<compile_context>
chip_gen: v5e
topology: v5e:2x2
jax: 0.10.0
libtpu: 0.0.40
codegen_flags: <defaults>
</compile_context>

<pallas_src>
import functools

import jax
import jax.numpy as jnp
from jax.experimental import pallas as pl
from jax.experimental.pallas import tpu as pltpu


# ---------------------------------------------------------------------------
# Fused LSTM + decoder kernel.  Grid iterates over time blocks; the per-step
# recurrence runs inside the body with h/c carried across grid steps in VMEM.
# ---------------------------------------------------------------------------
def lstm_decoder_kernel(x_ref, w0_ref, wr_ref, bg_ref, peep_ref, why_ref,
                        bhy_ref, wd_ref, bd_ref, out_ref,
                        h_sc, c_sc, y_sc, *, nlayers, nhid, tb, batch):
    @pl.when(pl.program_id(0) == 0)
    def _init():
        h_sc[...] = jnp.zeros_like(h_sc)
        c_sc[...] = jnp.zeros_like(c_sc)

    def timestep(t):
        x = x_ref[t]                                    # (B, ninput) bf16
        y = jnp.zeros((batch, nhid), jnp.float32)
        h_below = None                                  # bf16 h of layer below
        for j in range(nlayers):                        # small & static
            h_prev = h_sc[j]                            # (B, nhid) bf16
            c_prev = c_sc[j]                            # (B, nhid) f32

            # Single fused-K gate matmul per layer (gates packed [i|f|o|g]).
            if j == 0:
                # `last_hn1` (h_ln) is never updated in the reference -> it is
                # identically zero; its weight rows were dropped host-side.
                lhs = jnp.concatenate([x, h_prev], axis=-1)
                z = jnp.dot(lhs, w0_ref[...],
                            preferred_element_type=jnp.float32)
            else:
                lhs = jnp.concatenate([x, h_below, h_prev], axis=-1)
                z = jnp.dot(lhs, wr_ref[j - 1],
                            preferred_element_type=jnp.float32)
            # Constants re-read from VMEM per use (cheap loads, no pinned vregs).
            z = z + bg_ref[j:j + 1, :]

            zi = z[:, 0 * nhid:1 * nhid]
            zf = z[:, 1 * nhid:2 * nhid]
            zo = z[:, 2 * nhid:3 * nhid]
            zg = z[:, 3 * nhid:4 * nhid]

            i_t = jax.nn.sigmoid(zi + peep_ref[j, 0:1, :] * c_prev)
            f_t = jax.nn.sigmoid(zf + peep_ref[j, 1:2, :] * c_prev)
            c_t = i_t * jnp.tanh(zg) + f_t * c_prev
            o_t = jax.nn.sigmoid(zo + peep_ref[j, 2:3, :] * c_prev)  # old c
            h_t = o_t * jnp.tanh(c_t)

            h_bf = h_t.astype(jnp.bfloat16)             # h only feeds matmuls
            h_sc[j] = h_bf
            c_sc[j] = c_t
            h_below = h_bf

            # linear_hy as per-layer accumulation (== concat(h) @ why + bhy,
            # without a lane-dim concatenate).
            y = y + jnp.dot(h_bf, why_ref[j],
                            preferred_element_type=jnp.float32)

        y_sc[t] = y + bhy_ref[...]                      # dense f32 (B, nhid)

    # Time loop, manually unrolled by 2 to expose the layer wavefront.
    @pl.loop(0, tb // 2)
    def _pair(s):
        t0 = 2 * s
        timestep(t0)
        timestep(t0 + 1)

    if tb % 2:                                          # static remainder
        timestep(tb - 1)

    # Fused decoder over the whole time block: one dense MXU tile, logits
    # written straight to HBM (lane-dense (tb*B, V) f32 block).
    y_blk = y_sc[...].reshape(tb * batch, nhid).astype(jnp.bfloat16)
    logits = jnp.dot(y_blk, wd_ref[...], preferred_element_type=jnp.float32)
    out_ref[...] = logits + bd_ref[...]


def _pick_time_block(seq_len, target=32):
    tb = min(seq_len, target)
    while seq_len % tb:
        tb -= 1
    return tb


def lstm_decoder_forward(emb, params):
    """emb: (S, B, ninput) bf16 -> logits (S, B, nvoc) f32."""
    S, B, ninput = emb.shape
    nlayers, vec_sz, four_nhid = params["w_all"].shape
    nhid = four_nhid // 4
    nvoc = params["wd"].shape[1]
    tb = _pick_time_block(S)

    w_all = params["w_all"]
    # Layer-0 weight with the h_ln rows removed: [x-rows | h_lt-rows].
    w0 = jnp.concatenate([w_all[0, :ninput, :], w_all[0, ninput + nhid:, :]],
                         axis=0).astype(jnp.bfloat16)          # (ninput+nhid, 4*nhid)
    if nlayers > 1:
        wr = w_all[1:].astype(jnp.bfloat16)                    # (nlayers-1, vec_sz, 4*nhid)
    else:
        wr = jnp.zeros((1, vec_sz, four_nhid), jnp.bfloat16)   # never read
    why = params["why"].reshape(nlayers, nhid, nhid).astype(jnp.bfloat16)
    wd = params["wd"].astype(jnp.bfloat16)
    bg, peep, bhy, bd = params["bg"], params["peep"], params["bhy"], params["bd"]

    kernel = functools.partial(lstm_decoder_kernel, nlayers=nlayers, nhid=nhid,
                               tb=tb, batch=B)

    def const_spec(shape):
        return pl.BlockSpec(shape, lambda i, _n=len(shape): (0,) * _n)

    out = pl.pallas_call(
        kernel,
        out_shape=jax.ShapeDtypeStruct((S * B, nvoc), jnp.float32),
        grid=(S // tb,),
        in_specs=[
            pl.BlockSpec((tb, B, ninput), lambda i: (i, 0, 0)),   # x time block
            const_spec(w0.shape),
            const_spec(wr.shape),
            const_spec(bg.shape),
            const_spec(peep.shape),
            const_spec(why.shape),
            const_spec(bhy.shape),
            const_spec(wd.shape),
            const_spec(bd.shape),
        ],
        out_specs=pl.BlockSpec((tb * B, nvoc), lambda i: (i, 0)),
        scratch_shapes=[
            pltpu.VMEM((nlayers, B, nhid), jnp.bfloat16),   # h (matmul operand)
            pltpu.VMEM((nlayers, B, nhid), jnp.float32),    # c (f32 gate numerics)
            pltpu.VMEM((tb, B, nhid), jnp.float32),         # y of current block
        ],
        compiler_params=pltpu.CompilerParams(
            dimension_semantics=("arbitrary",),             # sequential recurrence
            vmem_limit_bytes=32 * 1024 * 1024),
    )(emb, w0, wr, bg, peep, why, bhy, wd, bd)
    return out.reshape(S, B, nvoc)


# ---------------------------------------------------------------------------
# Full LMModel forward (embedding gather is glue in plain JAX, on a bf16 table)
# ---------------------------------------------------------------------------
def lmmodel_forward(tokens, params):
    emb = params["emb"].astype(jnp.bfloat16)[tokens]   # (S, B, ninput); dropout=id
    return lstm_decoder_forward(emb, params)           # (S, B, nvoc) f32


# ---------------------------------------------------------------------------
# Deterministic parameter init (mirrors shapes from LMModel.__init__)
# ---------------------------------------------------------------------------
def init_params(key, nvoc, ninput, nhid, nlayers):
    ks = jax.random.split(key, 8)
    vec_sz = ninput + 2 * nhid
    lin_scale = 1.0 / jnp.sqrt(vec_sz)
    hy_scale = 1.0 / jnp.sqrt(nhid * nlayers)
    params = {
        "emb": jax.random.uniform(ks[1], (nvoc, ninput), minval=-0.1, maxval=0.1,
                                  dtype=jnp.float32),
        # Gate Linear(vec_sz -> nhid) x 4 gates packed as [i|f|o|g], pre-
        # transposed; input rows ordered [x | h_ln | h_lt] (matches torch.cat).
        "w_all": jax.random.uniform(ks[0], (nlayers, vec_sz, 4 * nhid),
                                    minval=-lin_scale, maxval=lin_scale,
                                    dtype=jnp.float32),
        "bg": jax.random.uniform(ks[2], (nlayers, 4 * nhid),
                                 minval=-lin_scale, maxval=lin_scale,
                                 dtype=jnp.float32),
        # peephole params linear_ci / linear_cf / linear_co (randn in torch)
        "peep": jax.random.normal(ks[3], (nlayers, 3, nhid), dtype=jnp.float32),
        # linear_hy: (nhid*nlayers -> nhid), pre-transposed
        "why": jax.random.uniform(ks[4], (nlayers * nhid, nhid),
                                  minval=-hy_scale, maxval=hy_scale,
                                  dtype=jnp.float32),
        "bhy": jax.random.uniform(ks[5], (1, nhid),
                                  minval=-hy_scale, maxval=hy_scale,
                                  dtype=jnp.float32),
        # decoder: Linear(nhid -> nvoc), weight uniform(-0.1, 0.1), bias zeros
        "wd": jax.random.uniform(ks[6], (nhid, nvoc), minval=-0.1, maxval=0.1,
                                 dtype=jnp.float32),
        "bd": jnp.zeros((1, nvoc), jnp.float32),
    }
    return params


# ---------------------------------------------------------------------------
# Pure-JAX f32 reference (same math, no Pallas) for validation
# ---------------------------------------------------------------------------
def reference_forward(tokens, params, nlayers, nhid):
    emb = params["emb"][tokens]
    S, B, _ = emb.shape

    def step(carry, x):
        h, c = carry                                    # (nlayers, B, nhid) each
        h_new, c_new = [], []
        h_below = jnp.zeros((B, nhid), jnp.float32)     # last_hn1 (never updated)
        for j in range(nlayers):
            v = jnp.concatenate([x, h_below, h[j]], axis=-1)
            z = v @ params["w_all"][j] + params["bg"][j]
            zi, zf, zo, zg = jnp.split(z, 4, axis=-1)
            ci, cf, co = params["peep"][j]
            i_t = jax.nn.sigmoid(zi + ci * c[j])
            f_t = jax.nn.sigmoid(zf + cf * c[j])
            c_t = i_t * jnp.tanh(zg) + f_t * c[j]
            o_t = jax.nn.sigmoid(zo + co * c[j])
            h_t = o_t * jnp.tanh(c_t)
            h_new.append(h_t)
            c_new.append(c_t)
            h_below = h_t
        y = jnp.concatenate(h_new, -1) @ params["why"] + params["bhy"][0]
        return (jnp.stack(h_new), jnp.stack(c_new)), y

    init = (jnp.zeros((nlayers, B, nhid), jnp.float32),
            jnp.zeros((nlayers, B, nhid), jnp.float32))
    _, ys = jax.lax.scan(step, init, emb)
    dec = ys.reshape(S * B, nhid) @ params["wd"] + params["bd"][0]
    return dec.reshape(S, B, -1)


if __name__ == "__main__":
    nvoc, ninput, nhid, nlayers = 256, 128, 128, 3   # 8/128-aligned small config
    seq_len, batch = 64, 8

    key = jax.random.PRNGKey(0)
    k_tok, k_par = jax.random.split(key)
    tokens = jax.random.randint(k_tok, (seq_len, batch), 0, nvoc, dtype=jnp.int32)
    params = init_params(k_par, nvoc, ninput, nhid, nlayers)

    forward = jax.jit(lmmodel_forward)
    out = jax.block_until_ready(forward(tokens, params))

    ref_fn = jax.jit(functools.partial(reference_forward,
                                       nlayers=nlayers, nhid=nhid))
    ref = jax.block_until_ready(ref_fn(tokens, params))

    assert out.shape == (seq_len, batch, nvoc)
    # bf16 matmul operands (f32 accumulation) vs f32 reference -> loose tolerance.
    assert jnp.allclose(out, ref, atol=1e-2, rtol=1e-2), "mismatch vs reference"
    print("KERNEL_OK")
</pallas_src>

<mosaic_0001>
module attributes {stable_mosaic.version = 11 : i64} {
  func.func @lstm_decoder_kernel(%arg0: i32, %arg1: memref<32x8x128xbf16, #tpu.memory_space<vmem>>, %arg2: memref<256x512xbf16, #tpu.memory_space<vmem>>, %arg3: memref<2x384x512xbf16, #tpu.memory_space<vmem>>, %arg4: memref<3x512xf32, #tpu.memory_space<vmem>>, %arg5: memref<3x3x128xf32, #tpu.memory_space<vmem>>, %arg6: memref<3x128x128xbf16, #tpu.memory_space<vmem>>, %arg7: memref<1x128xf32, #tpu.memory_space<vmem>>, %arg8: memref<128x256xbf16, #tpu.memory_space<vmem>>, %arg9: memref<1x256xf32, #tpu.memory_space<vmem>>, %arg10: memref<256x256xf32, #tpu.memory_space<vmem>>, %arg11: memref<3x8x128xbf16, #tpu.memory_space<vmem>>, %arg12: memref<3x8x128xf32, #tpu.memory_space<vmem>>, %arg13: memref<32x8x128xf32, #tpu.memory_space<vmem>>) attributes {dimension_semantics = [#tpu.dimension_semantics<arbitrary>], iteration_bounds = array<i64: 2>, scalar_prefetch = 0 : i64, scratch_operands = 3 : i64, tpu.core_type = #tpu.core_type<tc>, window_params = [{transform_indices = @transform_0, window_bounds = array<i64: 32, 8, 128>}, {pipeline_mode = #tpu.pipeline_mode<synchronous>, transform_indices = @transform_1, window_bounds = array<i64: 256, 512>}, {pipeline_mode = #tpu.pipeline_mode<synchronous>, transform_indices = @transform_2, window_bounds = array<i64: 2, 384, 512>}, {pipeline_mode = #tpu.pipeline_mode<synchronous>, transform_indices = @transform_3, window_bounds = array<i64: 3, 512>}, {pipeline_mode = #tpu.pipeline_mode<synchronous>, transform_indices = @transform_4, window_bounds = array<i64: 3, 3, 128>}, {pipeline_mode = #tpu.pipeline_mode<synchronous>, transform_indices = @transform_5, window_bounds = array<i64: 3, 128, 128>}, {pipeline_mode = #tpu.pipeline_mode<synchronous>, transform_indices = @transform_6, window_bounds = array<i64: 1, 128>}, {pipeline_mode = #tpu.pipeline_mode<synchronous>, transform_indices = @transform_7, window_bounds = array<i64: 128, 256>}, {pipeline_mode = #tpu.pipeline_mode<synchronous>, transform_indices = @transform_8, window_bounds = array<i64: 1, 256>}, {transform_indices = @transform_9, window_bounds = array<i64: 256, 256>}]} {
    %c0_i32 = arith.constant 0 : i32
    %0 = arith.cmpi eq, %arg0, %c0_i32 : i32
    %1 = arith.extui %0 : i1 to i32
    %c0_i32_0 = arith.constant 0 : i32
    %2 = arith.cmpi ne, %1, %c0_i32_0 : i32
    scf.if %2 {
      %cst_11 = arith.constant 0.000000e+00 : bf16
      %13 = vector.broadcast %cst_11 : bf16 to vector<3x8x128xbf16>
      %c0_12 = arith.constant 0 : index
      %c0_13 = arith.constant 0 : index
      %c0_14 = arith.constant 0 : index
      %14 = vector.load %arg11[%c0_12, %c0_13, %c0_14] : memref<3x8x128xbf16, #tpu.memory_space<vmem>>, vector<3x8x128xbf16>
      tpu.vector_store %arg11[%c0_12, %c0_13, %c0_14], %13 {strides = array<i32>} : memref<3x8x128xbf16, #tpu.memory_space<vmem>>, vector<3x8x128xbf16>,
      %cst_15 = arith.constant 0.000000e+00 : f32
      %15 = vector.broadcast %cst_15 : f32 to vector<3x8x128xf32>
      %c0_16 = arith.constant 0 : index
      %c0_17 = arith.constant 0 : index
      %c0_18 = arith.constant 0 : index
      %16 = vector.load %arg12[%c0_16, %c0_17, %c0_18] : memref<3x8x128xf32, #tpu.memory_space<vmem>>, vector<3x8x128xf32>
      tpu.vector_store %arg12[%c0_16, %c0_17, %c0_18], %15 {strides = array<i32>} : memref<3x8x128xf32, #tpu.memory_space<vmem>>, vector<3x8x128xf32>,
    } else {
    }
    %c0_i32_1 = arith.constant 0 : i32
    %c16_i32 = arith.constant 16 : i32
    %3 = arith.addi %c0_i32_1, %c16_i32 : i32
    %c1_i32 = arith.constant 1 : i32
    scf.for %arg14 = %c0_i32_1 to %3 step %c1_i32  : i32 {
      %c1_i32_11 = arith.constant 1 : i32
      %13 = arith.muli %arg14, %c1_i32_11 : i32
      %c0_i32_12 = arith.constant 0 : i32
      %14 = arith.addi %c0_i32_12, %13 : i32
      %c2_i32 = arith.constant 2 : i32
      %15 = arith.muli %c2_i32, %14 : i32
      %16 = arith.index_cast %15 : i32 to index
      %c0_13 = arith.constant 0 : index
      %c0_14 = arith.constant 0 : index
      %17 = vector.load %arg1[%16, %c0_13, %c0_14] : memref<32x8x128xbf16, #tpu.memory_space<vmem>>, vector<1x8x128xbf16>
      %18 = vector.shape_cast %17 : vector<1x8x128xbf16> to vector<8x128xbf16>
      %cst_15 = arith.constant 0.000000e+00 : f32
      %19 = vector.broadcast %cst_15 : f32 to vector<8x128xf32>
      %c0_16 = arith.constant 0 : index
      %c0_17 = arith.constant 0 : index
      %c0_18 = arith.constant 0 : index
      %20 = vector.load %arg11[%c0_16, %c0_17, %c0_18] : memref<3x8x128xbf16, #tpu.memory_space<vmem>>, vector<1x8x128xbf16>
      %21 = vector.shape_cast %20 : vector<1x8x128xbf16> to vector<8x128xbf16>
      %c0_19 = arith.constant 0 : index
      %c0_20 = arith.constant 0 : index
      %c0_21 = arith.constant 0 : index
      %22 = vector.load %arg12[%c0_19, %c0_20, %c0_21] : memref<3x8x128xf32, #tpu.memory_space<vmem>>, vector<1x8x128xf32>
      %23 = vector.shape_cast %22 : vector<1x8x128xf32> to vector<8x128xf32>
      %24 = tpu.concatenate %18, %21 in 1 : vector<8x128xbf16>, vector<8x128xbf16> -> vector<8x256xbf16>
      %c0_22 = arith.constant 0 : index
      %c0_23 = arith.constant 0 : index
      %25 = vector.load %arg2[%c0_22, %c0_23] : memref<256x512xbf16, #tpu.memory_space<vmem>>, vector<256x512xbf16>
      %cst_24 = arith.constant dense<0.000000e+00> : vector<8x512xf32>
      %26 = tpu.matmul %24, %25, %cst_24 {dimension_numbers = #tpu.dot_dimension_numbers<[1], [0], [0], [1], [0, 0, 1, 1], [], []>} : vector<8x256xbf16>, vector<256x512xbf16>, vector<8x512xf32> -> vector<8x512xf32>
      %c0_25 = arith.constant 0 : index
      %c0_26 = arith.constant 0 : index
      %27 = vector.load %arg4[%c0_25, %c0_26] : memref<3x512xf32, #tpu.memory_space<vmem>>, vector<1x512xf32>
      %28 = vector.broadcast %27 : vector<1x512xf32> to vector<8x512xf32>
      %29 = arith.addf %26, %28 : vector<8x512xf32>
      %30 = vector.extract_strided_slice %29 {offsets = [0, 0], sizes = [8, 128], strides = [1, 1]} : vector<8x512xf32> to vector<8x128xf32>
      %31 = vector.extract_strided_slice %29 {offsets = [0, 128], sizes = [8, 128], strides = [1, 1]} : vector<8x512xf32> to vector<8x128xf32>
      %32 = vector.extract_strided_slice %29 {offsets = [0, 256], sizes = [8, 128], strides = [1, 1]} : vector<8x512xf32> to vector<8x128xf32>
      %33 = vector.extract_strided_slice %29 {offsets = [0, 384], sizes = [8, 128], strides = [1, 1]} : vector<8x512xf32> to vector<8x128xf32>
      %c0_27 = arith.constant 0 : index
      %c0_28 = arith.constant 0 : index
      %c0_29 = arith.constant 0 : index
      %34 = vector.load %arg5[%c0_27, %c0_28, %c0_29] : memref<3x3x128xf32, #tpu.memory_space<vmem>>, vector<1x1x128xf32>
      %35 = vector.shape_cast %34 : vector<1x1x128xf32> to vector<1x128xf32>
      %36 = vector.broadcast %35 : vector<1x128xf32> to vector<8x128xf32>
      %37 = arith.mulf %36, %23 : vector<8x128xf32>
      %38 = arith.addf %30, %37 : vector<8x128xf32>
      %39 = arith.negf %38 : vector<8x128xf32>
      %40 = math.exp %39 : vector<8x128xf32>
      %cst_30 = arith.constant 1.000000e+00 : f32
      %41 = vector.broadcast %cst_30 : f32 to vector<8x128xf32>
      %42 = arith.addf %41, %40 : vector<8x128xf32>
      %43 = arith.divf %41, %42 : vector<8x128xf32>
      %c0_31 = arith.constant 0 : index
      %c1 = arith.constant 1 : index
      %c0_32 = arith.constant 0 : index
      %44 = vector.load %arg5[%c0_31, %c1, %c0_32] : memref<3x3x128xf32, #tpu.memory_space<vmem>>, vector<1x1x128xf32>
      %45 = vector.shape_cast %44 : vector<1x1x128xf32> to vector<1x128xf32>
      %46 = vector.broadcast %45 : vector<1x128xf32> to vector<8x128xf32>
      %47 = arith.mulf %46, %23 : vector<8x128xf32>
      %48 = arith.addf %31, %47 : vector<8x128xf32>
      %49 = arith.negf %48 : vector<8x128xf32>
      %50 = math.exp %49 : vector<8x128xf32>
      %cst_33 = arith.constant 1.000000e+00 : f32
      %51 = vector.broadcast %cst_33 : f32 to vector<8x128xf32>
      %52 = arith.addf %51, %50 : vector<8x128xf32>
      %53 = arith.divf %51, %52 : vector<8x128xf32>
      %54 = math.tanh %33 : vector<8x128xf32>
      %55 = arith.mulf %43, %54 : vector<8x128xf32>
      %56 = arith.mulf %53, %23 : vector<8x128xf32>
      %57 = arith.addf %55, %56 : vector<8x128xf32>
      %c0_34 = arith.constant 0 : index
      %c2 = arith.constant 2 : index
      %c0_35 = arith.constant 0 : index
      %58 = vector.load %arg5[%c0_34, %c2, %c0_35] : memref<3x3x128xf32, #tpu.memory_space<vmem>>, vector<1x1x128xf32>
      %59 = vector.shape_cast %58 : vector<1x1x128xf32> to vector<1x128xf32>
      %60 = vector.broadcast %59 : vector<1x128xf32> to vector<8x128xf32>
      %61 = arith.mulf %60, %23 : vector<8x128xf32>
      %62 = arith.addf %32, %61 : vector<8x128xf32>
      %63 = arith.negf %62 : vector<8x128xf32>
      %64 = math.exp %63 : vector<8x128xf32>
      %cst_36 = arith.constant 1.000000e+00 : f32
      %65 = vector.broadcast %cst_36 : f32 to vector<8x128xf32>
      %66 = arith.addf %65, %64 : vector<8x128xf32>
      %67 = arith.divf %65, %66 : vector<8x128xf32>
      %68 = math.tanh %57 : vector<8x128xf32>
      %69 = arith.mulf %67, %68 : vector<8x128xf32>
      %70 = arith.truncf %69 : vector<8x128xf32> to vector<8x128xbf16>
      %c0_37 = arith.constant 0 : index
      %c0_38 = arith.constant 0 : index
      %c0_39 = arith.constant 0 : index
      %71 = vector.load %arg11[%c0_37, %c0_38, %c0_39] : memref<3x8x128xbf16, #tpu.memory_space<vmem>>, vector<1x8x128xbf16>
      %72 = vector.shape_cast %71 : vector<1x8x128xbf16> to vector<8x128xbf16>
      %73 = vector.shape_cast %70 : vector<8x128xbf16> to vector<1x8x128xbf16>
      tpu.vector_store %arg11[%c0_37, %c0_38, %c0_39], %73 {strides = array<i32>} : memref<3x8x128xbf16, #tpu.memory_space<vmem>>, vector<1x8x128xbf16>,
      %c0_40 = arith.constant 0 : index
      %c0_41 = arith.constant 0 : index
      %c0_42 = arith.constant 0 : index
      %74 = vector.load %arg12[%c0_40, %c0_41, %c0_42] : memref<3x8x128xf32, #tpu.memory_space<vmem>>, vector<1x8x128xf32>
      %75 = vector.shape_cast %74 : vector<1x8x128xf32> to vector<8x128xf32>
      %76 = vector.shape_cast %57 : vector<8x128xf32> to vector<1x8x128xf32>
      tpu.vector_store %arg12[%c0_40, %c0_41, %c0_42], %76 {strides = array<i32>} : memref<3x8x128xf32, #tpu.memory_space<vmem>>, vector<1x8x128xf32>,
      %c0_43 = arith.constant 0 : index
      %c0_44 = arith.constant 0 : index
      %c0_45 = arith.constant 0 : index
      %77 = vector.load %arg6[%c0_43, %c0_44, %c0_45] : memref<3x128x128xbf16, #tpu.memory_space<vmem>>, vector<1x128x128xbf16>
      %78 = vector.shape_cast %77 : vector<1x128x128xbf16> to vector<128x128xbf16>
      %cst_46 = arith.constant dense<0.000000e+00> : vector<8x128xf32>
      %79 = tpu.matmul %70, %78, %cst_46 {dimension_numbers = #tpu.dot_dimension_numbers<[1], [0], [0], [1], [0, 0, 1, 1], [], []>} : vector<8x128xbf16>, vector<128x128xbf16>, vector<8x128xf32> -> vector<8x128xf32>
      %80 = arith.addf %19, %79 : vector<8x128xf32>
      %c1_47 = arith.constant 1 : index
      %c0_48 = arith.constant 0 : index
      %c0_49 = arith.constant 0 : index
      %81 = vector.load %arg11[%c1_47, %c0_48, %c0_49] : memref<3x8x128xbf16, #tpu.memory_space<vmem>>, vector<1x8x128xbf16>
      %82 = vector.shape_cast %81 : vector<1x8x128xbf16> to vector<8x128xbf16>
      %c1_50 = arith.constant 1 : index
      %c0_51 = arith.constant 0 : index
      %c0_52 = arith.constant 0 : index
      %83 = vector.load %arg12[%c1_50, %c0_51, %c0_52] : memref<3x8x128xf32, #tpu.memory_space<vmem>>, vector<1x8x128xf32>
      %84 = vector.shape_cast %83 : vector<1x8x128xf32> to vector<8x128xf32>
      %85 = tpu.concatenate %18, %70, %82 in 1 : vector<8x128xbf16>, vector<8x128xbf16>, vector<8x128xbf16> -> vector<8x384xbf16>
      %c0_53 = arith.constant 0 : index
      %c0_54 = arith.constant 0 : index
      %c0_55 = arith.constant 0 : index
      %86 = vector.load %arg3[%c0_53, %c0_54, %c0_55] : memref<2x384x512xbf16, #tpu.memory_space<vmem>>, vector<1x384x512xbf16>
      %87 = vector.shape_cast %86 : vector<1x384x512xbf16> to vector<384x512xbf16>
      %cst_56 = arith.constant dense<0.000000e+00> : vector<8x512xf32>
      %88 = tpu.matmul %85, %87, %cst_56 {dimension_numbers = #tpu.dot_dimension_numbers<[1], [0], [0], [1], [0, 0, 1, 1], [], []>} : vector<8x384xbf16>, vector<384x512xbf16>, vector<8x512xf32> -> vector<8x512xf32>
      %c1_57 = arith.constant 1 : index
      %c0_58 = arith.constant 0 : index
      %89 = vector.load %arg4[%c1_57, %c0_58] : memref<3x512xf32, #tpu.memory_space<vmem>>, vector<1x512xf32>
      %90 = vector.broadcast %89 : vector<1x512xf32> to vector<8x512xf32>
      %91 = arith.addf %88, %90 : vector<8x512xf32>
      %92 = vector.extract_strided_slice %91 {offsets = [0, 0], sizes = [8, 128], strides = [1, 1]} : vector<8x512xf32> to vector<8x128xf32>
      %93 = vector.extract_strided_slice %91 {offsets = [0, 128], sizes = [8, 128], strides = [1, 1]} : vector<8x512xf32> to vector<8x128xf32>
      %94 = vector.extract_strided_slice %91 {offsets = [0, 256], sizes = [8, 128], strides = [1, 1]} : vector<8x512xf32> to vector<8x128xf32>
      %95 = vector.extract_strided_slice %91 {offsets = [0, 384], sizes = [8, 128], strides = [1, 1]} : vector<8x512xf32> to vector<8x128xf32>
      %c1_59 = arith.constant 1 : index
      %c0_60 = arith.constant 0 : index
      %c0_61 = arith.constant 0 : index
      %96 = vector.load %arg5[%c1_59, %c0_60, %c0_61] : memref<3x3x128xf32, #tpu.memory_space<vmem>>, vector<1x1x128xf32>
      %97 = vector.shape_cast %96 : vector<1x1x128xf32> to vector<1x128xf32>
      %98 = vector.broadcast %97 : vector<1x128xf32> to vector<8x128xf32>
      %99 = arith.mulf %98, %84 : vector<8x128xf32>
      %100 = arith.addf %92, %99 : vector<8x128xf32>
      %101 = arith.negf %100 : vector<8x128xf32>
      %102 = math.exp %101 : vector<8x128xf32>
      %cst_62 = arith.constant 1.000000e+00 : f32
      %103 = vector.broadcast %cst_62 : f32 to vector<8x128xf32>
      %104 = arith.addf %103, %102 : vector<8x128xf32>
      %105 = arith.divf %103, %104 : vector<8x128xf32>
      %c1_63 = arith.constant 1 : index
      %c1_64 = arith.constant 1 : index
      %c0_65 = arith.constant 0 : index
      %106 = vector.load %arg5[%c1_63, %c1_64, %c0_65] : memref<3x3x128xf32, #tpu.memory_space<vmem>>, vector<1x1x128xf32>
      %107 = vector.shape_cast %106 : vector<1x1x128xf32> to vector<1x128xf32>
      %108 = vector.broadcast %107 : vector<1x128xf32> to vector<8x128xf32>
      %109 = arith.mulf %108, %84 : vector<8x128xf32>
      %110 = arith.addf %93, %109 : vector<8x128xf32>
      %111 = arith.negf %110 : vector<8x128xf32>
      %112 = math.exp %111 : vector<8x128xf32>
      %cst_66 = arith.constant 1.000000e+00 : f32
      %113 = vector.broadcast %cst_66 : f32 to vector<8x128xf32>
      %114 = arith.addf %113, %112 : vector<8x128xf32>
      %115 = arith.divf %113, %114 : vector<8x128xf32>
      %116 = math.tanh %95 : vector<8x128xf32>
      %117 = arith.mulf %105, %116 : vector<8x128xf32>
      %118 = arith.mulf %115, %84 : vector<8x128xf32>
      %119 = arith.addf %117, %118 : vector<8x128xf32>
      %c1_67 = arith.constant 1 : index
      %c2_68 = arith.constant 2 : index
      %c0_69 = arith.constant 0 : index
      %120 = vector.load %arg5[%c1_67, %c2_68, %c0_69] : memref<3x3x128xf32, #tpu.memory_space<vmem>>, vector<1x1x128xf32>
      %121 = vector.shape_cast %120 : vector<1x1x128xf32> to vector<1x128xf32>
      %122 = vector.broadcast %121 : vector<1x128xf32> to vector<8x128xf32>
      %123 = arith.mulf %122, %84 : vector<8x128xf32>
      %124 = arith.addf %94, %123 : vector<8x128xf32>
      %125 = arith.negf %124 : vector<8x128xf32>
      %126 = math.exp %125 : vector<8x128xf32>
      %cst_70 = arith.constant 1.000000e+00 : f32
      %127 = vector.broadcast %cst_70 : f32 to vector<8x128xf32>
      %128 = arith.addf %127, %126 : vector<8x128xf32>
      %129 = arith.divf %127, %128 : vector<8x128xf32>
      %130 = math.tanh %119 : vector<8x128xf32>
      %131 = arith.mulf %129, %130 : vector<8x128xf32>
      %132 = arith.truncf %131 : vector<8x128xf32> to vector<8x128xbf16>
      %c1_71 = arith.constant 1 : index
      %c0_72 = arith.constant 0 : index
      %c0_73 = arith.constant 0 : index
      %133 = vector.load %arg11[%c1_71, %c0_72, %c0_73] : memref<3x8x128xbf16, #tpu.memory_space<vmem>>, vector<1x8x128xbf16>
      %134 = vector.shape_cast %133 : vector<1x8x128xbf16> to vector<8x128xbf16>
      %135 = vector.shape_cast %132 : vector<8x128xbf16> to vector<1x8x128xbf16>
      tpu.vector_store %arg11[%c1_71, %c0_72, %c0_73], %135 {strides = array<i32>} : memref<3x8x128xbf16, #tpu.memory_space<vmem>>, vector<1x8x128xbf16>,
      %c1_74 = arith.constant 1 : index
      %c0_75 = arith.constant 0 : index
      %c0_76 = arith.constant 0 : index
      %136 = vector.load %arg12[%c1_74, %c0_75, %c0_76] : memref<3x8x128xf32, #tpu.memory_space<vmem>>, vector<1x8x128xf32>
      %137 = vector.shape_cast %136 : vector<1x8x128xf32> to vector<8x128xf32>
      %138 = vector.shape_cast %119 : vector<8x128xf32> to vector<1x8x128xf32>
      tpu.vector_store %arg12[%c1_74, %c0_75, %c0_76], %138 {strides = array<i32>} : memref<3x8x128xf32, #tpu.memory_space<vmem>>, vector<1x8x128xf32>,
      %c1_77 = arith.constant 1 : index
      %c0_78 = arith.constant 0 : index
      %c0_79 = arith.constant 0 : index
      %139 = vector.load %arg6[%c1_77, %c0_78, %c0_79] : memref<3x128x128xbf16, #tpu.memory_space<vmem>>, vector<1x128x128xbf16>
      %140 = vector.shape_cast %139 : vector<1x128x128xbf16> to vector<128x128xbf16>
      %cst_80 = arith.constant dense<0.000000e+00> : vector<8x128xf32>
      %141 = tpu.matmul %132, %140, %cst_80 {dimension_numbers = #tpu.dot_dimension_numbers<[1], [0], [0], [1], [0, 0, 1, 1], [], []>} : vector<8x128xbf16>, vector<128x128xbf16>, vector<8x128xf32> -> vector<8x128xf32>
      %142 = arith.addf %80, %141 : vector<8x128xf32>
      %c2_81 = arith.constant 2 : index
      %c0_82 = arith.constant 0 : index
      %c0_83 = arith.constant 0 : index
      %143 = vector.load %arg11[%c2_81, %c0_82, %c0_83] : memref<3x8x128xbf16, #tpu.memory_space<vmem>>, vector<1x8x128xbf16>
      %144 = vector.shape_cast %143 : vector<1x8x128xbf16> to vector<8x128xbf16>
      %c2_84 = arith.constant 2 : index
      %c0_85 = arith.constant 0 : index
      %c0_86 = arith.constant 0 : index
      %145 = vector.load %arg12[%c2_84, %c0_85, %c0_86] : memref<3x8x128xf32, #tpu.memory_space<vmem>>, vector<1x8x128xf32>
      %146 = vector.shape_cast %145 : vector<1x8x128xf32> to vector<8x128xf32>
      %147 = tpu.concatenate %18, %132, %144 in 1 : vector<8x128xbf16>, vector<8x128xbf16>, vector<8x128xbf16> -> vector<8x384xbf16>
      %c1_87 = arith.constant 1 : index
      %c0_88 = arith.constant 0 : index
      %c0_89 = arith.constant 0 : index
      %148 = vector.load %arg3[%c1_87, %c0_88, %c0_89] : memref<2x384x512xbf16, #tpu.memory_space<vmem>>, vector<1x384x512xbf16>
      %149 = vector.shape_cast %148 : vector<1x384x512xbf16> to vector<384x512xbf16>
      %cst_90 = arith.constant dense<0.000000e+00> : vector<8x512xf32>
      %150 = tpu.matmul %147, %149, %cst_90 {dimension_numbers = #tpu.dot_dimension_numbers<[1], [0], [0], [1], [0, 0, 1, 1], [], []>} : vector<8x384xbf16>, vector<384x512xbf16>, vector<8x512xf32> -> vector<8x512xf32>
      %c2_91 = arith.constant 2 : index
      %c0_92 = arith.constant 0 : index
      %151 = vector.load %arg4[%c2_91, %c0_92] : memref<3x512xf32, #tpu.memory_space<vmem>>, vector<1x512xf32>
      %152 = vector.broadcast %151 : vector<1x512xf32> to vector<8x512xf32>
      %153 = arith.addf %150, %152 : vector<8x512xf32>
      %154 = vector.extract_strided_slice %153 {offsets = [0, 0], sizes = [8, 128], strides = [1, 1]} : vector<8x512xf32> to vector<8x128xf32>
      %155 = vector.extract_strided_slice %153 {offsets = [0, 128], sizes = [8, 128], strides = [1, 1]} : vector<8x512xf32> to vector<8x128xf32>
      %156 = vector.extract_strided_slice %153 {offsets = [0, 256], sizes = [8, 128], strides = [1, 1]} : vector<8x512xf32> to vector<8x128xf32>
      %157 = vector.extract_strided_slice %153 {offsets = [0, 384], sizes = [8, 128], strides = [1, 1]} : vector<8x512xf32> to vector<8x128xf32>
      %c2_93 = arith.constant 2 : index
      %c0_94 = arith.constant 0 : index
      %c0_95 = arith.constant 0 : index
      %158 = vector.load %arg5[%c2_93, %c0_94, %c0_95] : memref<3x3x128xf32, #tpu.memory_space<vmem>>, vector<1x1x128xf32>
      %159 = vector.shape_cast %158 : vector<1x1x128xf32> to vector<1x128xf32>
      %160 = vector.broadcast %159 : vector<1x128xf32> to vector<8x128xf32>
      %161 = arith.mulf %160, %146 : vector<8x128xf32>
      %162 = arith.addf %154, %161 : vector<8x128xf32>
      %163 = arith.negf %162 : vector<8x128xf32>
      %164 = math.exp %163 : vector<8x128xf32>
      %cst_96 = arith.constant 1.000000e+00 : f32
      %165 = vector.broadcast %cst_96 : f32 to vector<8x128xf32>
      %166 = arith.addf %165, %164 : vector<8x128xf32>
      %167 = arith.divf %165, %166 : vector<8x128xf32>
      %c2_97 = arith.constant 2 : index
      %c1_98 = arith.constant 1 : index
      %c0_99 = arith.constant 0 : index
      %168 = vector.load %arg5[%c2_97, %c1_98, %c0_99] : memref<3x3x128xf32, #tpu.memory_space<vmem>>, vector<1x1x128xf32>
      %169 = vector.shape_cast %168 : vector<1x1x128xf32> to vector<1x128xf32>
      %170 = vector.broadcast %169 : vector<1x128xf32> to vector<8x128xf32>
      %171 = arith.mulf %170, %146 : vector<8x128xf32>
      %172 = arith.addf %155, %171 : vector<8x128xf32>
      %173 = arith.negf %172 : vector<8x128xf32>
      %174 = math.exp %173 : vector<8x128xf32>
      %cst_100 = arith.constant 1.000000e+00 : f32
      %175 = vector.broadcast %cst_100 : f32 to vector<8x128xf32>
      %176 = arith.addf %175, %174 : vector<8x128xf32>
      %177 = arith.divf %175, %176 : vector<8x128xf32>
      %178 = math.tanh %157 : vector<8x128xf32>
      %179 = arith.mulf %167, %178 : vector<8x128xf32>
      %180 = arith.mulf %177, %146 : vector<8x128xf32>
      %181 = arith.addf %179, %180 : vector<8x128xf32>
      %c2_101 = arith.constant 2 : index
      %c2_102 = arith.constant 2 : index
      %c0_103 = arith.constant 0 : index
      %182 = vector.load %arg5[%c2_101, %c2_102, %c0_103] : memref<3x3x128xf32, #tpu.memory_space<vmem>>, vector<1x1x128xf32>
      %183 = vector.shape_cast %182 : vector<1x1x128xf32> to vector<1x128xf32>
      %184 = vector.broadcast %183 : vector<1x128xf32> to vector<8x128xf32>
      %185 = arith.mulf %184, %146 : vector<8x128xf32>
      %186 = arith.addf %156, %185 : vector<8x128xf32>
      %187 = arith.negf %186 : vector<8x128xf32>
      %188 = math.exp %187 : vector<8x128xf32>
      %cst_104 = arith.constant 1.000000e+00 : f32
      %189 = vector.broadcast %cst_104 : f32 to vector<8x128xf32>
      %190 = arith.addf %189, %188 : vector<8x128xf32>
      %191 = arith.divf %189, %190 : vector<8x128xf32>
      %192 = math.tanh %181 : vector<8x128xf32>
      %193 = arith.mulf %191, %192 : vector<8x128xf32>
      %194 = arith.truncf %193 : vector<8x128xf32> to vector<8x128xbf16>
      %c2_105 = arith.constant 2 : index
      %c0_106 = arith.constant 0 : index
      %c0_107 = arith.constant 0 : index
      %195 = vector.load %arg11[%c2_105, %c0_106, %c0_107] : memref<3x8x128xbf16, #tpu.memory_space<vmem>>, vector<1x8x128xbf16>
      %196 = vector.shape_cast %195 : vector<1x8x128xbf16> to vector<8x128xbf16>
      %197 = vector.shape_cast %194 : vector<8x128xbf16> to vector<1x8x128xbf16>
      tpu.vector_store %arg11[%c2_105, %c0_106, %c0_107], %197 {strides = array<i32>} : memref<3x8x128xbf16, #tpu.memory_space<vmem>>, vector<1x8x128xbf16>,
      %c2_108 = arith.constant 2 : index
      %c0_109 = arith.constant 0 : index
      %c0_110 = arith.constant 0 : index
      %198 = vector.load %arg12[%c2_108, %c0_109, %c0_110] : memref<3x8x128xf32, #tpu.memory_space<vmem>>, vector<1x8x128xf32>
      %199 = vector.shape_cast %198 : vector<1x8x128xf32> to vector<8x128xf32>
      %200 = vector.shape_cast %181 : vector<8x128xf32> to vector<1x8x128xf32>
      tpu.vector_store %arg12[%c2_108, %c0_109, %c0_110], %200 {strides = array<i32>} : memref<3x8x128xf32, #tpu.memory_space<vmem>>, vector<1x8x128xf32>,
      %c2_111 = arith.constant 2 : index
      %c0_112 = arith.constant 0 : index
      %c0_113 = arith.constant 0 : index
      %201 = vector.load %arg6[%c2_111, %c0_112, %c0_113] : memref<3x128x128xbf16, #tpu.memory_space<vmem>>, vector<1x128x128xbf16>
      %202 = vector.shape_cast %201 : vector<1x128x128xbf16> to vector<128x128xbf16>
      %cst_114 = arith.constant dense<0.000000e+00> : vector<8x128xf32>
      %203 = tpu.matmul %194, %202, %cst_114 {dimension_numbers = #tpu.dot_dimension_numbers<[1], [0], [0], [1], [0, 0, 1, 1], [], []>} : vector<8x128xbf16>, vector<128x128xbf16>, vector<8x128xf32> -> vector<8x128xf32>
      %204 = arith.addf %142, %203 : vector<8x128xf32>
      %c0_115 = arith.constant 0 : index
      %c0_116 = arith.constant 0 : index
      %205 = vector.load %arg7[%c0_115, %c0_116] : memref<1x128xf32, #tpu.memory_space<vmem>>, vector<1x128xf32>
      %206 = vector.broadcast %205 : vector<1x128xf32> to vector<8x128xf32>
      %207 = arith.addf %204, %206 : vector<8x128xf32>
      %208 = arith.index_cast %15 : i32 to index
      %c0_117 = arith.constant 0 : index
      %c0_118 = arith.constant 0 : index
      %209 = vector.load %arg13[%208, %c0_117, %c0_118] : memref<32x8x128xf32, #tpu.memory_space<vmem>>, vector<1x8x128xf32>
      %210 = vector.shape_cast %209 : vector<1x8x128xf32> to vector<8x128xf32>
      %211 = vector.shape_cast %207 : vector<8x128xf32> to vector<1x8x128xf32>
      tpu.vector_store %arg13[%208, %c0_117, %c0_118], %211 {strides = array<i32>} : memref<32x8x128xf32, #tpu.memory_space<vmem>>, vector<1x8x128xf32>,
      %c1_i32_119 = arith.constant 1 : i32
      %212 = arith.addi %15, %c1_i32_119 : i32
      %213 = arith.index_cast %212 : i32 to index
      %c0_120 = arith.constant 0 : index
      %c0_121 = arith.constant 0 : index
      %214 = vector.load %arg1[%213, %c0_120, %c0_121] : memref<32x8x128xbf16, #tpu.memory_space<vmem>>, vector<1x8x128xbf16>
      %215 = vector.shape_cast %214 : vector<1x8x128xbf16> to vector<8x128xbf16>
      %cst_122 = arith.constant 0.000000e+00 : f32
      %216 = vector.broadcast %cst_122 : f32 to vector<8x128xf32>
      %c0_123 = arith.constant 0 : index
      %c0_124 = arith.constant 0 : index
      %c0_125 = arith.constant 0 : index
      %217 = vector.load %arg11[%c0_123, %c0_124, %c0_125] : memref<3x8x128xbf16, #tpu.memory_space<vmem>>, vector<1x8x128xbf16>
      %218 = vector.shape_cast %217 : vector<1x8x128xbf16> to vector<8x128xbf16>
      %c0_126 = arith.constant 0 : index
      %c0_127 = arith.constant 0 : index
      %c0_128 = arith.constant 0 : index
      %219 = vector.load %arg12[%c0_126, %c0_127, %c0_128] : memref<3x8x128xf32, #tpu.memory_space<vmem>>, vector<1x8x128xf32>
      %220 = vector.shape_cast %219 : vector<1x8x128xf32> to vector<8x128xf32>
      %221 = tpu.concatenate %215, %218 in 1 : vector<8x128xbf16>, vector<8x128xbf16> -> vector<8x256xbf16>
      %c0_129 = arith.constant 0 : index
      %c0_130 = arith.constant 0 : index
      %222 = vector.load %arg2[%c0_129, %c0_130] : memref<256x512xbf16, #tpu.memory_space<vmem>>, vector<256x512xbf16>
      %cst_131 = arith.constant dense<0.000000e+00> : vector<8x512xf32>
      %223 = tpu.matmul %221, %222, %cst_131 {dimension_numbers = #tpu.dot_dimension_numbers<[1], [0], [0], [1], [0, 0, 1, 1], [], []>} : vector<8x256xbf16>, vector<256x512xbf16>, vector<8x512xf32> -> vector<8x512xf32>
      %c0_132 = arith.constant 0 : index
      %c0_133 = arith.constant 0 : index
      %224 = vector.load %arg4[%c0_132, %c0_133] : memref<3x512xf32, #tpu.memory_space<vmem>>, vector<1x512xf32>
      %225 = vector.broadcast %224 : vector<1x512xf32> to vector<8x512xf32>
      %226 = arith.addf %223, %225 : vector<8x512xf32>
      %227 = vector.extract_strided_slice %226 {offsets = [0, 0], sizes = [8, 128], strides = [1, 1]} : vector<8x512xf32> to vector<8x128xf32>
      %228 = vector.extract_strided_slice %226 {offsets = [0, 128], sizes = [8, 128], strides = [1, 1]} : vector<8x512xf32> to vector<8x128xf32>
      %229 = vector.extract_strided_slice %226 {offsets = [0, 256], sizes = [8, 128], strides = [1, 1]} : vector<8x512xf32> to vector<8x128xf32>
      %230 = vector.extract_strided_slice %226 {offsets = [0, 384], sizes = [8, 128], strides = [1, 1]} : vector<8x512xf32> to vector<8x128xf32>
      %c0_134 = arith.constant 0 : index
      %c0_135 = arith.constant 0 : index
      %c0_136 = arith.constant 0 : index
      %231 = vector.load %arg5[%c0_134, %c0_135, %c0_136] : memref<3x3x128xf32, #tpu.memory_space<vmem>>, vector<1x1x128xf32>
      %232 = vector.shape_cast %231 : vector<1x1x128xf32> to vector<1x128xf32>
      %233 = vector.broadcast %232 : vector<1x128xf32> to vector<8x128xf32>
      %234 = arith.mulf %233, %220 : vector<8x128xf32>
      %235 = arith.addf %227, %234 : vector<8x128xf32>
      %236 = arith.negf %235 : vector<8x128xf32>
      %237 = math.exp %236 : vector<8x128xf32>
      %cst_137 = arith.constant 1.000000e+00 : f32
      %238 = vector.broadcast %cst_137 : f32 to vector<8x128xf32>
      %239 = arith.addf %238, %237 : vector<8x128xf32>
      %240 = arith.divf %238, %239 : vector<8x128xf32>
      %c0_138 = arith.constant 0 : index
      %c1_139 = arith.constant 1 : index
      %c0_140 = arith.constant 0 : index
      %241 = vector.load %arg5[%c0_138, %c1_139, %c0_140] : memref<3x3x128xf32, #tpu.memory_space<vmem>>, vector<1x1x128xf32>
      %242 = vector.shape_cast %241 : vector<1x1x128xf32> to vector<1x128xf32>
      %243 = vector.broadcast %242 : vector<1x128xf32> to vector<8x128xf32>
      %244 = arith.mulf %243, %220 : vector<8x128xf32>
      %245 = arith.addf %228, %244 : vector<8x128xf32>
      %246 = arith.negf %245 : vector<8x128xf32>
      %247 = math.exp %246 : vector<8x128xf32>
      %cst_141 = arith.constant 1.000000e+00 : f32
      %248 = vector.broadcast %cst_141 : f32 to vector<8x128xf32>
      %249 = arith.addf %248, %247 : vector<8x128xf32>
      %250 = arith.divf %248, %249 : vector<8x128xf32>
      %251 = math.tanh %230 : vector<8x128xf32>
      %252 = arith.mulf %240, %251 : vector<8x128xf32>
      %253 = arith.mulf %250, %220 : vector<8x128xf32>
      %254 = arith.addf %252, %253 : vector<8x128xf32>
      %c0_142 = arith.constant 0 : index
      %c2_143 = arith.constant 2 : index
      %c0_144 = arith.constant 0 : index
      %255 = vector.load %arg5[%c0_142, %c2_143, %c0_144] : memref<3x3x128xf32, #tpu.memory_space<vmem>>, vector<1x1x128xf32>
      %256 = vector.shape_cast %255 : vector<1x1x128xf32> to vector<1x128xf32>
      %257 = vector.broadcast %256 : vector<1x128xf32> to vector<8x128xf32>
      %258 = arith.mulf %257, %220 : vector<8x128xf32>
      %259 = arith.addf %229, %258 : vector<8x128xf32>
      %260 = arith.negf %259 : vector<8x128xf32>
      %261 = math.exp %260 : vector<8x128xf32>
      %cst_145 = arith.constant 1.000000e+00 : f32
      %262 = vector.broadcast %cst_145 : f32 to vector<8x128xf32>
      %263 = arith.addf %262, %261 : vector<8x128xf32>
      %264 = arith.divf %262, %263 : vector<8x128xf32>
      %265 = math.tanh %254 : vector<8x128xf32>
      %266 = arith.mulf %264, %265 : vector<8x128xf32>
      %267 = arith.truncf %266 : vector<8x128xf32> to vector<8x128xbf16>
      %c0_146 = arith.constant 0 : index
      %c0_147 = arith.constant 0 : index
      %c0_148 = arith.constant 0 : index
      %268 = vector.load %arg11[%c0_146, %c0_147, %c0_148] : memref<3x8x128xbf16, #tpu.memory_space<vmem>>, vector<1x8x128xbf16>
      %269 = vector.shape_cast %268 : vector<1x8x128xbf16> to vector<8x128xbf16>
      %270 = vector.shape_cast %267 : vector<8x128xbf16> to vector<1x8x128xbf16>
      tpu.vector_store %arg11[%c0_146, %c0_147, %c0_148], %270 {strides = array<i32>} : memref<3x8x128xbf16, #tpu.memory_space<vmem>>, vector<1x8x128xbf16>,
      %c0_149 = arith.constant 0 : index
      %c0_150 = arith.constant 0 : index
      %c0_151 = arith.constant 0 : index
      %271 = vector.load %arg12[%c0_149, %c0_150, %c0_151] : memref<3x8x128xf32, #tpu.memory_space<vmem>>, vector<1x8x128xf32>
      %272 = vector.shape_cast %271 : vector<1x8x128xf32> to vector<8x128xf32>
      %273 = vector.shape_cast %254 : vector<8x128xf32> to vector<1x8x128xf32>
      tpu.vector_store %arg12[%c0_149, %c0_150, %c0_151], %273 {strides = array<i32>} : memref<3x8x128xf32, #tpu.memory_space<vmem>>, vector<1x8x128xf32>,
      %c0_152 = arith.constant 0 : index
      %c0_153 = arith.constant 0 : index
      %c0_154 = arith.constant 0 : index
      %274 = vector.load %arg6[%c0_152, %c0_153, %c0_154] : memref<3x128x128xbf16, #tpu.memory_space<vmem>>, vector<1x128x128xbf16>
      %275 = vector.shape_cast %274 : vector<1x128x128xbf16> to vector<128x128xbf16>
      %cst_155 = arith.constant dense<0.000000e+00> : vector<8x128xf32>
      %276 = tpu.matmul %267, %275, %cst_155 {dimension_numbers = #tpu.dot_dimension_numbers<[1], [0], [0], [1], [0, 0, 1, 1], [], []>} : vector<8x128xbf16>, vector<128x128xbf16>, vector<8x128xf32> -> vector<8x128xf32>
      %277 = arith.addf %216, %276 : vector<8x128xf32>
      %c1_156 = arith.constant 1 : index
      %c0_157 = arith.constant 0 : index
      %c0_158 = arith.constant 0 : index
      %278 = vector.load %arg11[%c1_156, %c0_157, %c0_158] : memref<3x8x128xbf16, #tpu.memory_space<vmem>>, vector<1x8x128xbf16>
      %279 = vector.shape_cast %278 : vector<1x8x128xbf16> to vector<8x128xbf16>
      %c1_159 = arith.constant 1 : index
      %c0_160 = arith.constant 0 : index
      %c0_161 = arith.constant 0 : index
      %280 = vector.load %arg12[%c1_159, %c0_160, %c0_161] : memref<3x8x128xf32, #tpu.memory_space<vmem>>, vector<1x8x128xf32>
      %281 = vector.shape_cast %280 : vector<1x8x128xf32> to vector<8x128xf32>
      %282 = tpu.concatenate %215, %267, %279 in 1 : vector<8x128xbf16>, vector<8x128xbf16>, vector<8x128xbf16> -> vector<8x384xbf16>
      %c0_162 = arith.constant 0 : index
      %c0_163 = arith.constant 0 : index
      %c0_164 = arith.constant 0 : index
      %283 = vector.load %arg3[%c0_162, %c0_163, %c0_164] : memref<2x384x512xbf16, #tpu.memory_space<vmem>>, vector<1x384x512xbf16>
      %284 = vector.shape_cast %283 : vector<1x384x512xbf16> to vector<384x512xbf16>
      %cst_165 = arith.constant dense<0.000000e+00> : vector<8x512xf32>
      %285 = tpu.matmul %282, %284, %cst_165 {dimension_numbers = #tpu.dot_dimension_numbers<[1], [0], [0], [1], [0, 0, 1, 1], [], []>} : vector<8x384xbf16>, vector<384x512xbf16>, vector<8x512xf32> -> vector<8x512xf32>
      %c1_166 = arith.constant 1 : index
      %c0_167 = arith.constant 0 : index
      %286 = vector.load %arg4[%c1_166, %c0_167] : memref<3x512xf32, #tpu.memory_space<vmem>>, vector<1x512xf32>
      %287 = vector.broadcast %286 : vector<1x512xf32> to vector<8x512xf32>
      %288 = arith.addf %285, %287 : vector<8x512xf32>
      %289 = vector.extract_strided_slice %288 {offsets = [0, 0], sizes = [8, 128], strides = [1, 1]} : vector<8x512xf32> to vector<8x128xf32>
      %290 = vector.extract_strided_slice %288 {offsets = [0, 128], sizes = [8, 128], strides = [1, 1]} : vector<8x512xf32> to vector<8x128xf32>
      %291 = vector.extract_strided_slice %288 {offsets = [0, 256], sizes = [8, 128], strides = [1, 1]} : vector<8x512xf32> to vector<8x128xf32>
      %292 = vector.extract_strided_slice %288 {offsets = [0, 384], sizes = [8, 128], strides = [1, 1]} : vector<8x512xf32> to vector<8x128xf32>
      %c1_168 = arith.constant 1 : index
      %c0_169 = arith.constant 0 : index
      %c0_170 = arith.constant 0 : index
      %293 = vector.load %arg5[%c1_168, %c0_169, %c0_170] : memref<3x3x128xf32, #tpu.memory_space<vmem>>, vector<1x1x128xf32>
      %294 = vector.shape_cast %293 : vector<1x1x128xf32> to vector<1x128xf32>
      %295 = vector.broadcast %294 : vector<1x128xf32> to vector<8x128xf32>
      %296 = arith.mulf %295, %281 : vector<8x128xf32>
      %297 = arith.addf %289, %296 : vector<8x128xf32>
      %298 = arith.negf %297 : vector<8x128xf32>
      %299 = math.exp %298 : vector<8x128xf32>
      %cst_171 = arith.constant 1.000000e+00 : f32
      %300 = vector.broadcast %cst_171 : f32 to vector<8x128xf32>
      %301 = arith.addf %300, %299 : vector<8x128xf32>
      %302 = arith.divf %300, %301 : vector<8x128xf32>
      %c1_172 = arith.constant 1 : index
      %c1_173 = arith.constant 1 : index
      %c0_174 = arith.constant 0 : index
      %303 = vector.load %arg5[%c1_172, %c1_173, %c0_174] : memref<3x3x128xf32, #tpu.memory_space<vmem>>, vector<1x1x128xf32>
      %304 = vector.shape_cast %303 : vector<1x1x128xf32> to vector<1x128xf32>
      %305 = vector.broadcast %304 : vector<1x128xf32> to vector<8x128xf32>
      %306 = arith.mulf %305, %281 : vector<8x128xf32>
      %307 = arith.addf %290, %306 : vector<8x128xf32>
      %308 = arith.negf %307 : vector<8x128xf32>
      %309 = math.exp %308 : vector<8x128xf32>
      %cst_175 = arith.constant 1.000000e+00 : f32
      %310 = vector.broadcast %cst_175 : f32 to vector<8x128xf32>
      %311 = arith.addf %310, %309 : vector<8x128xf32>
      %312 = arith.divf %310, %311 : vector<8x128xf32>
      %313 = math.tanh %292 : vector<8x128xf32>
      %314 = arith.mulf %302, %313 : vector<8x128xf32>
      %315 = arith.mulf %312, %281 : vector<8x128xf32>
      %316 = arith.addf %314, %315 : vector<8x128xf32>
      %c1_176 = arith.constant 1 : index
      %c2_177 = arith.constant 2 : index
      %c0_178 = arith.constant 0 : index
      %317 = vector.load %arg5[%c1_176, %c2_177, %c0_178] : memref<3x3x128xf32, #tpu.memory_space<vmem>>, vector<1x1x128xf32>
      %318 = vector.shape_cast %317 : vector<1x1x128xf32> to vector<1x128xf32>
      %319 = vector.broadcast %318 : vector<1x128xf32> to vector<8x128xf32>
      %320 = arith.mulf %319, %281 : vector<8x128xf32>
      %321 = arith.addf %291, %320 : vector<8x128xf32>
      %322 = arith.negf %321 : vector<8x128xf32>
      %323 = math.exp %322 : vector<8x128xf32>
      %cst_179 = arith.constant 1.000000e+00 : f32
      %324 = vector.broadcast %cst_179 : f32 to vector<8x128xf32>
      %325 = arith.addf %324, %323 : vector<8x128xf32>
      %326 = arith.divf %324, %325 : vector<8x128xf32>
      %327 = math.tanh %316 : vector<8x128xf32>
      %328 = arith.mulf %326, %327 : vector<8x128xf32>
      %329 = arith.truncf %328 : vector<8x128xf32> to vector<8x128xbf16>
      %c1_180 = arith.constant 1 : index
      %c0_181 = arith.constant 0 : index
      %c0_182 = arith.constant 0 : index
      %330 = vector.load %arg11[%c1_180, %c0_181, %c0_182] : memref<3x8x128xbf16, #tpu.memory_space<vmem>>, vector<1x8x128xbf16>
      %331 = vector.shape_cast %330 : vector<1x8x128xbf16> to vector<8x128xbf16>
      %332 = vector.shape_cast %329 : vector<8x128xbf16> to vector<1x8x128xbf16>
      tpu.vector_store %arg11[%c1_180, %c0_181, %c0_182], %332 {strides = array<i32>} : memref<3x8x128xbf16, #tpu.memory_space<vmem>>, vector<1x8x128xbf16>,
      %c1_183 = arith.constant 1 : index
      %c0_184 = arith.constant 0 : index
      %c0_185 = arith.constant 0 : index
      %333 = vector.load %arg12[%c1_183, %c0_184, %c0_185] : memref<3x8x128xf32, #tpu.memory_space<vmem>>, vector<1x8x128xf32>
      %334 = vector.shape_cast %333 : vector<1x8x128xf32> to vector<8x128xf32>
      %335 = vector.shape_cast %316 : vector<8x128xf32> to vector<1x8x128xf32>
      tpu.vector_store %arg12[%c1_183, %c0_184, %c0_185], %335 {strides = array<i32>} : memref<3x8x128xf32, #tpu.memory_space<vmem>>, vector<1x8x128xf32>,
      %c1_186 = arith.constant 1 : index
      %c0_187 = arith.constant 0 : index
      %c0_188 = arith.constant 0 : index
      %336 = vector.load %arg6[%c1_186, %c0_187, %c0_188] : memref<3x128x128xbf16, #tpu.memory_space<vmem>>, vector<1x128x128xbf16>
      %337 = vector.shape_cast %336 : vector<1x128x128xbf16> to vector<128x128xbf16>
      %cst_189 = arith.constant dense<0.000000e+00> : vector<8x128xf32>
      %338 = tpu.matmul %329, %337, %cst_189 {dimension_numbers = #tpu.dot_dimension_numbers<[1], [0], [0], [1], [0, 0, 1, 1], [], []>} : vector<8x128xbf16>, vector<128x128xbf16>, vector<8x128xf32> -> vector<8x128xf32>
      %339 = arith.addf %277, %338 : vector<8x128xf32>
      %c2_190 = arith.constant 2 : index
      %c0_191 = arith.constant 0 : index
      %c0_192 = arith.constant 0 : index
      %340 = vector.load %arg11[%c2_190, %c0_191, %c0_192] : memref<3x8x128xbf16, #tpu.memory_space<vmem>>, vector<1x8x128xbf16>
      %341 = vector.shape_cast %340 : vector<1x8x128xbf16> to vector<8x128xbf16>
      %c2_193 = arith.constant 2 : index
      %c0_194 = arith.constant 0 : index
      %c0_195 = arith.constant 0 : index
      %342 = vector.load %arg12[%c2_193, %c0_194, %c0_195] : memref<3x8x128xf32, #tpu.memory_space<vmem>>, vector<1x8x128xf32>
      %343 = vector.shape_cast %342 : vector<1x8x128xf32> to vector<8x128xf32>
      %344 = tpu.concatenate %215, %329, %341 in 1 : vector<8x128xbf16>, vector<8x128xbf16>, vector<8x128xbf16> -> vector<8x384xbf16>
      %c1_196 = arith.constant 1 : index
      %c0_197 = arith.constant 0 : index
      %c0_198 = arith.constant 0 : index
      %345 = vector.load %arg3[%c1_196, %c0_197, %c0_198] : memref<2x384x512xbf16, #tpu.memory_space<vmem>>, vector<1x384x512xbf16>
      %346 = vector.shape_cast %345 : vector<1x384x512xbf16> to vector<384x512xbf16>
      %cst_199 = arith.constant dense<0.000000e+00> : vector<8x512xf32>
      %347 = tpu.matmul %344, %346, %cst_199 {dimension_numbers = #tpu.dot_dimension_numbers<[1], [0], [0], [1], [0, 0, 1, 1], [], []>} : vector<8x384xbf16>, vector<384x512xbf16>, vector<8x512xf32> -> vector<8x512xf32>
      %c2_200 = arith.constant 2 : index
      %c0_201 = arith.constant 0 : index
      %348 = vector.load %arg4[%c2_200, %c0_201] : memref<3x512xf32, #tpu.memory_space<vmem>>, vector<1x512xf32>
      %349 = vector.broadcast %348 : vector<1x512xf32> to vector<8x512xf32>
      %350 = arith.addf %347, %349 : vector<8x512xf32>
      %351 = vector.extract_strided_slice %350 {offsets = [0, 0], sizes = [8, 128], strides = [1, 1]} : vector<8x512xf32> to vector<8x128xf32>
      %352 = vector.extract_strided_slice %350 {offsets = [0, 128], sizes = [8, 128], strides = [1, 1]} : vector<8x512xf32> to vector<8x128xf32>
      %353 = vector.extract_strided_slice %350 {offsets = [0, 256], sizes = [8, 128], strides = [1, 1]} : vector<8x512xf32> to vector<8x128xf32>
      %354 = vector.extract_strided_slice %350 {offsets = [0, 384], sizes = [8, 128], strides = [1, 1]} : vector<8x512xf32> to vector<8x128xf32>
      %c2_202 = arith.constant 2 : index
      %c0_203 = arith.constant 0 : index
      %c0_204 = arith.constant 0 : index
      %355 = vector.load %arg5[%c2_202, %c0_203, %c0_204] : memref<3x3x128xf32, #tpu.memory_space<vmem>>, vector<1x1x128xf32>
      %356 = vector.shape_cast %355 : vector<1x1x128xf32> to vector<1x128xf32>
      %357 = vector.broadcast %356 : vector<1x128xf32> to vector<8x128xf32>
      %358 = arith.mulf %357, %343 : vector<8x128xf32>
      %359 = arith.addf %351, %358 : vector<8x128xf32>
      %360 = arith.negf %359 : vector<8x128xf32>
      %361 = math.exp %360 : vector<8x128xf32>
      %cst_205 = arith.constant 1.000000e+00 : f32
      %362 = vector.broadcast %cst_205 : f32 to vector<8x128xf32>
      %363 = arith.addf %362, %361 : vector<8x128xf32>
      %364 = arith.divf %362, %363 : vector<8x128xf32>
      %c2_206 = arith.constant 2 : index
      %c1_207 = arith.constant 1 : index
      %c0_208 = arith.constant 0 : index
      %365 = vector.load %arg5[%c2_206, %c1_207, %c0_208] : memref<3x3x128xf32, #tpu.memory_space<vmem>>, vector<1x1x128xf32>
      %366 = vector.shape_cast %365 : vector<1x1x128xf32> to vector<1x128xf32>
      %367 = vector.broadcast %366 : vector<1x128xf32> to vector<8x128xf32>
      %368 = arith.mulf %367, %343 : vector<8x128xf32>
      %369 = arith.addf %352, %368 : vector<8x128xf32>
      %370 = arith.negf %369 : vector<8x128xf32>
      %371 = math.exp %370 : vector<8x128xf32>
      %cst_209 = arith.constant 1.000000e+00 : f32
      %372 = vector.broadcast %cst_209 : f32 to vector<8x128xf32>
      %373 = arith.addf %372, %371 : vector<8x128xf32>
      %374 = arith.divf %372, %373 : vector<8x128xf32>
      %375 = math.tanh %354 : vector<8x128xf32>
      %376 = arith.mulf %364, %375 : vector<8x128xf32>
      %377 = arith.mulf %374, %343 : vector<8x128xf32>
      %378 = arith.addf %376, %377 : vector<8x128xf32>
      %c2_210 = arith.constant 2 : index
      %c2_211 = arith.constant 2 : index
      %c0_212 = arith.constant 0 : index
      %379 = vector.load %arg5[%c2_210, %c2_211, %c0_212] : memref<3x3x128xf32, #tpu.memory_space<vmem>>, vector<1x1x128xf32>
      %380 = vector.shape_cast %379 : vector<1x1x128xf32> to vector<1x128xf32>
      %381 = vector.broadcast %380 : vector<1x128xf32> to vector<8x128xf32>
      %382 = arith.mulf %381, %343 : vector<8x128xf32>
      %383 = arith.addf %353, %382 : vector<8x128xf32>
      %384 = arith.negf %383 : vector<8x128xf32>
      %385 = math.exp %384 : vector<8x128xf32>
      %cst_213 = arith.constant 1.000000e+00 : f32
      %386 = vector.broadcast %cst_213 : f32 to vector<8x128xf32>
      %387 = arith.addf %386, %385 : vector<8x128xf32>
      %388 = arith.divf %386, %387 : vector<8x128xf32>
      %389 = math.tanh %378 : vector<8x128xf32>
      %390 = arith.mulf %388, %389 : vector<8x128xf32>
      %391 = arith.truncf %390 : vector<8x128xf32> to vector<8x128xbf16>
      %c2_214 = arith.constant 2 : index
      %c0_215 = arith.constant 0 : index
      %c0_216 = arith.constant 0 : index
      %392 = vector.load %arg11[%c2_214, %c0_215, %c0_216] : memref<3x8x128xbf16, #tpu.memory_space<vmem>>, vector<1x8x128xbf16>
      %393 = vector.shape_cast %392 : vector<1x8x128xbf16> to vector<8x128xbf16>
      %394 = vector.shape_cast %391 : vector<8x128xbf16> to vector<1x8x128xbf16>
      tpu.vector_store %arg11[%c2_214, %c0_215, %c0_216], %394 {strides = array<i32>} : memref<3x8x128xbf16, #tpu.memory_space<vmem>>, vector<1x8x128xbf16>,
      %c2_217 = arith.constant 2 : index
      %c0_218 = arith.constant 0 : index
      %c0_219 = arith.constant 0 : index
      %395 = vector.load %arg12[%c2_217, %c0_218, %c0_219] : memref<3x8x128xf32, #tpu.memory_space<vmem>>, vector<1x8x128xf32>
      %396 = vector.shape_cast %395 : vector<1x8x128xf32> to vector<8x128xf32>
      %397 = vector.shape_cast %378 : vector<8x128xf32> to vector<1x8x128xf32>
      tpu.vector_store %arg12[%c2_217, %c0_218, %c0_219], %397 {strides = array<i32>} : memref<3x8x128xf32, #tpu.memory_space<vmem>>, vector<1x8x128xf32>,
      %c2_220 = arith.constant 2 : index
      %c0_221 = arith.constant 0 : index
      %c0_222 = arith.constant 0 : index
      %398 = vector.load %arg6[%c2_220, %c0_221, %c0_222] : memref<3x128x128xbf16, #tpu.memory_space<vmem>>, vector<1x128x128xbf16>
      %399 = vector.shape_cast %398 : vector<1x128x128xbf16> to vector<128x128xbf16>
      %cst_223 = arith.constant dense<0.000000e+00> : vector<8x128xf32>
      %400 = tpu.matmul %391, %399, %cst_223 {dimension_numbers = #tpu.dot_dimension_numbers<[1], [0], [0], [1], [0, 0, 1, 1], [], []>} : vector<8x128xbf16>, vector<128x128xbf16>, vector<8x128xf32> -> vector<8x128xf32>
      %401 = arith.addf %339, %400 : vector<8x128xf32>
      %c0_224 = arith.constant 0 : index
      %c0_225 = arith.constant 0 : index
      %402 = vector.load %arg7[%c0_224, %c0_225] : memref<1x128xf32, #tpu.memory_space<vmem>>, vector<1x128xf32>
      %403 = vector.broadcast %402 : vector<1x128xf32> to vector<8x128xf32>
      %404 = arith.addf %401, %403 : vector<8x128xf32>
      %405 = arith.index_cast %212 : i32 to index
      %c0_226 = arith.constant 0 : index
      %c0_227 = arith.constant 0 : index
      %406 = vector.load %arg13[%405, %c0_226, %c0_227] : memref<32x8x128xf32, #tpu.memory_space<vmem>>, vector<1x8x128xf32>
      %407 = vector.shape_cast %406 : vector<1x8x128xf32> to vector<8x128xf32>
      %408 = vector.shape_cast %404 : vector<8x128xf32> to vector<1x8x128xf32>
      tpu.vector_store %arg13[%405, %c0_226, %c0_227], %408 {strides = array<i32>} : memref<32x8x128xf32, #tpu.memory_space<vmem>>, vector<1x8x128xf32>,
    }
    %c16_i32_2 = arith.constant 16 : i32
    %c0 = arith.constant 0 : index
    %c0_3 = arith.constant 0 : index
    %c0_4 = arith.constant 0 : index
    %4 = vector.load %arg13[%c0, %c0_3, %c0_4] : memref<32x8x128xf32, #tpu.memory_space<vmem>>, vector<32x8x128xf32>
    %5 = vector.shape_cast %4 : vector<32x8x128xf32> to vector<256x128xf32>
    %6 = arith.truncf %5 : vector<256x128xf32> to vector<256x128xbf16>
    %c0_5 = arith.constant 0 : index
    %c0_6 = arith.constant 0 : index
    %7 = vector.load %arg8[%c0_5, %c0_6] : memref<128x256xbf16, #tpu.memory_space<vmem>>, vector<128x256xbf16>
    %cst = arith.constant dense<0.000000e+00> : vector<256x256xf32>
    %8 = tpu.matmul %6, %7, %cst {dimension_numbers = #tpu.dot_dimension_numbers<[1], [0], [0], [1], [0, 0, 1, 1], [], []>} : vector<256x128xbf16>, vector<128x256xbf16>, vector<256x256xf32> -> vector<256x256xf32>
    %c0_7 = arith.constant 0 : index
    %c0_8 = arith.constant 0 : index
    %9 = vector.load %arg9[%c0_7, %c0_8] : memref<1x256xf32, #tpu.memory_space<vmem>>, vector<1x256xf32>
    %10 = vector.broadcast %9 : vector<1x256xf32> to vector<256x256xf32>
    %11 = arith.addf %8, %10 : vector<256x256xf32>
    %c0_9 = arith.constant 0 : index
    %c0_10 = arith.constant 0 : index
    %12 = vector.load %arg10[%c0_9, %c0_10] : memref<256x256xf32, #tpu.memory_space<vmem>>, vector<256x256xf32>
    tpu.vector_store %arg10[%c0_9, %c0_10], %11 {strides = array<i32>} : memref<256x256xf32, #tpu.memory_space<vmem>>, vector<256x256xf32>,
    return
  }
  func.func @transform_0(%arg0: i32) -> (i32, i32, i32) {
    %c0_i32 = arith.constant 0 : i32
    %c0_i32_0 = arith.constant 0 : i32
    %c0_i32_1 = arith.constant 0 : i32
    return %arg0, %c0_i32, %c0_i32_0 : i32, i32, i32
  }
  func.func @transform_1(%arg0: i32) -> (i32, i32) {
    %c0_i32 = arith.constant 0 : i32
    %c0_i32_0 = arith.constant 0 : i32
    %c0_i32_1 = arith.constant 0 : i32
    return %c0_i32, %c0_i32_0 : i32, i32
  }
  func.func @transform_2(%arg0: i32) -> (i32, i32, i32) {
    %c0_i32 = arith.constant 0 : i32
    %c0_i32_0 = arith.constant 0 : i32
    %c0_i32_1 = arith.constant 0 : i32
    %c0_i32_2 = arith.constant 0 : i32
    return %c0_i32, %c0_i32_0, %c0_i32_1 : i32, i32, i32
  }
  func.func @transform_3(%arg0: i32) -> (i32, i32) {
    %c0_i32 = arith.constant 0 : i32
    %c0_i32_0 = arith.constant 0 : i32
    %c0_i32_1 = arith.constant 0 : i32
    return %c0_i32, %c0_i32_0 : i32, i32
  }
  func.func @transform_4(%arg0: i32) -> (i32, i32, i32) {
    %c0_i32 = arith.constant 0 : i32
    %c0_i32_0 = arith.constant 0 : i32
    %c0_i32_1 = arith.constant 0 : i32
    %c0_i32_2 = arith.constant 0 : i32
    return %c0_i32, %c0_i32_0, %c0_i32_1 : i32, i32, i32
  }
  func.func @transform_5(%arg0: i32) -> (i32, i32, i32) {
    %c0_i32 = arith.constant 0 : i32
    %c0_i32_0 = arith.constant 0 : i32
    %c0_i32_1 = arith.constant 0 : i32
    %c0_i32_2 = arith.constant 0 : i32
    return %c0_i32, %c0_i32_0, %c0_i32_1 : i32, i32, i32
  }
  func.func @transform_6(%arg0: i32) -> (i32, i32) {
    %c0_i32 = arith.constant 0 : i32
    %c0_i32_0 = arith.constant 0 : i32
    %c0_i32_1 = arith.constant 0 : i32
    return %c0_i32, %c0_i32_0 : i32, i32
  }
  func.func @transform_7(%arg0: i32) -> (i32, i32) {
    %c0_i32 = arith.constant 0 : i32
    %c0_i32_0 = arith.constant 0 : i32
    %c0_i32_1 = arith.constant 0 : i32
    return %c0_i32, %c0_i32_0 : i32, i32
  }
  func.func @transform_8(%arg0: i32) -> (i32, i32) {
    %c0_i32 = arith.constant 0 : i32
    %c0_i32_0 = arith.constant 0 : i32
    %c0_i32_1 = arith.constant 0 : i32
    return %c0_i32, %c0_i32_0 : i32, i32
  }
  func.func @transform_9(%arg0: i32) -> (i32, i32) {
    %c0_i32 = arith.constant 0 : i32
    %c0_i32_0 = arith.constant 0 : i32
    return %arg0, %c0_i32 : i32, i32
  }
}

</mosaic_0001>

<bundles_post_ra>
// kernel: lmmodel_forward.1
= control target key start
LH: loop header
LB: loop body
LE: loop exit
PB: predicated region body
PF: predicated region fallthrough
CT: control target
= control target key end

     0   :  { %s13367_s0 = inlined_call_operand.vmem [shape: bf16[64,8,128], index: 0, kind: input, shape index: {}]   ;;  %s13368_s1 = inlined_call_operand.vmem [shape: bf16[256,512], index: 1, kind: input, shape index: {}]   ;;  %s13369_s2 = inlined_call_operand.vmem [shape: bf16[2,384,512], index: 2, kind: input, shape index: {}]   ;;  %s13370_s3 = inlined_call_operand.vmem [shape: f32[3,512], index: 3, kind: input, shape index: {}]   ;;  %s13371_s4 = inlined_call_operand.vmem [shape: f32[3,3,128], index: 4, kind: input, shape index: {}]   ;;  %s13372_s5 = inlined_call_operand.vmem [shape: bf16[3,128,128], index: 5, kind: input, shape index: {}]   ;;  %s13373_s6 = inlined_call_operand.vmem [shape: f32[1,128], index: 6, kind: input, shape index: {}]   ;;  %s13374_s7 = inlined_call_operand.vmem [shape: bf16[128,256], index: 7, kind: input, shape index: {}]   ;;  %s13375_s8 = inlined_call_operand.vmem [shape: f32[1,256], index: 8, kind: input, shape index: {}]   ;;  %s13376_s9 = inlined_call_operand.hbm [shape: f32[512,256], index: 9, kind: output, shape index: {}]  }
   0x1   :  { %13379 = sst [smem:[#allocation11_spill]] %s13367_s0 }
   0x2   :  { %14 = vsyncpa [#allocation6], 0 }
   0x3   :  { %16 = vsyncpa [#allocation6 + $0x1], 0  ;;  %s9295_s30 = smov 0   ;;  %s9297_s10 = smov 0  }
   0x4   :  { %s9299_s11 = smov 0   ;;  %s9301_s12 = smov 0  }
   0x5 LB: > { %13380 = sst [smem:[#allocation8_spill]] %s9231_s11  ;;  %s9316_s13 = sadd.s32 4294967295, %s9235_s12   ;;  %s9235_s12 = sphi %s9301_s12, %s13402_s12   ;;  %s9231_s11 = sphi %s9299_s11, %s13399_s11   ;;  %s9227_s10 = sphi %s9297_s10, %s13401_s10   ;;  %s9223_s30 = sphi %s9295_s30, %s13400_s30  }
   0x6   : > { %s5782_s14 = sadd.s32 4294967294, %s9235_s12   ;;  %s9320_s15 = sadd.s32 1, %s9235_s12  }
   0x7   : > { %s223_s16 = sadd.s32 1, %s9231_s11  ;;  %s220_s17 = ssub.s32 %s9235_s12, %s9320_s15 }
   0x8   : > { %p233_p0 = scmp.ne.s32.totalorder %s9231_s11, %s9227_s10  ;;  %p221_p1 = scmp.eq.s32.totalorder %s220_s17, 0 }
   0x9   : > { %p234_p2 = scmp.eq.s32.totalorder %s9316_s13, 1  ;;  %p239_p3 = scmp.ne.s32.totalorder %s9227_s10, %s9223_s30 }
   0xa   : > { %p240_p4 = scmp.eq.s32.totalorder %s5782_s14, 1  ;;  %p5785_p7 = scmp.ge.s32.totalorder %s9235_s12, 1 }
   0xb   : > { %s9331_s18 = scalar_select %p221_p1, %s9231_s11, %s223_s16  }
   0xc   : > { %p9333_p5 = por %p234_p2, %p233_p0  ;;  %p9337_p6 = por %p240_p4, %p239_p3 }
   0xd   : > { %13381 = sst [smem:[#allocation9_spill]] %s9331_s18  ;;  %p291_p8 = scmp.lt.s32.totalorder %s9235_s12, 3 }
   0xf   : > { %p292_p9 = pnand %p5785_p7, %p291_p8 }
  0x11   : > { %295 = sbr.rel (%p292_p9) target bundleno = 1681 (0x691), region = 56 }
  0x16   : > { %s13377_s21 = sand.u32 1, %s9227_s10   ;;  %s5787_s22 = sshll.u32 %s9316_s13, 5 }
  0x17   : > { %s5786_s23 = sshll.u32 %s13377_s21, 9  ;;  %p328_p10 = scmp.lt.s32.totalorder %s5787_s22, 63 }
  0x18   : > { %s13384_s0 = sld [smem:[#allocation11_spill]]  ;;  %s9352_s28 = scalar_lea.vmem [#allocation5], %s5786_s23 }
  0x19   : > { %s13404_s22 = smov (!%p328_p10, %s5787_s22), 63  ;;  %p5789_p11 = scmp.ne.s32.totalorder %s9316_s13, 0 }
  0x1a   : > { %s5788_s24 = sshll.u32 %s13404_s22, 2 }
  0x1b   : > { %338 = sbr.rel (%p5789_p11) target bundleno = 39 (0x27), region = 60 }
  0x1e   : > { %s9350_s27 = scalar_lea.vmem %s13384_s0, %s5788_s24 }
  0x1f   : > { %13385 = sst [smem:[#allocation10_spill]] %s9350_s27 }
  0x20   : > { %v9241_v0 = vmov 0   ;;  %v9242_v1 = vmov 0.0  }
  0x21   : > { %339 = vst [vmem:[#allocation2] sm:$0xf] %v9241_v0 }
  0x22   : > { %340 = vst [vmem:[#allocation2 + $0x4] sm:$0xf] %v9241_v0 }
  0x23   : > { %341 = vst [vmem:[#allocation2 + $0x8] sm:$0xf] %v9241_v0 }
  0x24   : > { %342 = vst [vmem:[#allocation3 + $0x10] sm:$0xff] %v9242_v1 }
  0x25   : > { %343 = vst [vmem:[#allocation3] sm:$0xff] %v9242_v1 }
  0x26   : > { %344 = vst [vmem:[#allocation3 + $0x8] sm:$0xff] %v9242_v1 }
  0x27 PF: > { %s9355_s29 = smov 0  }
  0x28 LB: >> { %v5906_v2 = vld [vmem:[%s13368_s1 + $0xe0] sm:$0xf]  ;;  %v8430_v3 = vld [vmem:[%s13368_s1 + $0xec] sm:$0xf0]  ;;  %v8428_v7 = vld [vmem:[%s13368_s1 + $0xe4] sm:$0xf]  ;;  %s9239_s29 = sphi %s9355_s29, %s350_s29  }
  0x29   : >> { %v6034_v4 = vld [vmem:[%s13368_s1 + $0x1e0] sm:$0xf]  ;;  %v5907_v5 = vor.u32 %v8430_v3, %v5906_v2  ;;  %v8462_v6 = vld [vmem:[%s13368_s1 + $0x1ec] sm:$0xf0]  ;;  %v5908_v8 = vld [vmem:[%s13368_s1 + $0xf0] sm:$0xf0] }
  0x2a   : >> { %v6035_v9 = vor.u32 %v8462_v6, %v6034_v4  ;;  %v5911_v10 = vor.u32 %v8428_v7, %v5908_v8  ;;  %v8460_v11 = vld [vmem:[%s13368_s1 + $0x1e4] sm:$0xf]  ;;  %v6036_v12 = vld [vmem:[%s13368_s1 + $0x1f0] sm:$0xf0]  ;;  %v5890_v13 = vld [vmem:[%s13368_s1 + $0xc0] sm:$0xf] }
  0x2b   : >> { %751 = vmatpush.bf16.msra.mxu0 %v5907_v5  ;;  %v6039_v14 = vor.u32 %v8460_v11, %v6036_v12  ;;  %v8426_v15 = vld [vmem:[%s13368_s1 + $0xcc] sm:$0xf0]  ;;  %v6018_v16 = vld [vmem:[%s13368_s1 + $0x1c0] sm:$0xf]  ;;  %v8424_v20 = vld [vmem:[%s13368_s1 + $0xc4] sm:$0xf] }
  0x2c   : >> { %v8458_v17 = vld [vmem:[%s13368_s1 + $0x1cc] sm:$0xf0]  ;;  %764 = vmatpush.bf16.msra.mxu1 %v6035_v9  ;;  %777 = vmatpush.bf16.msra.mxu2 %v5911_v10  ;;  %v5891_v18 = vor.u32 %v8426_v15, %v5890_v13  ;;  %v5892_v21 = vld [vmem:[%s13368_s1 + $0xd0] sm:$0xf0]  ;;  %v8456_v22 = vld [vmem:[%s13368_s1 + $0x1c4] sm:$0xf] }
  0x2d   : >> { %v6019_v19 = vor.u32 %v8458_v17, %v6018_v16  ;;  %790 = vmatpush.bf16.msra.mxu3 %v6039_v14  ;;  %v5895_v23 = vor.u32 %v8424_v20, %v5892_v21  ;;  %v6020_v24 = vld [vmem:[%s13368_s1 + $0x1d0] sm:$0xf0]  ;;  %v5874_v25 = vld [vmem:[%s13368_s1 + $0xa0] sm:$0xf]  ;;  %v8422_v26 = vld [vmem:[%s13368_s1 + $0xac] sm:$0xf0] }
  0x2e   : >> { %v6023_v27 = vor.u32 %v8456_v22, %v6020_v24  ;;  %v6002_v28 = vld [vmem:[%s13368_s1 + $0x1a0] sm:$0xf]  ;;  %v8454_v29 = vld [vmem:[%s13368_s1 + $0x1ac] sm:$0xf0]  ;;  %v8420_v30 = vld [vmem:[%s13368_s1 + $0xa4] sm:$0xf]  ;;  %v5875_v31 = vor.u32 %v8422_v26, %v5874_v25 }
  0x2f   : >> { %752 = vmatpush.bf16.msra.mxu0 %v5891_v18  ;;  %v5876_v32 = vld [vmem:[%s13368_s1 + $0xb0] sm:$0xf0]  ;;  %v8452_v33 = vld [vmem:[%s13368_s1 + $0x1a4] sm:$0xf]  ;;  %v6003_v35 = vor.u32 %v8454_v29, %v6002_v28  ;;  %v5858_v37 = vld [vmem:[%s13368_s1 + $0x80] sm:$0xf] }
  0x30   : >> { %v6004_v34 = vld [vmem:[%s13368_s1 + $0x1b0] sm:$0xf0]  ;;  %765 = vmatpush.bf16.msra.mxu1 %v6019_v19  ;;  %778 = vmatpush.bf16.msra.mxu2 %v5895_v23  ;;  %v5879_v36 = vor.u32 %v8420_v30, %v5876_v32  ;;  %v8418_v38 = vld [vmem:[%s13368_s1 + $0x8c] sm:$0xf0]  ;;  %v5986_v39 = vld [vmem:[%s13368_s1 + $0x180] sm:$0xf] }
  0x31   : >> { %791 = vmatpush.bf16.msra.mxu3 %v6023_v27  ;;  %v6007_v40 = vor.u32 %v8452_v33, %v6004_v34  ;;  %v8450_v41 = vld [vmem:[%s13368_s1 + $0x18c] sm:$0xf0]  ;;  %v8416_v42 = vld [vmem:[%s13368_s1 + $0x84] sm:$0xf]  ;;  %v5860_v43 = vld [vmem:[%s13368_s1 + $0x90] sm:$0xf0]  ;;  %v5859_v46 = vor.u32 %v8418_v38, %v5858_v37 }
  0x32   : >> { %v8448_v44 = vld [vmem:[%s13368_s1 + $0x184] sm:$0xf]  ;;  %v5988_v45 = vld [vmem:[%s13368_s1 + $0x190] sm:$0xf0]  ;;  %v5987_v47 = vor.u32 %v8450_v41, %v5986_v39  ;;  %v5863_v48 = vor.u32 %v8416_v42, %v5860_v43  ;;  %v5842_v49 = vld [vmem:[%s13368_s1 + $0x60] sm:$0xf] }
  0x33   : >> { %753 = vmatpush.bf16.msra.mxu0 %v5875_v31  ;;  %v8414_v50 = vld [vmem:[%s13368_s1 + $0x6c] sm:$0xf0]  ;;  %v5970_v51 = vld [vmem:[%s13368_s1 + $0x160] sm:$0xf]  ;;  %v5991_v52 = vor.u32 %v8448_v44, %v5988_v45  ;;  %v8412_v54 = vld [vmem:[%s13368_s1 + $0x64] sm:$0xf] }
  0x34   : >> { %766 = vmatpush.bf16.msra.mxu1 %v6003_v35  ;;  %779 = vmatpush.bf16.msra.mxu2 %v5879_v36  ;;  %v8446_v53 = vld [vmem:[%s13368_s1 + $0x16c] sm:$0xf0]  ;;  %v5844_v55 = vld [vmem:[%s13368_s1 + $0x70] sm:$0xf0]  ;;  %v8444_v56 = vld [vmem:[%s13368_s1 + $0x164] sm:$0xf]  ;;  %v5843_v58 = vor.u32 %v8414_v50, %v5842_v49 }
  0x35   : >> { %792 = vmatpush.bf16.msra.mxu3 %v6007_v40  ;;  %v5972_v57 = vld [vmem:[%s13368_s1 + $0x170] sm:$0xf0]  ;;  %v5971_v59 = vor.u32 %v8446_v53, %v5970_v51  ;;  %v5847_v60 = vor.u32 %v8412_v54, %v5844_v55  ;;  %v5826_v61 = vld [vmem:[%s13368_s1 + $0x40] sm:$0xf]  ;;  %v8410_v62 = vld [vmem:[%s13368_s1 + $0x4c] sm:$0xf0] }
  0x36   : >> { %v5954_v63 = vld [vmem:[%s13368_s1 + $0x140] sm:$0xf]  ;;  %v5975_v0 = vor.u32 %v8444_v56, %v5972_v57  ;;  %v8442_v1 = vld [vmem:[%s13368_s1 + $0x14c] sm:$0xf0]  ;;  %v8408_v2 = vld [vmem:[%s13368_s1 + $0x44] sm:$0xf]  ;;  %v5827_v6 = vor.u32 %v8410_v62, %v5826_v61 }
  0x37   : >> { %754 = vmatpush.bf16.msra.mxu0 %v5859_v46  ;;  %v5828_v3 = vld [vmem:[%s13368_s1 + $0x50] sm:$0xf0]  ;;  %v8440_v4 = vld [vmem:[%s13368_s1 + $0x144] sm:$0xf]  ;;  %v5955_v7 = vor.u32 %v8442_v1, %v5954_v63  ;;  %v5810_v9 = vld [vmem:[%s13368_s1 + $0x20] sm:$0xf] }
  0x38   : >> { %767 = vmatpush.bf16.msra.mxu1 %v5987_v47  ;;  %780 = vmatpush.bf16.msra.mxu2 %v5863_v48  ;;  %v5956_v5 = vld [vmem:[%s13368_s1 + $0x150] sm:$0xf0]  ;;  %v5831_v8 = vor.u32 %v8408_v2, %v5828_v3  ;;  %v8406_v10 = vld [vmem:[%s13368_s1 + $0x2c] sm:$0xf0]  ;;  %v5938_v11 = vld [vmem:[%s13368_s1 + $0x120] sm:$0xf] }
  0x39   : >> { %793 = vmatpush.bf16.msra.mxu3 %v5991_v52  ;;  %v5959_v12 = vor.u32 %v8440_v4, %v5956_v5  ;;  %v8438_v13 = vld [vmem:[%s13368_s1 + $0x12c] sm:$0xf0]  ;;  %v8404_v14 = vld [vmem:[%s13368_s1 + $0x24] sm:$0xf]  ;;  %v5812_v15 = vld [vmem:[%s13368_s1 + $0x30] sm:$0xf0]  ;;  %v5811_v18 = vor.u32 %v8406_v10, %v5810_v9 }
  0x3a   : >> { %v8436_v16 = vld [vmem:[%s13368_s1 + $0x124] sm:$0xf]  ;;  %v5940_v17 = vld [vmem:[%s13368_s1 + $0x130] sm:$0xf0]  ;;  %v5794_v19 = vld [vmem:[%s13368_s1] sm:$0xf]  ;;  %v5939_v22 = vor.u32 %v8438_v13, %v5938_v11  ;;  %v5815_v23 = vor.u32 %v8404_v14, %v5812_v15 }
  0x3b   : >> { %755 = vmatpush.bf16.msra.mxu0 %v5843_v58  ;;  %v8402_v20 = vld [vmem:[%s13368_s1 + $0xc] sm:$0xf0]  ;;  %v5922_v21 = vld [vmem:[%s13368_s1 + $0x100] sm:$0xf]  ;;  %v8400_v25 = vld [vmem:[%s13368_s1 + $0x4] sm:$0xf]  ;;  %v5943_v27 = vor.u32 %v8436_v16, %v5940_v17 }
  0x3c   : >> { %768 = vmatpush.bf16.msra.mxu1 %v5971_v59  ;;  %781 = vmatpush.bf16.msra.mxu2 %v5847_v60  ;;  %v8434_v24 = vld [vmem:[%s13368_s1 + $0x10c] sm:$0xf0]  ;;  %v5796_v26 = vld [vmem:[%s13368_s1 + $0x10] sm:$0xf0]  ;;  %v8432_v28 = vld [vmem:[%s13368_s1 + $0x104] sm:$0xf]  ;;  %v5795_v33 = vor.u32 %v8402_v20, %v5794_v19 }
  0x3d   : >> { %794 = vmatpush.bf16.msra.mxu3 %v5975_v0  ;;  %v5924_v29 = vld [vmem:[%s13368_s1 + $0x110] sm:$0xf0]  ;;  %v5914_v30 = vld [vmem:[%s13368_s1 + $0xe8] sm:$0xf]  ;;  %v8431_v31 = vld [vmem:[%s13368_s1 + $0xf4] sm:$0xf0]  ;;  %v5923_v37 = vor.u32 %v8434_v24, %v5922_v21  ;;  %v5799_v38 = vor.u32 %v8400_v25, %v5796_v26 }
  0x3e   : >> { %v6042_v32 = vld [vmem:[%s13368_s1 + $0x1e8] sm:$0xf]  ;;  %s13386_s27 = sld [smem:[#allocation10_spill]]  ;;  %s8399_s17 = sshll.u32 %s9239_s29, 3  ;;  %v8463_v34 = vld [vmem:[%s13368_s1 + $0x1f4] sm:$0xf0]  ;;  %v5927_v41 = vor.u32 %v8432_v28, %v5924_v29  ;;  %v5915_v42 = vor.u32 %v8431_v31, %v5914_v30 }
  0x3f   : >> { %756 = vmatpush.bf16.msra.mxu0 %v5827_v6  ;;  %v8429_v35 = vld [vmem:[%s13368_s1 + $0xec] sm:$0xf]  ;;  %v5916_v36 = vld [vmem:[%s13368_s1 + $0xf8] sm:$0xf0]  ;;  %v6043_v43 = vor.u32 %v8463_v34, %v6042_v32  ;;  %v5898_v45 = vld [vmem:[%s13368_s1 + $0xc8] sm:$0xf] }
  0x40   : >> { %769 = vmatpush.bf16.msra.mxu1 %v5955_v7  ;;  %782 = vmatpush.bf16.msra.mxu2 %v5831_v8  ;;  %v8461_v39 = vld [vmem:[%s13368_s1 + $0x1ec] sm:$0xf]  ;;  %v6044_v40 = vld [vmem:[%s13368_s1 + $0x1f8] sm:$0xf0]  ;;  %v5919_v44 = vor.u32 %v8429_v35, %v5916_v36  ;;  %v8427_v46 = vld [vmem:[%s13368_s1 + $0xd4] sm:$0xf0] }
  0x41   : >> { %795 = vmatpush.bf16.msra.mxu3 %v5959_v12  ;;  %v6026_v47 = vld [vmem:[%s13368_s1 + $0x1c8] sm:$0xf]  ;;  %v6047_v48 = vor.u32 %v8461_v39, %v6044_v40  ;;  %v8459_v49 = vld [vmem:[%s13368_s1 + $0x1d4] sm:$0xf0]  ;;  %v8425_v50 = vld [vmem:[%s13368_s1 + $0xcc] sm:$0xf]  ;;  %v5899_v56 = vor.u32 %v8427_v46, %v5898_v45 }
  0x42   : >> { %v5900_v51 = vld [vmem:[%s13368_s1 + $0xd8] sm:$0xf0]  ;;  %v8457_v53 = vld [vmem:[%s13368_s1 + $0x1cc] sm:$0xf]  ;;  %v9607_v55 = vld [vmem:[#allocation2] sm:$0xf]  ;;  %v6027_v57 = vor.u32 %v8459_v49, %v6026_v47 }
  0x43   : >> { %757 = vmatpush.bf16.msra.mxu0 %v5811_v18  ;;  %v6028_v54 = vld [vmem:[%s13368_s1 + $0x1d8] sm:$0xf0]  ;;  %v5903_v58 = vor.u32 %v8425_v50, %v5900_v51  ;;  %v5882_v59 = vld [vmem:[%s13368_s1 + $0xa8] sm:$0xf]  ;;  %v8423_v60 = vld [vmem:[%s13368_s1 + $0xb4] sm:$0xf0] }
  0x44   : >> { %770 = vmatpush.bf16.msra.mxu1 %v5939_v22  ;;  %783 = vmatpush.bf16.msra.mxu2 %v5815_v23  ;;  %s9578_s22 = scalar_lea.vmem %s13386_s27, %s8399_s17  ;;  %v6010_v61 = vld [vmem:[%s13368_s1 + $0x1a8] sm:$0xf]  ;;  %v6031_v62 = vor.u32 %v8457_v53, %v6028_v54  ;;  %v8455_v63 = vld [vmem:[%s13368_s1 + $0x1b4] sm:$0xf0]  ;;  %v8421_v0 = vld [vmem:[%s13368_s1 + $0xac] sm:$0xf]  ;;  %v5883_v4 = vor.u32 %v8423_v60, %v5882_v59 }
  0x45   : >> { %796 = vmatpush.bf16.msra.mxu3 %v5943_v27  ;;  %v9599_v52 = vld [vmem:[%s9578_s22] sm:$0xf]  ;;  %v5884_v1 = vld [vmem:[%s13368_s1 + $0xb8] sm:$0xf0]  ;;  %v8453_v2 = vld [vmem:[%s13368_s1 + $0x1ac] sm:$0xf]  ;;  %v6011_v5 = vor.u32 %v8455_v63, %v6010_v61 }
  0x46   : >> { %v6012_v3 = vld [vmem:[%s13368_s1 + $0x1b8] sm:$0xf0]  ;;  %v5887_v6 = vor.u32 %v8421_v0, %v5884_v1  ;;  %v5866_v7 = vld [vmem:[%s13368_s1 + $0x88] sm:$0xf]  ;;  %v8419_v8 = vld [vmem:[%s13368_s1 + $0x94] sm:$0xf0] }
  0x47   : >> { %758 = vmatpush.bf16.msra.mxu0 %v5795_v33  ;;  %v5994_v9 = vld [vmem:[%s13368_s1 + $0x188] sm:$0xf]  ;;  %v6015_v10 = vor.u32 %v8453_v2, %v6012_v3  ;;  %v8451_v11 = vld [vmem:[%s13368_s1 + $0x194] sm:$0xf0]  ;;  %v8417_v12 = vld [vmem:[%s13368_s1 + $0x8c] sm:$0xf]  ;;  %v5867_v16 = vor.u32 %v8419_v8, %v5866_v7 }
  0x48   : >> { %771 = vmatpush.bf16.msra.mxu1 %v5923_v37  ;;  %784 = vmatpush.bf16.msra.mxu2 %v5799_v38  ;;  %v5868_v13 = vld [vmem:[%s13368_s1 + $0x98] sm:$0xf0]  ;;  %v8449_v14 = vld [vmem:[%s13368_s1 + $0x18c] sm:$0xf]  ;;  %v5995_v17 = vor.u32 %v8451_v11, %v5994_v9  ;;  %v5850_v19 = vld [vmem:[%s13368_s1 + $0x68] sm:$0xf] }
  0x49   : >> { %797 = vmatpush.bf16.msra.mxu3 %v5927_v41  ;;  %v5996_v15 = vld [vmem:[%s13368_s1 + $0x198] sm:$0xf0]  ;;  %v5871_v18 = vor.u32 %v8417_v12, %v5868_v13  ;;  %v8415_v20 = vld [vmem:[%s13368_s1 + $0x74] sm:$0xf0]  ;;  %v5978_v21 = vld [vmem:[%s13368_s1 + $0x168] sm:$0xf] }
  0x4a   : >> { %759 = vmatmul.bf16.vlgmr.msra.gmra.mxu0 %v9599_v52  ;;  %v5999_v22 = vor.u32 %v8449_v14, %v5996_v15  ;;  %v8447_v23 = vld [vmem:[%s13368_s1 + $0x174] sm:$0xf0]  ;;  %v8413_v24 = vld [vmem:[%s13368_s1 + $0x6c] sm:$0xf]  ;;  %v5852_v25 = vld [vmem:[%s13368_s1 + $0x78] sm:$0xf0]  ;;  %v5851_v28 = vor.u32 %v8415_v20, %v5850_v19 }
  0x4b   : >> { %803 = vmatpush.bf16.msrb.mxu0 %v5915_v42  ;;  %785 = vmatmul.bf16.vlgmr.msra.gmra.mxu2 %v9599_v52  ;;  %v8445_v26 = vld [vmem:[%s13368_s1 + $0x16c] sm:$0xf]  ;;  %v5980_v27 = vld [vmem:[%s13368_s1 + $0x178] sm:$0xf0]  ;;  %v5834_v29 = vld [vmem:[%s13368_s1 + $0x48] sm:$0xf]  ;;  %v5979_v30 = vor.u32 %v8447_v23, %v5978_v21  ;;  %v5855_v31 = vor.u32 %v8413_v24, %v5852_v25 }
  0x4c   : >> { %816 = vmatpush.bf16.msrb.mxu1 %v6043_v43  ;;  %829 = vmatpush.bf16.msrb.mxu2 %v5919_v44  ;;  %v8411_v32 = vld [vmem:[%s13368_s1 + $0x54] sm:$0xf0]  ;;  %v5962_v33 = vld [vmem:[%s13368_s1 + $0x148] sm:$0xf]  ;;  %v5983_v35 = vor.u32 %v8445_v26, %v5980_v27  ;;  %v8409_v36 = vld [vmem:[%s13368_s1 + $0x4c] sm:$0xf] }
  0x4d   : >> { %842 = vmatpush.bf16.msrb.mxu3 %v6047_v48  ;;  %772 = vmatmul.bf16.vlgmr.msra.gmra.mxu1 %v9607_v55  ;;  %v8443_v34 = vld [vmem:[%s13368_s1 + $0x154] sm:$0xf0]  ;;  %v5836_v37 = vld [vmem:[%s13368_s1 + $0x58] sm:$0xf0]  ;;  %v8441_v38 = vld [vmem:[%s13368_s1 + $0x14c] sm:$0xf]  ;;  %v5835_v42 = vor.u32 %v8411_v32, %v5834_v29 }
  0x4e   : >> { %798 = vmatmul.bf16.vlgmr.msra.gmra.mxu3 %v9607_v55  ;;  %v5964_v39 = vld [vmem:[%s13368_s1 + $0x158] sm:$0xf0]  ;;  %v5818_v40 = vld [vmem:[%s13368_s1 + $0x28] sm:$0xf]  ;;  %v8407_v41 = vld [vmem:[%s13368_s1 + $0x34] sm:$0xf0]  ;;  %v5963_v47 = vor.u32 %v8443_v34, %v5962_v33  ;;  %v5839_v48 = vor.u32 %v8409_v36, %v5836_v37 }
  0x4f   : >> { %804 = vmatpush.bf16.msrb.mxu0 %v5899_v56  ;;  %v5946_v43 = vld [vmem:[%s13368_s1 + $0x128] sm:$0xf]  ;;  %v8439_v44 = vld [vmem:[%s13368_s1 + $0x134] sm:$0xf0]  ;;  %v8405_v45 = vld [vmem:[%s13368_s1 + $0x2c] sm:$0xf]  ;;  %v5967_v49 = vor.u32 %v8441_v38, %v5964_v39  ;;  %v5819_v56 = vor.u32 %v8407_v41, %v5818_v40 }
  0x50   : >> { %817 = vmatpush.bf16.msrb.mxu1 %v6027_v57  ;;  %830 = vmatpush.bf16.msrb.mxu2 %v5903_v58  ;;  %v5820_v46 = vld [vmem:[%s13368_s1 + $0x38] sm:$0xf0]  ;;  %v8437_v50 = vld [vmem:[%s13368_s1 + $0x12c] sm:$0xf]  ;;  %v5802_v53 = vld [vmem:[%s13368_s1 + $0x8] sm:$0xf]  ;;  %v5947_v61 = vor.u32 %v8439_v44, %v5946_v43 }
  0x51   : >> { %843 = vmatpush.bf16.msrb.mxu3 %v6031_v62  ;;  %v5948_v51 = vld [vmem:[%s13368_s1 + $0x138] sm:$0xf0]  ;;  %v8403_v54 = vld [vmem:[%s13368_s1 + $0x14] sm:$0xf0]  ;;  %v5930_v57 = vld [vmem:[%s13368_s1 + $0x108] sm:$0xf]  ;;  %v5823_v62 = vor.u32 %v8405_v45, %v5820_v46 }
  0x52   : >> { %v8435_v58 = vld [vmem:[%s13368_s1 + $0x114] sm:$0xf0]  ;;  %v8401_v59 = vld [vmem:[%s13368_s1 + $0xc] sm:$0xf]  ;;  %v5804_v60 = vld [vmem:[%s13368_s1 + $0x18] sm:$0xf0]  ;;  %v5951_v2 = vor.u32 %v8437_v50, %v5948_v51 }
  0x53   : >> { %805 = vmatpush.bf16.msrb.mxu0 %v5883_v4  ;;  %v8433_v63 = vld [vmem:[%s13368_s1 + $0x10c] sm:$0xf]  ;;  %v5932_v0 = vld [vmem:[%s13368_s1 + $0x118] sm:$0xf0]  ;;  %v6422_v1 = vld [vmem:[%s13369_s2 + $0x2e0] sm:$0xf]  ;;  %v5803_v4 = vor.u32 %v8403_v54, %v5802_v53 }
  0x54   : >> { %818 = vmatpush.bf16.msrb.mxu1 %v6011_v5  ;;  %831 = vmatpush.bf16.msrb.mxu2 %v5887_v6  ;;  %v8566_v3 = vld [vmem:[%s13369_s2 + $0x2ec] sm:$0xf0]  ;;  %v5931_v5 = vor.u32 %v8435_v58, %v5930_v57  ;;  %v5807_v6 = vor.u32 %v8401_v59, %v5804_v60  ;;  %v5935_v7 = vor.u32 %v8433_v63, %v5932_v0  ;;  %v6166_v9 = vld [vmem:[%s13369_s2 + $0xe0] sm:$0xf]  ;;  %v8500_v34 = vld [vmem:[%s13369_s2 + $0xe4] sm:$0xf] }
  0x55   : >> { %844 = vmatpush.bf16.msrb.mxu3 %v6015_v10  ;;  %v6423_v8 = vor.u32 %v8566_v3, %v6422_v1  ;;  %v8502_v10 = vld [vmem:[%s13369_s2 + $0xec] sm:$0xf0]  ;;  %v6406_v11 = vld [vmem:[%s13369_s2 + $0x2c0] sm:$0xf]  ;;  %v6168_v36 = vld [vmem:[%s13369_s2 + $0xf0] sm:$0xf0] }
  0x56   : >> { %v8562_v12 = vld [vmem:[%s13369_s2 + $0x2cc] sm:$0xf0]  ;;  %v6167_v13 = vor.u32 %v8502_v10, %v6166_v9  ;;  %v6150_v15 = vld [vmem:[%s13369_s2 + $0xc0] sm:$0xf]  ;;  %v6171_v37 = vor.u32 %v8500_v34, %v6168_v36  ;;  %v8496_v43 = vld [vmem:[%s13369_s2 + $0xc4] sm:$0xf] }
  0x57   : >> { %806 = vmatpush.bf16.msrb.mxu0 %v5867_v16  ;;  %v6407_v14 = vor.u32 %v8562_v12, %v6406_v11  ;;  %v8498_v16 = vld [vmem:[%s13369_s2 + $0xcc] sm:$0xf0]  ;;  %v6374_v21 = vld [vmem:[%s13369_s2 + $0x280] sm:$0xf]  ;;  %v6152_v45 = vld [vmem:[%s13369_s2 + $0xd0] sm:$0xf0] }
  0x58   : >> { %819 = vmatpush.bf16.msrb.mxu1 %v5995_v17  ;;  %832 = vmatpush.bf16.msrb.mxu2 %v5871_v18  ;;  %v6390_v17 = vld [vmem:[%s13369_s2 + $0x2a0] sm:$0xf]  ;;  %v8558_v18 = vld [vmem:[%s13369_s2 + $0x2ac] sm:$0xf0]  ;;  %v6151_v19 = vor.u32 %v8498_v16, %v6150_v15  ;;  %v6174_v46 = vld [vmem:[%s13369_s2 + $0xe8] sm:$0xf] }
  0x59   : >> { %845 = vmatpush.bf16.msrb.mxu3 %v5999_v22  ;;  %v6391_v20 = vor.u32 %v8558_v18, %v6390_v17  ;;  %v8554_v22 = vld [vmem:[%s13369_s2 + $0x28c] sm:$0xf0]  ;;  %v6358_v24 = vld [vmem:[%s13369_s2 + $0x260] sm:$0xf]  ;;  %v8492_v58 = vld [vmem:[%s13369_s2 + $0xa4] sm:$0xf] }
  0x5a   : >> { %v6375_v23 = vor.u32 %v8554_v22, %v6374_v21  ;;  %v6342_v26 = vld [vmem:[%s13369_s2 + $0x240] sm:$0xf]  ;;  %v8546_v27 = vld [vmem:[%s13369_s2 + $0x24c] sm:$0xf0]  ;;  %v6136_v59 = vld [vmem:[%s13369_s2 + $0xb0] sm:$0xf0] }
  0x5b   : >> { %807 = vmatpush.bf16.msrb.mxu0 %v5851_v28  ;;  %v6343_v28 = vor.u32 %v8546_v27, %v6342_v26  ;;  %v6134_v29 = vld [vmem:[%s13369_s2 + $0xa0] sm:$0xf]  ;;  %v8542_v33 = vld [vmem:[%s13369_s2 + $0x22c] sm:$0xf0]  ;;  %v6158_v60 = vld [vmem:[%s13369_s2 + $0xc8] sm:$0xf] }
  0x5c   : >> { %820 = vmatpush.bf16.msrb.mxu1 %v5979_v30  ;;  %833 = vmatpush.bf16.msrb.mxu2 %v5855_v31  ;;  %v8494_v30 = vld [vmem:[%s13369_s2 + $0xac] sm:$0xf0]  ;;  %v6326_v31 = vld [vmem:[%s13369_s2 + $0x220] sm:$0xf]  ;;  %v8495_v10 = vld [vmem:[%s13369_s2 + $0xb4] sm:$0xf0] }
  0x5d   : >> { %846 = vmatpush.bf16.msrb.mxu3 %v5983_v35  ;;  %v6135_v32 = vor.u32 %v8494_v30, %v6134_v29  ;;  %v6327_v35 = vor.u32 %v8542_v33, %v6326_v31  ;;  %v6118_v38 = vld [vmem:[%s13369_s2 + $0x80] sm:$0xf]  ;;  %v8490_v39 = vld [vmem:[%s13369_s2 + $0x8c] sm:$0xf0]  ;;  %v8484_v18 = vld [vmem:[%s13369_s2 + $0x64] sm:$0xf] }
  0x5e   : >> { %v6310_v40 = vld [vmem:[%s13369_s2 + $0x200] sm:$0xf]  ;;  %v6119_v41 = vor.u32 %v8490_v39, %v6118_v38  ;;  %v8534_v51 = vld [vmem:[%s13369_s2 + $0x1ec] sm:$0xf0]  ;;  %v8491_v22 = vld [vmem:[%s13369_s2 + $0x94] sm:$0xf0] }
  0x5f   : >> { %808 = vmatpush.bf16.msrb.mxu0 %v5835_v42  ;;  %v8538_v42 = vld [vmem:[%s13369_s2 + $0x20c] sm:$0xf0]  ;;  %v6294_v50 = vld [vmem:[%s13369_s2 + $0x1e0] sm:$0xf]  ;;  %v8480_v30 = vld [vmem:[%s13369_s2 + $0x44] sm:$0xf] }
  0x60   : >> { %821 = vmatpush.bf16.msrb.mxu1 %v5963_v47  ;;  %834 = vmatpush.bf16.msrb.mxu2 %v5839_v48  ;;  %v6311_v44 = vor.u32 %v8538_v42, %v6310_v40  ;;  %v8503_v47 = vld [vmem:[%s13369_s2 + $0xf4] sm:$0xf0]  ;;  %v6155_v48 = vor.u32 %v8496_v43, %v6152_v45  ;;  %v6295_v53 = vor.u32 %v8534_v51, %v6294_v50  ;;  %v6102_v54 = vld [vmem:[%s13369_s2 + $0x60] sm:$0xf]  ;;  %v8530_v1 = vld [vmem:[%s13369_s2 + $0x1cc] sm:$0xf0] }
  0x61   : >> { %847 = vmatpush.bf16.msrb.mxu3 %v5967_v49  ;;  %v6175_v49 = vor.u32 %v8503_v47, %v6174_v46  ;;  %v6278_v0 = vld [vmem:[%s13369_s2 + $0x1c0] sm:$0xf]  ;;  %v8478_v16 = vld [vmem:[%s13369_s2 + $0x2c] sm:$0xf0]  ;;  %v6088_v31 = vld [vmem:[%s13369_s2 + $0x50] sm:$0xf0] }
  0x62   : >> { %v6086_v3 = vld [vmem:[%s13369_s2 + $0x40] sm:$0xf]  ;;  %v6091_v33 = vor.u32 %v8480_v30, %v6088_v31  ;;  %v6296_v34 = vld [vmem:[%s13369_s2 + $0x1f0] sm:$0xf0]  ;;  %v8487_v36 = vld [vmem:[%s13369_s2 + $0x74] sm:$0xf0] }
  0x63   : >> { %809 = vmatpush.bf16.msrb.mxu0 %v5819_v56  ;;  %v8486_v56 = vld [vmem:[%s13369_s2 + $0x6c] sm:$0xf0]  ;;  %v6262_v12 = vld [vmem:[%s13369_s2 + $0x1a0] sm:$0xf]  ;;  %v8476_v43 = vld [vmem:[%s13369_s2 + $0x24] sm:$0xf] }
  0x64   : >> { %822 = vmatpush.bf16.msrb.mxu1 %v5947_v61  ;;  %835 = vmatpush.bf16.msrb.mxu2 %v5823_v62  ;;  %v6103_v57 = vor.u32 %v8486_v56, %v6102_v54  ;;  %v6139_v61 = vor.u32 %v8492_v58, %v6136_v59  ;;  %v8499_v62 = vld [vmem:[%s13369_s2 + $0xd4] sm:$0xf0]  ;;  %v6070_v15 = vld [vmem:[%s13369_s2 + $0x20] sm:$0xf]  ;;  %v8518_v40 = vld [vmem:[%s13369_s2 + $0x16c] sm:$0xf0] }
  0x65   : >> { %848 = vmatpush.bf16.msrb.mxu3 %v5951_v2  ;;  %v6159_v63 = vor.u32 %v8499_v62, %v6158_v60  ;;  %v6279_v2 = vor.u32 %v8530_v1, %v6278_v0  ;;  %v6071_v17 = vor.u32 %v8478_v16, %v6070_v15  ;;  %v6054_v27 = vld [vmem:[%s13369_s2] sm:$0xf]  ;;  %v8528_v45 = vld [vmem:[%s13369_s2 + $0x1c4] sm:$0xf]  ;;  %v6280_v47 = vld [vmem:[%s13369_s2 + $0x1d0] sm:$0xf0] }
  0x66   : >> { %v6230_v39 = vld [vmem:[%s13369_s2 + $0x160] sm:$0xf]  ;;  %v6283_v51 = vor.u32 %v8528_v45, %v6280_v47  ;;  %v8514_v56 = vld [vmem:[%s13369_s2 + $0x14c] sm:$0xf0]  ;;  %v8472_v59 = vld [vmem:[%s13369_s2 + $0x4] sm:$0xf] }
  0x67   : >> { %810 = vmatpush.bf16.msrb.mxu0 %v5803_v4  ;;  %v8482_v4 = vld [vmem:[%s13369_s2 + $0x4c] sm:$0xf0]  ;;  %v6231_v42 = vor.u32 %v8518_v40, %v6230_v39  ;;  %v9048_v50 = vld [vmem:[%s13371_s4] ss:$0 sm:$0xff]  ;;  %v6056_v60 = vld [vmem:[%s13369_s2 + $0x10] sm:$0xf0] }
  0x68   : >> { %823 = vmatpush.bf16.msrb.mxu1 %v5931_v5  ;;  %836 = vmatpush.bf16.msrb.mxu2 %v5807_v6  ;;  %v6087_v5 = vor.u32 %v8482_v4, %v6086_v3  ;;  %v8488_v6 = vld [vmem:[%s13369_s2 + $0x84] sm:$0xf]  ;;  %v6214_v54 = vld [vmem:[%s13369_s2 + $0x140] sm:$0xf]  ;;  %v6264_v0 = vld [vmem:[%s13369_s2 + $0x1b0] sm:$0xf0] }
  0x69   : >> { %849 = vmatpush.bf16.msrb.mxu3 %v5935_v7  ;;  %v6120_v7 = vld [vmem:[%s13369_s2 + $0x90] sm:$0xf0]  ;;  %v6215_v58 = vor.u32 %v8514_v56, %v6214_v54  ;;  %v6078_v1 = vld [vmem:[%s13369_s2 + $0x28] sm:$0xf]  ;;  %v8520_v16 = vld [vmem:[%s13369_s2 + $0x184] sm:$0xf] }
  0x6a   : >> { %811 = vmatmul.bf16.vlgmr.msrb.gmra.mxu0 %v9599_v52  ;;  %v6123_v9 = vor.u32 %v8488_v6, %v6120_v7  ;;  %v8479_v6 = vld [vmem:[%s13369_s2 + $0x34] sm:$0xf0]  ;;  %v6302_v7 = vld [vmem:[%s13369_s2 + $0x1e8] sm:$0xf]  ;;  %v6182_v30 = vld [vmem:[%s13369_s2 + $0x100] sm:$0xf] }
  0x6b   : >> { %824 = vmatmul.bf16.vlgmr.msrb.gmra.mxu1 %v9607_v55  ;;  %837 = vmatmul.bf16.vlgmr.msrb.gmra.mxu2 %v9599_v52  ;;  %v8506_v31 = vld [vmem:[%s13369_s2 + $0x10c] sm:$0xf0]  ;;  %v6270_v45 = vld [vmem:[%s13369_s2 + $0x1a8] sm:$0xf]  ;;  %v8560_v56 = vld [vmem:[%s13369_s2 + $0x2c4] sm:$0xf] }
  0x6c   : >> { %1566 = vmatpush.bf16.msra.mxu2 %v6423_v8  ;;  %850 = vmatmul.bf16.vlgmr.msrb.gmra.mxu3 %v9607_v55  ;;  %v8550_v55 = vld [vmem:[%s13369_s2 + $0x26c] sm:$0xf0]  ;;  %v6142_v8 = vld [vmem:[%s13369_s2 + $0xa8] sm:$0xf]  ;;  %s8680_s14 = sshll.u32 %s9239_s29, 4  ;;  %s350_s29 = sadd.s32 1, %s9239_s29  }
  0x6d   : >> { %1540 = vmatpush.bf16.msra.mxu0 %v6167_v13  ;;  %v6359_v25 = vor.u32 %v8550_v55, %v6358_v24  ;;  %1579 = vmatpush.bf16.msra.mxu3 %v6171_v37  ;;  %v6143_v11 = vor.u32 %v8495_v10, %v6142_v8  ;;  %v8526_v13 = vld [vmem:[%s13369_s2 + $0x1ac] sm:$0xf0]  ;;  %v6246_v55 = vld [vmem:[%s13369_s2 + $0x180] sm:$0xf]  ;;  %v8535_v8 = vld [vmem:[%s13369_s2 + $0x1f4] sm:$0xf0]  ;;  %v6079_v10 = vor.u32 %v8479_v6, %v6078_v1 }
  0x6e   : >> { %1553 = vmatpush.bf16.msra.mxu1 %v6295_v53  ;;  %v8523_v1 = vld [vmem:[%s13369_s2 + $0x194] sm:$0xf0]  ;;  %s11998_s17 = scalar_lea.vmem [#allocation4], %s8680_s14  ;;  %p347_p12 = scmp.ge.s32.totalorder %s350_s29, 16  }
  0x6f   : > { %s8980_s11 = sshll.u32 (%p347_p12), %s9316_s13, 9  ;;  %s5700_s13 = sshll.u32 (%p347_p12), %s9352_s28, 4  ;;  %s5701_s13 = int_to_ptr.vmem [resolvable:$true] %s5700_s13 }
  0x70   : >> { %1567 = vmatpush.bf16.msra.mxu2 %v6407_v14  ;;  %v6263_v14 = vor.u32 %v8526_v13, %v6262_v12  ;;  %v6198_v12 = vld [vmem:[%s13369_s2 + $0x120] sm:$0xf]  ;;  %v8510_v13 = vld [vmem:[%s13369_s2 + $0x12c] sm:$0xf0]  ;;  %s5699_s23 = scalar_lea.hbm (%p347_p12), %s13376_s9, %s8980_s11  ;;  %s13397_s24 = sand.u32 (%p347_p12), 1, %s9227_s10  }
  0x71   : >> { %1541 = vmatpush.bf16.msra.mxu0 %v6151_v19  ;;  %1580 = vmatpush.bf16.msra.mxu3 %v6155_v48  ;;  %v6104_v19 = vld [vmem:[%s13369_s2 + $0x70] sm:$0xf0]  ;;  %v6094_v48 = vld [vmem:[%s13369_s2 + $0x48] sm:$0xf]  ;;  %v6199_v15 = vor.u32 %v8510_v13, %v6198_v12  ;;  %v8508_v12 = vld [vmem:[%s13369_s2 + $0x124] sm:$0xf] }
  0x72   : >> { %1554 = vmatpush.bf16.msra.mxu1 %v6279_v2  ;;  %v6107_v21 = vor.u32 %v8484_v18, %v6104_v19  ;;  %v6062_v18 = vld [vmem:[%s13369_s2 + $0x8] sm:$0xf]  ;;  %v9049_v19 = vld [vmem:[%s13371_s4 + $0x1] ss:$0 sm:$0xff]  ;;  %v6200_v13 = vld [vmem:[%s13369_s2 + $0x130] sm:$0xf0] }
  0x73   : > { %s5702_s14 = sshll.u32 (%p347_p12), %s5699_s23, 4  ;;  %s5687_s25 = scalar_lea.sflag (%p347_p12), [#allocation6], %s13397_s24  ;;  %s5703_s14 = int_to_ptr.hbm [resolvable:$true] %s5702_s14 }
  0x74   : >> { %1568 = vmatpush.bf16.msra.mxu2 %v6391_v20  ;;  %v6126_v20 = vld [vmem:[%s13369_s2 + $0x88] sm:$0xf]  ;;  %s9183_s0 = sshra.s32 (%p347_p12), %s5703_s14, 4  ;;  %s9189_s26 = scalar_lea.hbm (%p347_p12), %s13376_s9, 1024  ;;  %s9184_s0 = int_to_ptr.hbm [resolvable:$true] %s9183_s0 }
  0x75   : >> { %1542 = vmatpush.bf16.msra.mxu0 %v6135_v32  ;;  %1581 = vmatpush.bf16.msra.mxu3 %v6139_v61  ;;  %v6127_v24 = vor.u32 %v8491_v22, %v6126_v20  ;;  %v8532_v32 = vld [vmem:[%s13369_s2 + $0x1e4] sm:$0xf]  ;;  %v6286_v22 = vld [vmem:[%s13369_s2 + $0x1c8] sm:$0xf]  ;;  %s9185_s21 = scalar_lea.hbm (%p347_p12), %s9184_s0, 512  ;;  %p9190_p2 = scmp.lt.s32.totalorder (%p347_p12), %s9184_s0, %s13376_s9 }
  0x76   : >> { %1555 = vmatpush.bf16.msra.mxu1 %v6263_v14  ;;  %v6299_v37 = vor.u32 %v8532_v32, %v6296_v34  ;;  %v8524_v61 = vld [vmem:[%s13369_s2 + $0x1a4] sm:$0xf]  ;;  %p9186_p13 = scmp.ne.s32.totalorder (%p347_p12), %s9184_s0, %s9185_s21  ;;  %p9191_p3 = scmp.lt.s32.totalorder (%p347_p12), %s9189_s26, %s9185_s21 }
  0x78   : >> { %1569 = vmatpush.bf16.msra.mxu2 %v6375_v23  ;;  %v9926_v23 = vld [vmem:[%s13370_s3] ss:$4 sm:$0xf]  ;;  %p9187_p0 = pnand (%p347_p12), %p9186_p13, %p9333_p5  ;;  %p9192_p4 = por (%p347_p12), %p9191_p3, %p9190_p2 }
  0x79   : >> { %1543 = vmatpush.bf16.msra.mxu0 %v6119_v41  ;;  %1582 = vmatpush.bf16.msra.mxu3 %v6123_v9  ;;  %v423_v41 = vperm.slane %v9926_v23, 0  ;;  %v424_v9 = vperm.slane %v9926_v23, 1 }
  0x7a   : > { %p9188_p1 = pneg (%p347_p12), %p9187_p0 }
  0x7c   : >> { %1570 = vmatpush.bf16.msra.mxu2 %v6359_v25  ;;  %v8522_v25 = vld [vmem:[%s13369_s2 + $0x18c] sm:$0xf0]  ;;  %p9193_p7 = pnand (%p347_p12), %p9192_p4, %p9188_p1 }
  0x7d   : >> { %1544 = vmatpush.bf16.msra.mxu0 %v6103_v57  ;;  %v6247_v26 = vor.u32 %v8522_v25, %v6246_v55  ;;  %1583 = vmatpush.bf16.msra.mxu3 %v6107_v21  ;;  %v9993_v57 = vld [vmem:[#allocation3 + $0x10] sm:$0xff]  ;;  %v8475_v21 = vld [vmem:[%s13369_s2 + $0x14] sm:$0xf0]  ;;  %v10045_v55 = vld [vmem:[#allocation2 + $0x4] sm:$0xf] }
  0x7e   : >> { %v857_v4 = vmul.f32 %v9048_v50, %v9993_v57  ;;  %v6063_v25 = vor.u32 %v8475_v21, %v6062_v18  ;;  %v880_v40 = vmul.f32 %v9049_v19, %v9993_v57  ;;  %v6288_v50 = vld [vmem:[%s13369_s2 + $0x1d8] sm:$0xf0]  ;;  %v8519_v18 = vld [vmem:[%s13369_s2 + $0x174] sm:$0xf0] }
  0x7f   : >> { %1556 = vmatpush.bf16.msra.mxu1 %v6247_v26  ;;  %v8531_v26 = vld [vmem:[%s13369_s2 + $0x1d4] sm:$0xf0]  ;;  %v6256_v21 = vld [vmem:[%s13369_s2 + $0x198] sm:$0xf0] }
  0x80   : >> { %1571 = vmatpush.bf16.msra.mxu2 %v6343_v28  ;;  %v8474_v28 = vld [vmem:[%s13369_s2 + $0xc] sm:$0xf0] }
  0x81   : >> { %1545 = vmatpush.bf16.msra.mxu0 %v6087_v5  ;;  %v6055_v29 = vor.u32 %v8474_v28, %v6054_v27  ;;  %1584 = vmatpush.bf16.msra.mxu3 %v6091_v33  ;;  %v6267_v5 = vor.u32 %v8524_v61, %v6264_v0  ;;  %v8533_v27 = vld [vmem:[%s13369_s2 + $0x1ec] sm:$0xf]  ;;  %v6287_v28 = vor.u32 %v8531_v26, %v6286_v22  ;;  %v6216_v61 = vld [vmem:[%s13369_s2 + $0x150] sm:$0xf0]  ;;  %v6254_v0 = vld [vmem:[%s13369_s2 + $0x188] sm:$0xf] }
  0x82   : >> { %v8552_v22 = vld [vmem:[%s13369_s2 + $0x284] sm:$0xf] }
  0x83   : >> { %1557 = vmatpush.bf16.msra.mxu1 %v6231_v42  ;;  %v8504_v26 = vld [vmem:[%s13369_s2 + $0x104] sm:$0xf] }
  0x84   : >> { %1572 = vmatpush.bf16.msra.mxu2 %v6327_v35  ;;  %v6110_v35 = vld [vmem:[%s13369_s2 + $0x68] sm:$0xf] }
  0x85   : >> { %1546 = vmatpush.bf16.msra.mxu0 %v6071_v17  ;;  %v6111_v38 = vor.u32 %v8487_v36, %v6110_v35  ;;  %v6248_v17 = vld [vmem:[%s13369_s2 + $0x190] sm:$0xf0]  ;;  %v6183_v35 = vor.u32 %v8506_v31, %v6182_v30  ;;  %v8564_v36 = vld [vmem:[%s13369_s2 + $0x2e4] sm:$0xf]  ;;  %v6222_v30 = vld [vmem:[%s13369_s2 + $0x148] sm:$0xf] }
  0x86   : >> { %v6251_v20 = vor.u32 %v8520_v16, %v6248_v17  ;;  %v6203_v16 = vor.u32 %v8508_v12, %v6200_v13  ;;  %v6238_v17 = vld [vmem:[%s13369_s2 + $0x168] sm:$0xf]  ;;  %v8515_v31 = vld [vmem:[%s13369_s2 + $0x154] sm:$0xf0]  ;;  %v6432_v12 = vld [vmem:[%s13369_s2 + $0x2f8] sm:$0xf0] }
  0x87   : >> { %1558 = vmatpush.bf16.msra.mxu1 %v6215_v58  ;;  %v6408_v58 = vld [vmem:[%s13369_s2 + $0x2d0] sm:$0xf0]  ;;  %v6239_v19 = vor.u32 %v8519_v18, %v6238_v17  ;;  %v8540_v17 = vld [vmem:[%s13369_s2 + $0x224] sm:$0xf] }
  0x88   : >> { %1573 = vmatpush.bf16.msra.mxu2 %v6311_v44  ;;  %v6072_v44 = vld [vmem:[%s13369_s2 + $0x30] sm:$0xf0] }
  0x89   : >> { %1547 = vmatpush.bf16.msra.mxu0 %v6055_v29  ;;  %v6075_v46 = vor.u32 %v8476_v43, %v6072_v44  ;;  %v6304_v29 = vld [vmem:[%s13369_s2 + $0x1f8] sm:$0xf0]  ;;  %v8516_v43 = vld [vmem:[%s13369_s2 + $0x164] sm:$0xf]  ;;  %v6232_v44 = vld [vmem:[%s13369_s2 + $0x170] sm:$0xf0] }
  0x8a   : >> { %v6307_v34 = vor.u32 %v8533_v27, %v6304_v29  ;;  %v6235_v47 = vor.u32 %v8516_v43, %v6232_v44  ;;  %v6184_v27 = vld [vmem:[%s13369_s2 + $0x110] sm:$0xf0] }
  0x8b   : >> { %1585 = vmatpush.bf16.msra.mxu3 %v6075_v46  ;;  %1559 = vmatpush.bf16.msra.mxu1 %v6199_v15  ;;  %v6187_v29 = vor.u32 %v8504_v26, %v6184_v27  ;;  %v6328_v18 = vld [vmem:[%s13369_s2 + $0x230] sm:$0xf0]  ;;  %v6192_v26 = vld [vmem:[%s13369_s2 + $0x118] sm:$0xf0]  ;;  %v426_v27 = vperm.slane %v9926_v23, 3 }
  0x8c   : >> { %1618 = vmatpush.bf16.msrb.mxu2 %v6175_v49  ;;  %v8483_v49 = vld [vmem:[%s13369_s2 + $0x54] sm:$0xf0]  ;;  %1548 = vmatmul.bf16.vlgmr.msra.gmra.mxu0 %v9599_v52 }
  0x8d   : >> { %1592 = vmatpush.bf16.msrb.mxu0 %v6299_v37  ;;  %v6095_v53 = vor.u32 %v8483_v49, %v6094_v48  ;;  %1574 = vmatmul.bf16.vlgmr.msra.gmra.mxu2 %v10045_v55  ;;  %v6424_v37 = vld [vmem:[%s13369_s2 + $0x2f0] sm:$0xf0]  ;;  %v8527_v48 = vld [vmem:[%s13369_s2 + $0x1b4] sm:$0xf0]  ;;  %v8529_v49 = vld [vmem:[%s13369_s2 + $0x1cc] sm:$0xf] }
  0x8e   : >> { %v6427_v42 = vor.u32 %v8564_v36, %v6424_v37  ;;  %v6291_v54 = vor.u32 %v8529_v49, %v6288_v50  ;;  %v8563_v49 = vld [vmem:[%s13369_s2 + $0x2d4] sm:$0xf0]  ;;  %v8513_v50 = vld [vmem:[%s13369_s2 + $0x14c] sm:$0xf] }
  0x8f   : >> { %1560 = vmatpush.bf16.msra.mxu1 %v6183_v35  ;;  %v8517_v35 = vld [vmem:[%s13369_s2 + $0x16c] sm:$0xf] }
  0x90   : >> { %1619 = vmatpush.bf16.msrb.mxu2 %v6159_v63  ;;  %v6059_v63 = vor.u32 %v8472_v59, %v6056_v60  ;;  %v6411_v59 = vor.u32 %v8560_v56, %v6408_v58  ;;  %v8512_v60 = vld [vmem:[%s13369_s2 + $0x144] sm:$0xf]  ;;  %v6224_v56 = vld [vmem:[%s13369_s2 + $0x158] sm:$0xf0] }
  0x91   : >> { %1593 = vmatpush.bf16.msrb.mxu0 %v6283_v51  ;;  %v8544_v58 = vld [vmem:[%s13369_s2 + $0x244] sm:$0xf] }
  0x92   : >> { %1586 = vmatpush.bf16.msra.mxu3 %v6059_v63  ;;  %v6219_v63 = vor.u32 %v8512_v60, %v6216_v61  ;;  %v6344_v60 = vld [vmem:[%s13369_s2 + $0x250] sm:$0xf0] }
  0x93   : >> { %1605 = vmatpush.bf16.msrb.mxu1 %v6427_v42 }
  0x94   : >> { %1620 = vmatpush.bf16.msrb.mxu2 %v6143_v11  ;;  %v6303_v11 = vor.u32 %v8535_v8, %v6302_v7  ;;  %v8556_v7 = vld [vmem:[%s13369_s2 + $0x2a4] sm:$0xf]  ;;  %v6392_v8 = vld [vmem:[%s13369_s2 + $0x2b0] sm:$0xf0] }
  0x95   : >> { %1594 = vmatpush.bf16.msrb.mxu0 %v6267_v5  ;;  %1587 = vmatmul.bf16.vlgmr.msra.gmra.mxu3 %v9599_v52 }
  0x96   : >> { %1631 = vmatpush.bf16.msrb.mxu3 %v6303_v11  ;;  %v6395_v11 = vor.u32 %v8556_v7, %v6392_v8 }
  0x97   : >> { %1606 = vmatpush.bf16.msrb.mxu1 %v6411_v59  ;;  %v6227_v59 = vor.u32 %v8513_v50, %v6224_v56  ;;  %v6400_v50 = vld [vmem:[%s13369_s2 + $0x2b8] sm:$0xf0] }
  0x98   : >> { %1621 = vmatpush.bf16.msrb.mxu2 %v6127_v24 }
  0x99   : >> { %1595 = vmatpush.bf16.msrb.mxu0 %v6251_v20  ;;  %v8521_v20 = vld [vmem:[%s13369_s2 + $0x18c] sm:$0xf] }
  0x9a   : >> { %1632 = vmatpush.bf16.msrb.mxu3 %v6287_v28 }
  0x9b   : >> { %1607 = vmatpush.bf16.msrb.mxu1 %v6395_v11  ;;  %v8565_v11 = vld [vmem:[%s13369_s2 + $0x2ec] sm:$0xf] }
  0x9c   : >> { %1622 = vmatpush.bf16.msrb.mxu2 %v6111_v38 }
  0x9d   : >> { %1596 = vmatpush.bf16.msrb.mxu0 %v6235_v47 }
  0xa0   : >> { %1623 = vmatpush.bf16.msrb.mxu2 %v6095_v53  ;;  %v6271_v53 = vor.u32 %v8527_v48, %v6270_v45  ;;  %v8511_v45 = vld [vmem:[%s13369_s2 + $0x134] sm:$0xf0]  ;;  %v425_v48 = vperm.slane %v9926_v23, 2  ;;  %v8536_v23 = vld [vmem:[%s13369_s2 + $0x204] sm:$0xf] }
  0xa1   : >> { %1597 = vmatpush.bf16.msrb.mxu0 %v6219_v63  ;;  %v6190_v63 = vld [vmem:[%s13369_s2 + $0x108] sm:$0xf] }
  0xa2   : >> { %1633 = vmatpush.bf16.msrb.mxu3 %v6271_v53 }
  0xa4   : >> { %1624 = vmatpush.bf16.msrb.mxu2 %v6079_v10 }
  0xa5   : >> { %1598 = vmatpush.bf16.msrb.mxu0 %v6203_v16  ;;  %v6435_v16 = vor.u32 %v8565_v11, %v6432_v12  ;;  %v8543_v11 = vld [vmem:[%s13369_s2 + $0x234] sm:$0xf0] }
  0xa8   : >> { %1625 = vmatpush.bf16.msrb.mxu2 %v6063_v25  ;;  %v6376_v25 = vld [vmem:[%s13369_s2 + $0x290] sm:$0xf0] }
  0xa9   : >> { %v6379_v28 = vor.u32 %v8552_v22, %v6376_v25  ;;  %1599 = vmatpush.bf16.msrb.mxu0 %v6187_v29  ;;  %v6331_v22 = vor.u32 %v8540_v17, %v6328_v18  ;;  %v8505_v25 = vld [vmem:[%s13369_s2 + $0x10c] sm:$0xf]  ;;  %v6368_v17 = vld [vmem:[%s13369_s2 + $0x278] sm:$0xf0] }
  0xaa   : >> { %v6195_v29 = vor.u32 %v8505_v25, %v6192_v26  ;;  %v8539_v25 = vld [vmem:[%s13369_s2 + $0x214] sm:$0xf0] }
  0xab   : >> { %1608 = vmatpush.bf16.msrb.mxu1 %v6379_v28  ;;  %1626 = vmatmul.bf16.vlgmr.msrb.gmra.mxu2 %v9599_v52  ;;  %v6206_v52 = vld [vmem:[%s13369_s2 + $0x128] sm:$0xf] }
  0xac   : >> { %1670 = vmatpush.bf16.msra.mxu2 %v6307_v34  ;;  %v8567_v34 = vld [vmem:[%s13369_s2 + $0x2f4] sm:$0xf0]  ;;  %v6207_v53 = vor.u32 %v8511_v45, %v6206_v52 }
  0xb0   : >> { %1671 = vmatpush.bf16.msra.mxu2 %v6291_v54 }
  0xc7   : >> { %v760_v62 = vpop.f32.mrf.mxu0 }
  0xc8   : >> { %v761_v2 = vadd.f32 %v760_v62, %v423_v41 }
  0xca   : >> { %v773_v3 = vpop.f32.mrf.mxu1 }
  0xcb   : >> { %v774_v14 = vadd.f32 %v773_v3, %v761_v2  ;;  %v8525_v2 = vld [vmem:[%s13369_s2 + $0x1ac] sm:$0xf]  ;;  %v6255_v3 = vor.u32 %v8523_v1, %v6254_v0  ;;  %v8507_v0 = vld [vmem:[%s13369_s2 + $0x114] sm:$0xf0] }
  0xcd   : >> { %v858_v24 = vadd.f32 %v857_v4, %v774_v14  ;;  %v6272_v4 = vld [vmem:[%s13369_s2 + $0x1b8] sm:$0xf0]  ;;  %1634 = vmatpush.bf16.msrb.mxu3 %v6255_v3  ;;  %v6398_v3 = vld [vmem:[%s13369_s2 + $0x2a8] sm:$0xf] }
  0xce   : >> { %v786_v33 = vpop.f32.mrf.mxu2  ;;  %v6275_v6 = vor.u32 %v8525_v2, %v6272_v4  ;;  %v6191_v2 = vor.u32 %v8507_v0, %v6190_v63  ;;  %v8559_v4 = vld [vmem:[%s13369_s2 + $0x2b4] sm:$0xf0]  ;;  %v6350_v63 = vld [vmem:[%s13369_s2 + $0x248] sm:$0xf] }
  0xcf   : >> { %v6048_v32 = vmul.f32 -1.442695, %v858_v24  ;;  %v787_v38 = vadd.f32 %v786_v33, %v424_v9  ;;  %v762_v41 = vpop.f32.mrf.mxu0  ;;  %v6259_v24 = vor.u32 %v8521_v20, %v6256_v21  ;;  %v6430_v33 = vld [vmem:[%s13369_s2 + $0x2e8] sm:$0xf]  ;;  %v8547_v0 = vld [vmem:[%s13369_s2 + $0x254] sm:$0xf0] }
  0xd0   : >> { %1672 = vmatpush.bf16.msra.mxu2 %v6275_v6  ;;  %v6431_v37 = vor.u32 %v8567_v34, %v6430_v33 }
  0xd1   : >> { %v799_v39 = vpop.f32.mrf.mxu3  ;;  %9068 = vpow2.f32 %v6048_v32  ;;  %1635 = vmatpush.bf16.msrb.mxu3 %v6239_v19  ;;  %v6223_v32 = vor.u32 %v8515_v31, %v6222_v30  ;;  %v6382_v19 = vld [vmem:[%s13369_s2 + $0x288] sm:$0xf]  ;;  %v8561_v30 = vld [vmem:[%s13369_s2 + $0x2cc] sm:$0xf]  ;;  %v6416_v31 = vld [vmem:[%s13369_s2 + $0x2d8] sm:$0xf0] }
  0xd2   : >> { %v775_v46 = vpop.f32.mrf.mxu1  ;;  %v800_v51 = vadd.f32 %v799_v39, %v787_v38  ;;  %v6240_v38 = vld [vmem:[%s13369_s2 + $0x178] sm:$0xf0]  ;;  %v8548_v39 = vld [vmem:[%s13369_s2 + $0x264] sm:$0xf]  ;;  %1644 = vmatpush.bf16.msra.mxu0 %v6431_v37  ;;  %v6419_v34 = vor.u32 %v8561_v30, %v6416_v31  ;;  %v8541_v31 = vld [vmem:[%s13369_s2 + $0x22c] sm:$0xf] }
  0xd3   : >> { %v6243_v42 = vor.u32 %v8517_v35, %v6240_v38  ;;  %v6414_v46 = vld [vmem:[%s13369_s2 + $0x2c8] sm:$0xf]  ;;  %v6312_v35 = vld [vmem:[%s13369_s2 + $0x210] sm:$0xf0] }
  0xd4   : >> { %v881_v62 = vadd.f32 %v880_v40, %v800_v51  ;;  %1673 = vmatpush.bf16.msra.mxu2 %v6259_v24  ;;  %v6360_v40 = vld [vmem:[%s13369_s2 + $0x270] sm:$0xf0]  ;;  %v9050_v51 = vld [vmem:[%s13371_s4 + $0x2] ss:$0 sm:$0xff]  ;;  %v6415_v54 = vor.u32 %v8563_v49, %v6414_v46  ;;  %v8555_v24 = vld [vmem:[%s13369_s2 + $0x294] sm:$0xf0] }
  0xd5   : >> { %v6363_v43 = vor.u32 %v8548_v39, %v6360_v40  ;;  %1636 = vmatpush.bf16.msrb.mxu3 %v6223_v32  ;;  %v907_v8 = vmul.f32 %v9050_v51, %v9993_v57  ;;  %v6383_v28 = vor.u32 %v8555_v24, %v6382_v19  ;;  %v8557_v49 = vld [vmem:[%s13369_s2 + $0x2ac] sm:$0xf]  ;;  %v6318_v24 = vld [vmem:[%s13369_s2 + $0x208] sm:$0xf] }
  0xd6   : >> { %v6049_v5 = vmul.f32 -1.442695, %v881_v62  ;;  %v788_v10 = vpop.f32.mrf.mxu2  ;;  %1645 = vmatpush.bf16.msra.mxu0 %v6415_v54  ;;  %v6347_v62 = vor.u32 %v8544_v58, %v6344_v60  ;;  %v6403_v56 = vor.u32 %v8557_v49, %v6400_v50  ;;  %v6319_v26 = vor.u32 %v8539_v25, %v6318_v24  ;;  %v6719_v24 = vld [vmem:[%s13369_s2 + $0x3d0] sm:$0xf0] }
  0xd7   : >> { %v9069_v9 = vpop.eup %9068  ;;  %1609 = vmatpush.bf16.msrb.mxu1 %v6363_v43  ;;  %v6208_v10 = vld [vmem:[%s13369_s2 + $0x138] sm:$0xf0]  ;;  %v8551_v43 = vld [vmem:[%s13369_s2 + $0x274] sm:$0xf0] }
  0xd8   : >> { %v10125_v14 = vadd.f32 1.0, %v9069_v9  ;;  %9070 = vpow2.f32 %v6049_v5  ;;  %1674 = vmatpush.bf16.msra.mxu2 %v6243_v42  ;;  %v8509_v5 = vld [vmem:[%s13369_s2 + $0x12c] sm:$0xf]  ;;  %v6399_v9 = vor.u32 %v8559_v4, %v6398_v3  ;;  %v6366_v42 = vld [vmem:[%s13369_s2 + $0x268] sm:$0xf] }
  0xd9   : >> { %v801_v15 = vpop.f32.mrf.mxu3  ;;  %1637 = vmatpush.bf16.msrb.mxu3 %v6207_v53  ;;  %v8553_v3 = vld [vmem:[%s13369_s2 + $0x28c] sm:$0xf]  ;;  %v6384_v4 = vld [vmem:[%s13369_s2 + $0x298] sm:$0xf0] }
  0xda   : >> { %9072 = vrcp.f32 %v10125_v14  ;;  %v6211_v15 = vor.u32 %v8509_v5, %v6208_v10  ;;  %1646 = vmatpush.bf16.msra.mxu0 %v6399_v9  ;;  %vm868_vm1 = vweird.f32 %v10125_v14  ;;  %v6387_v5 = vor.u32 %v8553_v3, %v6384_v4  ;;  %v6334_v10 = vld [vmem:[%s13369_s2 + $0x228] sm:$0xf]  ;;  %v6096_v3 = vld [vmem:[%s13369_s2 + $0x58] sm:$0xf0] }
  0xdb   : >> { %1610 = vmatpush.bf16.msrb.mxu1 %v6347_v62  ;;  %v872_v62 = vand.u32 2147483647, %v10125_v14 }
  0xdc   : >> { %1675 = vmatpush.bf16.msra.mxu2 %v6227_v59  ;;  %v874_v59 = vand.u32 2147483648, %v10125_v14 }
  0xdd   : >> { %1638 = vmatpush.bf16.msrb.mxu3 %v6191_v2  ;;  %v6351_v2 = vor.u32 %v8547_v0, %v6350_v63  ;;  %vm873_vm7 = vcmp.eq.f32.partialorder %v872_v62, 8.507059e+37  ;;  %v6128_v62 = vld [vmem:[%s13369_s2 + $0x98] sm:$0xf0]  ;;  %v8485_v0 = vld [vmem:[%s13369_s2 + $0x6c] sm:$0xf] }
  0xde   : >> { %v9071_v36 = vpop.eup %9070  ;;  %1647 = vmatpush.bf16.msra.mxu0 %v6383_v28  ;;  %v6352_v28 = vld [vmem:[%s13369_s2 + $0x258] sm:$0xf0] }
  0xdf   : >> { %v10177_v41 = vadd.f32 1.0, %v9071_v36  ;;  %1611 = vmatpush.bf16.msrb.mxu1 %v6331_v22  ;;  %v6315_v36 = vor.u32 %v8536_v23, %v6312_v35 }
  0xe0   : >> { %v10179_v44 = vpop.eup %9072  ;;  %1676 = vmatpush.bf16.msra.mxu2 %v6211_v15 }
  0xe1   : >> { %v10192_v47 = vmul.f32 %v10179_v44, %v10125_v14  ;;  %9074 = vrcp.f32 %v10177_v41  ;;  %1683 = vmatpush.bf16.msra.mxu3 %v6435_v16  ;;  %vm891_vm0 = vweird.f32 %v10177_v41  ;;  %v897_v52 = vand.u32 2147483648, %v10177_v41 }
  0xe2   : >> { %vm869_vm3 = vweird.f32 %v10179_v44  ;;  %v895_v53 = vand.u32 2147483647, %v10177_v41  ;;  %v6335_v16 = vor.u32 %v8543_v11, %v6334_v10  ;;  %v8470_v10 = vld [vmem:[%s13372_s5 + $0x30] sm:$0xff]  ;;  %v10435_v11 = vld [vmem:[%s9578_s22] sm:$0xf] }
  0xe3   : >> { %v865_v61 = vsub.f32 1.0, %v10192_v47  ;;  %1612 = vmatpush.bf16.msrb.mxu1 %v6315_v36  ;;  %vm10317_vm5 = vmor %vm868_vm1, %vm869_vm3  ;;  %v8537_v36 = vld [vmem:[%s13369_s2 + $0x20c] sm:$0xf] }
  0xe4   : >> { %1677 = vmatpush.bf16.msra.mxu2 %v6195_v29  ;;  %vm896_vm6 = vcmp.eq.f32.partialorder %v895_v53, 8.507059e+37  ;;  %v8497_v53 = vld [vmem:[%s13369_s2 + $0xcc] sm:$0xf] }
  0xe5   : >> { %v866_v40 = vmul.f32 %v10179_v44, %v865_v61  ;;  %1684 = vmatpush.bf16.msra.mxu3 %v6419_v34 }
  0xe7   : >> { %v812_v1 = vpop.f32.mrf.mxu0  ;;  %v10240_v13 = vpop.eup %9074  ;;  %v867_v61 = vadd.f32 %v10179_v44, %v866_v40 }
  0xe8   : >> { %v813_v6 = vadd.f32 %v812_v1, %v425_v48  ;;  %v825_v7 = vpop.f32.mrf.mxu1  ;;  %v887_v20 = vmul.f32 %v10240_v13, %v10177_v41  ;;  %vm892_vm2 = vweird.f32 %v10240_v13  ;;  %v6367_v48 = vor.u32 %v8551_v43, %v6366_v42  ;;  %v6112_v41 = vld [vmem:[%s13369_s2 + $0x78] sm:$0xf0] }
  0xe9   : >> { %vm10301_vm4 = vmor %vm891_vm0, %vm892_vm2  ;;  %v898_v1 = vor.u32 1.1754944e-38, %v897_v52  ;;  %1685 = vmatpush.bf16.msra.mxu3 %v6403_v56 }
  0xea   : >> { %v826_v21 = vadd.f32 %v825_v7, %v813_v6  ;;  %v888_v32 = vsub.f32 1.0, %v887_v20  ;;  %1648 = vmatpush.bf16.msra.mxu0 %v6367_v48  ;;  %v875_v6 = vor.u32 1.1754944e-38, %v874_v59  ;;  %v6144_v59 = vld [vmem:[%s13369_s2 + $0xb8] sm:$0xf0] }
  0xec   : >> { %v908_v33 = vadd.f32 %v907_v8, %v826_v21  ;;  %v889_v37 = vmul.f32 %v10240_v13, %v888_v32  ;;  %v871_v8 = vsel %vm10317_vm5, %v10179_v44, %v867_v61  ;;  %v8549_v44 = vld [vmem:[%s13369_s2 + $0x26c] sm:$0xf]  ;;  %v6336_v32 = vld [vmem:[%s13369_s2 + $0x238] sm:$0xf0] }
  0xed   : >> { %1686 = vmatpush.bf16.msra.mxu3 %v6387_v5  ;;  %v6371_v18 = vor.u32 %v8549_v44, %v6368_v17  ;;  %v876_v20 = vsel %vm873_vm7, %v875_v6, %v871_v8  ;;  %v6339_v34 = vor.u32 %v8541_v31, %v6336_v32  ;;  %v8489_v61 = vld [vmem:[%s13369_s2 + $0x8c] sm:$0xf]  ;;  %v6080_v5 = vld [vmem:[%s13369_s2 + $0x38] sm:$0xf0]  ;;  %v8604_v17 = vld [vmem:[%s13369_s2 + $0x3e4] sm:$0xf] }
  0xee   : >> { %v6050_v38 = vmul.f32 -1.442695, %v908_v33  ;;  %v838_v39 = vpop.f32.mrf.mxu2  ;;  %v890_v51 = vadd.f32 %v10240_v13, %v889_v37  ;;  %1649 = vmatpush.bf16.msra.mxu0 %v6351_v2  ;;  %v6320_v37 = vld [vmem:[%s13369_s2 + $0x218] sm:$0xf0]  ;;  %v6131_v63 = vor.u32 %v8489_v61, %v6128_v62  ;;  %v8481_v2 = vld [vmem:[%s13369_s2 + $0x4c] sm:$0xf] }
  0xef   : >> { %v839_v45 = vadd.f32 %v838_v39, %v426_v27  ;;  %v851_v46 = vpop.f32.mrf.mxu3  ;;  %v814_v47 = vpop.f32.mrf.mxu0  ;;  %v8545_v27 = vld [vmem:[%s13369_s2 + $0x24c] sm:$0xf]  ;;  %v6323_v40 = vor.u32 %v8537_v36, %v6320_v37  ;;  %v6099_v4 = vor.u32 %v8481_v2, %v6096_v3  ;;  %v6064_v8 = vld [vmem:[%s13369_s2 + $0x18] sm:$0xf0]  ;;  %v8588_v32 = vld [vmem:[%s13369_s2 + $0x364] sm:$0xf] }
  0xf0   : >> { %9076 = vpow2.f32 %v6050_v38  ;;  %v827_v54 = vpop.f32.mrf.mxu1  ;;  %v894_v14 = vsel %vm10301_vm4, %v10240_v13, %v890_v51  ;;  %v6355_v29 = vor.u32 %v8545_v27, %v6352_v28  ;;  %v8465_v44 = vld [vmem:[%s13372_s5 + $0x8] sm:$0xff]  ;;  %v6703_v27 = vld [vmem:[%s13369_s2 + $0x3b0] sm:$0xf0]  ;;  %v8584_v36 = vld [vmem:[%s13369_s2 + $0x344] sm:$0xf] }
  0xf1   : >> { %v852_v58 = vadd.f32 %v851_v46, %v839_v45  ;;  %v899_v13 = vsel %vm896_vm6, %v898_v1, %v894_v14  ;;  %1687 = vmatpush.bf16.msra.mxu3 %v6371_v18  ;;  %v8501_v45 = vld [vmem:[%s13369_s2 + $0xec] sm:$0xf]  ;;  %v6176_v46 = vld [vmem:[%s13369_s2 + $0xf8] sm:$0xf0]  ;;  %v6115_v1 = vor.u32 %v8485_v0, %v6112_v41  ;;  %v6735_v18 = vld [vmem:[%s13369_s2 + $0x3f0] sm:$0xf0] }
  0xf2   : >> { %v903_v22 = vmul.f32 %v899_v13, %v9993_v57  ;;  %1650 = vmatpush.bf16.msra.mxu0 %v6335_v16  ;;  %v6179_v50 = vor.u32 %v8501_v45, %v6176_v46  ;;  %v6160_v54 = vld [vmem:[%s13369_s2 + $0xd8] sm:$0xf0]  ;;  %v8477_v14 = vld [vmem:[%s13369_s2 + $0x2c] sm:$0xf]  ;;  %v8468_v13 = vld [vmem:[%s13372_s5 + $0x20] sm:$0xff] }
  0xf3   : >> { %9078 = vtanh.f32 %v852_v58  ;;  %v6163_v56 = vor.u32 %v8497_v53, %v6160_v54  ;;  %v8493_v58 = vld [vmem:[%s13369_s2 + $0xac] sm:$0xf]  ;;  %v6083_v6 = vor.u32 %v8477_v14, %v6080_v5  ;;  %v8466_v16 = vld [vmem:[%s13372_s5 + $0x10] sm:$0xff]  ;;  %v6869_v54 = vld [vmem:[%s13369_s2 + $0x4e8] sm:$0xf] }
  0xf4   : >> { %v6147_v60 = vor.u32 %v8493_v58, %v6144_v59  ;;  %v6655_v37 = vld [vmem:[%s13369_s2 + $0x350] sm:$0xf0]  ;;  %v8575_v58 = vld [vmem:[%s13372_s5 + $0x78] sm:$0xff]  ;;  %v8602_v61 = vld [vmem:[%s13369_s2 + $0x3cc] sm:$0xf0] }
  0xf5   : >> { %1688 = vmatpush.bf16.msra.mxu3 %v6355_v29  ;;  %v8592_v29 = vld [vmem:[%s13369_s2 + $0x384] sm:$0xf]  ;;  %v6639_v45 = vld [vmem:[%s13369_s2 + $0x330] sm:$0xf0]  ;;  %v8635_v0 = vld [vmem:[%s13369_s2 + $0x4d4] sm:$0xf0] }
  0xf6   : >> { %v9077_v7 = vpop.eup %9076  ;;  %v840_v9 = vpop.f32.mrf.mxu2  ;;  %1651 = vmatpush.bf16.msra.mxu0 %v6319_v26  ;;  %v8596_v26 = vld [vmem:[%s13369_s2 + $0x3a4] sm:$0xf]  ;;  %v8574_v41 = vld [vmem:[%s13372_s5 + $0x70] sm:$0xff]  ;;  %v6701_v2 = vld [vmem:[%s13369_s2 + $0x3a0] sm:$0xf] }
  0xf7   : >> { %v912_v12 = vadd.f32 1.0, %v9077_v7  ;;  %v853_v15 = vpop.f32.mrf.mxu3  ;;  %v8473_v7 = vld [vmem:[%s13369_s2 + $0xc] sm:$0xf]  ;;  %v8471_v9 = vld [vmem:[%s13372_s5 + $0x38] sm:$0xff]  ;;  %v8598_v3 = vld [vmem:[%s13369_s2 + $0x3ac] sm:$0xf0] }
  0xf8   : >> { %v8467_v15 = vld [vmem:[%s13372_s5 + $0x18] sm:$0xff]  ;;  %v6837_v14 = vld [vmem:[%s13369_s2 + $0x4a8] sm:$0xf] }
  0xf9   : >> { %v9079_v19 = vpop.eup %9078  ;;  %9080 = vrcp.f32 %v912_v12  ;;  %v924_v35 = vand.u32 2147483648, %v912_v12  ;;  %1689 = vmatpush.bf16.msra.mxu3 %v6339_v34  ;;  %v922_v39 = vand.u32 2147483647, %v912_v12  ;;  %vm918_vm9 = vweird.f32 %v912_v12  ;;  %v8631_v5 = vld [vmem:[%s13369_s2 + $0x4b4] sm:$0xf0] }
  0xfa   : >> { %v902_v21 = vmul.f32 %v9079_v19, %v876_v20  ;;  %v8464_v19 = vld [vmem:[%s13372_s5] sm:$0xff] }
  0xfb   : >> { %v925_v43 = vor.u32 1.1754944e-38, %v924_v35  ;;  %vm923_vm11 = vcmp.eq.f32.partialorder %v922_v39, 8.507059e+37 }
  0xfc   : >> { %v904_v57 = vadd.f32 %v903_v22, %v902_v21  ;;  %v6738_v21 = vor.u32 %v8604_v17, %v6735_v18  ;;  %v8600_v22 = vld [vmem:[%s13369_s2 + $0x3c4] sm:$0xf]  ;;  %v6669_v17 = vld [vmem:[%s13369_s2 + $0x360] sm:$0xf]  ;;  %v8590_v18 = vld [vmem:[%s13369_s2 + $0x36c] sm:$0xf0] }
  0xfd   : >> { %1690 = vmatpush.bf16.msra.mxu3 %v6323_v40  ;;  %v6722_v25 = vor.u32 %v8600_v22, %v6719_v24  ;;  %v6805_v22 = vld [vmem:[%s13369_s2 + $0x468] sm:$0xf]  ;;  %v8623_v24 = vld [vmem:[%s13369_s2 + $0x474] sm:$0xf0] }
  0xfe   : >> { %932 = vst [vmem:[#allocation3 + $0x10] sm:$0xff] %v904_v57  ;;  %9082 = vtanh.f32 %v904_v57  ;;  %v6706_v57 = vor.u32 %v8596_v26, %v6703_v27  ;;  %v6806_v26 = vor.u32 %v8623_v24, %v6805_v22  ;;  %v6845_v27 = vld [vmem:[%s13369_s2 + $0x4c0] sm:$0xf] }
  0xff   : >> { %v9081_v30 = vpop.eup %9080  ;;  %v6781_v24 = vld [vmem:[%s13369_s2 + $0x440] sm:$0xf] }
 0x100   : >> { %v914_v33 = vmul.f32 %v9081_v30, %v912_v12  ;;  %vm919_vm8 = vweird.f32 %v9081_v30  ;;  %v8469_v12 = vld [vmem:[%s13372_s5 + $0x28] sm:$0xff] }
 0x101   : >> { %vm920_vm10 = vmor %vm918_vm9, %vm919_vm8 }
 0x102   : >> { %v915_v23 = vsub.f32 1.0, %v914_v33  ;;  %v6671_v33 = vld [vmem:[%s13369_s2 + $0x370] sm:$0xf0] }
 0x103   : >> { %v6674_v35 = vor.u32 %v8588_v32, %v6671_v33  ;;  %v6789_v33 = vld [vmem:[%s13369_s2 + $0x448] sm:$0xf] }
 0x104   : >> { %v916_v38 = vmul.f32 %v9081_v30, %v915_v23  ;;  %v9083_v47 = vpop.eup %9082 }
 0x106   : >> { %v917_v42 = vadd.f32 %v9081_v30, %v916_v38  ;;  %v6658_v38 = vor.u32 %v8584_v36, %v6655_v37  ;;  %v8570_v36 = vld [vmem:[%s13372_s5 + $0x50] sm:$0xff] }
 0x108   : >> { %v921_v52 = vsel %vm920_vm10, %v9081_v30, %v917_v42  ;;  %v6687_v30 = vld [vmem:[%s13369_s2 + $0x390] sm:$0xf0] }
 0x109   : >> { %v926_v48 = vsel %vm923_vm11, %v925_v43, %v921_v52  ;;  %v10462_v20 = vpop.f32.mrf.mxu0  ;;  %v6690_v31 = vor.u32 %v8592_v29, %v6687_v30  ;;  %v8580_v52 = vld [vmem:[%s13369_s2 + $0x324] sm:$0xf]  ;;  %v6653_v29 = vld [vmem:[%s13369_s2 + $0x340] sm:$0xf]  ;;  %v8586_v30 = vld [vmem:[%s13369_s2 + $0x34c] sm:$0xf0] }
 0x10a   : >> { %v929_v49 = vmul.f32 %v9083_v47, %v926_v48  ;;  %v6642_v46 = vor.u32 %v8580_v52, %v6639_v45  ;;  %v6733_v47 = vld [vmem:[%s13369_s2 + $0x3e0] sm:$0xf]  ;;  %v8606_v48 = vld [vmem:[%s13369_s2 + $0x3ec] sm:$0xf0]  ;;  %v6654_v32 = vor.u32 %v8586_v30, %v6653_v29  ;;  %v8665_v29 = vld [vmem:[%s13369_s2 + $0x5cc] sm:$0xf] }
 0x10b   : >> { %v6637_v52 = vld [vmem:[%s13369_s2 + $0x320] sm:$0xf]  ;;  %v8582_v45 = vld [vmem:[%s13369_s2 + $0x32c] sm:$0xf0] }
 0x10c   : >> { %v10376_v51 = vpack.c.bf16 %v929_v49, %v929_v49  ;;  %v6734_v49 = vor.u32 %v8606_v48, %v6733_v47  ;;  %v6638_v47 = vor.u32 %v8582_v45, %v6637_v52  ;;  %v9051_v48 = vld [vmem:[%s13371_s4 + $0x4] ss:$0 sm:$0xff]  ;;  %v6765_v45 = vld [vmem:[%s13369_s2 + $0x420] sm:$0xf] }
 0x10e   : >> { %931 = vst [vmem:[#allocation2] sm:$0xf] %v10376_v51  ;;  %1561 = vmatmul.bf16.vlgmr.msra.gmra.mxu1 %v10376_v51  ;;  %1600 = vmatmul.bf16.vlgmr.msrb.gmra.mxu0 %v10376_v51 }
 0x10f   : >> { %1639 = vmatmul.bf16.vlgmr.msrb.gmra.mxu3 %v10376_v51  ;;  %1657 = vmatpush.bf16.msra.mxu1 %v6179_v50  ;;  %v8576_v50 = vld [vmem:[%s13369_s2 + $0x304] sm:$0xf] }
 0x110   : >> { %1678 = vmatmul.bf16.vlgmr.msra.gmra.mxu2 %v10376_v51  ;;  %v10489_v34 = vpop.f32.mrf.mxu2  ;;  %1840 = vmatpush.bf16.msrb.mxu0 %v8575_v58 }
 0x111   : >> { %v1551_v28 = vpop.f32.mrf.mxu0  ;;  %2506 = vmatpush.bf16.msrb.mxu2 %v6734_v49  ;;  %v6773_v49 = vld [vmem:[%s13369_s2 + $0x428] sm:$0xf] }
 0x112   : >> { %v8634_v28 = vld [vmem:[%s13369_s2 + $0x4cc] sm:$0xf0] }
 0x113   : >> { %1658 = vmatpush.bf16.msra.mxu1 %v6163_v56  ;;  %v8639_v56 = vld [vmem:[%s13369_s2 + $0x4f4] sm:$0xf0] }
 0x114   : >> { %v6870_v59 = vor.u32 %v8639_v56, %v6869_v54  ;;  %1841 = vmatpush.bf16.msrb.mxu0 %v8574_v41  ;;  %v6813_v54 = vld [vmem:[%s13369_s2 + $0x480] sm:$0xf]  ;;  %v8626_v56 = vld [vmem:[%s13369_s2 + $0x48c] sm:$0xf0]  ;;  %v8636_v41 = vld [vmem:[%s13369_s2 + $0x4e4] sm:$0xf] }
 0x117   : >> { %1659 = vmatpush.bf16.msra.mxu1 %v6147_v60  ;;  %v6717_v60 = vld [vmem:[%s13369_s2 + $0x3c0] sm:$0xf] }
 0x118   : >> { %v10491_v23 = vpop.f32.mrf.mxu3  ;;  %v1577_v39 = vpop.f32.mrf.mxu2  ;;  %v6718_v62 = vor.u32 %v8602_v61, %v6717_v60  ;;  %v6621_v60 = vld [vmem:[%s13369_s2 + $0x300] sm:$0xf]  ;;  %v8578_v61 = vld [vmem:[%s13369_s2 + $0x30c] sm:$0xf0] }
 0x119   : >> { %v8630_v39 = vld [vmem:[%s13369_s2 + $0x4ac] sm:$0xf0] }
 0x11a   : >> { %2507 = vmatpush.bf16.msrb.mxu2 %v6718_v62 }
 0x11b   : >> { %1660 = vmatpush.bf16.msra.mxu1 %v6131_v63  ;;  %v6853_v63 = vld [vmem:[%s13369_s2 + $0x4c8] sm:$0xf] }
 0x11e   : >> { %1613 = vmatmul.bf16.vlgmr.msrb.gmra.mxu1 %v10045_v55  ;;  %1652 = vmatmul.bf16.vlgmr.msra.gmra.mxu0 %v10045_v55 }
 0x11f   : >> { %1661 = vmatpush.bf16.msra.mxu1 %v6115_v1  ;;  %1691 = vmatmul.bf16.vlgmr.msra.gmra.mxu3 %v10045_v55  ;;  %v6067_v55 = vor.u32 %v8473_v7, %v6064_v8  ;;  %v6854_v1 = vor.u32 %v8635_v0, %v6853_v63  ;;  %v6838_v7 = vor.u32 %v8631_v5, %v6837_v14  ;;  %v6685_v8 = vld [vmem:[%s13369_s2 + $0x380] sm:$0xf]  ;;  %v8611_v14 = vld [vmem:[%s13369_s2 + $0x414] sm:$0xf0] }
 0x120   : >> { %v1590_v40 = vpop.f32.mrf.mxu3  ;;  %v6622_v0 = vor.u32 %v8578_v61, %v6621_v60  ;;  %v6815_v60 = vld [vmem:[%s13369_s2 + $0x490] sm:$0xf0] }
 0x123   : >> { %1662 = vmatpush.bf16.msra.mxu1 %v6099_v4  ;;  %v6702_v4 = vor.u32 %v8598_v3, %v6701_v2 }
 0x125   : >> { %2508 = vmatpush.bf16.msrb.mxu2 %v6702_v4  ;;  %v6757_v4 = vld [vmem:[%s13369_s2 + $0x408] sm:$0xf] }
 0x127   : >> { %1663 = vmatpush.bf16.msra.mxu1 %v6083_v6  ;;  %v8573_v6 = vld [vmem:[%s13372_s5 + $0x68] sm:$0xff] }
 0x128   : >> { %1842 = vmatpush.bf16.msrb.mxu0 %v8573_v6  ;;  %v8568_v6 = vld [vmem:[%s13372_s5 + $0x40] sm:$0xff] }
 0x12b   : >> { %1664 = vmatpush.bf16.msra.mxu1 %v6067_v55  ;;  %v8594_v55 = vld [vmem:[%s13369_s2 + $0x38c] sm:$0xf0] }
 0x12e   : >> { %1665 = vmatmul.bf16.vlgmr.msra.gmra.mxu1 %v10435_v11  ;;  %v10499_v42 = vpop.f32.mrf.mxu2 }
 0x12f   : >> { %1901 = vmatpush.bf16.msrb.mxu1 %v8471_v9  ;;  %v6686_v9 = vor.u32 %v8594_v55, %v6685_v8  ;;  %v6797_v8 = vld [vmem:[%s13369_s2 + $0x460] sm:$0xf]  ;;  %v8622_v55 = vld [vmem:[%s13369_s2 + $0x46c] sm:$0xf0] }
 0x131   : >> { %2509 = vmatpush.bf16.msrb.mxu2 %v6686_v9 }
 0x133   : >> { %1902 = vmatpush.bf16.msrb.mxu1 %v8470_v10  ;;  %v6821_v10 = vld [vmem:[%s13369_s2 + $0x488] sm:$0xf] }
 0x136   : >> { %v1629_v43 = vpop.f32.mrf.mxu2 }
 0x137   : >> { %1903 = vmatpush.bf16.msrb.mxu1 %v8469_v12  ;;  %v8572_v12 = vld [vmem:[%s13372_s5 + $0x60] sm:$0xff] }
 0x138   : >> { %1843 = vmatpush.bf16.msrb.mxu0 %v8572_v12  ;;  %v6989_v12 = vld [vmem:[%s13369_s2 + $0x5e0] sm:$0xf] }
 0x13b   : >> { %1904 = vmatpush.bf16.msrb.mxu1 %v8468_v13  ;;  %v8627_v13 = vld [vmem:[%s13369_s2 + $0x494] sm:$0xf0] }
 0x13f   : >> { %1905 = vmatpush.bf16.msrb.mxu1 %v8467_v15  ;;  %v6861_v15 = vld [vmem:[%s13369_s2 + $0x4e0] sm:$0xf] }
 0x143   : >> { %1906 = vmatpush.bf16.msrb.mxu1 %v8466_v16  ;;  %v6822_v16 = vor.u32 %v8627_v13, %v6821_v10  ;;  %v6798_v10 = vor.u32 %v8622_v55, %v6797_v8  ;;  %v8670_v13 = vld [vmem:[%s13369_s2 + $0x5ec] sm:$0xf0] }
 0x147   : >> { %1907 = vmatpush.bf16.msrb.mxu1 %v8465_v44  ;;  %v8638_v44 = vld [vmem:[%s13369_s2 + $0x4ec] sm:$0xf0] }
 0x14b   : >> { %1908 = vmatpush.bf16.msrb.mxu1 %v8464_v19  ;;  %v6862_v19 = vor.u32 %v8638_v44, %v6861_v15  ;;  %v8669_v15 = vld [vmem:[%s13369_s2 + $0x5ec] sm:$0xf]  ;;  %v8632_v44 = vld [vmem:[%s13369_s2 + $0x4c4] sm:$0xf] }
 0x14d   : >> { %2519 = vmatpush.bf16.msrb.mxu3 %v6862_v19 }
 0x14e   : >> { %1909 = vmatmul.bf16.vlgmr.msrb.gmra.mxu1 %v10376_v51  ;;  %v6623_v51 = vld [vmem:[%s13369_s2 + $0x310] sm:$0xf0] }
 0x14f   : >> { %2545 = vmatpush.bf16.msra.mxu1 %v6738_v21  ;;  %v6626_v53 = vor.u32 %v8576_v50, %v6623_v51  ;;  %v6670_v21 = vor.u32 %v8590_v18, %v6669_v17  ;;  %v8615_v50 = vld [vmem:[%s13369_s2 + $0x434] sm:$0xf0]  ;;  %v8569_v51 = vld [vmem:[%s13372_s5 + $0x48] sm:$0xff]  ;;  %v6847_v17 = vld [vmem:[%s13369_s2 + $0x4d0] sm:$0xf0] }
 0x150   : >> { %v6850_v22 = vor.u32 %v8632_v44, %v6847_v17  ;;  %v8620_v44 = vld [vmem:[%s13369_s2 + $0x464] sm:$0xf]  ;;  %v6799_v17 = vld [vmem:[%s13369_s2 + $0x470] sm:$0xf0] }
 0x151   : >> { %2510 = vmatpush.bf16.msrb.mxu2 %v6670_v21 }
 0x153   : >> { %2546 = vmatpush.bf16.msra.mxu1 %v6722_v25  ;;  %v8571_v25 = vld [vmem:[%s13372_s5 + $0x58] sm:$0xff] }
 0x154   : >> { %1844 = vmatpush.bf16.msrb.mxu0 %v8571_v25  ;;  %v8618_v25 = vld [vmem:[%s13369_s2 + $0x44c] sm:$0xf0] }
 0x155   : >> { %2511 = vmatpush.bf16.msrb.mxu2 %v6654_v32 }
 0x157   : >> { %2547 = vmatpush.bf16.msra.mxu1 %v6706_v57  ;;  %v6846_v57 = vor.u32 %v8634_v28, %v6845_v27 }
 0x158   : >> { %1845 = vmatpush.bf16.msrb.mxu0 %v8570_v36  ;;  %v8628_v36 = vld [vmem:[%s13369_s2 + $0x4a4] sm:$0xf] }
 0x159   : >> { %2520 = vmatpush.bf16.msrb.mxu3 %v6846_v57  ;;  %2512 = vmatpush.bf16.msrb.mxu2 %v6638_v47  ;;  %v6782_v57 = vor.u32 %v8618_v25, %v6781_v24  ;;  %v8614_v47 = vld [vmem:[%s13369_s2 + $0x42c] sm:$0xf0]  ;;  %v6802_v24 = vor.u32 %v8620_v44, %v6799_v17 }
 0x15b   : >> { %2548 = vmatpush.bf16.msra.mxu1 %v6690_v31  ;;  %v10610_v31 = vld [vmem:[%s13370_s3 + $0x1] ss:$4 sm:$0xf] }
 0x15c   : >> { %v1052_v40 = vperm.slane %v10610_v31, 0  ;;  %1846 = vmatpush.bf16.msrb.mxu0 %v8569_v51  ;;  %v1053_v5 = vperm.slane %v10610_v31, 1  ;;  %v1054_v18 = vperm.slane %v10610_v31, 2  ;;  %v8662_v51 = vld [vmem:[%s13369_s2 + $0x5ac] sm:$0xf0] }
 0x15d   : >> { %2513 = vmatpush.bf16.msrb.mxu2 %v6622_v0  ;;  %v6749_v0 = vld [vmem:[%s13369_s2 + $0x400] sm:$0xf] }
 0x15e   : >> { %v1550_v58 = vadd.f32 %v10462_v20, %v1052_v40  ;;  %v6863_v20 = vld [vmem:[%s13369_s2 + $0x4f0] sm:$0xf0]  ;;  %v9053_v40 = vld [vmem:[%s13371_s4 + $0x6] ss:$0 sm:$0xff] }
 0x15f   : >> { %2549 = vmatpush.bf16.msra.mxu1 %v6674_v35  ;;  %v8619_v35 = vld [vmem:[%s13369_s2 + $0x454] sm:$0xf0]  ;;  %v6866_v3 = vor.u32 %v8636_v41, %v6863_v20  ;;  %v6941_v41 = vld [vmem:[%s13369_s2 + $0x580] sm:$0xf] }
 0x160   : >> { %v6790_v37 = vor.u32 %v8619_v35, %v6789_v33  ;;  %1847 = vmatpush.bf16.msrb.mxu0 %v8568_v6  ;;  %2514 = vmatmul.bf16.vlgmr.msrb.gmra.mxu2 %v10435_v11  ;;  %v6983_v35 = vld [vmem:[%s13369_s2 + $0x5d8] sm:$0xf0] }
 0x161   : >> { %2558 = vmatpush.bf16.msra.mxu2 %v6866_v3  ;;  %v6951_v6 = vld [vmem:[%s13369_s2 + $0x598] sm:$0xf0] }
 0x163   : >> { %2550 = vmatpush.bf16.msra.mxu1 %v6658_v38  ;;  %v6829_v38 = vld [vmem:[%s13369_s2 + $0x4a0] sm:$0xf] }
 0x164   : >> { %v6830_v43 = vor.u32 %v8630_v39, %v6829_v38  ;;  %v9052_v39 = vld [vmem:[%s13371_s4 + $0x5] ss:$0 sm:$0xff] }
 0x165   : >> { %2559 = vmatpush.bf16.msra.mxu2 %v6850_v22 }
 0x166   : >> { %2521 = vmatpush.bf16.msrb.mxu3 %v6830_v43  ;;  %v6986_v43 = vor.u32 %v8665_v29, %v6983_v35  ;;  %v6975_v29 = vld [vmem:[%s13369_s2 + $0x5d0] sm:$0xf0]  ;;  %v8616_v35 = vld [vmem:[%s13369_s2 + $0x444] sm:$0xf] }
 0x167   : >> { %2551 = vmatpush.bf16.msra.mxu1 %v6642_v46  ;;  %v10634_v46 = vld [vmem:[#allocation3] sm:$0xff] }
 0x168   : >> { %v1699_v2 = vmul.f32 %v9051_v48, %v10634_v46  ;;  %v6957_v48 = vld [vmem:[%s13369_s2 + $0x5a0] sm:$0xf]  ;;  %v1749_v3 = vmul.f32 %v9053_v40, %v10634_v46 }
 0x16b   : >> { %2552 = vmatpush.bf16.msra.mxu1 %v6626_v53  ;;  %v6774_v53 = vor.u32 %v8615_v50, %v6773_v49  ;;  %v1589_v49 = vadd.f32 %v10491_v23, %v1053_v5  ;;  %v6766_v50 = vor.u32 %v8614_v47, %v6765_v45  ;;  %v8624_v23 = vld [vmem:[%s13369_s2 + $0x484] sm:$0xf]  ;;  %v8657_v5 = vld [vmem:[%s13369_s2 + $0x58c] sm:$0xf]  ;;  %v6919_v45 = vld [vmem:[%s13369_s2 + $0x558] sm:$0xf0] }
 0x16c   : >> { %v6818_v61 = vor.u32 %v8624_v23, %v6815_v60  ;;  %v8646_v23 = vld [vmem:[%s13369_s2 + $0x52c] sm:$0xf0] }
 0x16e   : >> { %2553 = vmatmul.bf16.vlgmr.msra.gmra.mxu1 %v10435_v11  ;;  %v8666_v11 = vld [vmem:[%s13369_s2 + $0x5cc] sm:$0xf0] }
 0x16f   : >> { %2597 = vmatpush.bf16.msrb.mxu1 %v6870_v59  ;;  %v6814_v59 = vor.u32 %v8626_v56, %v6813_v54  ;;  %v6967_v54 = vld [vmem:[%s13369_s2 + $0x5b8] sm:$0xf0]  ;;  %v1628_v56 = vadd.f32 %v10499_v42, %v1054_v18  ;;  %v8610_v42 = vld [vmem:[%s13369_s2 + $0x40c] sm:$0xf0] }
 0x171   : >> { %2522 = vmatpush.bf16.msrb.mxu3 %v6814_v59 }
 0x173   : >> { %2598 = vmatpush.bf16.msrb.mxu1 %v6854_v1 }
 0x175   : >> { %2523 = vmatpush.bf16.msrb.mxu3 %v6798_v10  ;;  %v6954_v10 = vor.u32 %v8657_v5, %v6951_v6 }
 0x177   : >> { %2599 = vmatpush.bf16.msrb.mxu1 %v6838_v7  ;;  %v6758_v7 = vor.u32 %v8611_v14, %v6757_v4  ;;  %v6750_v4 = vor.u32 %v8610_v42, %v6749_v0  ;;  %v8658_v14 = vld [vmem:[%s13369_s2 + $0x58c] sm:$0xf0]  ;;  %v8645_v0 = vld [vmem:[%s13369_s2 + $0x52c] sm:$0xf]  ;;  %v6903_v42 = vld [vmem:[%s13369_s2 + $0x538] sm:$0xf0] }
 0x179   : >> { %2524 = vmatpush.bf16.msrb.mxu3 %v6782_v57 }
 0x17b   : >> { %2600 = vmatpush.bf16.msrb.mxu1 %v6822_v16  ;;  %v6990_v16 = vor.u32 %v8670_v13, %v6989_v12  ;;  %v8668_v12 = vld [vmem:[%s13369_s2 + $0x5e4] sm:$0xf]  ;;  %v6991_v13 = vld [vmem:[%s13369_s2 + $0x5f0] sm:$0xf0] }
 0x17d   : >> { %2532 = vmatpush.bf16.msra.mxu0 %v6990_v16  ;;  %2525 = vmatpush.bf16.msrb.mxu3 %v6766_v50  ;;  %v8660_v50 = vld [vmem:[%s13369_s2 + $0x5a4] sm:$0xf] }
 0x17f   : >> { %2601 = vmatpush.bf16.msrb.mxu1 %v6806_v26  ;;  %v6973_v26 = vld [vmem:[%s13369_s2 + $0x5c0] sm:$0xf] }
 0x180   : >> { %v6974_v33 = vor.u32 %v8666_v11, %v6973_v26  ;;  %v8653_v26 = vld [vmem:[%s13369_s2 + $0x56c] sm:$0xf]  ;;  %v8664_v11 = vld [vmem:[%s13369_s2 + $0x5c4] sm:$0xf] }
 0x181   : >> { %2526 = vmatpush.bf16.msrb.mxu3 %v6750_v4  ;;  %v6751_v4 = vld [vmem:[%s13369_s2 + $0x410] sm:$0xf0] }
 0x182   : >> { %2533 = vmatpush.bf16.msra.mxu0 %v6974_v33  ;;  %v6978_v33 = vor.u32 %v8664_v11, %v6975_v29  ;;  %v8648_v11 = vld [vmem:[%s13369_s2 + $0x544] sm:$0xf]  ;;  %v6911_v29 = vld [vmem:[%s13369_s2 + $0x550] sm:$0xf0] }
 0x183   : >> { %2602 = vmatpush.bf16.msrb.mxu1 %v6790_v37  ;;  %v6831_v37 = vld [vmem:[%s13369_s2 + $0x4b0] sm:$0xf0] }
 0x184   : >> { %v6834_v52 = vor.u32 %v8628_v36, %v6831_v37  ;;  %v6783_v37 = vld [vmem:[%s13369_s2 + $0x450] sm:$0xf0] }
 0x185   : >> { %v6786_v40 = vor.u32 %v8616_v35, %v6783_v37 }
 0x186   : >> { %2560 = vmatpush.bf16.msra.mxu2 %v6834_v52  ;;  %v8649_v52 = vld [vmem:[%s13369_s2 + $0x54c] sm:$0xf] }
 0x187   : >> { %2603 = vmatpush.bf16.msrb.mxu1 %v6774_v53  ;;  %v8661_v53 = vld [vmem:[%s13369_s2 + $0x5ac] sm:$0xf] }
 0x188   : >> { %v6970_v59 = vor.u32 %v8661_v53, %v6967_v54  ;;  %v8612_v53 = vld [vmem:[%s13369_s2 + $0x424] sm:$0xf] }
 0x18a   : >> { %2561 = vmatpush.bf16.msra.mxu2 %v6818_v61 }
 0x18b   : >> { %v1562_v62 = vpop.f32.mrf.mxu1  ;;  %v10661_v63 = vpop.f32.mrf.mxu0  ;;  %2604 = vmatpush.bf16.msrb.mxu1 %v6758_v7 }
 0x18c   : >> { %v1563_v1 = vadd.f32 %v1562_v62, %v1550_v58  ;;  %v6958_v58 = vor.u32 %v8662_v51, %v6957_v48  ;;  %v1722_v62 = vmul.f32 %v9052_v39, %v10634_v46  ;;  %v6959_v51 = vld [vmem:[%s13369_s2 + $0x5b0] sm:$0xf0] }
 0x18e   : >> { %v1576_v9 = vadd.f32 %v10489_v34, %v1563_v1  ;;  %v6999_v34 = vld [vmem:[%s13369_s2 + $0x5f8] sm:$0xf0]  ;;  %2534 = vmatpush.bf16.msra.mxu0 %v6958_v58  ;;  %v1602_v1 = vadd.f32 %v10661_v63, %v1589_v49  ;;  %2562 = vmatpush.bf16.msra.mxu2 %v6802_v24  ;;  %v6922_v49 = vor.u32 %v8649_v52, %v6919_v45  ;;  %v6767_v58 = vld [vmem:[%s13369_s2 + $0x430] sm:$0xf0]  ;;  %v8644_v52 = vld [vmem:[%s13369_s2 + $0x524] sm:$0xf] }
 0x18f   : >> { %v7002_v21 = vor.u32 %v8669_v15, %v6999_v34  ;;  %v6994_v34 = vor.u32 %v8668_v12, %v6991_v13  ;;  %v6770_v61 = vor.u32 %v8612_v53, %v6767_v58  ;;  %v1055_v12 = vperm.slane %v10610_v31, 3  ;;  %v6887_v31 = vld [vmem:[%s13369_s2 + $0x518] sm:$0xf0] }
 0x190   : >> { %v1700_v19 = vadd.f32 %v1699_v2, %v1576_v9  ;;  %v6942_v9 = vor.u32 %v8658_v14, %v6941_v41  ;;  %v6906_v41 = vor.u32 %v8645_v0, %v6903_v42  ;;  %v6693_v42 = vld [vmem:[%s13369_s2 + $0x388] sm:$0xf] }
 0x191   : >> { %2649 = vmatpush.bf16.msra.mxu1 %v7002_v21  ;;  %v8654_v21 = vld [vmem:[%s13369_s2 + $0x56c] sm:$0xf0]  ;;  %2571 = vmatpush.bf16.msra.mxu3 %v6994_v34 }
 0x192   : >> { %v6437_v27 = vmul.f32 -1.442695, %v1700_v19  ;;  %v1640_v28 = vpop.f32.mrf.mxu3  ;;  %2535 = vmatpush.bf16.msra.mxu0 %v6942_v9  ;;  %v6925_v19 = vld [vmem:[%s13369_s2 + $0x560] sm:$0xf]  ;;  %2563 = vmatpush.bf16.msra.mxu2 %v6786_v40  ;;  %v6965_v40 = vld [vmem:[%s13369_s2 + $0x5a8] sm:$0xf] }
 0x193   : >> { %v10722_v30 = vpop.f32.mrf.mxu2  ;;  %v1564_v32 = vpop.f32.mrf.mxu1  ;;  %v1641_v63 = vadd.f32 %v1640_v28, %v1628_v56  ;;  %v6926_v25 = vor.u32 %v8654_v21, %v6925_v19  ;;  %v6962_v56 = vor.u32 %v8660_v50, %v6959_v51  ;;  %v8652_v21 = vld [vmem:[%s13369_s2 + $0x564] sm:$0xf] }
 0x194   : >> { %9084 = vpow2.f32 %v6437_v27  ;;  %v1603_v38 = vpop.f32.mrf.mxu0  ;;  %v6935_v27 = vld [vmem:[%s13369_s2 + $0x578] sm:$0xf0] }
 0x195   : >> { %2650 = vmatpush.bf16.msra.mxu1 %v6986_v43  ;;  %v6938_v57 = vor.u32 %v8653_v26, %v6935_v27  ;;  %v6909_v38 = vld [vmem:[%s13369_s2 + $0x540] sm:$0xf]  ;;  %2572 = vmatpush.bf16.msra.mxu3 %v6978_v33  ;;  %v8650_v43 = vld [vmem:[%s13369_s2 + $0x54c] sm:$0xf0]  ;;  %v6981_v26 = vld [vmem:[%s13369_s2 + $0x5c8] sm:$0xf] }
 0x196   : >> { %2536 = vmatpush.bf16.msra.mxu0 %v6926_v25  ;;  %v6910_v48 = vor.u32 %v8650_v43, %v6909_v38  ;;  %2564 = vmatpush.bf16.msra.mxu2 %v6770_v61  ;;  %v8663_v43 = vld [vmem:[%s13369_s2 + $0x5b4] sm:$0xf0] }
 0x197   : >> { %v8659_v61 = vld [vmem:[%s13369_s2 + $0x594] sm:$0xf0] }
 0x199   : >> { %2651 = vmatpush.bf16.msra.mxu1 %v6970_v59  ;;  %v6893_v59 = vld [vmem:[%s13369_s2 + $0x520] sm:$0xf]  ;;  %2573 = vmatpush.bf16.msra.mxu3 %v6962_v56 }
 0x19a   : >> { %v9085_v20 = vpop.eup %9084  ;;  %v1642_v2 = vpop.f32.mrf.mxu3  ;;  %2537 = vmatpush.bf16.msra.mxu0 %v6910_v48  ;;  %v6895_v48 = vld [vmem:[%s13369_s2 + $0x530] sm:$0xf0] }
 0x19b   : >> { %v10786_v7 = vadd.f32 1.0, %v9085_v20  ;;  %v1681_v8 = vpop.f32.mrf.mxu2  ;;  %v1614_v55 = vpop.f32.mrf.mxu1  ;;  %v8656_v20 = vld [vmem:[%s13369_s2 + $0x584] sm:$0xf]  ;;  %v6898_v58 = vor.u32 %v8644_v52, %v6895_v48 }
 0x19c   : >> { %v1615_v15 = vadd.f32 %v1614_v55, %v1602_v1  ;;  %v1653_v16 = vpop.f32.mrf.mxu0  ;;  %v6943_v1 = vld [vmem:[%s13369_s2 + $0x590] sm:$0xf0]  ;;  %v8642_v8 = vld [vmem:[%s13369_s2 + $0x50c] sm:$0xf0]  ;;  %v6997_v55 = vld [vmem:[%s13369_s2 + $0x5e8] sm:$0xf] }
 0x19d   : >> { %v1654_v18 = vadd.f32 %v1653_v16, %v1641_v63  ;;  %2652 = vmatpush.bf16.msra.mxu1 %v6954_v10  ;;  %9086 = vrcp.f32 %v10786_v7  ;;  %v6946_v2 = vor.u32 %v8656_v20, %v6943_v1  ;;  %v6877_v63 = vld [vmem:[%s13369_s2 + $0x500] sm:$0xf]  ;;  %v1714_v51 = vand.u32 2147483647, %v10786_v7  ;;  %v8706_v48 = vld [vmem:[%s13368_s1 + $0xc4] sm:$0xf] }
 0x19e   : >> { %v1723_v22 = vadd.f32 %v1722_v62, %v1615_v15  ;;  %v6894_v62 = vor.u32 %v8646_v23, %v6893_v59  ;;  %v6878_v13 = vor.u32 %v8642_v8, %v6877_v63  ;;  %v8671_v15 = vld [vmem:[%s13369_s2 + $0x5f4] sm:$0xf0]  ;;  %v1716_v56 = vand.u32 2147483648, %v10786_v7  ;;  %v6949_v23 = vld [vmem:[%s13369_s2 + $0x588] sm:$0xf] }
 0x19f   : >> { %v1750_v28 = vadd.f32 %v1749_v3, %v1654_v18  ;;  %v8608_v3 = vld [vmem:[%s13369_s2 + $0x404] sm:$0xf]  ;;  %2574 = vmatpush.bf16.msra.mxu3 %v6946_v2  ;;  %v6998_v44 = vor.u32 %v8671_v15, %v6997_v55  ;;  %v8641_v18 = vld [vmem:[%s13369_s2 + $0x50c] sm:$0xf]  ;;  %vm1710_vm14 = vweird.f32 %v10786_v7  ;;  %vm1715_vm3 = vcmp.eq.f32.partialorder %v1714_v51, 8.507059e+37 }
 0x1a0   : >> { %v6439_v32 = vmul.f32 -1.442695, %v1723_v22  ;;  %v6754_v6 = vor.u32 %v8608_v3, %v6751_v4  ;;  %2538 = vmatpush.bf16.msra.mxu0 %v6894_v62  ;;  %v6927_v22 = vld [vmem:[%s13369_s2 + $0x570] sm:$0xf0]  ;;  %v6890_v25 = vor.u32 %v8641_v18, %v6887_v31  ;;  %v8640_v62 = vld [vmem:[%s13369_s2 + $0x504] sm:$0xf] }
 0x1a1   : >> { %v6441_v36 = vmul.f32 -1.442695, %v1750_v28  ;;  %2653 = vmatpush.bf16.msra.mxu1 %v6938_v57  ;;  %v6930_v28 = vor.u32 %v8652_v21, %v6927_v22  ;;  %v8667_v57 = vld [vmem:[%s13369_s2 + $0x5d4] sm:$0xf0]  ;;  %v1717_v4 = vor.u32 1.1754944e-38, %v1716_v56 }
 0x1a2   : >> { %9088 = vpow2.f32 %v6439_v32  ;;  %v10828_v39 = vpop.f32.mrf.mxu3  ;;  %2565 = vmatpush.bf16.msra.mxu2 %v6754_v6  ;;  %v6982_v33 = vor.u32 %v8667_v57, %v6981_v26  ;;  %v6933_v6 = vld [vmem:[%s13369_s2 + $0x568] sm:$0xf]  ;;  %v8655_v63 = vld [vmem:[%s13369_s2 + $0x574] sm:$0xf0]  ;;  %v8605_v26 = vld [vmem:[%s13369_s2 + $0x3ec] sm:$0xf] }
 0x1a3   : >> { %9090 = vpow2.f32 %v6441_v36  ;;  %v1616_v47 = vpop.f32.mrf.mxu1  ;;  %v10857_v60 = vpop.eup %9086  ;;  %2575 = vmatpush.bf16.msra.mxu3 %v6930_v28  ;;  %v6914_v36 = vor.u32 %v8648_v11, %v6911_v29  ;;  %v6917_v15 = vld [vmem:[%s13369_s2 + $0x548] sm:$0xf]  ;;  %v6743_v57 = vld [vmem:[%s13369_s2 + $0x3f8] sm:$0xf0]  ;;  %v8643_v29 = vld [vmem:[%s13369_s2 + $0x514] sm:$0xf0] }
 0x1a4   : >> { %v1655_v54 = vpop.f32.mrf.mxu0  ;;  %v1706_v5 = vmul.f32 %v10857_v60, %v10786_v7  ;;  %2539 = vmatpush.bf16.msra.mxu0 %v6878_v13  ;;  %v6966_v47 = vor.u32 %v8663_v43, %v6965_v40  ;;  %vm1711_vm12 = vweird.f32 %v10857_v60  ;;  %v6950_v7 = vor.u32 %v8659_v61, %v6949_v23  ;;  %v6901_v31 = vld [vmem:[%s13369_s2 + $0x528] sm:$0xf]  ;;  %v8603_v43 = vld [vmem:[%s13369_s2 + $0x3d4] sm:$0xf0]  ;;  %v8702_v23 = vld [vmem:[%s13368_s1 + $0xa4] sm:$0xf] }
 0x1a5   : >> { %2654 = vmatpush.bf16.msra.mxu1 %v6922_v49  ;;  %vm10960_vm15 = vmor %vm1710_vm14, %vm1711_vm12  ;;  %v6885_v11 = vld [vmem:[%s13369_s2 + $0x508] sm:$0xf]  ;;  %v6746_v52 = vor.u32 %v8605_v26, %v6743_v57  ;;  %v7145_v61 = vld [vmem:[%s13368_s1 + $0xb0] sm:$0xf0] }
 0x1a6   : >> { %v1707_v19 = vsub.f32 1.0, %v1706_v5  ;;  %2610 = vmatpush.bf16.msrb.mxu2 %v6998_v44  ;;  %v6725_v40 = vld [vmem:[%s13369_s2 + $0x3c8] sm:$0xf]  ;;  %v8581_v26 = vld [vmem:[%s13369_s2 + $0x32c] sm:$0xf] }
 0x1a7   : >> { %2576 = vmatpush.bf16.msra.mxu3 %v6914_v36  ;;  %v6709_v51 = vld [vmem:[%s13369_s2 + $0x3a8] sm:$0xf]  ;;  %v7081_v57 = vld [vmem:[%s13368_s1 + $0x30] sm:$0xf0] }
 0x1a8   : >> { %v9089_v14 = vpop.eup %9088  ;;  %v1708_v32 = vmul.f32 %v10857_v60, %v1707_v19  ;;  %v8647_v19 = vld [vmem:[%s13369_s2 + $0x534] sm:$0xf0] }
 0x1a9   : >> { %v9091_v9 = vpop.eup %9090  ;;  %v10888_v10 = vadd.f32 1.0, %v9089_v14  ;;  %2655 = vmatpush.bf16.msra.mxu1 %v6906_v41  ;;  %v6879_v41 = vld [vmem:[%s13369_s2 + $0x510] sm:$0xf0]  ;;  %v6902_v22 = vor.u32 %v8647_v19, %v6901_v31  ;;  %v8690_v31 = vld [vmem:[%s13368_s1 + $0x44] sm:$0xf] }
 0x1aa   : >> { %v10894_v16 = vadd.f32 1.0, %v9091_v9  ;;  %v1694_v34 = vpop.f32.mrf.mxu3  ;;  %2611 = vmatpush.bf16.msrb.mxu2 %v6982_v33  ;;  %v1709_v50 = vadd.f32 %v10857_v60, %v1708_v32  ;;  %v6882_v14 = vor.u32 %v8640_v62, %v6879_v41  ;;  %v6934_v9 = vor.u32 %v8655_v63, %v6933_v6  ;;  %v8710_v33 = vld [vmem:[%s13368_s1 + $0xe4] sm:$0xf]  ;;  %v8591_v6 = vld [vmem:[%s13369_s2 + $0x374] sm:$0xf0] }
 0x1ab   : >> { %9092 = vrcp.f32 %v10888_v10  ;;  %v1666_v17 = vpop.f32.mrf.mxu1  ;;  %v1737_v53 = vand.u32 2147483647, %v10888_v10  ;;  %v1739_v54 = vand.u32 2147483648, %v10888_v10  ;;  %vm1733_vm0 = vweird.f32 %v10888_v10  ;;  %2577 = vmatpush.bf16.msra.mxu3 %v6898_v58  ;;  %v8651_v34 = vld [vmem:[%s13369_s2 + $0x554] sm:$0xf0] }
 0x1ac   : >> { %9094 = vrcp.f32 %v10894_v16  ;;  %v1667_v24 = vadd.f32 %v1666_v17, %v1055_v12  ;;  %v1713_v1 = vsel %vm10960_vm15, %v10857_v60, %v1709_v50  ;;  %v6918_v17 = vor.u32 %v8651_v34, %v6917_v15  ;;  %v8597_v58 = vld [vmem:[%s13369_s2 + $0x3ac] sm:$0xf]  ;;  %v6661_v15 = vld [vmem:[%s13369_s2 + $0x348] sm:$0xf]  ;;  %v8587_v34 = vld [vmem:[%s13369_s2 + $0x354] sm:$0xf0] }
 0x1ad   : >> { %2656 = vmatpush.bf16.msra.mxu1 %v6890_v25  ;;  %v1740_v3 = vor.u32 1.1754944e-38, %v1739_v54  ;;  %vm1738_vm2 = vcmp.eq.f32.partialorder %v1737_v53, 8.507059e+37  ;;  %v1718_v8 = vsel %vm1715_vm3, %v1717_v4, %v1713_v1  ;;  %v1766_v18 = vand.u32 2147483648, %v10894_v16  ;;  %v6741_v25 = vld [vmem:[%s13369_s2 + $0x3e8] sm:$0xf] }
 0x1ae   : >> { %v1680_v27 = vadd.f32 %v10722_v30, %v1667_v24  ;;  %2612 = vmatpush.bf16.msrb.mxu2 %v6966_v47  ;;  %vm1760_vm5 = vweird.f32 %v10894_v16  ;;  %v6727_v47 = vld [vmem:[%s13369_s2 + $0x3d8] sm:$0xf0]  ;;  %v6726_v50 = vor.u32 %v8603_v43, %v6725_v40  ;;  %v8599_v53 = vld [vmem:[%s13369_s2 + $0x3b4] sm:$0xf0]  ;;  %v8593_v1 = vld [vmem:[%s13369_s2 + $0x38c] sm:$0xf] }
 0x1af   : >> { %2578 = vmatpush.bf16.msra.mxu3 %v6882_v14  ;;  %v1767_v24 = vor.u32 1.1754944e-38, %v1766_v18  ;;  %v7129_v4 = vld [vmem:[%s13368_s1 + $0x90] sm:$0xf0]  ;;  %v8585_v18 = vld [vmem:[%s13369_s2 + $0x34c] sm:$0xf] }
 0x1b0   : >> { %v1693_v30 = vadd.f32 %v10828_v39, %v1680_v27  ;;  %v7097_v19 = vld [vmem:[%s13368_s1 + $0x50] sm:$0xf0]  ;;  %v6871_v40 = vld [vmem:[%s13369_s2 + $0x4f8] sm:$0xf0]  ;;  %v8577_v43 = vld [vmem:[%s13369_s2 + $0x30c] sm:$0xf] }
 0x1b1   : >> { %v9093_v35 = vpop.eup %9092 }
 0x1b2   : >> { %v10925_v37 = vpop.eup %9094  ;;  %v1729_v38 = vmul.f32 %v9093_v35, %v10888_v10  ;;  %9096 = vtanh.f32 %v1693_v30  ;;  %vm1734_vm13 = vweird.f32 %v9093_v35  ;;  %2613 = vmatpush.bf16.msrb.mxu2 %v6950_v7  ;;  %v6886_v30 = vor.u32 %v8643_v29, %v6885_v11  ;;  %v8595_v7 = vld [vmem:[%s13369_s2 + $0x394] sm:$0xf0]  ;;  %v6629_v29 = vld [vmem:[%s13369_s2 + $0x308] sm:$0xf] }
 0x1b3   : >> { %v1756_v39 = vmul.f32 %v10925_v37, %v10894_v16  ;;  %v1668_v45 = vpop.f32.mrf.mxu1  ;;  %vm1735_vm1 = vmor %vm1733_vm0, %vm1734_vm13  ;;  %vm1761_vm4 = vweird.f32 %v10925_v37  ;;  %v6694_v14 = vor.u32 %v8595_v7, %v6693_v42  ;;  %v7169_v42 = vld [vmem:[%s13368_s1 + $0xd8] sm:$0xf0] }
 0x1b4   : >> { %v1730_v49 = vsub.f32 1.0, %v1729_v38  ;;  %vm1762_vm6 = vmor %vm1760_vm5, %vm1761_vm4  ;;  %v8601_v45 = vld [vmem:[%s13369_s2 + $0x3cc] sm:$0xf] }
 0x1b5   : >> { %v1757_v0 = vsub.f32 1.0, %v1756_v39  ;;  %v6730_v54 = vor.u32 %v8601_v45, %v6727_v47  ;;  %v7175_v45 = vld [vmem:[%s13368_s1 + $0xe0] sm:$0xf]  ;;  %v8712_v47 = vld [vmem:[%s13368_s1 + $0xec] sm:$0xf0] }
 0x1b6   : >> { %v1731_v59 = vmul.f32 %v9093_v35, %v1730_v49  ;;  %2614 = vmatpush.bf16.msrb.mxu2 %v6934_v9  ;;  %v7161_v49 = vld [vmem:[%s13368_s1 + $0xd0] sm:$0xf0]  ;;  %v8694_v9 = vld [vmem:[%s13368_s1 + $0x64] sm:$0xf] }
 0x1b7   : >> { %v1758_v60 = vmul.f32 %v10925_v37, %v1757_v0  ;;  %v7164_v56 = vor.u32 %v8706_v48, %v7161_v49  ;;  %v6710_v0 = vor.u32 %v8599_v53, %v6709_v51  ;;  %v8711_v49 = vld [vmem:[%s13368_s1 + $0xec] sm:$0xf] }
 0x1b8   : >> { %v1732_v20 = vadd.f32 %v9093_v35, %v1731_v59  ;;  %v9097_v2 = vpop.eup %9096  ;;  %v6711_v59 = vld [vmem:[%s13369_s2 + $0x3b8] sm:$0xf0] }
 0x1b9   : >> { %v1744_v10 = vmul.f32 %v9097_v2, %v1718_v8  ;;  %v1759_v44 = vadd.f32 %v10925_v37, %v1758_v60  ;;  %v6714_v41 = vor.u32 %v8597_v58, %v6711_v59  ;;  %v6695_v2 = vld [vmem:[%s13369_s2 + $0x398] sm:$0xf0]  ;;  %v8589_v8 = vld [vmem:[%s13369_s2 + $0x36c] sm:$0xf]  ;;  %v7176_v59 = vor.u32 %v8712_v47, %v7175_v45 }
 0x1ba   : >> { %v1736_v5 = vsel %vm1735_vm1, %v9093_v35, %v1732_v20  ;;  %2615 = vmatpush.bf16.msrb.mxu2 %v6918_v17  ;;  %v7177_v35 = vld [vmem:[%s13368_s1 + $0xf0] sm:$0xf0]  ;;  %v7148_v20 = vor.u32 %v8702_v23, %v7145_v61  ;;  %v6698_v63 = vor.u32 %v8593_v1, %v6695_v2  ;;  %v6855_v58 = vld [vmem:[%s13369_s2 + $0x4d8] sm:$0xf0]  ;;  %v7159_v61 = vld [vmem:[%s13368_s1 + $0xc0] sm:$0xf] }
 0x1bb   : >> { %v1741_v55 = vsel %vm1738_vm2, %v1740_v3, %v1736_v5  ;;  %v1763_v21 = vsel %vm1762_vm6, %v10925_v37, %v1759_v44  ;;  %v7180_v39 = vor.u32 %v8710_v33, %v7177_v35  ;;  %v8698_v3 = vld [vmem:[%s13368_s1 + $0x84] sm:$0xf]  ;;  %v6677_v5 = vld [vmem:[%s13369_s2 + $0x368] sm:$0xf]  ;;  %v8637_v35 = vld [vmem:[%s13369_s2 + $0x4ec] sm:$0xf] }
 0x1bc   : >> { %v1745_v12 = vmul.f32 %v1741_v55, %v10634_v46  ;;  %v1764_v46 = vand.u32 2147483647, %v10894_v16  ;;  %v8607_v16 = vld [vmem:[%s13369_s2 + $0x3f4] sm:$0xf0]  ;;  %v7132_v60 = vor.u32 %v8698_v3, %v7129_v4  ;;  %v6679_v55 = vld [vmem:[%s13369_s2 + $0x378] sm:$0xf0]  ;;  %v6874_v51 = vor.u32 %v8637_v35, %v6871_v40 }
 0x1bd   : >> { %v6742_v37 = vor.u32 %v8607_v16, %v6741_v25  ;;  %v6682_v44 = vor.u32 %v8589_v8, %v6679_v55  ;;  %v7100_v16 = vor.u32 %v8690_v31, %v7097_v19  ;;  %v8682_v33 = vld [vmem:[%s13368_s1 + $0x4] sm:$0xf]  ;;  %v9165_v3 = vld [vmem:[%s9578_s22] sm:$0xf]  ;;  %v8625_v8 = vld [vmem:[%s13369_s2 + $0x48c] sm:$0xf] }
 0x1be   : >> { %v1746_v13 = vadd.f32 %v1745_v12, %v1744_v10  ;;  %vm1765_vm7 = vcmp.eq.f32.partialorder %v1764_v46, 8.507059e+37  ;;  %2616 = vmatpush.bf16.msrb.mxu2 %v6902_v22  ;;  %v7113_v10 = vld [vmem:[%s13368_s1 + $0x70] sm:$0xf0]  ;;  %v1915_v12 = vld [vmem:[#allocation2 + $0x8] sm:$0xf] }
 0x1bf   : >> { %v1768_v28 = vsel %vm1765_vm7, %v1767_v24, %v1763_v21  ;;  %v7116_v17 = vor.u32 %v8694_v9, %v7113_v10  ;;  %v6663_v46 = vld [vmem:[%s13369_s2 + $0x358] sm:$0xf0]  ;;  %v6662_v21 = vor.u32 %v8587_v34, %v6661_v15  ;;  %v6645_v22 = vld [vmem:[%s13369_s2 + $0x328] sm:$0xf]  ;;  %v8583_v24 = vld [vmem:[%s13369_s2 + $0x334] sm:$0xf0] }
 0x1c0   : >> { %9098 = vtanh.f32 %v1746_v13  ;;  %1774 = vst [vmem:[#allocation3] sm:$0xff] %v1746_v13  ;;  %v6678_v13 = vor.u32 %v8591_v6, %v6677_v5  ;;  %v6666_v25 = vor.u32 %v8585_v18, %v6663_v46  ;;  %v6646_v11 = vor.u32 %v8583_v24, %v6645_v22  ;;  %v11199_v2 = vld [vmem:[%s9578_s22 + $0x4] sm:$0xf]  ;;  %v8704_v5 = vld [vmem:[%s13368_s1 + $0xac] sm:$0xf0] }
 0x1c1   : >> { %v8703_v6 = vld [vmem:[%s13368_s1 + $0xac] sm:$0xf]  ;;  %v6823_v55 = vld [vmem:[%s13369_s2 + $0x498] sm:$0xf0]  ;;  %v7111_v19 = vld [vmem:[%s13368_s1 + $0x60] sm:$0xf] }
 0x1c2   : >> { %2617 = vmatpush.bf16.msrb.mxu2 %v6886_v30  ;;  %v8699_v15 = vld [vmem:[%s13368_s1 + $0x8c] sm:$0xf]  ;;  %v7137_v34 = vld [vmem:[%s13368_s1 + $0x98] sm:$0xf0] }
 0x1c3   : >> { %v6807_v18 = vld [vmem:[%s13369_s2 + $0x478] sm:$0xf0]  ;;  %v7140_v31 = vor.u32 %v8699_v15, %v7137_v34  ;;  %v8695_v22 = vld [vmem:[%s13368_s1 + $0x6c] sm:$0xf]  ;;  %v7151_v15 = vld [vmem:[%s13368_s1 + $0xa8] sm:$0xf] }
 0x1c4   : >> { %v7121_v24 = vld [vmem:[%s13368_s1 + $0x78] sm:$0xf0]  ;;  %v8613_v35 = vld [vmem:[%s13369_s2 + $0x42c] sm:$0xf]  ;;  %v8705_v34 = vld [vmem:[%s13368_s1 + $0xb4] sm:$0xf0] }
 0x1c5   : >> { %v7089_v45 = vld [vmem:[%s13368_s1 + $0x38] sm:$0xf0] }
 0x1c6   : >> { %v9099_v27 = vpop.eup %9098 }
 0x1c7   : >> { %v1771_v32 = vmul.f32 %v9099_v27, %v1768_v28  ;;  %v6647_v27 = vld [vmem:[%s13369_s2 + $0x338] sm:$0xf0]  ;;  %v8686_v28 = vld [vmem:[%s13368_s1 + $0x24] sm:$0xf] }
 0x1c8   : >> { %v6650_v30 = vor.u32 %v8581_v26, %v6647_v27  ;;  %v6791_v26 = vld [vmem:[%s13369_s2 + $0x458] sm:$0xf0] }
 0x1c9   : >> { %v11023_v38 = vpack.c.bf16 %v1771_v32, %v1771_v32  ;;  %v8579_v32 = vld [vmem:[%s13369_s2 + $0x314] sm:$0xf0] }
 0x1ca   : >> { %v6630_v48 = vor.u32 %v8579_v32, %v6629_v29  ;;  %v8691_v29 = vld [vmem:[%s13368_s1 + $0x4c] sm:$0xf]  ;;  %v7105_v32 = vld [vmem:[%s13368_s1 + $0x58] sm:$0xf0] }
 0x1cb   : >> { %v11021_v36 = vpop.f32.mrf.mxu1  ;;  %1773 = vst [vmem:[#allocation2 + $0x4] sm:$0xf] %v11023_v38  ;;  %1848 = vmatmul.bf16.vlgmr.msrb.gmra.mxu0 %v11023_v38  ;;  %2527 = vmatmul.bf16.vlgmr.msrb.gmra.mxu3 %v11023_v38  ;;  %v7108_v40 = vor.u32 %v8691_v29, %v7105_v32  ;;  %v8697_v29 = vld [vmem:[%s13368_s1 + $0x74] sm:$0xf0]  ;;  %v7627_v32 = vld [vmem:[%s13369_s2 + $0x260] sm:$0xf] }
 0x1cc   : >> { %2566 = vmatmul.bf16.vlgmr.msra.gmra.mxu2 %v11023_v38  ;;  %2584 = vmatpush.bf16.msrb.mxu0 %v6742_v37  ;;  %v7084_v37 = vor.u32 %v8686_v28, %v7081_v57  ;;  %v7124_v28 = vor.u32 %v8695_v22, %v7121_v24  ;;  %v7095_v57 = vld [vmem:[%s13368_s1 + $0x40] sm:$0xf]  ;;  %v8701_v22 = vld [vmem:[%s13368_s1 + $0x94] sm:$0xf0] }
 0x1cd   : >> { %2605 = vmatmul.bf16.vlgmr.msrb.gmra.mxu1 %v11023_v38  ;;  %2623 = vmatpush.bf16.msrb.mxu3 %v6746_v52  ;;  %v6631_v52 = vld [vmem:[%s13369_s2 + $0x318] sm:$0xf0]  ;;  %v7643_v24 = vld [vmem:[%s13369_s2 + $0x280] sm:$0xf] }
 0x1ce   : >> { %3254 = vmatpush.bf16.msrb.mxu1 %v7180_v39  ;;  %v7065_v39 = vld [vmem:[%s13368_s1 + $0x10] sm:$0xf0]  ;;  %v6634_v53 = vor.u32 %v8577_v43, %v6631_v52  ;;  %v7079_v43 = vld [vmem:[%s13368_s1 + $0x20] sm:$0xf]  ;;  %v8688_v52 = vld [vmem:[%s13368_s1 + $0x2c] sm:$0xf0] }
 0x1d0   : >> { %2585 = vmatpush.bf16.msrb.mxu0 %v6726_v50  ;;  %v7185_v50 = vld [vmem:[%s13368_s1 + $0xf8] sm:$0xf0] }
 0x1d1   : >> { %2624 = vmatpush.bf16.msrb.mxu3 %v6730_v54  ;;  %v7068_v54 = vor.u32 %v8682_v33, %v7065_v39  ;;  %v7188_v23 = vor.u32 %v8711_v49, %v7185_v50  ;;  %v8687_v39 = vld [vmem:[%s13368_s1 + $0x2c] sm:$0xf]  ;;  %v6759_v49 = vld [vmem:[%s13369_s2 + $0x418] sm:$0xf0] }
 0x1d2   : >> { %3255 = vmatpush.bf16.msrb.mxu1 %v7164_v56  ;;  %v8633_v56 = vld [vmem:[%s13369_s2 + $0x4cc] sm:$0xf] }
 0x1d3   : >> { %v1912_v62 = vpop.f32.mrf.mxu1  ;;  %v6858_v7 = vor.u32 %v8633_v56, %v6855_v58  ;;  %v8683_v50 = vld [vmem:[%s13368_s1 + $0xc] sm:$0xf]  ;;  %v8744_v56 = vld [vmem:[%s13368_s1 + $0x1ec] sm:$0xf0]  ;;  %v7063_v58 = vld [vmem:[%s13368_s1] sm:$0xf] }
 0x1d4   : >> { %2586 = vmatpush.bf16.msrb.mxu0 %v6710_v0  ;;  %v8708_v62 = vld [vmem:[%s13368_s1 + $0xcc] sm:$0xf0]  ;;  %v8707_v0 = vld [vmem:[%s13368_s1 + $0xcc] sm:$0xf] }
 0x1d5   : >> { %2625 = vmatpush.bf16.msrb.mxu3 %v6714_v41  ;;  %v8629_v41 = vld [vmem:[%s13369_s2 + $0x4ac] sm:$0xf]  ;;  %v7160_v1 = vor.u32 %v8708_v62, %v7159_v61  ;;  %v7172_v4 = vor.u32 %v8707_v0, %v7169_v42  ;;  %v7183_v61 = vld [vmem:[%s13368_s1 + $0xe8] sm:$0xf]  ;;  %v8713_v62 = vld [vmem:[%s13368_s1 + $0xf4] sm:$0xf0] }
 0x1d6   : >> { %3256 = vmatpush.bf16.msrb.mxu1 %v7148_v20  ;;  %v6839_v20 = vld [vmem:[%s13369_s2 + $0x4b8] sm:$0xf0]  ;;  %v7691_v42 = vld [vmem:[%s13369_s2 + $0x2e0] sm:$0xf] }
 0x1d8   : >> { %2587 = vmatpush.bf16.msrb.mxu0 %v6694_v14  ;;  %v7143_v14 = vld [vmem:[%s13368_s1 + $0xa0] sm:$0xf] }
 0x1d9   : >> { %2626 = vmatpush.bf16.msrb.mxu3 %v6698_v63  ;;  %v7153_v63 = vld [vmem:[%s13368_s1 + $0xb8] sm:$0xf0]  ;;  %v7144_v9 = vor.u32 %v8704_v5, %v7143_v14  ;;  %v7184_v14 = vor.u32 %v8713_v62, %v7183_v61  ;;  %v7191_v62 = vld [vmem:[%s13368_s1 + $0x100] sm:$0xf] }
 0x1da   : >> { %3257 = vmatpush.bf16.msrb.mxu1 %v7132_v60  ;;  %v6842_v60 = vor.u32 %v8629_v41, %v6839_v20  ;;  %v7156_v10 = vor.u32 %v8703_v6, %v7153_v63  ;;  %v7167_v6 = vld [vmem:[%s13368_s1 + $0xc8] sm:$0xf]  ;;  %v8709_v63 = vld [vmem:[%s13368_s1 + $0xd4] sm:$0xf0] }
 0x1db   : >> { %2540 = vmatmul.bf16.vlgmr.msra.gmra.mxu0 %v1915_v12  ;;  %2579 = vmatmul.bf16.vlgmr.msra.gmra.mxu3 %v1915_v12 }
 0x1dc   : >> { %2588 = vmatpush.bf16.msrb.mxu0 %v6678_v13  ;;  %2618 = vmatmul.bf16.vlgmr.msrb.gmra.mxu2 %v1915_v12  ;;  %v8700_v13 = vld [vmem:[%s13368_s1 + $0x8c] sm:$0xf0] }
 0x1dd   : >> { %2627 = vmatpush.bf16.msrb.mxu3 %v6682_v44  ;;  %2657 = vmatmul.bf16.vlgmr.msra.gmra.mxu1 %v1915_v12  ;;  %v7127_v12 = vld [vmem:[%s13368_s1 + $0x80] sm:$0xf]  ;;  %v6826_v44 = vor.u32 %v8625_v8, %v6823_v55  ;;  %v8844_v8 = vld [vmem:[%s13369_s2 + $0x2cc] sm:$0xf0] }
 0x1de   : >> { %3258 = vmatpush.bf16.msrb.mxu1 %v7116_v17  ;;  %v8621_v17 = vld [vmem:[%s13369_s2 + $0x46c] sm:$0xf]  ;;  %v7128_v46 = vor.u32 %v8700_v13, %v7127_v12  ;;  %v7168_v12 = vor.u32 %v8709_v63, %v7167_v6 }
 0x1e0   : >> { %2589 = vmatpush.bf16.msrb.mxu0 %v6662_v21  ;;  %v8696_v21 = vld [vmem:[%s13368_s1 + $0x6c] sm:$0xf0] }
 0x1e1   : >> { %2628 = vmatpush.bf16.msrb.mxu3 %v6666_v25  ;;  %v6810_v25 = vor.u32 %v8621_v17, %v6807_v18  ;;  %v7112_v27 = vor.u32 %v8696_v21, %v7111_v19  ;;  %v8840_v17 = vld [vmem:[%s13369_s2 + $0x2ac] sm:$0xf0]  ;;  %v7255_v18 = vld [vmem:[%s13368_s1 + $0x180] sm:$0xf]  ;;  %v7135_v21 = vld [vmem:[%s13368_s1 + $0x88] sm:$0xf] }
 0x1e2   : >> { %3259 = vmatpush.bf16.msrb.mxu1 %v7100_v16  ;;  %v8617_v16 = vld [vmem:[%s13369_s2 + $0x44c] sm:$0xf] }
 0x1e3   : >> { %v6794_v33 = vor.u32 %v8617_v16, %v6791_v26  ;;  %v7239_v26 = vld [vmem:[%s13368_s1 + $0x160] sm:$0xf] }
 0x1e4   : >> { %2590 = vmatpush.bf16.msrb.mxu0 %v6646_v11  ;;  %v8692_v11 = vld [vmem:[%s13368_s1 + $0x4c] sm:$0xf0] }
 0x1e5   : >> { %2629 = vmatpush.bf16.msrb.mxu3 %v6650_v30  ;;  %v6775_v30 = vld [vmem:[%s13369_s2 + $0x438] sm:$0xf0] }
 0x1e6   : >> { %3260 = vmatpush.bf16.msrb.mxu1 %v7084_v37  ;;  %v7096_v37 = vor.u32 %v8692_v11, %v7095_v57  ;;  %v6778_v47 = vor.u32 %v8613_v35, %v6775_v30  ;;  %v7119_v11 = vld [vmem:[%s13368_s1 + $0x68] sm:$0xf]  ;;  %v7223_v30 = vld [vmem:[%s13368_s1 + $0x140] sm:$0xf] }
 0x1e8   : >> { %2591 = vmatpush.bf16.msrb.mxu0 %v6630_v48  ;;  %v8609_v48 = vld [vmem:[%s13369_s2 + $0x40c] sm:$0xf] }
 0x1e9   : >> { %2630 = vmatpush.bf16.msrb.mxu3 %v6634_v53  ;;  %v7080_v53 = vor.u32 %v8688_v52, %v7079_v43  ;;  %v6762_v0 = vor.u32 %v8609_v48, %v6759_v49  ;;  %v7103_v52 = vld [vmem:[%s13368_s1 + $0x48] sm:$0xf]  ;;  %v7207_v49 = vld [vmem:[%s13368_s1 + $0x120] sm:$0xf] }
 0x1ea   : >> { %3261 = vmatpush.bf16.msrb.mxu1 %v7068_v54  ;;  %v7092_v54 = vor.u32 %v8687_v39, %v7089_v45  ;;  %v8693_v39 = vld [vmem:[%s13368_s1 + $0x54] sm:$0xf0]  ;;  %v7611_v45 = vld [vmem:[%s13369_s2 + $0x240] sm:$0xf] }
 0x1eb   : >> { %2592 = vmatmul.bf16.vlgmr.msrb.gmra.mxu0 %v9165_v3 }
 0x1ec   : >> { %2636 = vmatpush.bf16.msra.mxu0 %v6874_v51  ;;  %2631 = vmatmul.bf16.vlgmr.msrb.gmra.mxu3 %v9165_v3  ;;  %v7303_v51 = vld [vmem:[%s13368_s1 + $0x1e0] sm:$0xf] }
 0x1ed   : >> { %3228 = vmatpush.bf16.msra.mxu3 %v7176_v59  ;;  %3262 = vmatmul.bf16.vlgmr.msrb.gmra.mxu1 %v11199_v2  ;;  %v8684_v59 = vld [vmem:[%s13368_s1 + $0xc] sm:$0xf0]  ;;  %v7304_v41 = vor.u32 %v8744_v56, %v7303_v51  ;;  %v7287_v3 = vld [vmem:[%s13368_s1 + $0x1c0] sm:$0xf]  ;;  %v7104_v51 = vor.u32 %v8693_v39, %v7103_v52  ;;  %v7087_v56 = vld [vmem:[%s13368_s1 + $0x28] sm:$0xf] }
 0x1ee   : >> { %3306 = vmatpush.bf16.msra.mxu1 %v7188_v23  ;;  %v7073_v23 = vld [vmem:[%s13368_s1 + $0x18] sm:$0xf0]  ;;  %v7064_v20 = vor.u32 %v8684_v59, %v7063_v58  ;;  %v8689_v58 = vld [vmem:[%s13368_s1 + $0x34] sm:$0xf0]  ;;  %v7595_v59 = vld [vmem:[%s13369_s2 + $0x220] sm:$0xf] }
 0x1f0   : >> { %2637 = vmatpush.bf16.msra.mxu0 %v6858_v7  ;;  %v8848_v7 = vld [vmem:[%s13369_s2 + $0x2ec] sm:$0xf0] }
 0x1f1   : >> { %3229 = vmatpush.bf16.msra.mxu3 %v7160_v1  ;;  %v7076_v1 = vor.u32 %v8683_v50, %v7073_v23  ;;  %v7692_v5 = vor.u32 %v8848_v7, %v7691_v42  ;;  %v8720_v50 = vld [vmem:[%s13368_s1 + $0x12c] sm:$0xf0]  ;;  %v7311_v42 = vld [vmem:[%s13368_s1 + $0x1e8] sm:$0xf]  ;;  %v7088_v7 = vor.u32 %v8689_v58, %v7087_v56  ;;  %v11534_v56 = vld [vmem:[#allocation3 + $0x8] sm:$0xff] }
 0x1f2   : >> { %3307 = vmatpush.bf16.msra.mxu1 %v7172_v4  ;;  %v8740_v4 = vld [vmem:[%s13368_s1 + $0x1cc] sm:$0xf0]  ;;  %v7208_v61 = vor.u32 %v8720_v50, %v7207_v49  ;;  %v8675_v58 = vld [vmem:[%s13372_s5 + $0x98] sm:$0xff] }
 0x1f3   : >> { %v7288_v55 = vor.u32 %v8740_v4, %v7287_v3  ;;  %v8824_v23 = vld [vmem:[%s13369_s2 + $0x22c] sm:$0xf0]  ;;  %v7071_v3 = vld [vmem:[%s13368_s1 + $0x8] sm:$0xf]  ;;  %v8685_v4 = vld [vmem:[%s13368_s1 + $0x14] sm:$0xf0] }
 0x1f4   : >> { %2638 = vmatpush.bf16.msra.mxu0 %v6842_v60  ;;  %v7675_v60 = vld [vmem:[%s13369_s2 + $0x2c0] sm:$0xf] }
 0x1f5   : >> { %3230 = vmatpush.bf16.msra.mxu3 %v7144_v9  ;;  %v7271_v9 = vld [vmem:[%s13368_s1 + $0x1a0] sm:$0xf]  ;;  %v7676_v13 = vor.u32 %v8844_v8, %v7675_v60  ;;  %v7072_v60 = vor.u32 %v8685_v4, %v7071_v3 }
 0x1f6   : >> { %3308 = vmatpush.bf16.msra.mxu1 %v7156_v10  ;;  %v8736_v10 = vld [vmem:[%s13368_s1 + $0x1ac] sm:$0xf0] }
 0x1f8   : >> { %2639 = vmatpush.bf16.msra.mxu0 %v6826_v44  ;;  %v7659_v44 = vld [vmem:[%s13369_s2 + $0x2a0] sm:$0xf] }
 0x1f9   : >> { %3231 = vmatpush.bf16.msra.mxu3 %v7128_v46  ;;  %v8732_v46 = vld [vmem:[%s13368_s1 + $0x18c] sm:$0xf0]  ;;  %v7660_v19 = vor.u32 %v8840_v17, %v7659_v44  ;;  %v8737_v44 = vld [vmem:[%s13368_s1 + $0x1b4] sm:$0xf0]  ;;  %v3426_v17 = vld [vmem:[#allocation2 + $0x4] sm:$0xf] }
 0x1fa   : >> { %3309 = vmatpush.bf16.msra.mxu1 %v7140_v31  ;;  %v7152_v31 = vor.u32 %v8705_v34, %v7151_v15  ;;  %v7256_v16 = vor.u32 %v8732_v46, %v7255_v18  ;;  %v11468_v15 = vld [vmem:[#allocation2] sm:$0xf]  ;;  %v7279_v34 = vld [vmem:[%s13368_s1 + $0x1a8] sm:$0xf]  ;;  %v8733_v46 = vld [vmem:[%s13368_s1 + $0x194] sm:$0xf0] }
 0x1fb   : >> { %v7263_v18 = vld [vmem:[%s13368_s1 + $0x188] sm:$0xf] }
 0x1fc   : >> { %2640 = vmatpush.bf16.msra.mxu0 %v6810_v25  ;;  %v8836_v25 = vld [vmem:[%s13369_s2 + $0x28c] sm:$0xf0] }
 0x1fd   : >> { %3232 = vmatpush.bf16.msra.mxu3 %v7112_v27  ;;  %v8728_v27 = vld [vmem:[%s13368_s1 + $0x16c] sm:$0xf0]  ;;  %v7644_v57 = vor.u32 %v8836_v25, %v7643_v24  ;;  %v8725_v24 = vld [vmem:[%s13368_s1 + $0x154] sm:$0xf0] }
 0x1fe   : >> { %3310 = vmatpush.bf16.msra.mxu1 %v7124_v28  ;;  %v7136_v28 = vor.u32 %v8701_v22, %v7135_v21  ;;  %v7240_v35 = vor.u32 %v8728_v27, %v7239_v26  ;;  %v7231_v22 = vld [vmem:[%s13368_s1 + $0x148] sm:$0xf]  ;;  %v8721_v26 = vld [vmem:[%s13368_s1 + $0x134] sm:$0xf0] }
 0x1ff   : >> { %v7232_v25 = vor.u32 %v8725_v24, %v7231_v22 }
 0x200   : >> { %2641 = vmatpush.bf16.msra.mxu0 %v6794_v33  ;;  %v8832_v33 = vld [vmem:[%s13369_s2 + $0x26c] sm:$0xf0] }
 0x201   : >> { %3233 = vmatpush.bf16.msra.mxu3 %v7096_v37  ;;  %v8724_v37 = vld [vmem:[%s13368_s1 + $0x14c] sm:$0xf0]  ;;  %v7628_v43 = vor.u32 %v8832_v33, %v7627_v32 }
 0x202   : >> { %3311 = vmatpush.bf16.msra.mxu1 %v7108_v40  ;;  %v7120_v40 = vor.u32 %v8697_v29, %v7119_v11  ;;  %v7224_v48 = vor.u32 %v8724_v37, %v7223_v30  ;;  %v8679_v29 = vld [vmem:[%s13372_s5 + $0xb8] sm:$0xff]  ;;  %v11520_v30 = vld [vmem:[%s13370_s3 + $0x2] ss:$4 sm:$0xf] }
 0x203   : >> { %2806 = vmatpush.bf16.msra.mxu2 %v8679_v29  ;;  %v2018_v52 = vperm.slane %v11520_v30, 0  ;;  %v2019_v49 = vperm.slane %v11520_v30, 1 }
 0x204   : >> { %2642 = vmatpush.bf16.msra.mxu0 %v6778_v47  ;;  %v8828_v47 = vld [vmem:[%s13369_s2 + $0x24c] sm:$0xf0] }
 0x205   : >> { %3234 = vmatpush.bf16.msra.mxu3 %v7080_v53  ;;  %v11422_v53 = vpop.f32.mrf.mxu1 }
 0x206   : >> { %3312 = vmatpush.bf16.msra.mxu1 %v7092_v54  ;;  %v7612_v54 = vor.u32 %v8828_v47, %v7611_v45  ;;  %v8676_v47 = vld [vmem:[%s13372_s5 + $0xa0] sm:$0xff] }
 0x208   : >> { %2643 = vmatpush.bf16.msra.mxu0 %v6762_v0  ;;  %v8716_v0 = vld [vmem:[%s13368_s1 + $0x10c] sm:$0xf0] }
 0x209   : >> { %3235 = vmatpush.bf16.msra.mxu3 %v7064_v20  ;;  %v7596_v20 = vor.u32 %v8824_v23, %v7595_v59  ;;  %v7192_v6 = vor.u32 %v8716_v0, %v7191_v62  ;;  %v9055_v62 = vld [vmem:[%s13371_s4 + $0x9] ss:$0 sm:$0xff] }
 0x20a   : >> { %3313 = vmatpush.bf16.msra.mxu1 %v7076_v1  ;;  %v8745_v1 = vld [vmem:[%s13368_s1 + $0x1f4] sm:$0xf0] }
 0x20b   : >> { %2644 = vmatmul.bf16.vlgmr.msra.gmra.mxu0 %v11023_v38  ;;  %v7272_v38 = vor.u32 %v8736_v10, %v7271_v9  ;;  %v7312_v63 = vor.u32 %v8745_v1, %v7311_v42  ;;  %v7295_v9 = vld [vmem:[%s13368_s1 + $0x1c8] sm:$0xf]  ;;  %v8741_v10 = vld [vmem:[%s13368_s1 + $0x1d4] sm:$0xf0]  ;;  %v2688_v1 = vmul.f32 %v9055_v62, %v11534_v56 }
 0x20c   : >> { %3241 = vmatpush.bf16.msrb.mxu0 %v7304_v41  ;;  %3236 = vmatmul.bf16.vlgmr.msra.gmra.mxu3 %v11199_v2  ;;  %v11445_v41 = vpop.f32.mrf.mxu2 }
 0x20d   : >> { %3280 = vmatpush.bf16.msrb.mxu3 %v7184_v14  ;;  %3314 = vmatmul.bf16.vlgmr.msra.gmra.mxu1 %v11199_v2  ;;  %v7579_v14 = vld [vmem:[%s13369_s2 + $0x200] sm:$0xf]  ;;  %v2556_v8 = vpop.f32.mrf.mxu1 }
 0x20e   : >> { %4040 = vmatpush.bf16.msrb.mxu1 %v7692_v5  ;;  %v8820_v5 = vld [vmem:[%s13369_s2 + $0x20c] sm:$0xf0] }
 0x210   : >> { %3242 = vmatpush.bf16.msrb.mxu0 %v7288_v55  ;;  %v7580_v55 = vor.u32 %v8820_v5, %v7579_v14  ;;  %v8673_v5 = vld [vmem:[%s13372_s5 + $0x88] sm:$0xff] }
 0x211   : >> { %3281 = vmatpush.bf16.msrb.mxu3 %v7168_v12  ;;  %v7296_v12 = vor.u32 %v8741_v10, %v7295_v9  ;;  %v8672_v9 = vld [vmem:[%s13372_s5 + $0x80] sm:$0xff] }
 0x212   : >> { %4041 = vmatpush.bf16.msrb.mxu1 %v7676_v13  ;;  %v8742_v10 = vld [vmem:[%s13368_s1 + $0x1e4] sm:$0xf] }
 0x214   : >> { %3243 = vmatpush.bf16.msrb.mxu0 %v7272_v38  ;;  %v2517_v13 = vpop.f32.mrf.mxu2  ;;  %v7280_v38 = vor.u32 %v8737_v44, %v7279_v34 }
 0x215   : >> { %3282 = vmatpush.bf16.msrb.mxu3 %v7152_v31  ;;  %v7264_v31 = vor.u32 %v8733_v46, %v7263_v18  ;;  %v2020_v13 = vperm.slane %v11520_v30, 2  ;;  %v8738_v18 = vld [vmem:[%s13368_s1 + $0x1c4] sm:$0xf]  ;;  %v7289_v46 = vld [vmem:[%s13368_s1 + $0x1d0] sm:$0xf0] }
 0x216   : >> { %4042 = vmatpush.bf16.msrb.mxu1 %v7660_v19  ;;  %v7247_v19 = vld [vmem:[%s13368_s1 + $0x168] sm:$0xf] }
 0x218   : >> { %3244 = vmatpush.bf16.msrb.mxu0 %v7256_v16  ;;  %v7215_v16 = vld [vmem:[%s13368_s1 + $0x128] sm:$0xf] }
 0x219   : >> { %3283 = vmatpush.bf16.msrb.mxu3 %v7136_v28  ;;  %v7216_v27 = vor.u32 %v8721_v26, %v7215_v16  ;;  %v7199_v28 = vld [vmem:[%s13368_s1 + $0x108] sm:$0xf]  ;;  %v8734_v16 = vld [vmem:[%s13368_s1 + $0x1a4] sm:$0xf]  ;;  %v7273_v26 = vld [vmem:[%s13368_s1 + $0x1b0] sm:$0xf0] }
 0x21a   : >> { %4043 = vmatpush.bf16.msrb.mxu1 %v7644_v57  ;;  %v8717_v57 = vld [vmem:[%s13368_s1 + $0x114] sm:$0xf0] }
 0x21b   : >> { %v7200_v11 = vor.u32 %v8717_v57, %v7199_v28 }
 0x21c   : >> { %3245 = vmatpush.bf16.msrb.mxu0 %v7240_v35  ;;  %v8678_v35 = vld [vmem:[%s13372_s5 + $0xb0] sm:$0xff] }
 0x21d   : >> { %3284 = vmatpush.bf16.msrb.mxu3 %v7120_v40  ;;  %2807 = vmatpush.bf16.msra.mxu2 %v8678_v35 }
 0x21e   : >> { %4044 = vmatpush.bf16.msrb.mxu1 %v7628_v43  ;;  %v8677_v43 = vld [vmem:[%s13372_s5 + $0xa8] sm:$0xff] }
 0x220   : >> { %3246 = vmatpush.bf16.msrb.mxu0 %v7224_v48  ;;  %v2516_v48 = vadd.f32 %v11445_v41, %v2018_v52  ;;  %v8674_v41 = vld [vmem:[%s13372_s5 + $0x90] sm:$0xff] }
 0x221   : >> { %3285 = vmatpush.bf16.msrb.mxu3 %v7104_v51  ;;  %2808 = vmatpush.bf16.msra.mxu2 %v8677_v43  ;;  %v9054_v51 = vld [vmem:[%s13371_s4 + $0x8] ss:$0 sm:$0xff] }
 0x222   : >> { %4045 = vmatpush.bf16.msrb.mxu1 %v7612_v54  ;;  %v2665_v42 = vmul.f32 %v9054_v51, %v11534_v56  ;;  %v7225_v51 = vld [vmem:[%s13368_s1 + $0x150] sm:$0xf0] }
 0x224   : >> { %3247 = vmatpush.bf16.msrb.mxu0 %v7208_v61  ;;  %v2555_v61 = vadd.f32 %v11422_v53, %v2019_v49 }
 0x225   : >> { %3286 = vmatpush.bf16.msrb.mxu3 %v7088_v7  ;;  %2809 = vmatpush.bf16.msra.mxu2 %v8676_v47  ;;  %v8726_v47 = vld [vmem:[%s13368_s1 + $0x164] sm:$0xf] }
 0x226   : >> { %4046 = vmatpush.bf16.msrb.mxu1 %v7596_v20 }
 0x228   : >> { %3248 = vmatpush.bf16.msrb.mxu0 %v7192_v6 }
 0x229   : >> { %3287 = vmatpush.bf16.msrb.mxu3 %v7072_v60  ;;  %2810 = vmatpush.bf16.msra.mxu2 %v8675_v58 }
 0x22a   : >> { %4047 = vmatpush.bf16.msrb.mxu1 %v7580_v55 }
 0x22b   : >> { %3249 = vmatmul.bf16.vlgmr.msrb.gmra.mxu0 %v11468_v15 }
 0x22c   : >> { %3293 = vmatpush.bf16.msra.mxu0 %v7312_v63  ;;  %3288 = vmatmul.bf16.vlgmr.msrb.gmra.mxu3 %v11199_v2  ;;  %v8729_v2 = vld [vmem:[%s13368_s1 + $0x174] sm:$0xf0] }
 0x22d   : >> { %4048 = vmatmul.bf16.vlgmr.msrb.gmra.mxu1 %v3426_v17  ;;  %v7248_v21 = vor.u32 %v8729_v2, %v7247_v19  ;;  %2811 = vmatpush.bf16.msra.mxu2 %v8674_v41  ;;  %v9056_v17 = vld [vmem:[%s13371_s4 + $0xa] ss:$0 sm:$0xff]  ;;  %v7292_v2 = vor.u32 %v8738_v18, %v7289_v46 }
 0x230   : >> { %3294 = vmatpush.bf16.msra.mxu0 %v7296_v12  ;;  %v7305_v12 = vld [vmem:[%s13368_s1 + $0x1f0] sm:$0xf0] }
 0x231   : >> { %2812 = vmatpush.bf16.msra.mxu2 %v8673_v5  ;;  %v7308_v34 = vor.u32 %v8742_v10, %v7305_v12 }
 0x234   : >> { %3295 = vmatpush.bf16.msra.mxu0 %v7280_v38 }
 0x235   : >> { %2813 = vmatpush.bf16.msra.mxu2 %v8672_v9 }
 0x238   : >> { %3296 = vmatpush.bf16.msra.mxu0 %v7264_v31 }
 0x239   : >> { %3267 = vmatpush.bf16.msrb.mxu2 %v7308_v34 }
 0x23c   : >> { %3297 = vmatpush.bf16.msra.mxu0 %v7248_v21 }
 0x23d   : >> { %3268 = vmatpush.bf16.msrb.mxu2 %v7292_v2 }
 0x240   : >> { %3298 = vmatpush.bf16.msra.mxu0 %v7232_v25  ;;  %v2715_v25 = vmul.f32 %v9056_v17, %v11534_v56 }
 0x244   : >> { %3299 = vmatpush.bf16.msra.mxu0 %v7216_v27  ;;  %v7276_v27 = vor.u32 %v8734_v16, %v7273_v26 }
 0x246   : >> { %3269 = vmatpush.bf16.msrb.mxu2 %v7276_v27 }
 0x248   : >> { %3300 = vmatpush.bf16.msra.mxu0 %v7200_v11  ;;  %v11512_v32 = vpop.f32.mrf.mxu0 }
 0x24a   : >> { %v2606_v33 = vpop.f32.mrf.mxu1 }
 0x24b   : >> { %3301 = vmatmul.bf16.vlgmr.msra.gmra.mxu0 %v11468_v15 }
 0x24e   : >> { %v2528_v37 = vpop.f32.mrf.mxu3 }
 0x24f   : >> { %v2567_v40 = vpop.f32.mrf.mxu2  ;;  %v2529_v59 = vadd.f32 %v2528_v37, %v2516_v48  ;;  %v7257_v37 = vld [vmem:[%s13368_s1 + $0x190] sm:$0xf0] }
 0x250   : >> { %v1851_v39 = vpop.f32.mrf.mxu0  ;;  %v2568_v20 = vadd.f32 %v2567_v40, %v2555_v61  ;;  %v7241_v48 = vld [vmem:[%s13368_s1 + $0x170] sm:$0xf0] }
 0x251   : >> { %v7244_v49 = vor.u32 %v8726_v47, %v7241_v48  ;;  %v7209_v61 = vld [vmem:[%s13368_s1 + $0x130] sm:$0xf0]  ;;  %v7313_v47 = vld [vmem:[%s13368_s1 + $0x1f8] sm:$0xf0] }
 0x252   : >> { %v2608_v45 = vpop.f32.mrf.mxu1 }
 0x256   : >> { %v2530_v50 = vpop.f32.mrf.mxu3 }
 0x257   : >> { %v2569_v54 = vpop.f32.mrf.mxu2  ;;  %v8722_v50 = vld [vmem:[%s13368_s1 + $0x144] sm:$0xf] }
 0x258   : >> { %v2541_v23 = vpop.f32.mrf.mxu0  ;;  %v7228_v58 = vor.u32 %v8722_v50, %v7225_v51 }
 0x259   : >> { %v2542_v0 = vadd.f32 %v2541_v23, %v2529_v59  ;;  %v8718_v23 = vld [vmem:[%s13368_s1 + $0x124] sm:$0xf] }
 0x25a   : >> { %v11544_v7 = vpop.f32.mrf.mxu1 }
 0x25b   : >> { %v2666_v3 = vadd.f32 %v2665_v42, %v2542_v0 }
 0x25d   : >> { %v7004_v60 = vmul.f32 -1.442695, %v2666_v3  ;;  %v2021_v3 = vperm.slane %v11520_v30, 3 }
 0x25e   : >> { %v2580_v53 = vpop.f32.mrf.mxu3 }
 0x25f   : >> { %v2581_v4 = vadd.f32 %v2580_v53, %v2568_v20  ;;  %v2619_v14 = vpop.f32.mrf.mxu2  ;;  %v7212_v20 = vor.u32 %v8718_v23, %v7209_v61  ;;  %v7297_v23 = vld [vmem:[%s13368_s1 + $0x1d8] sm:$0xf0] }
 0x260   : >> { %v2543_v6 = vpop.f32.mrf.mxu0 }
 0x261   : >> { %v2689_v63 = vadd.f32 %v2688_v1, %v2581_v4  ;;  %v8714_v4 = vld [vmem:[%s13368_s1 + $0x104] sm:$0xf] }
 0x262   : >> { %v2660_v8 = vpop.f32.mrf.mxu1 }
 0x263   : >> { %v7006_v55 = vmul.f32 -1.442695, %v2689_v63 }
 0x265   : >> { %9100 = vpow2.f32 %v7006_v55 }
 0x266   : >> { %v2582_v44 = vpop.f32.mrf.mxu3  ;;  %9102 = vpow2.f32 %v7004_v60 }
 0x267   : >> { %v2621_v38 = vpop.f32.mrf.mxu2 }
 0x268   : >> { %v2593_v31 = vpop.f32.mrf.mxu0 }
 0x269   : >> { %v2594_v19 = vadd.f32 %v2593_v31, %v2020_v13 }
 0x26a   : >> { %v11572_v21 = vpop.f32.mrf.mxu1 }
 0x26b   : >> { %v9101_v22 = vpop.eup %9100  ;;  %v2607_v24 = vadd.f32 %v2606_v33, %v2594_v19  ;;  %v8730_v33 = vld [vmem:[%s13368_s1 + $0x184] sm:$0xf] }
 0x26c   : >> { %v9103_v28 = vpop.eup %9102  ;;  %v11581_v11 = vadd.f32 1.0, %v9101_v22  ;;  %v7260_v52 = vor.u32 %v8730_v33, %v7257_v37 }
 0x26d   : >> { %v2620_v57 = vadd.f32 %v2619_v14, %v2607_v24  ;;  %v11589_v40 = vadd.f32 1.0, %v9103_v28  ;;  %v7193_v14 = vld [vmem:[%s13368_s1 + $0x110] sm:$0xf0] }
 0x26e   : >> { %9104 = vrcp.f32 %v11581_v11  ;;  %3270 = vmatpush.bf16.msrb.mxu2 %v7260_v52  ;;  %v7196_v5 = vor.u32 %v8714_v4, %v7193_v14  ;;  %v2705_v13 = vand.u32 2147483648, %v11581_v11  ;;  %vm2699_vm9 = vweird.f32 %v11581_v11  ;;  %v11640_v52 = vld [vmem:[%s13370_s3] ss:$4 sm:$0xf]  ;;  %v7265_v4 = vld [vmem:[%s13368_s1 + $0x198] sm:$0xf0] }
 0x26f   : >> { %v2716_v29 = vadd.f32 %v2715_v25, %v2620_v57  ;;  %v2632_v35 = vpop.f32.mrf.mxu3  ;;  %v2703_v38 = vand.u32 2147483647, %v11581_v11  ;;  %v2682_v18 = vand.u32 2147483648, %v11589_v40  ;;  %vm2676_vm12 = vweird.f32 %v11589_v40 }
 0x270   : >> { %v2595_v43 = vpop.f32.mrf.mxu0  ;;  %v2633_v63 = vadd.f32 %v2632_v35, %v2021_v3  ;;  %v2680_v46 = vand.u32 2147483647, %v11589_v40  ;;  %v2706_v19 = vor.u32 1.1754944e-38, %v2705_v13  ;;  %v2900_v50 = vperm.slane %v11640_v52, 0 }
 0x271   : >> { %v7008_v39 = vmul.f32 -1.442695, %v2716_v29  ;;  %vm2704_vm14 = vcmp.eq.f32.partialorder %v2703_v38, 8.507059e+37  ;;  %v2683_v25 = vor.u32 1.1754944e-38, %v2682_v18  ;;  %v8715_v38 = vld [vmem:[%s13368_s1 + $0x10c] sm:$0xf] }
 0x272   : >> { %v3265_v45 = vpop.f32.mrf.mxu1  ;;  %3271 = vmatpush.bf16.msrb.mxu2 %v7244_v49  ;;  %vm2681_vm15 = vcmp.eq.f32.partialorder %v2680_v46, 8.507059e+37  ;;  %v7201_v18 = vld [vmem:[%s13368_s1 + $0x118] sm:$0xf0]  ;;  %v2902_v46 = vperm.slane %v11640_v52, 2 }
 0x273   : >> { %9106 = vpow2.f32 %v7008_v39  ;;  %v8743_v45 = vld [vmem:[%s13368_s1 + $0x1ec] sm:$0xf] }
 0x274   : >> { %9108 = vrcp.f32 %v11589_v40  ;;  %v9105_v59 = vpop.eup %9104 }
 0x275   : >> { %v2695_v42 = vmul.f32 %v9105_v59, %v11581_v11  ;;  %vm2700_vm8 = vweird.f32 %v9105_v59 }
 0x276   : >> { %3272 = vmatpush.bf16.msrb.mxu2 %v7228_v58  ;;  %vm2701_vm11 = vmor %vm2699_vm9, %vm2700_vm8 }
 0x277   : >> { %v2634_v54 = vpop.f32.mrf.mxu3  ;;  %v2696_v53 = vsub.f32 1.0, %v2695_v42  ;;  %v8735_v42 = vld [vmem:[%s13368_s1 + $0x1ac] sm:$0xf] }
 0x278   : >> { %v7316_v54 = vor.u32 %v8743_v45, %v7313_v47  ;;  %v7387_v47 = vld [vmem:[%s13369_s2 + $0x80] sm:$0xf] }
 0x279   : >> { %v9107_v62 = vpop.eup %9106  ;;  %v2697_v60 = vmul.f32 %v9105_v59, %v2696_v53  ;;  %v8731_v53 = vld [vmem:[%s13368_s1 + $0x18c] sm:$0xf] }
 0x27a   : >> { %v9109_v0 = vpop.eup %9108  ;;  %v11612_v41 = vadd.f32 1.0, %v9107_v62  ;;  %3273 = vmatpush.bf16.msrb.mxu2 %v7212_v20  ;;  %v7268_v14 = vor.u32 %v8731_v53, %v7265_v4  ;;  %v8766_v53 = vld [vmem:[%s13369_s2 + $0x64] sm:$0xf]  ;;  %v7373_v4 = vld [vmem:[%s13369_s2 + $0x70] sm:$0xf0] }
 0x27b   : >> { %v2672_v1 = vmul.f32 %v9109_v0, %v11589_v40  ;;  %v2698_v10 = vadd.f32 %v9105_v59, %v2697_v60  ;;  %vm2677_vm10 = vweird.f32 %v9109_v0  ;;  %v7249_v60 = vld [vmem:[%s13368_s1 + $0x178] sm:$0xf0] }
 0x27c   : >> { %9110 = vrcp.f32 %v11612_v41  ;;  %vm2678_vm13 = vmor %vm2676_vm12, %vm2677_vm10  ;;  %v2732_v40 = vand.u32 2147483648, %v11612_v41  ;;  %vm2726_vm1 = vweird.f32 %v11612_v41  ;;  %v2730_v43 = vand.u32 2147483647, %v11612_v41 }
 0x27d   : >> { %v2673_v6 = vsub.f32 1.0, %v2672_v1  ;;  %v2702_v31 = vsel %vm2701_vm11, %v9105_v59, %v2698_v10  ;;  %v8739_v59 = vld [vmem:[%s13368_s1 + $0x1cc] sm:$0xf] }
 0x27e   : >> { %3274 = vmatpush.bf16.msrb.mxu2 %v7196_v5  ;;  %v2707_v16 = vsel %vm2704_vm14, %v2706_v19, %v2702_v31  ;;  %vm2731_vm3 = vcmp.eq.f32.partialorder %v2730_v43, 8.507059e+37  ;;  %v7300_v62 = vor.u32 %v8739_v59, %v7297_v23  ;;  %v7204_v31 = vor.u32 %v8715_v38, %v7201_v18  ;;  %v7405_v43 = vld [vmem:[%s13369_s2 + $0xb0] sm:$0xf0]  ;;  %v9057_v59 = vld [vmem:[%s13371_s4] ss:$0 sm:$0xff] }
 0x27f   : >> { %v2674_v30 = vmul.f32 %v9109_v0, %v2673_v6  ;;  %v2711_v29 = vmul.f32 %v2707_v16, %v11534_v56  ;;  %v2733_v56 = vor.u32 1.1754944e-38, %v2732_v40  ;;  %v7437_v16 = vld [vmem:[%s13369_s2 + $0xf0] sm:$0xf0]  ;;  %v8774_v40 = vld [vmem:[%s13369_s2 + $0xa4] sm:$0xf] }
 0x281   : >> { %v2675_v17 = vadd.f32 %v9109_v0, %v2674_v30  ;;  %v8723_v30 = vld [vmem:[%s13368_s1 + $0x14c] sm:$0xf] }
 0x282   : >> { %v9111_v8 = vpop.eup %9110 }
 0x283   : >> { %v2722_v34 = vmul.f32 %v9111_v8, %v11612_v41  ;;  %vm2727_vm0 = vweird.f32 %v9111_v8  ;;  %v7281_v41 = vld [vmem:[%s13368_s1 + $0x1b8] sm:$0xf0] }
 0x284   : >> { %vm2728_vm2 = vmor %vm2726_vm1, %vm2727_vm0  ;;  %v7284_v3 = vor.u32 %v8735_v42, %v7281_v41  ;;  %v7371_v42 = vld [vmem:[%s13369_s2 + $0x60] sm:$0xf] }
 0x285   : >> { %v2723_v2 = vsub.f32 1.0, %v2722_v34  ;;  %v8719_v34 = vld [vmem:[%s13368_s1 + $0x12c] sm:$0xf] }
 0x287   : >> { %v2724_v57 = vmul.f32 %v9111_v8, %v2723_v2  ;;  %v7435_v2 = vld [vmem:[%s13369_s2 + $0xe0] sm:$0xf] }
 0x288   : >> { %v2645_v55 = vpop.f32.mrf.mxu0 }
 0x289   : >> { %v2646_v9 = vadd.f32 %v2645_v55, %v2633_v63  ;;  %v2725_v33 = vadd.f32 %v9111_v8, %v2724_v57  ;;  %v8727_v63 = vld [vmem:[%s13368_s1 + $0x16c] sm:$0xf] }
 0x28a   : >> { %v11623_v12 = vpop.f32.mrf.mxu1  ;;  %v7252_v55 = vor.u32 %v8727_v63, %v7249_v60  ;;  %v7427_v63 = vld [vmem:[%s13369_s2 + $0xc8] sm:$0xf]  ;;  %v8781_v60 = vld [vmem:[%s13369_s2 + $0xd4] sm:$0xf0] }
 0x28b   : >> { %v2659_v44 = vadd.f32 %v11544_v7, %v2646_v9  ;;  %v2679_v7 = vsel %vm2678_vm13, %v9109_v0, %v2675_v17  ;;  %v2729_v39 = vsel %vm2728_vm2, %v9111_v8, %v2725_v33  ;;  %v7233_v9 = vld [vmem:[%s13368_s1 + $0x158] sm:$0xf0] }
 0x28c   : >> { %v2684_v28 = vsel %vm2681_vm15, %v2683_v25, %v2679_v7  ;;  %v2734_v49 = vsel %vm2731_vm3, %v2733_v56, %v2729_v39  ;;  %v7236_v10 = vor.u32 %v8723_v30, %v7233_v9  ;;  %v8782_v7 = vld [vmem:[%s13369_s2 + $0xe4] sm:$0xf]  ;;  %v7408_v56 = vor.u32 %v8774_v40, %v7405_v43  ;;  %v8812_v30 = vld [vmem:[%s13369_s2 + $0x1cc] sm:$0xf0]  ;;  %v7355_v9 = vld [vmem:[%s13369_s2 + $0x40] sm:$0xf] }
 0x28d   : >> { %9112 = vtanh.f32 %v2659_v44  ;;  %v7217_v44 = vld [vmem:[%s13368_s1 + $0x138] sm:$0xf0]  ;;  %v7440_v57 = vor.u32 %v8782_v7, %v7437_v16  ;;  %v7339_v7 = vld [vmem:[%s13369_s2 + $0x20] sm:$0xf] }
 0x28e   : >> { %v7220_v17 = vor.u32 %v8719_v34, %v7217_v44  ;;  %v8762_v34 = vld [vmem:[%s13369_s2 + $0x44] sm:$0xf]  ;;  %v7357_v44 = vld [vmem:[%s13369_s2 + $0x50] sm:$0xf0]  ;;  %v7323_v43 = vld [vmem:[%s13369_s2] sm:$0xf] }
 0x28f   : >> { %v3237_v22 = vpop.f32.mrf.mxu3  ;;  %v7360_v18 = vor.u32 %v8762_v34, %v7357_v44  ;;  %v9058_v34 = vld [vmem:[%s13371_s4 + $0x2] ss:$0 sm:$0xff] }
 0x290   : >> { %v2647_v24 = vpop.f32.mrf.mxu0  ;;  %v3238_v61 = vadd.f32 %v3237_v22, %v2900_v50  ;;  %v8784_v22 = vld [vmem:[%s13369_s2 + $0xec] sm:$0xf0] }
 0x291   : >> { %v7436_v25 = vor.u32 %v8784_v22, %v7435_v2  ;;  %v8808_v22 = vld [vmem:[%s13369_s2 + $0x1ac] sm:$0xf0] }
 0x292   : >> { %v3317_v26 = vpop.f32.mrf.mxu1 }
 0x293   : >> { %v9113_v27 = vpop.eup %9112  ;;  %v7419_v26 = vld [vmem:[%s13369_s2 + $0xc0] sm:$0xf]  ;;  %4014 = vmatpush.bf16.msra.mxu3 %v7436_v25 }
 0x294   : >> { %v2710_v11 = vmul.f32 %v9113_v27, %v2684_v28  ;;  %v8780_v27 = vld [vmem:[%s13369_s2 + $0xcc] sm:$0xf0] }
 0x296   : >> { %v2712_v35 = vadd.f32 %v2711_v29, %v2710_v11  ;;  %v8778_v11 = vld [vmem:[%s13369_s2 + $0xc4] sm:$0xf]  ;;  %v7421_v29 = vld [vmem:[%s13369_s2 + $0xd0] sm:$0xf0] }
 0x297   : >> { %v3239_v37 = vpop.f32.mrf.mxu3  ;;  %v7424_v33 = vor.u32 %v8778_v11, %v7421_v29  ;;  %v7395_v29 = vld [vmem:[%s13369_s2 + $0x88] sm:$0xf] }
 0x298   : >> { %9114 = vtanh.f32 %v2712_v35  ;;  %2740 = vst [vmem:[#allocation3 + $0x8] sm:$0xff] %v2712_v35  ;;  %v7420_v35 = vor.u32 %v8780_v27, %v7419_v26  ;;  %v7403_v37 = vld [vmem:[%s13369_s2 + $0xa0] sm:$0xf]  ;;  %v8758_v26 = vld [vmem:[%s13369_s2 + $0x24] sm:$0xf] }
 0x299   : >> { %v7341_v27 = vld [vmem:[%s13369_s2 + $0x30] sm:$0xf0] }
 0x29a   : >> { %4015 = vmatpush.bf16.msra.mxu3 %v7420_v35  ;;  %v7344_v11 = vor.u32 %v8758_v26, %v7341_v27  ;;  %v9059_v26 = vld [vmem:[%s13373_s6] ss:$0 sm:$0xff] }
 0x29e   : >> { %v9115_v48 = vpop.eup %9114 }
 0x29f   : >> { %v2737_v51 = vmul.f32 %v9115_v48, %v2734_v49  ;;  %v8772_v48 = vld [vmem:[%s13369_s2 + $0x8c] sm:$0xf0]  ;;  %v8770_v49 = vld [vmem:[%s13369_s2 + $0x84] sm:$0xf] }
 0x2a0   : >> { %v7388_v50 = vor.u32 %v8772_v48, %v7387_v47  ;;  %v7325_v47 = vld [vmem:[%s13369_s2 + $0x10] sm:$0xf0]  ;;  %v8814_v48 = vld [vmem:[%s13369_s2 + $0x1e4] sm:$0xf] }
 0x2a1   : >> { %v2738_v58 = vpack.c.bf16 %v2737_v51, %v2737_v51  ;;  %v7389_v51 = vld [vmem:[%s13369_s2 + $0x90] sm:$0xf0] }
 0x2a2   : >> { %v7392_v23 = vor.u32 %v8770_v49, %v7389_v51  ;;  %v7565_v49 = vld [vmem:[%s13369_s2 + $0x1f0] sm:$0xf0] }
 0x2a3   : >> { %2739 = vst [vmem:[#allocation2 + $0x8] sm:$0xf] %v2738_v58  ;;  %2814 = vmatmul.bf16.vlgmr.msra.gmra.mxu2 %v2738_v58  ;;  %v8785_v58 = vld [vmem:[%s13369_s2 + $0xf4] sm:$0xf0]  ;;  %v7568_v51 = vor.u32 %v8814_v48, %v7565_v49 }
 0x2a4   : >> { %3319 = vmatpush.bf16.msra.mxu2 %v7316_v54  ;;  %v7443_v54 = vld [vmem:[%s13369_s2 + $0xe8] sm:$0xf] }
 0x2a8   : >> { %v3250_v0 = vpop.f32.mrf.mxu0  ;;  %3320 = vmatpush.bf16.msra.mxu2 %v7300_v62  ;;  %v7563_v62 = vld [vmem:[%s13369_s2 + $0x1e0] sm:$0xf] }
 0x2a9   : >> { %v11661_v20 = vadd.f32 %v3250_v0, %v3238_v61  ;;  %v7444_v61 = vor.u32 %v8785_v58, %v7443_v54  ;;  %v8816_v0 = vld [vmem:[%s13369_s2 + $0x1ec] sm:$0xf0]  ;;  %v7379_v54 = vld [vmem:[%s13369_s2 + $0x68] sm:$0xf]  ;;  %v8769_v58 = vld [vmem:[%s13369_s2 + $0x74] sm:$0xf0] }
 0x2aa   : >> { %v11663_v1 = vpop.f32.mrf.mxu1  ;;  %v7564_v41 = vor.u32 %v8816_v0, %v7563_v62  ;;  %v7499_v62 = vld [vmem:[%s13369_s2 + $0x160] sm:$0xf]  ;;  %v8800_v0 = vld [vmem:[%s13369_s2 + $0x16c] sm:$0xf0] }
 0x2ab   : >> { %4092 = vmatpush.bf16.msra.mxu1 %v7444_v61  ;;  %v8817_v61 = vld [vmem:[%s13369_s2 + $0x1f4] sm:$0xf0] }
 0x2ac   : >> { %3321 = vmatpush.bf16.msra.mxu2 %v7284_v3  ;;  %v8768_v3 = vld [vmem:[%s13369_s2 + $0x6c] sm:$0xf0]  ;;  %4027 = vmatpush.bf16.msrb.mxu0 %v7564_v41  ;;  %v7500_v41 = vor.u32 %v8800_v0, %v7499_v62  ;;  %v7507_v62 = vld [vmem:[%s13369_s2 + $0x168] sm:$0xf] }
 0x2af   : >> { %v3289_v5 = vpop.f32.mrf.mxu3 }
 0x2b0   : >> { %v3252_v6 = vpop.f32.mrf.mxu0  ;;  %3322 = vmatpush.bf16.msra.mxu2 %v7268_v14  ;;  %v3290_v19 = vadd.f32 %v3289_v5, %v2902_v46  ;;  %v11775_v14 = vld [vmem:[#allocation3 + $0x10] sm:$0xff]  ;;  %v7372_v5 = vor.u32 %v8768_v3, %v7371_v42  ;;  %v7411_v46 = vld [vmem:[%s13369_s2 + $0xa8] sm:$0xf]  ;;  %v8810_v3 = vld [vmem:[%s13369_s2 + $0x1c4] sm:$0xf] }
 0x2b1   : >> { %v7376_v6 = vor.u32 %v8766_v53, %v7373_v4  ;;  %v7549_v53 = vld [vmem:[%s13369_s2 + $0x1d0] sm:$0xf0]  ;;  %v7363_v4 = vld [vmem:[%s13369_s2 + $0x48] sm:$0xf] }
 0x2b2   : >> { %v4051_v8 = vpop.f32.mrf.mxu1 }
 0x2b3   : >> { %3275 = vmatmul.bf16.vlgmr.msrb.gmra.mxu2 %v11468_v15  ;;  %v7428_v8 = vor.u32 %v8781_v60, %v7427_v63  ;;  %v7555_v63 = vld [vmem:[%s13369_s2 + $0x1c8] sm:$0xf]  ;;  %v8813_v60 = vld [vmem:[%s13369_s2 + $0x1d4] sm:$0xf0] }
 0x2b4   : >> { %3323 = vmatpush.bf16.msra.mxu2 %v7252_v55  ;;  %v7547_v55 = vld [vmem:[%s13369_s2 + $0x1c0] sm:$0xf] }
 0x2b5   : >> { %4093 = vmatpush.bf16.msra.mxu1 %v7428_v8 }
 0x2b7   : >> { %v3291_v13 = vpop.f32.mrf.mxu3 }
 0x2b8   : >> { %3324 = vmatpush.bf16.msra.mxu2 %v7236_v10  ;;  %v7548_v10 = vor.u32 %v8812_v30, %v7547_v55  ;;  %v8764_v13 = vld [vmem:[%s13369_s2 + $0x4c] sm:$0xf0]  ;;  %v7556_v55 = vor.u32 %v8813_v60, %v7555_v63  ;;  %v7483_v30 = vld [vmem:[%s13369_s2 + $0x140] sm:$0xf]  ;;  %v7677_v63 = vld [vmem:[%s13369_s2 + $0x2d0] sm:$0xf0] }
 0x2b9   : >> { %v7356_v38 = vor.u32 %v8764_v13, %v7355_v9  ;;  %v8796_v9 = vld [vmem:[%s13369_s2 + $0x14c] sm:$0xf0] }
 0x2ba   : >> { %4028 = vmatpush.bf16.msrb.mxu0 %v7548_v10  ;;  %v11900_v10 = vld [vmem:[%s9578_s22 + $0x4] sm:$0xf]  ;;  %v7484_v44 = vor.u32 %v8796_v9, %v7483_v30  ;;  %v7485_v30 = vld [vmem:[%s13369_s2 + $0x150] sm:$0xf0]  ;;  %v7491_v9 = vld [vmem:[%s13369_s2 + $0x148] sm:$0xf] }
 0x2bc   : >> { %3325 = vmatpush.bf16.msra.mxu2 %v7220_v17  ;;  %v3334_v17 = vmul.f32 %v9057_v59, %v11775_v14  ;;  %v7571_v59 = vld [vmem:[%s13369_s2 + $0x1e8] sm:$0xf] }
 0x2bd   : >> { %v7572_v42 = vor.u32 %v8817_v61, %v7571_v59  ;;  %v7501_v61 = vld [vmem:[%s13369_s2 + $0x170] sm:$0xf0] }
 0x2be   : >> { %v3335_v25 = vadd.f32 %v3334_v17, %v11661_v20  ;;  %v8773_v20 = vld [vmem:[%s13369_s2 + $0x94] sm:$0xf0]  ;;  %v8806_v17 = vld [vmem:[%s13369_s2 + $0x1a4] sm:$0xf] }
 0x2c0   : >> { %3326 = vmatpush.bf16.msra.mxu2 %v7204_v31  ;;  %v8777_v31 = vld [vmem:[%s13369_s2 + $0xb4] sm:$0xf0]  ;;  %v7317_v35 = vmul.f32 -1.442695, %v3335_v25  ;;  %v7467_v25 = vld [vmem:[%s13369_s2 + $0x120] sm:$0xf] }
 0x2c1   : >> { %v7412_v2 = vor.u32 %v8777_v31, %v7411_v46  ;;  %v8761_v31 = vld [vmem:[%s13369_s2 + $0x34] sm:$0xf0] }
 0x2c2   : >> { %9116 = vpow2.f32 %v7317_v35  ;;  %v3384_v35 = vmul.f32 %v9058_v34, %v11775_v14 }
 0x2c3   : >> { %3327 = vmatmul.bf16.vlgmr.msra.gmra.mxu2 %v11468_v15  ;;  %v8776_v15 = vld [vmem:[%s13369_s2 + $0xac] sm:$0xf0]  ;;  %4094 = vmatpush.bf16.msra.mxu1 %v7412_v2  ;;  %v8809_v2 = vld [vmem:[%s13369_s2 + $0x1b4] sm:$0xf0] }
 0x2c4   : >> { %4053 = vmatpush.bf16.msrb.mxu2 %v7440_v57  ;;  %v7404_v39 = vor.u32 %v8776_v15, %v7403_v37  ;;  %v7515_v37 = vld [vmem:[%s13369_s2 + $0x180] sm:$0xf]  ;;  %v8804_v15 = vld [vmem:[%s13369_s2 + $0x18c] sm:$0xf0] }
 0x2c5   : >> { %v7516_v40 = vor.u32 %v8804_v15, %v7515_v37  ;;  %v8805_v15 = vld [vmem:[%s13369_s2 + $0x194] sm:$0xf0] }
 0x2c6   : >> { %4016 = vmatpush.bf16.msra.mxu3 %v7404_v39  ;;  %v8756_v39 = vld [vmem:[%s13369_s2 + $0xc] sm:$0xf0] }
 0x2c8   : >> { %v3302_v24 = vpop.f32.mrf.mxu0  ;;  %4054 = vmatpush.bf16.msrb.mxu2 %v7424_v33  ;;  %v7396_v33 = vor.u32 %v8773_v20, %v7395_v29  ;;  %v9117_v13 = vpop.eup %9116  ;;  %v7517_v29 = vld [vmem:[%s13369_s2 + $0x190] sm:$0xf0]  ;;  %v7331_v20 = vld [vmem:[%s13369_s2 + $0x8] sm:$0xf] }
 0x2c9   : >> { %v11715_v28 = vadd.f32 %v3302_v24, %v3290_v19  ;;  %v7531_v19 = vld [vmem:[%s13369_s2 + $0x1a0] sm:$0xf]  ;;  %v8760_v24 = vld [vmem:[%s13369_s2 + $0x2c] sm:$0xf0] }
 0x2ca   : >> { %4017 = vmatpush.bf16.msra.mxu3 %v7388_v50  ;;  %v7532_v16 = vor.u32 %v8808_v22, %v7531_v19  ;;  %v7340_v57 = vor.u32 %v8760_v24, %v7339_v7  ;;  %4095 = vmatpush.bf16.msra.mxu1 %v7396_v33  ;;  %v7539_v19 = vld [vmem:[%s13369_s2 + $0x1a8] sm:$0xf]  ;;  %v11926_v22 = vadd.f32 1.0, %v9117_v13 }
 0x2cb   : >> { %v7540_v24 = vor.u32 %v8809_v2, %v7539_v19  ;;  %v3385_v48 = vadd.f32 %v3384_v35, %v11715_v28  ;;  %v8798_v28 = vld [vmem:[%s13369_s2 + $0x164] sm:$0xf]  ;;  %v9060_v35 = vld [vmem:[%s13371_s4 + $0x1] ss:$0 sm:$0xff] }
 0x2cc   : >> { %4055 = vmatpush.bf16.msrb.mxu2 %v7408_v56  ;;  %4029 = vmatpush.bf16.msrb.mxu0 %v7532_v16  ;;  %v8754_v56 = vld [vmem:[%s13369_s2 + $0x4] sm:$0xf]  ;;  %v8792_v16 = vld [vmem:[%s13369_s2 + $0x12c] sm:$0xf0]  ;;  %9118 = vrcp.f32 %v11926_v22  ;;  %v7504_v0 = vor.u32 %v8798_v28, %v7501_v61  ;;  %v8799_v28 = vld [vmem:[%s13369_s2 + $0x16c] sm:$0xf]  ;;  %vm3345_vm5 = vweird.f32 %v11926_v22 }
 0x2cd   : >> { %v7328_v50 = vor.u32 %v8754_v56, %v7325_v47  ;;  %v7468_v27 = vor.u32 %v8792_v16, %v7467_v25  ;;  %v8815_v56 = vld [vmem:[%s13369_s2 + $0x1ec] sm:$0xf]  ;;  %v7451_v47 = vld [vmem:[%s13369_s2 + $0x100] sm:$0xf]  ;;  %v8838_v2 = vld [vmem:[%s13369_s2 + $0x2a4] sm:$0xf] }
 0x2ce   : >> { %4018 = vmatpush.bf16.msra.mxu3 %v7372_v5  ;;  %v7552_v5 = vor.u32 %v8810_v3, %v7549_v53  ;;  %v7557_v3 = vld [vmem:[%s13369_s2 + $0x1d8] sm:$0xf0]  ;;  %v8790_v25 = vld [vmem:[%s13369_s2 + $0x124] sm:$0xf]  ;;  %v7469_v16 = vld [vmem:[%s13369_s2 + $0x130] sm:$0xf0] }
 0x2cf   : >> { %v7509_v61 = vld [vmem:[%s13369_s2 + $0x178] sm:$0xf0] }
 0x2d0   : >> { %v3304_v45 = vpop.f32.mrf.mxu0  ;;  %4056 = vmatpush.bf16.msrb.mxu2 %v7392_v23  ;;  %4030 = vmatpush.bf16.msrb.mxu0 %v7516_v40  ;;  %v7380_v23 = vor.u32 %v8769_v58, %v7379_v54  ;;  %v7693_v54 = vld [vmem:[%s13369_s2 + $0x2f0] sm:$0xf0] }
 0x2d1   : >> { %v7324_v45 = vor.u32 %v8756_v39, %v7323_v43 }
 0x2d2   : >> { %4019 = vmatpush.bf16.msra.mxu3 %v7356_v38  ;;  %4096 = vmatpush.bf16.msra.mxu1 %v7380_v23  ;;  %v7533_v38 = vld [vmem:[%s13369_s2 + $0x1b0] sm:$0xf0]  ;;  %v12007_v60 = vpop.eup %9118 }
 0x2d3   : >> { %v7536_v46 = vor.u32 %v8806_v17, %v7533_v38  ;;  %v8807_v17 = vld [vmem:[%s13369_s2 + $0x1ac] sm:$0xf]  ;;  %v7541_v38 = vld [vmem:[%s13369_s2 + $0x1b8] sm:$0xf0]  ;;  %v12031_v19 = vmul.f32 %v12007_v60, %v11926_v22  ;;  %vm3346_vm4 = vweird.f32 %v12007_v60 }
 0x2d4   : >> { %4057 = vmatpush.bf16.msrb.mxu2 %v7376_v6  ;;  %4031 = vmatpush.bf16.msrb.mxu0 %v7500_v41  ;;  %v8765_v6 = vld [vmem:[%s13369_s2 + $0x54] sm:$0xf0]  ;;  %v8811_v41 = vld [vmem:[%s13369_s2 + $0x1cc] sm:$0xf]  ;;  %vm12218_vm6 = vmor %vm3345_vm5, %vm3346_vm4 }
 0x2d5   : >> { %v7364_v8 = vor.u32 %v8765_v6, %v7363_v4  ;;  %v7560_v4 = vor.u32 %v8811_v41, %v7557_v3  ;;  %v8842_v6 = vld [vmem:[%s13369_s2 + $0x2c4] sm:$0xf]  ;;  %v7629_v3 = vld [vmem:[%s13369_s2 + $0x270] sm:$0xf0] }
 0x2d6   : >> { %4020 = vmatpush.bf16.msra.mxu3 %v7340_v57  ;;  %v1911_v57 = vadd.f32 %v11021_v36, %v11512_v32  ;;  %v8757_v36 = vld [vmem:[%s13369_s2 + $0x14] sm:$0xf0]  ;;  %v7523_v32 = vld [vmem:[%s13369_s2 + $0x188] sm:$0xf]  ;;  %v8830_v41 = vld [vmem:[%s13369_s2 + $0x264] sm:$0xf] }
 0x2d7   : >> { %4097 = vmatpush.bf16.msra.mxu1 %v7364_v8  ;;  %v7332_v43 = vor.u32 %v8757_v36, %v7331_v20  ;;  %v7524_v39 = vor.u32 %v8805_v15, %v7523_v32  ;;  %v7680_v8 = vor.u32 %v8842_v6, %v7677_v63  ;;  %v2903_v36 = vperm.slane %v11640_v52, 3  ;;  %v8834_v15 = vld [vmem:[%s13369_s2 + $0x284] sm:$0xf]  ;;  %v7683_v63 = vld [vmem:[%s13369_s2 + $0x2c8] sm:$0xf] }
 0x2d8   : >> { %4058 = vmatpush.bf16.msrb.mxu2 %v7360_v18  ;;  %v7347_v18 = vld [vmem:[%s13369_s2 + $0x28] sm:$0xf]  ;;  %4032 = vmatpush.bf16.msrb.mxu0 %v7484_v44  ;;  %v8797_v44 = vld [vmem:[%s13369_s2 + $0x154] sm:$0xf0]  ;;  %v3342_v32 = vsub.f32 1.0, %v12031_v19  ;;  %v7632_v6 = vor.u32 %v8830_v41, %v7629_v3 }
 0x2d9   : >> { %v7348_v7 = vor.u32 %v8761_v31, %v7347_v18  ;;  %v2901_v18 = vperm.slane %v11640_v52, 1  ;;  %v7544_v31 = vor.u32 %v8807_v17, %v7541_v38  ;;  %v7685_v17 = vld [vmem:[%s13369_s2 + $0x2d8] sm:$0xf0]  ;;  %v8826_v38 = vld [vmem:[%s13369_s2 + $0x244] sm:$0xf] }
 0x2da   : >> { %4021 = vmatpush.bf16.msra.mxu3 %v7324_v45  ;;  %v7573_v45 = vld [vmem:[%s13369_s2 + $0x1f8] sm:$0xf0]  ;;  %v8831_v19 = vld [vmem:[%s13369_s2 + $0x26c] sm:$0xf]  ;;  %v7619_v3 = vld [vmem:[%s13369_s2 + $0x248] sm:$0xf] }
 0x2db   : >> { %4098 = vmatpush.bf16.msra.mxu1 %v7348_v7  ;;  %v7576_v49 = vor.u32 %v8815_v56, %v7573_v45  ;;  %v7661_v7 = vld [vmem:[%s13369_s2 + $0x2b0] sm:$0xf0]  ;;  %v3264_v20 = vadd.f32 %v11572_v21, %v2901_v18  ;;  %v7459_v56 = vld [vmem:[%s13369_s2 + $0x108] sm:$0xf] }
 0x2dc   : >> { %4059 = vmatpush.bf16.msrb.mxu2 %v7344_v11  ;;  %v8802_v11 = vld [vmem:[%s13369_s2 + $0x184] sm:$0xf]  ;;  %4033 = vmatpush.bf16.msrb.mxu0 %v7468_v27  ;;  %v7472_v27 = vor.u32 %v8790_v25, %v7469_v16  ;;  %v7645_v21 = vld [vmem:[%s13369_s2 + $0x290] sm:$0xf0] }
 0x2dd   : >> { %4022 = vmatmul.bf16.vlgmr.msra.gmra.mxu3 %v11900_v10  ;;  %v7520_v37 = vor.u32 %v8802_v11, %v7517_v29  ;;  %v8803_v11 = vld [vmem:[%s13369_s2 + $0x18c] sm:$0xf]  ;;  %v7525_v29 = vld [vmem:[%s13369_s2 + $0x198] sm:$0xf0]  ;;  %v7613_v18 = vld [vmem:[%s13369_s2 + $0x250] sm:$0xf0] }
 0x2de   : >> { %4066 = vmatpush.bf16.msrb.mxu3 %v7568_v51  ;;  %v8846_v51 = vld [vmem:[%s13369_s2 + $0x2e4] sm:$0xf] }
 0x2df   : >> { %4099 = vmatpush.bf16.msra.mxu1 %v7332_v43  ;;  %v7696_v23 = vor.u32 %v8846_v51, %v7693_v54  ;;  %v8786_v43 = vld [vmem:[%s13369_s2 + $0x104] sm:$0xf]  ;;  %v8849_v51 = vld [vmem:[%s13369_s2 + $0x2f4] sm:$0xf0] }
 0x2e0   : >> { %4060 = vmatpush.bf16.msrb.mxu2 %v7328_v50  ;;  %v8788_v50 = vld [vmem:[%s13369_s2 + $0x10c] sm:$0xf0] }
 0x2e1   : >> { %v7452_v59 = vor.u32 %v8788_v50, %v7451_v47  ;;  %v7699_v50 = vld [vmem:[%s13369_s2 + $0x2e8] sm:$0xf] }
 0x2e2   : >> { %4067 = vmatpush.bf16.msrb.mxu3 %v7552_v5  ;;  %v7319_v5 = vmul.f32 -1.442695, %v3385_v48  ;;  %4100 = vmatmul.bf16.vlgmr.msra.gmra.mxu1 %v11900_v10 }
 0x2e3   : >> { %4061 = vmatmul.bf16.vlgmr.msrb.gmra.mxu2 %v11900_v10  ;;  %4144 = vmatpush.bf16.msrb.mxu1 %v7576_v49  ;;  %v8789_v49 = vld [vmem:[%s13369_s2 + $0x114] sm:$0xf0] }
 0x2e4   : >> { %4105 = vmatpush.bf16.msra.mxu2 %v7572_v42  ;;  %v8801_v42 = vld [vmem:[%s13369_s2 + $0x174] sm:$0xf0]  ;;  %4034 = vmatpush.bf16.msrb.mxu0 %v7452_v59  ;;  %9120 = vpow2.f32 %v7319_v5  ;;  %v7460_v59 = vor.u32 %v8789_v49, %v7459_v56  ;;  %v7653_v56 = vld [vmem:[%s13369_s2 + $0x298] sm:$0xf0] }
 0x2e5   : >> { %v7508_v53 = vor.u32 %v8801_v42, %v7507_v62  ;;  %v8847_v62 = vld [vmem:[%s13369_s2 + $0x2ec] sm:$0xf]  ;;  %v7701_v42 = vld [vmem:[%s13369_s2 + $0x2f8] sm:$0xf0] }
 0x2e6   : >> { %4068 = vmatpush.bf16.msrb.mxu3 %v7536_v46  ;;  %v7492_v46 = vor.u32 %v8797_v44, %v7491_v9  ;;  %v7704_v5 = vor.u32 %v8847_v62, %v7701_v42  ;;  %v3351_v42 = vand.u32 2147483648, %v11926_v22 }
 0x2e7   : >> { %4145 = vmatpush.bf16.msrb.mxu1 %v7560_v4 }
 0x2e8   : >> { %4106 = vmatpush.bf16.msra.mxu2 %v7556_v55  ;;  %4079 = vmatpush.bf16.msra.mxu0 %v7696_v23  ;;  %v8794_v55 = vld [vmem:[%s13369_s2 + $0x144] sm:$0xf]  ;;  %v7700_v23 = vor.u32 %v8849_v51, %v7699_v50  ;;  %v3316_v50 = vadd.f32 %v11623_v12, %v2903_v36  ;;  %v7635_v12 = vld [vmem:[%s13369_s2 + $0x268] sm:$0xf]  ;;  %v8833_v36 = vld [vmem:[%s13369_s2 + $0x274] sm:$0xf0] }
 0x2e9   : >> { %v7488_v34 = vor.u32 %v8794_v55, %v7485_v30  ;;  %v8795_v55 = vld [vmem:[%s13369_s2 + $0x14c] sm:$0xf] }
 0x2ea   : >> { %4069 = vmatpush.bf16.msrb.mxu3 %v7520_v37  ;;  %v7528_v37 = vor.u32 %v8803_v11, %v7525_v29  ;;  %v9121_v45 = vpop.eup %9120 }
 0x2eb   : >> { %4146 = vmatpush.bf16.msrb.mxu1 %v7544_v31  ;;  %v7616_v31 = vor.u32 %v8826_v38, %v7613_v18  ;;  %v8825_v38 = vld [vmem:[%s13369_s2 + $0x234] sm:$0xf0] }
 0x2ec   : >> { %4107 = vmatpush.bf16.msra.mxu2 %v7540_v24  ;;  %4080 = vmatpush.bf16.msra.mxu0 %v7680_v8  ;;  %v7664_v24 = vor.u32 %v8838_v2, %v7661_v7  ;;  %v8845_v8 = vld [vmem:[%s13369_s2 + $0x2d4] sm:$0xf0]  ;;  %v7667_v2 = vld [vmem:[%s13369_s2 + $0x2a8] sm:$0xf] }
 0x2ed   : >> { %v7684_v9 = vor.u32 %v8845_v8, %v7683_v63  ;;  %v8841_v7 = vld [vmem:[%s13369_s2 + $0x2b4] sm:$0xf0] }
 0x2ee   : >> { %4070 = vmatpush.bf16.msrb.mxu3 %v7504_v0  ;;  %v7512_v0 = vor.u32 %v8799_v28, %v7509_v61  ;;  %v7668_v16 = vor.u32 %v8841_v7, %v7667_v2  ;;  %v7636_v61 = vor.u32 %v8833_v36, %v7635_v12  ;;  %v8823_v2 = vld [vmem:[%s13369_s2 + $0x22c] sm:$0xf]  ;;  %v7605_v7 = vld [vmem:[%s13369_s2 + $0x238] sm:$0xf0] }
 0x2ef   : >> { %4147 = vmatpush.bf16.msrb.mxu1 %v7528_v37  ;;  %v7429_v36 = vld [vmem:[%s13369_s2 + $0xd8] sm:$0xf0] }
 0x2f0   : >> { %4108 = vmatpush.bf16.msra.mxu2 %v7524_v39  ;;  %4081 = vmatpush.bf16.msra.mxu0 %v7664_v24  ;;  %v7453_v39 = vld [vmem:[%s13369_s2 + $0x110] sm:$0xf0]  ;;  %v8791_v24 = vld [vmem:[%s13369_s2 + $0x12c] sm:$0xf] }
 0x2f1   : >> { %v7456_v48 = vor.u32 %v8786_v43, %v7453_v39  ;;  %v8835_v39 = vld [vmem:[%s13369_s2 + $0x28c] sm:$0xf] }
 0x2f2   : >> { %4071 = vmatpush.bf16.msrb.mxu3 %v7488_v34  ;;  %v8843_v34 = vld [vmem:[%s13369_s2 + $0x2cc] sm:$0xf]  ;;  %v7656_v51 = vor.u32 %v8835_v39, %v7653_v56 }
 0x2f3   : >> { %4148 = vmatpush.bf16.msrb.mxu1 %v7512_v0  ;;  %v3349_v0 = vand.u32 2147483647, %v11926_v22  ;;  %v7621_v22 = vld [vmem:[%s13369_s2 + $0x258] sm:$0xf0] }
 0x2f4   : >> { %4109 = vmatpush.bf16.msra.mxu2 %v7508_v53  ;;  %v12106_v53 = vadd.f32 1.0, %v9121_v45  ;;  %v8818_v45 = vld [vmem:[%s13369_s2 + $0x204] sm:$0xf] }
 0x2f5   : >> { %vm3350_vm7 = vcmp.eq.f32.partialorder %v3349_v0, 8.507059e+37  ;;  %v7397_v0 = vld [vmem:[%s13369_s2 + $0x98] sm:$0xf0] }
 0x2f6   : >> { %4072 = vmatpush.bf16.msrb.mxu3 %v7472_v27  ;;  %v8839_v27 = vld [vmem:[%s13369_s2 + $0x2ac] sm:$0xf]  ;;  %vm3395_vm13 = vweird.f32 %v12106_v53 }
 0x2f8   : >> { %4110 = vmatpush.bf16.msra.mxu2 %v7492_v46  ;;  %v7688_v46 = vor.u32 %v8843_v34, %v7685_v17  ;;  %v3352_v34 = vor.u32 1.1754944e-38, %v3351_v42  ;;  %v7603_v17 = vld [vmem:[%s13369_s2 + $0x228] sm:$0xf] }
 0x2fa   : >> { %4073 = vmatpush.bf16.msrb.mxu3 %v7456_v48  ;;  %v7581_v48 = vld [vmem:[%s13369_s2 + $0x210] sm:$0xf0] }
 0x2fe   : >> { %4118 = vmatpush.bf16.msra.mxu3 %v7700_v23 }
 0x302   : >> { %4119 = vmatpush.bf16.msra.mxu3 %v7684_v9 }
 0x306   : >> { %4120 = vmatpush.bf16.msra.mxu3 %v7668_v16  ;;  %v7608_v16 = vor.u32 %v8823_v2, %v7605_v7  ;;  %v8749_v2 = vld [vmem:[%s13372_s5 + $0x18] sm:$0xff]  ;;  %v7986_v7 = vld [vmem:[%s13369_s2 + $0x3c0] sm:$0xf] }
 0x326   : >> { %v2815_v33 = vpop.f32.mrf.mxu2 }
 0x327   : >> { %v2819_v40 = vadd.f32 %v2815_v33, %v1911_v57  ;;  %v8793_v57 = vld [vmem:[%s13369_s2 + $0x134] sm:$0xf0] }
 0x329   : >> { %v2824_v58 = vadd.f32 %v9059_v26, %v2819_v40  ;;  %v7475_v26 = vld [vmem:[%s13369_s2 + $0x128] sm:$0xf]  ;;  %v7648_v40 = vor.u32 %v8834_v15, %v7645_v21  ;;  %v8837_v15 = vld [vmem:[%s13369_s2 + $0x294] sm:$0xf0]  ;;  %v8787_v21 = vld [vmem:[%s13369_s2 + $0x10c] sm:$0xf] }
 0x32a   : >> { %v7476_v33 = vor.u32 %v8793_v57, %v7475_v26  ;;  %v7477_v26 = vld [vmem:[%s13369_s2 + $0x138] sm:$0xf0] }
 0x32b   : >> { %2827 = vst [vmem:[%s11998_s17] sm:$0xff] %v2824_v58  ;;  %v3357_v58 = vmul.f32 %v9060_v35, %v11775_v14  ;;  %4082 = vmatpush.bf16.msra.mxu0 %v7648_v40  ;;  %v7669_v57 = vld [vmem:[%s13369_s2 + $0x2b8] sm:$0xf0]  ;;  %v7480_v11 = vor.u32 %v8791_v24, %v7477_v26  ;;  %v7597_v35 = vld [vmem:[%s13369_s2 + $0x230] sm:$0xf0] }
 0x32c   : >> { %4111 = vmatpush.bf16.msra.mxu2 %v7476_v33  ;;  %v7672_v29 = vor.u32 %v8839_v27, %v7669_v57  ;;  %v7651_v33 = vld [vmem:[%s13369_s2 + $0x288] sm:$0xf]  ;;  %v7461_v40 = vld [vmem:[%s13369_s2 + $0x118] sm:$0xf0] }
 0x32d   : >> { %v7652_v43 = vor.u32 %v8837_v15, %v7651_v33 }
 0x32e   : >> { %v2817_v13 = vpop.f32.mrf.mxu2 }
 0x32f   : >> { %v7493_v13 = vld [vmem:[%s13369_s2 + $0x158] sm:$0xf0]  ;;  %4083 = vmatpush.bf16.msra.mxu0 %v7632_v6  ;;  %4121 = vmatpush.bf16.msra.mxu3 %v7652_v43 }
 0x330   : >> { %4112 = vmatpush.bf16.msra.mxu2 %v7460_v59  ;;  %v7496_v44 = vor.u32 %v8795_v55, %v7493_v13  ;;  %v7584_v59 = vor.u32 %v8818_v45, %v7581_v48  ;;  %v3401_v48 = vand.u32 2147483648, %v12106_v53  ;;  %v7365_v6 = vld [vmem:[%s13369_s2 + $0x58] sm:$0xf0] }
 0x332   : >> { %4149 = vmatpush.bf16.msrb.mxu1 %v7496_v44 }
 0x333   : >> { %4084 = vmatpush.bf16.msra.mxu0 %v7616_v31  ;;  %4122 = vmatpush.bf16.msra.mxu3 %v7636_v61  ;;  %v7604_v31 = vor.u32 %v8825_v38, %v7603_v17  ;;  %v8752_v17 = vld [vmem:[%s13372_s5 + $0x30] sm:$0xff]  ;;  %v8751_v38 = vld [vmem:[%s13372_s5 + $0x28] sm:$0xff] }
 0x334   : >> { %4157 = vmatpush.bf16.msrb.mxu2 %v7704_v5  ;;  %v8827_v5 = vld [vmem:[%s13369_s2 + $0x24c] sm:$0xf] }
 0x336   : >> { %v3276_v47 = vpop.f32.mrf.mxu2  ;;  %4150 = vmatpush.bf16.msrb.mxu1 %v7480_v11  ;;  %v7587_v11 = vld [vmem:[%s13369_s2 + $0x208] sm:$0xf] }
 0x337   : >> { %v3277_v54 = vadd.f32 %v3276_v47, %v3264_v20  ;;  %v8822_v20 = vld [vmem:[%s13369_s2 + $0x224] sm:$0xf]  ;;  %v7464_v47 = vor.u32 %v8787_v21, %v7461_v40 }
 0x338   : >> { %4158 = vmatpush.bf16.msrb.mxu2 %v7688_v46  ;;  %v7600_v37 = vor.u32 %v8822_v20, %v7597_v35  ;;  %v8819_v20 = vld [vmem:[%s13369_s2 + $0x20c] sm:$0xf] }
 0x339   : >> { %v3358_v4 = vadd.f32 %v3357_v58, %v3277_v54  ;;  %v3343_v58 = vmul.f32 %v12007_v60, %v3342_v32  ;;  %v7637_v32 = vld [vmem:[%s13369_s2 + $0x278] sm:$0xf0] }
 0x33a   : >> { %4085 = vmatpush.bf16.msra.mxu0 %v7600_v37  ;;  %4151 = vmatpush.bf16.msrb.mxu1 %v7464_v47  ;;  %v7640_v62 = vor.u32 %v8831_v19, %v7637_v32  ;;  %v7589_v37 = vld [vmem:[%s13369_s2 + $0x218] sm:$0xf0]  ;;  %v8775_v32 = vld [vmem:[%s13369_s2 + $0xac] sm:$0xf] }
 0x33b   : >> { %v7318_v30 = vmul.f32 -1.442695, %v3358_v4  ;;  %v3344_v28 = vadd.f32 %v12007_v60, %v3343_v58  ;;  %v8829_v4 = vld [vmem:[%s13369_s2 + $0x254] sm:$0xf0]  ;;  %v7592_v21 = vor.u32 %v8819_v20, %v7589_v37  ;;  %v8004_v20 = vld [vmem:[%s13369_s2 + $0x3f0] sm:$0xf0] }
 0x33c   : >> { %4159 = vmatpush.bf16.msrb.mxu2 %v7672_v29  ;;  %v7620_v63 = vor.u32 %v8829_v4, %v7619_v3  ;;  %v8821_v29 = vld [vmem:[%s13369_s2 + $0x214] sm:$0xf0]  ;;  %v7381_v3 = vld [vmem:[%s13369_s2 + $0x78] sm:$0xf0]  ;;  %v8882_v37 = vld [vmem:[%s13369_s2 + $0x3c4] sm:$0xf] }
 0x33d   : >> { %9122 = vpow2.f32 %v7318_v30  ;;  %v3348_v55 = vsel %vm12218_vm6, %v12007_v60, %v3344_v28  ;;  %v7624_v30 = vor.u32 %v8827_v5, %v7621_v22  ;;  %v7588_v33 = vor.u32 %v8821_v29, %v7587_v11  ;;  %v7413_v28 = vld [vmem:[%s13369_s2 + $0xb8] sm:$0xf0]  ;;  %v8763_v5 = vld [vmem:[%s13369_s2 + $0x4c] sm:$0xf]  ;;  %v8886_v29 = vld [vmem:[%s13369_s2 + $0x3e4] sm:$0xf] }
 0x33e   : >> { %v3278_v25 = vpop.f32.mrf.mxu2  ;;  %9124 = vrcp.f32 %v12106_v53  ;;  %4086 = vmatpush.bf16.msra.mxu0 %v7584_v59  ;;  %4123 = vmatpush.bf16.msra.mxu3 %v7620_v63  ;;  %v3353_v46 = vsel %vm3350_vm7, %v3352_v34, %v3348_v55  ;;  %v7416_v61 = vor.u32 %v8775_v32, %v7413_v28  ;;  %v9167_v63 = vld [vmem:[#allocation2 + $0x4] sm:$0xf]  ;;  %v7368_v22 = vor.u32 %v8763_v5, %v7365_v6  ;;  %v7349_v55 = vld [vmem:[%s13369_s2 + $0x38] sm:$0xf0]  ;;  %v8747_v11 = vld [vmem:[%s13372_s5 + $0x8] sm:$0xff] }
 0x33f   : >> { %v7940_v32 = vld [vmem:[%s13369_s2 + $0x370] sm:$0xf0]  ;;  %v8855_v5 = vld [vmem:[%s13372_s5 + $0x68] sm:$0xff]  ;;  %v7906_v6 = vld [vmem:[%s13369_s2 + $0x320] sm:$0xf] }
 0x340   : >> { %4160 = vmatpush.bf16.msrb.mxu2 %v7656_v51  ;;  %v3402_v51 = vor.u32 1.1754944e-38, %v3401_v48 }
 0x342   : >> { %4124 = vmatpush.bf16.msra.mxu3 %v7604_v31 }
 0x343   : >> { %v9123_v49 = vpop.eup %9122 }
 0x344   : >> { %v12184_v54 = vadd.f32 1.0, %v9123_v49  ;;  %v12206_v41 = vpop.eup %9124  ;;  %4161 = vmatpush.bf16.msrb.mxu2 %v7640_v62  ;;  %v3399_v49 = vand.u32 2147483647, %v12106_v53  ;;  %v8771_v62 = vld [vmem:[%s13369_s2 + $0x8c] sm:$0xf] }
 0x345   : >> { %v3391_v9 = vmul.f32 %v12206_v41, %v12106_v53  ;;  %vm3396_vm12 = vweird.f32 %v12206_v41  ;;  %v8779_v53 = vld [vmem:[%s13369_s2 + $0xcc] sm:$0xf]  ;;  %v7400_v42 = vor.u32 %v8771_v62, %v7397_v0  ;;  %v7922_v62 = vld [vmem:[%s13369_s2 + $0x340] sm:$0xf]  ;;  %v8868_v0 = vld [vmem:[%s13369_s2 + $0x34c] sm:$0xf0] }
 0x346   : >> { %9126 = vrcp.f32 %v12184_v54  ;;  %v3328_v23 = vpop.f32.mrf.mxu2  ;;  %v3374_v24 = vand.u32 2147483648, %v12184_v54  ;;  %v3372_v57 = vand.u32 2147483647, %v12184_v54  ;;  %vm3368_vm9 = vweird.f32 %v12184_v54  ;;  %4125 = vmatpush.bf16.msra.mxu3 %v7588_v33  ;;  %vm3397_vm14 = vmor %vm3395_vm13, %vm3396_vm12 }
 0x347   : >> { %v3329_v52 = vadd.f32 %v3328_v23, %v3316_v50  ;;  %v3392_v26 = vsub.f32 1.0, %v3391_v9  ;;  %vm3400_vm15 = vcmp.eq.f32.partialorder %v3399_v49, 8.507059e+37  ;;  %v7432_v19 = vor.u32 %v8779_v53, %v7429_v36  ;;  %v8755_v9 = vld [vmem:[%s13369_s2 + $0xc] sm:$0xf]  ;;  %v8872_v53 = vld [vmem:[%s13369_s2 + $0x36c] sm:$0xf0] }
 0x348   : >> { %4162 = vmatpush.bf16.msrb.mxu2 %v7624_v30  ;;  %v3375_v15 = vor.u32 1.1754944e-38, %v3374_v24  ;;  %vm3373_vm11 = vcmp.eq.f32.partialorder %v3372_v57, 8.507059e+37  ;;  %v8884_v24 = vld [vmem:[%s13369_s2 + $0x3cc] sm:$0xf0]  ;;  %v8007_v33 = vor.u32 %v8886_v29, %v8004_v20  ;;  %v8914_v20 = vld [vmem:[%s13369_s2 + $0x4c4] sm:$0xf] }
 0x349   : >> { %9128 = vtanh.f32 %v3329_v52  ;;  %v3393_v43 = vmul.f32 %v12206_v41, %v3392_v26  ;;  %v8880_v26 = vld [vmem:[%s13369_s2 + $0x3ac] sm:$0xf0] }
 0x34a   : >> { %v8916_v29 = vld [vmem:[%s13369_s2 + $0x4cc] sm:$0xf0] }
 0x34b   : >> { %v3394_v47 = vadd.f32 %v12206_v41, %v3393_v43 }
 0x34c   : >> { %v9127_v8 = vpop.eup %9126  ;;  %4163 = vmatpush.bf16.msrb.mxu2 %v7608_v16  ;;  %v7970_v16 = vld [vmem:[%s13369_s2 + $0x3a0] sm:$0xf] }
 0x34d   : >> { %v3364_v13 = vmul.f32 %v9127_v8, %v12184_v54  ;;  %vm3369_vm8 = vweird.f32 %v9127_v8  ;;  %v3398_v50 = vsel %vm3397_vm14, %v12206_v41, %v3394_v47  ;;  %v7445_v54 = vld [vmem:[%s13369_s2 + $0xf8] sm:$0xf0]  ;;  %v8767_v41 = vld [vmem:[%s13369_s2 + $0x6c] sm:$0xf]  ;;  %v7971_v57 = vor.u32 %v8880_v26, %v7970_v16  ;;  %v8921_v16 = vld [vmem:[%s13369_s2 + $0x4f4] sm:$0xf0] }
 0x34e   : >> { %v3330_v44 = vpop.f32.mrf.mxu2  ;;  %vm3370_vm10 = vmor %vm3368_vm9, %vm3369_vm8  ;;  %v3403_v59 = vsel %vm3400_vm15, %v3402_v51, %v3398_v50  ;;  %v7384_v4 = vor.u32 %v8767_v41, %v7381_v3  ;;  %v7954_v51 = vld [vmem:[%s13369_s2 + $0x380] sm:$0xf]  ;;  %v8866_v41 = vld [vmem:[%s13369_s2 + $0x344] sm:$0xf] }
 0x34f   : >> { %v9129_v18 = vpop.eup %9128  ;;  %v3365_v60 = vsub.f32 1.0, %v3364_v13  ;;  %v7333_v13 = vld [vmem:[%s13369_s2 + $0x18] sm:$0xf0]  ;;  %v7924_v3 = vld [vmem:[%s13369_s2 + $0x350] sm:$0xf0] }
 0x350   : >> { %v3379_v25 = vmul.f32 %v9129_v18, %v3353_v46  ;;  %4164 = vmatpush.bf16.msrb.mxu2 %v7592_v21  ;;  %v7336_v34 = vor.u32 %v8755_v9, %v7333_v13  ;;  %v8753_v44 = vld [vmem:[%s13372_s5 + $0x38] sm:$0xff]  ;;  %v8002_v18 = vld [vmem:[%s13369_s2 + $0x3e0] sm:$0xf] }
 0x351   : >> { %v3366_v27 = vmul.f32 %v9127_v8, %v3365_v60  ;;  %v8888_v60 = vld [vmem:[%s13369_s2 + $0x3ec] sm:$0xf0]  ;;  %v8750_v46 = vld [vmem:[%s13372_s5 + $0x20] sm:$0xff] }
 0x352   : >> { %v8003_v31 = vor.u32 %v8888_v60, %v8002_v18  ;;  %v8854_v9 = vld [vmem:[%s13372_s5 + $0x60] sm:$0xff] }
 0x353   : >> { %v3367_v35 = vadd.f32 %v9127_v8, %v3366_v27  ;;  %v8748_v27 = vld [vmem:[%s13372_s5 + $0x10] sm:$0xff]  ;;  %v7890_v13 = vld [vmem:[%s13369_s2 + $0x300] sm:$0xf] }
 0x354   : >> { %4974 = vmatpush.bf16.msra.mxu1 %v8003_v31  ;;  %v8130_v18 = vld [vmem:[%s13369_s2 + $0x4e0] sm:$0xf]  ;;  %v8918_v31 = vld [vmem:[%s13369_s2 + $0x4e4] sm:$0xf] }
 0x355   : >> { %v3371_v40 = vsel %vm3370_vm10, %v9127_v8, %v3367_v35  ;;  %v8759_v8 = vld [vmem:[%s13369_s2 + $0x2c] sm:$0xf]  ;;  %v8746_v35 = vld [vmem:[%s13372_s5] sm:$0xff] }
 0x356   : >> { %v3376_v39 = vsel %vm3373_vm11, %v3375_v15, %v3371_v40  ;;  %v7352_v30 = vor.u32 %v8759_v8, %v7349_v55  ;;  %v7988_v15 = vld [vmem:[%s13369_s2 + $0x3d0] sm:$0xf0]  ;;  %v8862_v8 = vld [vmem:[%s13369_s2 + $0x324] sm:$0xf] }
 0x357   : >> { %v3380_v56 = vmul.f32 %v3376_v39, %v11775_v14  ;;  %v8783_v14 = vld [vmem:[%s13369_s2 + $0xec] sm:$0xf]  ;;  %v7991_v21 = vor.u32 %v8882_v37, %v7988_v15  ;;  %v8878_v39 = vld [vmem:[%s13369_s2 + $0x3a4] sm:$0xf]  ;;  %v7908_v55 = vld [vmem:[%s13369_s2 + $0x330] sm:$0xf0] }
 0x358   : >> { %v7448_v12 = vor.u32 %v8783_v14, %v7445_v54  ;;  %v8876_v14 = vld [vmem:[%s13369_s2 + $0x38c] sm:$0xf0]  ;;  %v8874_v54 = vld [vmem:[%s13369_s2 + $0x384] sm:$0xf]  ;;  %v8122_v37 = vld [vmem:[%s13369_s2 + $0x4c8] sm:$0xf] }
 0x359   : >> { %v3381_v45 = vadd.f32 %v3380_v56, %v3379_v25  ;;  %v7987_v25 = vor.u32 %v8884_v24, %v7986_v7  ;;  %v7972_v56 = vld [vmem:[%s13369_s2 + $0x3b0] sm:$0xf0]  ;;  %v12482_v26 = vld [vmem:[%s13370_s3 + $0x1] ss:$4 sm:$0xf] }
 0x35a   : >> { %v8917_v15 = vld [vmem:[%s13369_s2 + $0x4d4] sm:$0xf0] }
 0x35b   : >> { %9130 = vtanh.f32 %v3381_v45  ;;  %3409 = vst [vmem:[#allocation3 + $0x10] sm:$0xff] %v3381_v45  ;;  %4975 = vmatpush.bf16.msra.mxu1 %v7987_v25  ;;  %v7975_v45 = vor.u32 %v8878_v39, %v7972_v56  ;;  %v8138_v25 = vld [vmem:[%s13369_s2 + $0x4e8] sm:$0xf]  ;;  %v8123_v39 = vor.u32 %v8917_v15, %v8122_v37  ;;  %v3526_v56 = vperm.slane %v12482_v26, 0  ;;  %v8901_v15 = vld [vmem:[%s13369_s2 + $0x454] sm:$0xf0] }
 0x35f   : >> { %4976 = vmatpush.bf16.msra.mxu1 %v7971_v57  ;;  %v12387_v47 = vpop.f32.mrf.mxu1  ;;  %v8853_v57 = vld [vmem:[%s13372_s5 + $0x58] sm:$0xff] }
 0x360   : >> { %v12376_v40 = vpop.f32.mrf.mxu3 }
 0x361   : >> { %v9131_v58 = vpop.eup %9130 }
 0x362   : >> { %v3406_v23 = vmul.f32 %v9131_v58, %v3403_v59  ;;  %v7955_v58 = vor.u32 %v8876_v14, %v7954_v51  ;;  %v7956_v59 = vld [vmem:[%s13369_s2 + $0x390] sm:$0xf0]  ;;  %v8106_v14 = vld [vmem:[%s13369_s2 + $0x4a8] sm:$0xf] }
 0x363   : >> { %v8100_v51 = vld [vmem:[%s13369_s2 + $0x4b0] sm:$0xf0] }
 0x364   : >> { %v12272_v52 = vpack.c.bf16 %v3406_v23, %v3406_v23  ;;  %v7959_v23 = vor.u32 %v8874_v54, %v7956_v59  ;;  %4977 = vmatpush.bf16.msra.mxu1 %v7955_v58  ;;  %v8913_v54 = vld [vmem:[%s13369_s2 + $0x4b4] sm:$0xf0] }
 0x365   : >> { %v8107_v59 = vor.u32 %v8913_v54, %v8106_v14  ;;  %v8042_v54 = vld [vmem:[%s13369_s2 + $0x428] sm:$0xf] }
 0x366   : >> { %3408 = vst [vmem:[#allocation2] sm:$0xf] %v12272_v52  ;;  %4035 = vmatmul.bf16.vlgmr.msrb.gmra.mxu0 %v12272_v52  ;;  %4074 = vmatmul.bf16.vlgmr.msrb.gmra.mxu3 %v12272_v52  ;;  %v12378_v43 = vpop.f32.mrf.mxu2 }
 0x367   : >> { %4113 = vmatmul.bf16.vlgmr.msra.gmra.mxu2 %v12272_v52  ;;  %4131 = vmatpush.bf16.msrb.mxu0 %v7448_v12  ;;  %v4103_v50 = vpop.f32.mrf.mxu1  ;;  %v8857_v12 = vld [vmem:[%s13372_s5 + $0x78] sm:$0xff] }
 0x368   : >> { %4152 = vmatmul.bf16.vlgmr.msrb.gmra.mxu1 %v12272_v52  ;;  %v4025_v48 = vpop.f32.mrf.mxu3  ;;  %4312 = vmatpush.bf16.msrb.mxu3 %v8857_v12  ;;  %v9061_v12 = vld [vmem:[%s13371_s4 + $0x4] ss:$0 sm:$0xff] }
 0x369   : >> { %v8098_v48 = vld [vmem:[%s13369_s2 + $0x4a0] sm:$0xf] }
 0x36b   : >> { %4132 = vmatpush.bf16.msrb.mxu0 %v7432_v19  ;;  %v8870_v19 = vld [vmem:[%s13369_s2 + $0x364] sm:$0xf] }
 0x36c   : >> { %v7943_v28 = vor.u32 %v8870_v19, %v7940_v32  ;;  %v8908_v19 = vld [vmem:[%s13369_s2 + $0x48c] sm:$0xf0]  ;;  %v8906_v32 = vld [vmem:[%s13369_s2 + $0x484] sm:$0xf] }
 0x36e   : >> { %v4064_v49 = vpop.f32.mrf.mxu2 }
 0x36f   : >> { %4133 = vmatpush.bf16.msrb.mxu0 %v7416_v61  ;;  %v8856_v61 = vld [vmem:[%s13372_s5 + $0x70] sm:$0xff] }
 0x370   : >> { %4313 = vmatpush.bf16.msrb.mxu3 %v8856_v61  ;;  %v8912_v49 = vld [vmem:[%s13369_s2 + $0x4ac] sm:$0xf0] }
 0x371   : >> { %v8099_v50 = vor.u32 %v8912_v49, %v8098_v48 }
 0x373   : >> { %4134 = vmatpush.bf16.msrb.mxu0 %v7400_v42  ;;  %v7923_v42 = vor.u32 %v8868_v0, %v7922_v62  ;;  %v8090_v62 = vld [vmem:[%s13369_s2 + $0x488] sm:$0xf]  ;;  %v8909_v0 = vld [vmem:[%s13369_s2 + $0x494] sm:$0xf0] }
 0x374   : >> { %4314 = vmatpush.bf16.msrb.mxu3 %v8855_v5  ;;  %v8850_v5 = vld [vmem:[%s13372_s5 + $0x40] sm:$0xff] }
 0x376   : >> { %4087 = vmatmul.bf16.vlgmr.msra.gmra.mxu0 %v9167_v63  ;;  %4126 = vmatmul.bf16.vlgmr.msra.gmra.mxu3 %v9167_v63 }
 0x377   : >> { %4135 = vmatpush.bf16.msrb.mxu0 %v7384_v4  ;;  %4165 = vmatmul.bf16.vlgmr.msrb.gmra.mxu2 %v9167_v63  ;;  %v7927_v4 = vor.u32 %v8866_v41, %v7924_v3  ;;  %v8864_v63 = vld [vmem:[%s13369_s2 + $0x32c] sm:$0xf0]  ;;  %v8091_v3 = vor.u32 %v8909_v0, %v8090_v62  ;;  %v8018_v0 = vld [vmem:[%s13369_s2 + $0x400] sm:$0xf] }
 0x378   : >> { %4315 = vmatpush.bf16.msrb.mxu3 %v8854_v9  ;;  %v8904_v9 = vld [vmem:[%s13369_s2 + $0x46c] sm:$0xf0] }
 0x37b   : >> { %4136 = vmatpush.bf16.msrb.mxu0 %v7368_v22  ;;  %v7907_v22 = vor.u32 %v8864_v63, %v7906_v6  ;;  %v8258_v6 = vld [vmem:[%s13369_s2 + $0x5e0] sm:$0xf]  ;;  %v8952_v63 = vld [vmem:[%s13369_s2 + $0x5ec] sm:$0xf0] }
 0x37c   : >> { %4316 = vmatpush.bf16.msrb.mxu3 %v8853_v57  ;;  %v8900_v57 = vld [vmem:[%s13369_s2 + $0x44c] sm:$0xf0] }
 0x37f   : >> { %4137 = vmatpush.bf16.msrb.mxu0 %v7352_v30  ;;  %v7911_v30 = vor.u32 %v8862_v8, %v7908_v55  ;;  %v8259_v55 = vor.u32 %v8952_v63, %v8258_v6  ;;  %v8020_v63 = vld [vmem:[%s13369_s2 + $0x410] sm:$0xf0] }
 0x383   : >> { %4138 = vmatpush.bf16.msrb.mxu0 %v7336_v34  ;;  %v8860_v34 = vld [vmem:[%s13369_s2 + $0x30c] sm:$0xf0] }
 0x386   : >> { %4139 = vmatmul.bf16.vlgmr.msrb.gmra.mxu0 %v11900_v10 }
 0x387   : >> { %4373 = vmatpush.bf16.msra.mxu0 %v8753_v44  ;;  %v7891_v44 = vor.u32 %v8860_v34, %v7890_v13  ;;  %v8902_v13 = vld [vmem:[%s13369_s2 + $0x464] sm:$0xf]  ;;  %v8068_v34 = vld [vmem:[%s13369_s2 + $0x470] sm:$0xf0] }
 0x38b   : >> { %4374 = vmatpush.bf16.msra.mxu0 %v8752_v17  ;;  %v8858_v17 = vld [vmem:[%s13369_s2 + $0x304] sm:$0xf] }
 0x38f   : >> { %4375 = vmatpush.bf16.msra.mxu0 %v8751_v38  ;;  %v7892_v38 = vld [vmem:[%s13369_s2 + $0x310] sm:$0xf0] }
 0x390   : >> { %v7895_v60 = vor.u32 %v8858_v17, %v7892_v38  ;;  %v8905_v17 = vld [vmem:[%s13369_s2 + $0x474] sm:$0xf0] }
 0x393   : >> { %4376 = vmatpush.bf16.msra.mxu0 %v8750_v46  ;;  %v8920_v46 = vld [vmem:[%s13369_s2 + $0x4ec] sm:$0xf0] }
 0x394   : >> { %v8131_v7 = vor.u32 %v8920_v46, %v8130_v18  ;;  %v8071_v18 = vor.u32 %v8902_v13, %v8068_v34  ;;  %v3527_v46 = vperm.slane %v12482_v26, 1  ;;  %v8893_v13 = vld [vmem:[%s13369_s2 + $0x414] sm:$0xf0]  ;;  %v8260_v34 = vld [vmem:[%s13369_s2 + $0x5f0] sm:$0xf0] }
 0x396   : >> { %4987 = vmatpush.bf16.msra.mxu2 %v8131_v7  ;;  %v8948_v7 = vld [vmem:[%s13369_s2 + $0x5cc] sm:$0xf0]  ;;  %v4063_v48 = vadd.f32 %v12378_v43, %v3527_v46  ;;  %v8036_v43 = vld [vmem:[%s13369_s2 + $0x430] sm:$0xf0]  ;;  %v8951_v46 = vld [vmem:[%s13369_s2 + $0x5ec] sm:$0xf] }
 0x397   : >> { %4377 = vmatpush.bf16.msra.mxu0 %v8749_v2  ;;  %v8132_v2 = vld [vmem:[%s13369_s2 + $0x4f0] sm:$0xf0] }
 0x398   : >> { %v8135_v24 = vor.u32 %v8918_v31, %v8132_v2  ;;  %v8242_v2 = vld [vmem:[%s13369_s2 + $0x5c0] sm:$0xf] }
 0x39b   : >> { %4378 = vmatpush.bf16.msra.mxu0 %v8748_v27  ;;  %v8139_v27 = vor.u32 %v8921_v16, %v8138_v25  ;;  %v8243_v16 = vor.u32 %v8948_v7, %v8242_v2 }
 0x39f   : >> { %4379 = vmatpush.bf16.msra.mxu0 %v8747_v11  ;;  %v8114_v11 = vld [vmem:[%s13369_s2 + $0x4c0] sm:$0xf] }
 0x3a3   : >> { %4380 = vmatpush.bf16.msra.mxu0 %v8746_v35  ;;  %v8115_v35 = vor.u32 %v8916_v29, %v8114_v11 }
 0x3a5   : >> { %4988 = vmatpush.bf16.msra.mxu2 %v8115_v35  ;;  %v8052_v35 = vld [vmem:[%s13369_s2 + $0x450] sm:$0xf0] }
 0x3a6   : >> { %4381 = vmatmul.bf16.vlgmr.msra.gmra.mxu0 %v12272_v52  ;;  %v7938_v52 = vld [vmem:[%s13369_s2 + $0x360] sm:$0xf] }
 0x3a7   : >> { %5013 = vmatpush.bf16.msrb.mxu0 %v8007_v33  ;;  %v7939_v36 = vor.u32 %v8872_v53, %v7938_v52  ;;  %v8116_v33 = vld [vmem:[%s13369_s2 + $0x4d0] sm:$0xf0]  ;;  %v8851_v52 = vld [vmem:[%s13372_s5 + $0x48] sm:$0xff]  ;;  %v4024_v53 = vadd.f32 %v12376_v40, %v3526_v56  ;;  %v8226_v56 = vld [vmem:[%s13369_s2 + $0x5a0] sm:$0xf] }
 0x3a8   : >> { %v8084_v40 = vld [vmem:[%s13369_s2 + $0x490] sm:$0xf0] }
 0x3a9   : >> { %4978 = vmatpush.bf16.msra.mxu1 %v7939_v36  ;;  %4989 = vmatpush.bf16.msra.mxu2 %v8099_v50  ;;  %v8082_v36 = vld [vmem:[%s13369_s2 + $0x480] sm:$0xf]  ;;  %v8087_v41 = vor.u32 %v8906_v32, %v8084_v40  ;;  %v8896_v50 = vld [vmem:[%s13369_s2 + $0x42c] sm:$0xf0] }
 0x3aa   : >> { %v8083_v61 = vor.u32 %v8908_v19, %v8082_v36  ;;  %v8210_v19 = vld [vmem:[%s13369_s2 + $0x580] sm:$0xf]  ;;  %v8940_v32 = vld [vmem:[%s13369_s2 + $0x58c] sm:$0xf0] }
 0x3ab   : >> { %5014 = vmatpush.bf16.msrb.mxu0 %v7991_v21  ;;  %v8119_v21 = vor.u32 %v8914_v20, %v8116_v33  ;;  %v8898_v20 = vld [vmem:[%s13369_s2 + $0x444] sm:$0xf]  ;;  %v8058_v33 = vld [vmem:[%s13369_s2 + $0x448] sm:$0xf]  ;;  %v8211_v62 = vor.u32 %v8940_v32, %v8210_v19  ;;  %v8236_v19 = vld [vmem:[%s13369_s2 + $0x5b8] sm:$0xf0] }
 0x3ac   : >> { %v8055_v37 = vor.u32 %v8898_v20, %v8052_v35  ;;  %v8244_v20 = vld [vmem:[%s13369_s2 + $0x5d0] sm:$0xf0] }
 0x3ad   : >> { %4979 = vmatpush.bf16.msra.mxu1 %v7923_v42  ;;  %4990 = vmatpush.bf16.msra.mxu2 %v8083_v61 }
 0x3af   : >> { %5015 = vmatpush.bf16.msrb.mxu0 %v7975_v45  ;;  %v8852_v45 = vld [vmem:[%s13372_s5 + $0x50] sm:$0xff] }
 0x3b0   : >> { %4317 = vmatpush.bf16.msrb.mxu3 %v8852_v45  ;;  %v8944_v45 = vld [vmem:[%s13369_s2 + $0x5ac] sm:$0xf0] }
 0x3b1   : >> { %4980 = vmatpush.bf16.msra.mxu1 %v7907_v22  ;;  %v8227_v49 = vor.u32 %v8944_v45, %v8226_v56 }
 0x3b3   : >> { %5016 = vmatpush.bf16.msrb.mxu0 %v7959_v23  ;;  %v12529_v23 = vld [vmem:[#allocation3] sm:$0xff] }
 0x3b4   : >> { %4318 = vmatpush.bf16.msrb.mxu3 %v8851_v52  ;;  %v4172_v8 = vmul.f32 %v9061_v12, %v12529_v23  ;;  %v9062_v12 = vld [vmem:[%s13371_s4 + $0x5] ss:$0 sm:$0xff] }
 0x3b5   : >> { %4981 = vmatpush.bf16.msra.mxu1 %v7891_v44  ;;  %v8074_v44 = vld [vmem:[%s13369_s2 + $0x468] sm:$0xf] }
 0x3b7   : >> { %5017 = vmatpush.bf16.msrb.mxu0 %v7943_v28 }
 0x3b8   : >> { %4982 = vmatmul.bf16.vlgmr.msra.gmra.mxu1 %v11900_v10  ;;  %4319 = vmatpush.bf16.msrb.mxu3 %v8850_v5 }
 0x3b9   : >> { %5026 = vmatpush.bf16.msrb.mxu1 %v8135_v24 }
 0x3bb   : >> { %5018 = vmatpush.bf16.msrb.mxu0 %v7927_v4 }
 0x3bc   : >> { %5000 = vmatpush.bf16.msra.mxu3 %v8259_v55 }
 0x3bd   : >> { %5027 = vmatpush.bf16.msrb.mxu1 %v8119_v21 }
 0x3bf   : >> { %5019 = vmatpush.bf16.msrb.mxu0 %v7911_v30  ;;  %v8066_v30 = vld [vmem:[%s13369_s2 + $0x460] sm:$0xf] }
 0x3c0   : >> { %5001 = vmatpush.bf16.msra.mxu3 %v8243_v16  ;;  %v8936_v16 = vld [vmem:[%s13369_s2 + $0x56c] sm:$0xf0] }
 0x3c3   : >> { %5020 = vmatpush.bf16.msrb.mxu0 %v7895_v60  ;;  %v8075_v60 = vor.u32 %v8905_v17, %v8074_v44  ;;  %v8266_v44 = vld [vmem:[%s13369_s2 + $0x5e8] sm:$0xf] }
 0x3c4   : >> { %5002 = vmatpush.bf16.msra.mxu3 %v8227_v49  ;;  %v8178_v49 = vld [vmem:[%s13369_s2 + $0x540] sm:$0xf] }
 0x3c6   : >> { %5021 = vmatmul.bf16.vlgmr.msrb.gmra.mxu0 %v11900_v10  ;;  %v8910_v10 = vld [vmem:[%s13369_s2 + $0x4a4] sm:$0xf] }
 0x3c7   : >> { %5065 = vmatpush.bf16.msra.mxu0 %v8139_v27  ;;  %v8103_v58 = vor.u32 %v8910_v10, %v8100_v51  ;;  %v8050_v27 = vld [vmem:[%s13369_s2 + $0x440] sm:$0xf]  ;;  %v8894_v51 = vld [vmem:[%s13369_s2 + $0x424] sm:$0xf] }
 0x3c8   : >> { %v8051_v29 = vor.u32 %v8900_v57, %v8050_v27  ;;  %v8034_v10 = vld [vmem:[%s13369_s2 + $0x420] sm:$0xf]  ;;  %v8039_v52 = vor.u32 %v8894_v51, %v8036_v43  ;;  %5003 = vmatpush.bf16.msra.mxu3 %v8211_v62  ;;  %v8942_v43 = vld [vmem:[%s13369_s2 + $0x5a4] sm:$0xf] }
 0x3c9   : >> { %5028 = vmatpush.bf16.msrb.mxu1 %v8103_v58  ;;  %v8035_v14 = vor.u32 %v8896_v50, %v8034_v10  ;;  %v8897_v58 = vld [vmem:[%s13369_s2 + $0x434] sm:$0xf0]  ;;  %v8932_v10 = vld [vmem:[%s13369_s2 + $0x54c] sm:$0xf0] }
 0x3cb   : >> { %5066 = vmatpush.bf16.msra.mxu0 %v8123_v39  ;;  %v8059_v39 = vor.u32 %v8901_v15, %v8058_v33  ;;  %v8947_v15 = vld [vmem:[%s13369_s2 + $0x5cc] sm:$0xf] }
 0x3cd   : >> { %5029 = vmatpush.bf16.msrb.mxu1 %v8087_v41  ;;  %v8890_v41 = vld [vmem:[%s13369_s2 + $0x404] sm:$0xf] }
 0x3cf   : >> { %5067 = vmatpush.bf16.msra.mxu0 %v8107_v59  ;;  %v3528_v59 = vperm.slane %v12482_v26, 2 }
 0x3d1   : >> { %5030 = vmatpush.bf16.msrb.mxu1 %v8071_v18 }
 0x3d3   : >> { %5068 = vmatpush.bf16.msra.mxu0 %v8091_v3 }
 0x3d5   : >> { %5031 = vmatpush.bf16.msrb.mxu1 %v8055_v37  ;;  %v8949_v37 = vld [vmem:[%s13369_s2 + $0x5d4] sm:$0xf0] }
 0x3d7   : >> { %5069 = vmatpush.bf16.msra.mxu0 %v8075_v60  ;;  %v8953_v60 = vld [vmem:[%s13369_s2 + $0x5f4] sm:$0xf0] }
 0x3d8   : >> { %v8267_v2 = vor.u32 %v8953_v60, %v8266_v44  ;;  %v8924_v44 = vld [vmem:[%s13369_s2 + $0x50c] sm:$0xf0] }
 0x3d9   : >> { %5032 = vmatpush.bf16.msrb.mxu1 %v8039_v52 }
 0x3db   : >> { %5070 = vmatpush.bf16.msra.mxu0 %v8059_v39 }
 0x3e3   : >> { %v4036_v28 = vpop.f32.mrf.mxu0 }
 0x3e4   : >> { %v4037_v42 = vadd.f32 %v4036_v28, %v4024_v53  ;;  %v8043_v53 = vor.u32 %v8897_v58, %v8042_v54  ;;  %v8228_v54 = vld [vmem:[%s13369_s2 + $0x5b0] sm:$0xf0]  ;;  %v8234_v58 = vld [vmem:[%s13369_s2 + $0x5a8] sm:$0xf] }
 0x3e5   : >> { %v12556_v4 = vpop.f32.mrf.mxu1  ;;  %v8231_v52 = vor.u32 %v8942_v43, %v8228_v54  ;;  %v8926_v54 = vld [vmem:[%s13369_s2 + $0x524] sm:$0xf] }
 0x3e6   : >> { %v4050_v22 = vadd.f32 %v11663_v1, %v4037_v42  ;;  %v8067_v1 = vor.u32 %v8904_v9, %v8066_v30  ;;  %v8892_v42 = vld [vmem:[%s13369_s2 + $0x40c] sm:$0xf0]  ;;  %5071 = vmatpush.bf16.msra.mxu0 %v8043_v53  ;;  %v4195_v30 = vmul.f32 %v9062_v12, %v12529_v23  ;;  %v8023_v9 = vor.u32 %v8890_v41, %v8020_v63  ;;  %v8945_v53 = vld [vmem:[%s13369_s2 + $0x5b4] sm:$0xf0]  ;;  %v8218_v63 = vld [vmem:[%s13369_s2 + $0x588] sm:$0xf] }
 0x3e7   : >> { %v8019_v6 = vor.u32 %v8892_v42, %v8018_v0  ;;  %v8235_v32 = vor.u32 %v8945_v53, %v8234_v58  ;;  %v3529_v0 = vperm.slane %v12482_v26, 3  ;;  %v8164_v58 = vld [vmem:[%s13369_s2 + $0x530] sm:$0xf0] }
 0x3e8   : >> { %v4173_v38 = vadd.f32 %v4172_v8, %v4050_v22  ;;  %4991 = vmatpush.bf16.msra.mxu2 %v8067_v1  ;;  %v8026_v22 = vld [vmem:[%s13369_s2 + $0x408] sm:$0xf]  ;;  %v4102_v8 = vadd.f32 %v12387_v47, %v3528_v59  ;;  %v8950_v1 = vld [vmem:[%s13369_s2 + $0x5e4] sm:$0xf]  ;;  %5033 = vmatpush.bf16.msrb.mxu1 %v8023_v9  ;;  %v8167_v53 = vor.u32 %v8926_v54, %v8164_v58  ;;  %v8879_v54 = vld [vmem:[%s13369_s2 + $0x3ac] sm:$0xf] }
 0x3e9   : >> { %v4075_v31 = vpop.f32.mrf.mxu3  ;;  %v9063_v47 = vld [vmem:[%s13371_s4 + $0x6] ss:$0 sm:$0xff]  ;;  %v8263_v18 = vor.u32 %v8950_v1, %v8260_v34  ;;  %v7980_v58 = vld [vmem:[%s13369_s2 + $0x3b8] sm:$0xf0] }
 0x3ea   : >> { %v7706_v24 = vmul.f32 -1.442695, %v4173_v38  ;;  %v12594_v25 = vpop.f32.mrf.mxu2  ;;  %v4076_v61 = vadd.f32 %v4075_v31, %v4063_v48  ;;  %v8027_v38 = vor.u32 %v8893_v13, %v8026_v22  ;;  %v8268_v31 = vld [vmem:[%s13369_s2 + $0x5f8] sm:$0xf0]  ;;  %v4222_v39 = vmul.f32 %v9063_v47, %v12529_v23  ;;  %v8146_v47 = vld [vmem:[%s13369_s2 + $0x500] sm:$0xf] }
 0x3eb   : >> { %v4038_v11 = vpop.f32.mrf.mxu0  ;;  %v8271_v7 = vor.u32 %v8951_v46, %v8268_v31  ;;  %v4115_v27 = vadd.f32 %v12594_v25, %v4102_v8  ;;  %v8250_v25 = vld [vmem:[%s13369_s2 + $0x5c8] sm:$0xf]  ;;  %v8252_v48 = vld [vmem:[%s13369_s2 + $0x5d8] sm:$0xf0]  ;;  %v8941_v8 = vld [vmem:[%s13369_s2 + $0x594] sm:$0xf0] }
 0x3ec   : >> { %9132 = vpow2.f32 %v7706_v24  ;;  %4992 = vmatpush.bf16.msra.mxu2 %v8051_v29  ;;  %v8194_v24 = vld [vmem:[%s13369_s2 + $0x560] sm:$0xf]  ;;  %5072 = vmatpush.bf16.msra.mxu0 %v8027_v38  ;;  %v8946_v29 = vld [vmem:[%s13369_s2 + $0x5c4] sm:$0xf]  ;;  %v8251_v45 = vor.u32 %v8949_v37, %v8250_v25  ;;  %v8255_v51 = vor.u32 %v8947_v15, %v8252_v48  ;;  %v8219_v1 = vor.u32 %v8941_v8, %v8218_v63  ;;  %v8180_v37 = vld [vmem:[%s13369_s2 + $0x550] sm:$0xf0] }
 0x3ed   : >> { %v4155_v21 = vpop.f32.mrf.mxu1  ;;  %v8195_v11 = vor.u32 %v8936_v16, %v8194_v24  ;;  %5078 = vmatpush.bf16.msra.mxu1 %v8267_v2  ;;  %v8247_v33 = vor.u32 %v8946_v29, %v8244_v20  ;;  %v8147_v38 = vor.u32 %v8924_v44, %v8146_v47  ;;  %v8934_v46 = vld [vmem:[%s13369_s2 + $0x564] sm:$0xf]  ;;  %v8196_v2 = vld [vmem:[%s13369_s2 + $0x570] sm:$0xf0]  ;;  %v8937_v24 = vld [vmem:[%s13369_s2 + $0x574] sm:$0xf0] }
 0x3ee   : >> { %v8199_v16 = vor.u32 %v8934_v46, %v8196_v2  ;;  %v8930_v25 = vld [vmem:[%s13369_s2 + $0x544] sm:$0xf]  ;;  %v8931_v48 = vld [vmem:[%s13369_s2 + $0x54c] sm:$0xf]  ;;  %v8148_v63 = vld [vmem:[%s13369_s2 + $0x510] sm:$0xf0] }
 0x3ef   : >> { %5004 = vmatpush.bf16.msra.mxu3 %v8195_v11 }
 0x3f0   : >> { %4993 = vmatpush.bf16.msra.mxu2 %v8035_v14  ;;  %5117 = vmatpush.bf16.msrb.mxu0 %v8271_v7  ;;  %v8179_v14 = vor.u32 %v8932_v10, %v8178_v49  ;;  %v8202_v7 = vld [vmem:[%s13369_s2 + $0x568] sm:$0xf] }
 0x3f1   : >> { %v4077_v36 = vpop.f32.mrf.mxu3  ;;  %5079 = vmatpush.bf16.msra.mxu1 %v8251_v45  ;;  %v8203_v20 = vor.u32 %v8937_v24, %v8202_v7  ;;  %v8933_v45 = vld [vmem:[%s13369_s2 + $0x554] sm:$0xf0] }
 0x3f2   : >> { %v9133_v28 = vpop.eup %9132  ;;  %v4116_v40 = vpop.f32.mrf.mxu2  ;;  %v8943_v36 = vld [vmem:[%s13369_s2 + $0x5ac] sm:$0xf] }
 0x3f3   : >> { %v12658_v3 = vadd.f32 1.0, %v9133_v28  ;;  %v4088_v5 = vpop.f32.mrf.mxu0  ;;  %v8239_v28 = vor.u32 %v8943_v36, %v8236_v19  ;;  %v8928_v40 = vld [vmem:[%s13369_s2 + $0x52c] sm:$0xf0]  ;;  %5005 = vmatpush.bf16.msra.mxu3 %v8179_v14  ;;  %v8170_v36 = vld [vmem:[%s13369_s2 + $0x528] sm:$0xf] }
 0x3f4   : >> { %v4089_v55 = vadd.f32 %v4088_v5, %v4076_v61  ;;  %4994 = vmatpush.bf16.msra.mxu2 %v8019_v6  ;;  %5118 = vmatpush.bf16.msrb.mxu0 %v8255_v51  ;;  %v8162_v61 = vld [vmem:[%s13369_s2 + $0x520] sm:$0xf]  ;;  %v8938_v5 = vld [vmem:[%s13369_s2 + $0x584] sm:$0xf]  ;;  %v8212_v6 = vld [vmem:[%s13369_s2 + $0x590] sm:$0xf0] }
 0x3f5   : >> { %9134 = vrcp.f32 %v12658_v3  ;;  %v8163_v42 = vor.u32 %v8928_v40, %v8162_v61  ;;  %v8215_v26 = vor.u32 %v8938_v5, %v8212_v6  ;;  %5080 = vmatpush.bf16.msra.mxu1 %v8235_v32  ;;  %v4187_v51 = vand.u32 2147483647, %v12658_v3  ;;  %v8929_v19 = vld [vmem:[%s13369_s2 + $0x534] sm:$0xf0]  ;;  %v8927_v40 = vld [vmem:[%s13369_s2 + $0x52c] sm:$0xf] }
 0x3f6   : >> { %v4196_v17 = vadd.f32 %v4195_v30, %v4089_v55  ;;  %v8939_v55 = vld [vmem:[%s13369_s2 + $0x58c] sm:$0xf]  ;;  %v8220_v30 = vld [vmem:[%s13369_s2 + $0x598] sm:$0xf0]  ;;  %vm4183_vm1 = vweird.f32 %v12658_v3  ;;  %v8171_v61 = vor.u32 %v8929_v19, %v8170_v36  ;;  %v8922_v6 = vld [vmem:[%s13369_s2 + $0x504] sm:$0xf]  ;;  %v7983_v19 = vor.u32 %v8879_v54, %v7980_v58 }
 0x3f7   : >> { %v8223_v34 = vor.u32 %v8939_v55, %v8220_v30  ;;  %5006 = vmatpush.bf16.msra.mxu3 %v8163_v42  ;;  %v8151_v30 = vor.u32 %v8922_v6, %v8148_v63  ;;  %vm4188_vm7 = vcmp.eq.f32.partialorder %v4187_v51, 8.507059e+37  ;;  %v7978_v51 = vld [vmem:[%s13369_s2 + $0x3a8] sm:$0xf]  ;;  %v8877_v36 = vld [vmem:[%s13369_s2 + $0x394] sm:$0xf0] }
 0x3f8   : >> { %v7708_v57 = vmul.f32 -1.442695, %v4196_v17  ;;  %5039 = vmatpush.bf16.msrb.mxu2 %v8263_v18  ;;  %5119 = vmatpush.bf16.msrb.mxu0 %v8239_v28  ;;  %v4189_v28 = vand.u32 2147483648, %v12658_v3  ;;  %v8869_v6 = vld [vmem:[%s13369_s2 + $0x354] sm:$0xf0] }
 0x3f9   : >> { %v4127_v35 = vpop.f32.mrf.mxu3  ;;  %5081 = vmatpush.bf16.msra.mxu1 %v8219_v1  ;;  %v8156_v1 = vld [vmem:[%s13369_s2 + $0x518] sm:$0xf0] }
 0x3fa   : >> { %9136 = vpow2.f32 %v7708_v57  ;;  %v4128_v21 = vadd.f32 %v4127_v35, %v4115_v27  ;;  %v12716_v56 = vpop.f32.mrf.mxu2  ;;  %v8935_v27 = vld [vmem:[%s13369_s2 + $0x56c] sm:$0xf]  ;;  %v8204_v57 = vld [vmem:[%s13369_s2 + $0x578] sm:$0xf0]  ;;  %v4190_v44 = vor.u32 1.1754944e-38, %v4189_v28 }
 0x3fb   : >> { %v4090_v50 = vpop.f32.mrf.mxu0  ;;  %v12736_v59 = vpop.eup %9134  ;;  %5007 = vmatpush.bf16.msra.mxu3 %v8147_v38  ;;  %v8207_v35 = vor.u32 %v8935_v27, %v8204_v57  ;;  %v7964_v28 = vld [vmem:[%s13369_s2 + $0x398] sm:$0xf0] }
 0x3fc   : >> { %v4223_v12 = vadd.f32 %v4222_v39, %v4128_v21  ;;  %5040 = vmatpush.bf16.msrb.mxu2 %v8247_v33  ;;  %v4179_v41 = vmul.f32 %v12736_v59, %v12658_v3  ;;  %5120 = vmatpush.bf16.msrb.mxu0 %v8223_v34  ;;  %v8183_v39 = vor.u32 %v8930_v25, %v8180_v37  ;;  %vm4184_vm0 = vweird.f32 %v12736_v59  ;;  %v8887_v37 = vld [vmem:[%s13369_s2 + $0x3ec] sm:$0xf] }
 0x3fd   : >> { %5082 = vmatpush.bf16.msra.mxu1 %v8203_v20  ;;  %vm12853_vm3 = vmor %vm4183_vm1, %vm4184_vm0  ;;  %v8889_v20 = vld [vmem:[%s13369_s2 + $0x3f4] sm:$0xf0] }
 0x3fe   : >> { %v7710_v62 = vmul.f32 -1.442695, %v4223_v12  ;;  %v4180_v18 = vsub.f32 1.0, %v4179_v41  ;;  %v7948_v41 = vld [vmem:[%s13369_s2 + $0x378] sm:$0xf0] }
 0x400   : >> { %v9137_v22 = vpop.eup %9136  ;;  %9138 = vpow2.f32 %v7710_v62  ;;  %5041 = vmatpush.bf16.msrb.mxu2 %v8231_v52  ;;  %v4181_v21 = vmul.f32 %v12736_v59, %v4180_v18  ;;  %5121 = vmatpush.bf16.msrb.mxu0 %v8207_v35  ;;  %v8172_v62 = vld [vmem:[%s13369_s2 + $0x538] sm:$0xf0] }
 0x401   : >> { %v12774_v9 = vadd.f32 1.0, %v9137_v22  ;;  %v4129_v13 = vpop.f32.mrf.mxu3  ;;  %v8175_v3 = vor.u32 %v8927_v40, %v8172_v62  ;;  %v8154_v22 = vld [vmem:[%s13369_s2 + $0x508] sm:$0xf]  ;;  %v8873_v62 = vld [vmem:[%s13369_s2 + $0x374] sm:$0xf0] }
 0x402   : >> { %v4168_v17 = vpop.f32.mrf.mxu2  ;;  %v4182_v52 = vadd.f32 %v12736_v59, %v4181_v21  ;;  %v8923_v13 = vld [vmem:[%s13369_s2 + $0x50c] sm:$0xf]  ;;  %v7946_v40 = vld [vmem:[%s13369_s2 + $0x368] sm:$0xf] }
 0x403   : >> { %9140 = vrcp.f32 %v12774_v9  ;;  %v4140_v60 = vpop.f32.mrf.mxu0  ;;  %v4212_v32 = vand.u32 2147483648, %v12774_v9  ;;  %v4210_v42 = vand.u32 2147483647, %v12774_v9  ;;  %vm4206_vm4 = vweird.f32 %v12774_v9 }
 0x404   : >> { %v4141_v31 = vadd.f32 %v4140_v60, %v3529_v0  ;;  %5042 = vmatpush.bf16.msrb.mxu2 %v8215_v26  ;;  %v4186_v55 = vsel %vm12853_vm3, %v12736_v59, %v4182_v52  ;;  %v8159_v17 = vor.u32 %v8923_v13, %v8156_v1  ;;  %v8863_v1 = vld [vmem:[%s13369_s2 + $0x32c] sm:$0xf] }
 0x405   : >> { %v4213_v47 = vor.u32 1.1754944e-38, %v4212_v32  ;;  %vm4211_vm6 = vcmp.eq.f32.partialorder %v4210_v42, 8.507059e+37  ;;  %v4191_v60 = vsel %vm4188_vm7, %v4190_v44, %v4186_v55  ;;  %v8875_v32 = vld [vmem:[%s13369_s2 + $0x38c] sm:$0xf]  ;;  %v7898_v44 = vld [vmem:[%s13369_s2 + $0x308] sm:$0xf] }
 0x406   : >> { %v9139_v11 = vpop.eup %9138  ;;  %v4154_v29 = vadd.f32 %v12556_v4, %v4141_v31  ;;  %v8186_v4 = vld [vmem:[%s13369_s2 + $0x548] sm:$0xf]  ;;  %v8871_v42 = vld [vmem:[%s13369_s2 + $0x36c] sm:$0xf] }
 0x407   : >> { %v12802_v33 = vadd.f32 1.0, %v9139_v11  ;;  %v8187_v50 = vor.u32 %v8933_v45, %v8186_v4  ;;  %v7994_v45 = vld [vmem:[%s13369_s2 + $0x3c8] sm:$0xf]  ;;  %v7951_v63 = vor.u32 %v8871_v42, %v7948_v41 }
 0x408   : >> { %v4167_v15 = vadd.f32 %v12716_v56, %v4154_v29  ;;  %5043 = vmatpush.bf16.msrb.mxu2 %v8199_v16  ;;  %v8188_v56 = vld [vmem:[%s13369_s2 + $0x558] sm:$0xf0] }
 0x409   : >> { %v9141_v49 = vpop.eup %9140  ;;  %9142 = vrcp.f32 %v12802_v33  ;;  %v8191_v43 = vor.u32 %v8931_v48, %v8188_v56  ;;  %5083 = vmatpush.bf16.msra.mxu1 %v8187_v50  ;;  %v4239_v27 = vand.u32 2147483648, %v12802_v33  ;;  %vm4233_vm9 = vweird.f32 %v12802_v33  ;;  %v8885_v48 = vld [vmem:[%s13369_s2 + $0x3d4] sm:$0xf0]  ;;  %v8883_v56 = vld [vmem:[%s13369_s2 + $0x3cc] sm:$0xf] }
 0x40a   : >> { %v4202_v10 = vmul.f32 %v9141_v49, %v12774_v9  ;;  %9144 = vtanh.f32 %v4167_v15  ;;  %vm4207_vm2 = vweird.f32 %v9141_v49  ;;  %v8925_v9 = vld [vmem:[%s13369_s2 + $0x514] sm:$0xf0]  ;;  %v4237_v57 = vand.u32 2147483647, %v12802_v33 }
 0x40b   : >> { %v4142_v14 = vpop.f32.mrf.mxu0  ;;  %5122 = vmatpush.bf16.msrb.mxu0 %v8191_v43  ;;  %vm4208_vm5 = vmor %vm4206_vm4, %vm4207_vm2  ;;  %v8155_v59 = vor.u32 %v8925_v9, %v8154_v22  ;;  %v4240_v29 = vor.u32 1.1754944e-38, %v4239_v27  ;;  %v7995_v50 = vor.u32 %v8885_v48, %v7994_v45  ;;  %v4386_v22 = vld [vmem:[#allocation2 + $0x8] sm:$0xf]  ;;  %v8865_v9 = vld [vmem:[%s13369_s2 + $0x334] sm:$0xf0] }
 0x40c   : >> { %v4203_v12 = vsub.f32 1.0, %v4202_v10  ;;  %5044 = vmatpush.bf16.msrb.mxu2 %v8183_v39  ;;  %vm4238_vm11 = vcmp.eq.f32.partialorder %v4237_v57, 8.507059e+37  ;;  %v7996_v10 = vld [vmem:[%s13369_s2 + $0x3d8] sm:$0xf0]  ;;  %v8881_v14 = vld [vmem:[%s13369_s2 + $0x3b4] sm:$0xf0] }
 0x40d   : >> { %5084 = vmatpush.bf16.msra.mxu1 %v8171_v61  ;;  %v7999_v43 = vor.u32 %v8883_v56, %v7996_v10  ;;  %v7979_v52 = vor.u32 %v8881_v14, %v7978_v51  ;;  %v8911_v57 = vld [vmem:[%s13369_s2 + $0x4ac] sm:$0xf]  ;;  %v8060_v45 = vld [vmem:[%s13369_s2 + $0x458] sm:$0xf0] }
 0x40e   : >> { %v4204_v0 = vmul.f32 %v9141_v49, %v4203_v12  ;;  %v8044_v56 = vld [vmem:[%s13369_s2 + $0x438] sm:$0xf0] }
 0x40f   : >> { %v9143_v5 = vpop.eup %9142  ;;  %5123 = vmatpush.bf16.msrb.mxu0 %v8175_v3  ;;  %v7947_v3 = vor.u32 %v8873_v62, %v7946_v40  ;;  %v8028_v51 = vld [vmem:[%s13369_s2 + $0x418] sm:$0xf0] }
 0x410   : >> { %v4205_v26 = vadd.f32 %v9141_v49, %v4204_v0  ;;  %v4229_v8 = vmul.f32 %v9143_v5, %v12802_v33  ;;  %5045 = vmatpush.bf16.msrb.mxu2 %v8167_v53  ;;  %v9145_v34 = vpop.eup %9144  ;;  %vm4234_vm8 = vweird.f32 %v9143_v5  ;;  %v8012_v33 = vld [vmem:[%s13369_s2 + $0x3f8] sm:$0xf0]  ;;  %v7962_v53 = vld [vmem:[%s13369_s2 + $0x388] sm:$0xf]  ;;  %v7967_v0 = vor.u32 %v8875_v32, %v7964_v28 }
 0x411   : >> { %v4217_v2 = vmul.f32 %v9145_v34, %v4191_v60  ;;  %5085 = vmatpush.bf16.msra.mxu1 %v8155_v59  ;;  %vm4235_vm10 = vmor %vm4233_vm9, %vm4234_vm8  ;;  %v7963_v61 = vor.u32 %v8877_v36, %v7962_v53  ;;  %v7916_v34 = vld [vmem:[%s13369_s2 + $0x338] sm:$0xf0]  ;;  %v8861_v59 = vld [vmem:[%s13369_s2 + $0x314] sm:$0xf0] }
 0x412   : >> { %v4230_v38 = vsub.f32 1.0, %v4229_v8  ;;  %v4209_v18 = vsel %vm4208_vm5, %v9141_v49, %v4205_v26  ;;  %v8015_v49 = vor.u32 %v8887_v37, %v8012_v33  ;;  %v8867_v26 = vld [vmem:[%s13369_s2 + $0x34c] sm:$0xf]  ;;  %v7932_v8 = vld [vmem:[%s13369_s2 + $0x358] sm:$0xf0] }
 0x413   : >> { %v4214_v46 = vsel %vm4211_vm6, %v4213_v47, %v4209_v18  ;;  %5124 = vmatpush.bf16.msrb.mxu0 %v8159_v17  ;;  %v7935_v13 = vor.u32 %v8867_v26, %v7932_v8  ;;  %v8919_v17 = vld [vmem:[%s13369_s2 + $0x4ec] sm:$0xf]  ;;  %v8140_v18 = vld [vmem:[%s13369_s2 + $0x4f8] sm:$0xf0] }
 0x414   : >> { %v4231_v31 = vmul.f32 %v9143_v5, %v4230_v38  ;;  %v4218_v7 = vmul.f32 %v4214_v46, %v12529_v23  ;;  %5046 = vmatpush.bf16.msrb.mxu2 %v8151_v30  ;;  %v8010_v23 = vld [vmem:[%s13369_s2 + $0x3e8] sm:$0xf]  ;;  %v7919_v38 = vor.u32 %v8863_v1, %v7916_v34  ;;  %v8859_v60 = vld [vmem:[%s13369_s2 + $0x30c] sm:$0xf]  ;;  %v7900_v46 = vld [vmem:[%s13369_s2 + $0x318] sm:$0xf0] }
 0x415   : >> { %v8011_v39 = vor.u32 %v8889_v20, %v8010_v23  ;;  %v7914_v30 = vld [vmem:[%s13369_s2 + $0x328] sm:$0xf]  ;;  %v8907_v20 = vld [vmem:[%s13369_s2 + $0x48c] sm:$0xf]  ;;  %v8076_v33 = vld [vmem:[%s13369_s2 + $0x478] sm:$0xf0] }
 0x416   : >> { %v4219_v24 = vadd.f32 %v4218_v7, %v4217_v2  ;;  %v4232_v16 = vadd.f32 %v9143_v5, %v4231_v31  ;;  %v7915_v47 = vor.u32 %v8865_v9, %v7914_v30  ;;  %v7899_v31 = vor.u32 %v8861_v59, %v7898_v44  ;;  %v8903_v37 = vld [vmem:[%s13369_s2 + $0x46c] sm:$0xf]  ;;  %v9064_v30 = vld [vmem:[%s13371_s4 + $0x8] ss:$0 sm:$0xff] }
 0x417   : >> { %v8143_v2 = vor.u32 %v8919_v17, %v8140_v18  ;;  %v7903_v7 = vor.u32 %v8859_v60, %v7900_v46  ;;  %v13045_v28 = vld [vmem:[%s13370_s3 + $0x2] ss:$4 sm:$0xf]  ;;  %v8961_v60 = vld [vmem:[%s13372_s5 + $0xb8] sm:$0xff] }
 0x418   : >> { %9146 = vtanh.f32 %v4219_v24  ;;  %4247 = vst [vmem:[#allocation3] sm:$0xff] %v4219_v24  ;;  %v4236_v11 = vsel %vm4235_vm10, %v9143_v5, %v4232_v16  ;;  %v7930_v5 = vld [vmem:[%s13369_s2 + $0x348] sm:$0xf]  ;;  %v8915_v24 = vld [vmem:[%s13369_s2 + $0x4cc] sm:$0xf]  ;;  %v4487_v40 = vperm.slane %v13045_v28, 1 }
 0x419   : >> { %v4241_v25 = vsel %vm4238_vm11, %v4240_v29, %v4236_v11  ;;  %v7931_v55 = vor.u32 %v8869_v6, %v7930_v5  ;;  %v8124_v16 = vld [vmem:[%s13369_s2 + $0x4d8] sm:$0xf0]  ;;  %v9168_v29 = vld [vmem:[%s9578_s22 + $0x4] sm:$0xf] }
 0x41a   : >> { %v8127_v27 = vor.u32 %v8915_v24, %v8124_v16  ;;  %v8108_v11 = vld [vmem:[%s13369_s2 + $0x4b8] sm:$0xf0]  ;;  %v8959_v16 = vld [vmem:[%s13372_s5 + $0xa8] sm:$0xff] }
 0x41b   : >> { %v8111_v23 = vor.u32 %v8911_v57, %v8108_v11  ;;  %v9066_v57 = vld [vmem:[%s13371_s4 + $0xa] ss:$0 sm:$0xff] }
 0x41e   : >> { %v9147_v35 = vpop.eup %9146 }
 0x41f   : >> { %v4244_v15 = vmul.f32 %v9147_v35, %v4241_v25  ;;  %v8092_v35 = vld [vmem:[%s13369_s2 + $0x498] sm:$0xf0] }
 0x420   : >> { %v8095_v25 = vor.u32 %v8907_v20, %v8092_v35  ;;  %v8958_v20 = vld [vmem:[%s13372_s5 + $0xa0] sm:$0xff] }
 0x421   : >> { %v12899_v4 = vpack.c.bf16 %v4244_v15, %v4244_v15  ;;  %v8079_v15 = vor.u32 %v8903_v37, %v8076_v33 }
 0x423   : >> { %v12897_v21 = vpop.f32.mrf.mxu0  ;;  %4246 = vst [vmem:[#allocation2 + $0x4] sm:$0xf] %v12899_v4  ;;  %4320 = vmatmul.bf16.vlgmr.msrb.gmra.mxu3 %v12899_v4  ;;  %4995 = vmatmul.bf16.vlgmr.msra.gmra.mxu2 %v12899_v4 }
 0x424   : >> { %5034 = vmatmul.bf16.vlgmr.msrb.gmra.mxu1 %v12899_v4  ;;  %5052 = vmatpush.bf16.msrb.mxu3 %v8011_v39  ;;  %v8899_v39 = vld [vmem:[%s13369_s2 + $0x44c] sm:$0xf] }
 0x425   : >> { %5073 = vmatmul.bf16.vlgmr.msra.gmra.mxu0 %v12899_v4  ;;  %5091 = vmatpush.bf16.msra.mxu2 %v8015_v49  ;;  %v8063_v48 = vor.u32 %v8899_v39, %v8060_v45  ;;  %v8895_v49 = vld [vmem:[%s13369_s2 + $0x42c] sm:$0xf] }
 0x426   : >> { %v8047_v10 = vor.u32 %v8895_v49, %v8044_v56  ;;  %5272 = vmatpush.bf16.msrb.mxu1 %v8961_v60 }
 0x428   : >> { %5053 = vmatpush.bf16.msrb.mxu3 %v7995_v50  ;;  %v8891_v50 = vld [vmem:[%s13369_s2 + $0x40c] sm:$0xf] }
 0x429   : >> { %5092 = vmatpush.bf16.msra.mxu2 %v7999_v43  ;;  %v8031_v14 = vor.u32 %v8891_v50, %v8028_v51  ;;  %v8955_v50 = vld [vmem:[%s13372_s5 + $0x88] sm:$0xff] }
 0x42b   : >> { %v4384_v12 = vpop.f32.mrf.mxu0 }
 0x42c   : >> { %5054 = vmatpush.bf16.msrb.mxu3 %v7979_v52 }
 0x42d   : >> { %5093 = vmatpush.bf16.msra.mxu2 %v7983_v19 }
 0x430   : >> { %5055 = vmatpush.bf16.msrb.mxu3 %v7963_v61 }
 0x431   : >> { %5094 = vmatpush.bf16.msra.mxu2 %v7967_v0 }
 0x433   : >> { %5008 = vmatmul.bf16.vlgmr.msra.gmra.mxu3 %v4386_v22  ;;  %5047 = vmatmul.bf16.vlgmr.msrb.gmra.mxu2 %v4386_v22 }
 0x434   : >> { %5056 = vmatpush.bf16.msrb.mxu3 %v7947_v3  ;;  %5086 = vmatmul.bf16.vlgmr.msra.gmra.mxu1 %v4386_v22 }
 0x435   : >> { %5125 = vmatmul.bf16.vlgmr.msrb.gmra.mxu0 %v4386_v22  ;;  %5095 = vmatpush.bf16.msra.mxu2 %v7951_v63  ;;  %v4983_v43 = vpop.f32.mrf.mxu1  ;;  %v9065_v63 = vld [vmem:[%s13371_s4 + $0x9] ss:$0 sm:$0xff]  ;;  %v13054_v22 = vld [vmem:[#allocation3 + $0x8] sm:$0xff] }
 0x436   : >> { %v5155_v1 = vmul.f32 %v9065_v63, %v13054_v22  ;;  %v5132_v44 = vmul.f32 %v9064_v30, %v13054_v22  ;;  %v5182_v37 = vmul.f32 %v9066_v57, %v13054_v22 }
 0x438   : >> { %5057 = vmatpush.bf16.msrb.mxu3 %v7931_v55 }
 0x439   : >> { %5096 = vmatpush.bf16.msra.mxu2 %v7935_v13 }
 0x43c   : >> { %5058 = vmatpush.bf16.msrb.mxu3 %v7915_v47 }
 0x43d   : >> { %5097 = vmatpush.bf16.msra.mxu2 %v7919_v38  ;;  %v4985_v58 = vpop.f32.mrf.mxu1 }
 0x440   : >> { %5059 = vmatpush.bf16.msrb.mxu3 %v7899_v31 }
 0x441   : >> { %5098 = vmatpush.bf16.msra.mxu2 %v7903_v7  ;;  %v4488_v7 = vperm.slane %v13045_v28, 2 }
 0x443   : >> { %5060 = vmatmul.bf16.vlgmr.msrb.gmra.mxu3 %v9168_v29  ;;  %v5022_v54 = vpop.f32.mrf.mxu0 }
 0x444   : >> { %5104 = vmatpush.bf16.msra.mxu3 %v8143_v2  ;;  %5099 = vmatmul.bf16.vlgmr.msra.gmra.mxu2 %v9168_v29  ;;  %v5023_v42 = vadd.f32 %v5022_v54, %v4487_v40  ;;  %v8960_v2 = vld [vmem:[%s13372_s5 + $0xb0] sm:$0xff]  ;;  %v8954_v54 = vld [vmem:[%s13372_s5 + $0x80] sm:$0xff] }
 0x445   : >> { %5273 = vmatpush.bf16.msrb.mxu1 %v8960_v2 }
 0x448   : >> { %5105 = vmatpush.bf16.msra.mxu3 %v8127_v27 }
 0x449   : >> { %5274 = vmatpush.bf16.msrb.mxu1 %v8959_v16 }
 0x44b   : >> { %v5024_v12 = vpop.f32.mrf.mxu0 }
 0x44c   : >> { %5106 = vmatpush.bf16.msra.mxu3 %v8111_v23 }
 0x44d   : >> { %5275 = vmatpush.bf16.msrb.mxu1 %v8958_v20 }
 0x450   : >> { %5107 = vmatpush.bf16.msra.mxu3 %v8095_v25 }
 0x454   : >> { %5108 = vmatpush.bf16.msra.mxu3 %v8079_v15 }
 0x458   : >> { %5109 = vmatpush.bf16.msra.mxu3 %v8063_v48  ;;  %v8957_v48 = vld [vmem:[%s13372_s5 + $0x98] sm:$0xff] }
 0x459   : >> { %5276 = vmatpush.bf16.msrb.mxu1 %v8957_v48 }
 0x45c   : >> { %5110 = vmatpush.bf16.msra.mxu3 %v8047_v10  ;;  %v8956_v10 = vld [vmem:[%s13372_s5 + $0x90] sm:$0xff] }
 0x45d   : >> { %5277 = vmatpush.bf16.msrb.mxu1 %v8956_v10 }
 0x460   : >> { %5111 = vmatpush.bf16.msra.mxu3 %v8031_v14 }
 0x461   : >> { %5278 = vmatpush.bf16.msrb.mxu1 %v8955_v50 }
 0x463   : >> { %5112 = vmatmul.bf16.vlgmr.msra.gmra.mxu3 %v12899_v4  ;;  %v4486_v4 = vperm.slane %v13045_v28, 0 }
 0x465   : >> { %v4984_v5 = vadd.f32 %v4983_v43, %v4486_v4  ;;  %5279 = vmatpush.bf16.msrb.mxu1 %v8954_v54  ;;  %v8373_v54 = vld [vmem:[%s13374_s7 + $0x58] sm:$0xf0] (%p347_p12) }
 0x4a1   : >> { %v5035_v52 = vpop.f32.mrf.mxu1 }
 0x4a2   : >> { %v5074_v53 = vpop.f32.mrf.mxu0  ;;  %v5036_v6 = vadd.f32 %v5035_v52, %v5023_v42 }
 0x4a6   : >> { %v13040_v36 = vpop.f32.mrf.mxu3  ;;  %v4996_v19 = vpop.f32.mrf.mxu2 }
 0x4a7   : >> { %v4997_v55 = vadd.f32 %v4996_v19, %v4984_v5 }
 0x4a9   : >> { %v5037_v32 = vpop.f32.mrf.mxu1 }
 0x4aa   : >> { %v5076_v61 = vpop.f32.mrf.mxu0 }
 0x4ae   : >> { %v4323_v62 = vpop.f32.mrf.mxu3  ;;  %v4998_v0 = vpop.f32.mrf.mxu2 }
 0x4b1   : >> { %v5087_v41 = vpop.f32.mrf.mxu1 }
 0x4b2   : >> { %v13049_v3 = vpop.f32.mrf.mxu0 }
 0x4b6   : >> { %v5009_v26 = vpop.f32.mrf.mxu3  ;;  %v5048_v8 = vpop.f32.mrf.mxu2 }
 0x4b7   : >> { %v5049_v9 = vadd.f32 %v5048_v8, %v5036_v6  ;;  %v5010_v13 = vadd.f32 %v5009_v26, %v4997_v55 }
 0x4b9   : >> { %v5089_v34 = vpop.f32.mrf.mxu1  ;;  %v5156_v59 = vadd.f32 %v5155_v1, %v5049_v9  ;;  %v5133_v17 = vadd.f32 %v5132_v44, %v5010_v13 }
 0x4ba   : >> { %v5128_v47 = vpop.f32.mrf.mxu0 }
 0x4bb   : >> { %v8275_v46 = vmul.f32 -1.442695, %v5156_v59  ;;  %v8273_v31 = vmul.f32 -1.442695, %v5133_v17 }
 0x4bd   : >> { %9148 = vpow2.f32 %v8275_v46 }
 0x4be   : >> { %v5011_v38 = vpop.f32.mrf.mxu3  ;;  %v5050_v18 = vpop.f32.mrf.mxu2  ;;  %9150 = vpow2.f32 %v8273_v31 }
 0x4c3   : >> { %v9149_v29 = vpop.eup %9148 }
 0x4c4   : >> { %v9151_v35 = vpop.eup %9150  ;;  %v5160_v33 = vadd.f32 1.0, %v9149_v29  ;;  %v9067_v29 = vld [vmem:[%s13373_s6] ss:$0 sm:$0xff] }
 0x4c5   : >> { %v5137_v39 = vadd.f32 1.0, %v9151_v35 }
 0x4c6   : >> { %v5061_v24 = vpop.f32.mrf.mxu3  ;;  %9152 = vrcp.f32 %v5160_v33  ;;  %v5172_v5 = vand.u32 2147483648, %v5160_v33  ;;  %vm5166_vm13 = vweird.f32 %v5160_v33 }
 0x4c7   : >> { %v5062_v27 = vadd.f32 %v5061_v24, %v4488_v7  ;;  %v5100_v11 = vpop.f32.mrf.mxu2  ;;  %v5149_v8 = vand.u32 2147483648, %v5137_v39  ;;  %vm5143_vm0 = vweird.f32 %v5137_v39  ;;  %v5147_v55 = vand.u32 2147483647, %v5137_v39 }
 0x4c8   : >> { %v5173_v9 = vor.u32 1.1754944e-38, %v5172_v5 }
 0x4c9   : >> { %v5075_v23 = vadd.f32 %v5074_v53, %v5062_v27  ;;  %v4489_v53 = vperm.slane %v13045_v28, 3  ;;  %v5170_v28 = vand.u32 2147483647, %v5160_v33  ;;  %v5150_v47 = vor.u32 1.1754944e-38, %v5149_v8 }
 0x4ca   : >> { %vm5148_vm3 = vcmp.eq.f32.partialorder %v5147_v55, 8.507059e+37 }
 0x4cb   : >> { %v5088_v25 = vadd.f32 %v5087_v41, %v5075_v23  ;;  %v5101_v61 = vadd.f32 %v5100_v11, %v4489_v53  ;;  %vm5171_vm2 = vcmp.eq.f32.partialorder %v5170_v28, 8.507059e+37  ;;  %v8972_v53 = vld [vmem:[%s13374_s7 + $0x44] sm:$0xf0] (%p347_p12)  ;;  %v8349_v28 = vld [vmem:[%s13374_s7 + $0x28] sm:$0xf0] (%p347_p12) }
 0x4cc   : >> { %v9153_v51 = vpop.eup %9152 }
 0x4cd   : >> { %v5183_v15 = vadd.f32 %v5182_v37, %v5088_v25  ;;  %v5162_v58 = vmul.f32 %v9153_v51, %v5160_v33  ;;  %vm5167_vm12 = vweird.f32 %v9153_v51  ;;  %v8387_v37 = vld [vmem:[%s13374_s7 + $0x70] sm:$0xf] (%p347_p12) }
 0x4ce   : >> { %v5063_v45 = vpop.f32.mrf.mxu3  ;;  %vm5168_vm15 = vmor %vm5166_vm13, %vm5167_vm12 }
 0x4cf   : >> { %v8277_v49 = vmul.f32 -1.442695, %v5183_v15  ;;  %v5102_v56 = vpop.f32.mrf.mxu2  ;;  %v5163_v19 = vsub.f32 1.0, %v5162_v58  ;;  %v8389_v15 = vld [vmem:[%s13374_s7 + $0x78] sm:$0xf0] (%p347_p12) }
 0x4d0   : > { %v8976_v45 = vld [vmem:[%s13374_s7 + $0x64] sm:$0xf0] (%p347_p12)  ;;  %v8381_v56 = vld [vmem:[%s13374_s7 + $0x68] sm:$0xf0] (%p347_p12) }
 0x4d1   : >> { %9154 = vpow2.f32 %v8277_v49  ;;  %v5164_v40 = vmul.f32 %v9153_v51, %v5163_v19  ;;  %v8975_v49 = vld [vmem:[%s13374_s7 + $0x64] sm:$0xf] (%p347_p12) }
 0x4d2   : >> { %9156 = vrcp.f32 %v5137_v39  ;;  %v8384_v50 = vor.u32 (%p347_p12), %v8975_v49, %v8381_v56  ;;  %v8971_v19 = vld [vmem:[%s13374_s7 + $0x44] sm:$0xf] (%p347_p12) }
 0x4d3   : >> { %v5165_v41 = vadd.f32 %v9153_v51, %v5164_v40 }
 0x4d5   : >> { %v5169_v30 = vsel %vm5168_vm15, %v9153_v51, %v5165_v41  ;;  %v8371_v51 = vld [vmem:[%s13374_s7 + $0x50] sm:$0xf] (%p347_p12) }
 0x4d6   : >> { %v5174_v44 = vsel %vm5171_vm2, %v5173_v9, %v5169_v30  ;;  %v8339_v30 = vld [vmem:[%s13374_s7 + $0x10] sm:$0xf] (%p347_p12)  ;;  %v8966_v9 = vld [vmem:[%s13374_s7 + $0x14] sm:$0xf0] (%p347_p12) }
 0x4d7   : >> { %v9155_v14 = vpop.eup %9154  ;;  %v5178_v18 = vmul.f32 %v5174_v44, %v13054_v22  ;;  %v4383_v22 = vadd.f32 %v12897_v21, %v13040_v36  ;;  %v8978_v21 = vld [vmem:[%s13374_s7 + $0x74] sm:$0xf0] (%p347_p12)  ;;  %v8977_v36 = vld [vmem:[%s13374_s7 + $0x74] sm:$0xf] (%p347_p12)  ;;  %v8331_v44 = vld [vmem:[%s13374_s7] sm:$0xf] (%p347_p12) }
 0x4d8   : >> { %v9157_v43 = vpop.eup %9156  ;;  %v5187_v12 = vadd.f32 1.0, %v9155_v14  ;;  %v8388_v33 = vor.u32 (%p347_p12), %v8978_v21, %v8387_v37  ;;  %v8392_v48 = vor.u32 (%p347_p12), %v8977_v36, %v8389_v15  ;;  %v8974_v14 = vld [vmem:[%s13374_s7 + $0x54] sm:$0xf0] (%p347_p12) }
 0x4d9   : >> { %v5139_v52 = vmul.f32 %v9157_v43, %v5137_v39  ;;  %vm5144_vm14 = vweird.f32 %v9157_v43  ;;  %v8379_v39 = vld [vmem:[%s13374_s7 + $0x60] sm:$0xf] (%p347_p12)  ;;  %v8372_v58 = vor.u32 (%p347_p12), %v8974_v14, %v8371_v51 }
 0x4da   : >> { %9158 = vrcp.f32 %v5187_v12  ;;  %vm5145_vm1 = vmor %vm5143_vm0, %vm5144_vm14  ;;  %v5199_v31 = vand.u32 2147483648, %v5187_v12  ;;  %vm5193_vm5 = vweird.f32 %v5187_v12  ;;  %v5197_v2 = vand.u32 2147483647, %v5187_v12  ;;  %5444 = vmatpush.bf16.msra.mxu0 (%p347_p12), %v8388_v33  ;;  %8981 = vmatpush.bf16.msra.mxu2 (%p347_p12), %v8388_v33 }
 0x4db   : >> { %v5140_v32 = vsub.f32 1.0, %v5139_v52  ;;  %v8380_v10 = vor.u32 (%p347_p12), %v8976_v45, %v8379_v39  ;;  %5533 = vmatpush.bf16.msra.mxu1 (%p347_p12), %v8392_v48  ;;  %8989 = vmatpush.bf16.msra.mxu3 (%p347_p12), %v8392_v48  ;;  %v8363_v52 = vld [vmem:[%s13374_s7 + $0x40] sm:$0xf] (%p347_p12) }
 0x4dc   : >> { %v5200_v24 = vor.u32 1.1754944e-38, %v5199_v31  ;;  %vm5198_vm7 = vcmp.eq.f32.partialorder %v5197_v2, 8.507059e+37 }
 0x4dd   : >> { %v5141_v4 = vmul.f32 %v9157_v43, %v5140_v32  ;;  %v8365_v32 = vld [vmem:[%s13374_s7 + $0x48] sm:$0xf0] (%p347_p12) }
 0x4de   : > { %5445 = vmatpush.bf16.msra.mxu0 (%p347_p12), %v8380_v10  ;;  %8982 = vmatpush.bf16.msra.mxu2 (%p347_p12), %v8380_v10  ;;  %v8368_v40 = vor.u32 (%p347_p12), %v8971_v19, %v8365_v32 }
 0x4df   : >> { %v5142_v26 = vadd.f32 %v9157_v43, %v5141_v4  ;;  %5534 = vmatpush.bf16.msra.mxu1 (%p347_p12), %v8384_v50  ;;  %8990 = vmatpush.bf16.msra.mxu3 (%p347_p12), %v8384_v50  ;;  %v8969_v4 = vld [vmem:[%s13374_s7 + $0x34] sm:$0xf] (%p347_p12) }
 0x4e0   : >> { %v9159_v62 = vpop.eup %9158 }
 0x4e1   : >> { %v5189_v6 = vmul.f32 %v9159_v62, %v5187_v12  ;;  %v5146_v1 = vsel %vm5145_vm1, %v9157_v43, %v5142_v26  ;;  %vm5194_vm4 = vweird.f32 %v9159_v62  ;;  %v8973_v43 = vld [vmem:[%s13374_s7 + $0x54] sm:$0xf] (%p347_p12)  ;;  %v8967_v26 = vld [vmem:[%s13374_s7 + $0x24] sm:$0xf] (%p347_p12) }
 0x4e2   : >> { %v5151_v59 = vsel %vm5148_vm3, %v5150_v47, %v5146_v1  ;;  %vm5195_vm6 = vmor %vm5193_vm5, %vm5194_vm4  ;;  %v8376_v12 = vor.u32 (%p347_p12), %v8973_v43, %v8373_v54  ;;  %5446 = vmatpush.bf16.msra.mxu0 (%p347_p12), %v8372_v58  ;;  %8983 = vmatpush.bf16.msra.mxu2 (%p347_p12), %v8372_v58  ;;  %v8352_v55 = vor.u32 (%p347_p12), %v8967_v26, %v8349_v28  ;;  %v8341_v1 = vld [vmem:[%s13374_s7 + $0x18] sm:$0xf0] (%p347_p12)  ;;  %v5358_v26 = vld [vmem:[%s13375_s8] sm:$0x3] (%p347_p12) }
 0x4e3   : >> { %v5190_v13 = vsub.f32 1.0, %v5189_v6  ;;  %v8347_v6 = vld [vmem:[%s13374_s7 + $0x20] sm:$0xf] (%p347_p12)  ;;  %v13201_v28 = vperm.slane (%p347_p12), %v5358_v26, 0 }
 0x4e4   : > { %5535 = vmatpush.bf16.msra.mxu1 (%p347_p12), %v8376_v12  ;;  %8991 = vmatpush.bf16.msra.mxu3 (%p347_p12), %v8376_v12 }
 0x4e5   : >> { %v5191_v17 = vmul.f32 %v9159_v62, %v5190_v13  ;;  %v8965_v13 = vld [vmem:[%s13374_s7 + $0x14] sm:$0xf] (%p347_p12) }
 0x4e6   : >> { %v5113_v0 = vpop.f32.mrf.mxu3  ;;  %v8344_v47 = vor.u32 (%p347_p12), %v8965_v13, %v8341_v1 }
 0x4e7   : >> { %v5114_v42 = vadd.f32 %v5113_v0, %v5101_v61  ;;  %v5192_v46 = vadd.f32 %v9159_v62, %v5191_v17  ;;  %v8364_v61 = vor.u32 (%p347_p12), %v8972_v53, %v8363_v52  ;;  %v8970_v0 = vld [vmem:[%s13374_s7 + $0x34] sm:$0xf0] (%p347_p12)  ;;  %v8333_v17 = vld [vmem:[%s13374_s7 + $0x8] sm:$0xf0] (%p347_p12) }
 0x4e8   : > { %5536 = vmatpush.bf16.msra.mxu1 (%p347_p12), %v8368_v40  ;;  %8992 = vmatpush.bf16.msra.mxu3 (%p347_p12), %v8368_v40 }
 0x4e9   : >> { %v5127_v63 = vadd.f32 %v13049_v3, %v5114_v42  ;;  %v5196_v7 = vsel %vm5195_vm6, %v9159_v62, %v5192_v46  ;;  %v8355_v62 = vld [vmem:[%s13374_s7 + $0x30] sm:$0xf] (%p347_p12)  ;;  %v8357_v42 = vld [vmem:[%s13374_s7 + $0x38] sm:$0xf0] (%p347_p12)  ;;  %5447 = vmatpush.bf16.msra.mxu0 (%p347_p12), %v8364_v61  ;;  %8984 = vmatpush.bf16.msra.mxu2 (%p347_p12), %v8364_v61 }
 0x4ea   : >> { %v5201_v27 = vsel %vm5198_vm7, %v5200_v24, %v5196_v7  ;;  %v8356_v41 = vor.u32 (%p347_p12), %v8970_v0, %v8355_v62  ;;  %v8360_v5 = vor.u32 (%p347_p12), %v8969_v4, %v8357_v42 }
 0x4eb   : >> { %9160 = vtanh.f32 %v5127_v63  ;;  %v8968_v63 = vld [vmem:[%s13374_s7 + $0x24] sm:$0xf0] (%p347_p12) }
 0x4ec   : > { %v8348_v8 = vor.u32 (%p347_p12), %v8968_v63, %v8347_v6  ;;  %5537 = vmatpush.bf16.msra.mxu1 (%p347_p12), %v8360_v5  ;;  %8993 = vmatpush.bf16.msra.mxu3 (%p347_p12), %v8360_v5 }
 0x4ed   : > { %5448 = vmatpush.bf16.msra.mxu0 (%p347_p12), %v8356_v41  ;;  %8985 = vmatpush.bf16.msra.mxu2 (%p347_p12), %v8356_v41 }
 0x4ee   : >> { %v5115_v34 = vpop.f32.mrf.mxu3 }
 0x4ef   : > { %v8340_v34 = vor.u32 (%p347_p12), %v8966_v9, %v8339_v30 }
 0x4f0   : > { %5538 = vmatpush.bf16.msra.mxu1 (%p347_p12), %v8352_v55  ;;  %8994 = vmatpush.bf16.msra.mxu3 (%p347_p12), %v8352_v55 }
 0x4f1   : >> { %v9161_v3 = vpop.eup %9160  ;;  %5449 = vmatpush.bf16.msra.mxu0 (%p347_p12), %v8348_v8  ;;  %8986 = vmatpush.bf16.msra.mxu2 (%p347_p12), %v8348_v8  ;;  %v13203_v8 = vperm.slane (%p347_p12), %v5358_v26, 1 }
 0x4f2   : >> { %v5177_v38 = vmul.f32 %v9161_v3, %v5151_v59  ;;  %v8964_v3 = vld [vmem:[%s13374_s7 + $0x4] sm:$0xf0] (%p347_p12)  ;;  %v8963_v59 = vld [vmem:[%s13374_s7 + $0x4] sm:$0xf] (%p347_p12) }
 0x4f3   : > { %v8336_v2 = vor.u32 (%p347_p12), %v8963_v59, %v8333_v17 }
 0x4f4   : >> { %v5179_v60 = vadd.f32 %v5178_v18, %v5177_v38  ;;  %v8332_v18 = vor.u32 (%p347_p12), %v8964_v3, %v8331_v44  ;;  %5539 = vmatpush.bf16.msra.mxu1 (%p347_p12), %v8344_v47  ;;  %8995 = vmatpush.bf16.msra.mxu3 (%p347_p12), %v8344_v47 }
 0x4f5   : > { %5450 = vmatpush.bf16.msra.mxu0 (%p347_p12), %v8340_v34  ;;  %8987 = vmatpush.bf16.msra.mxu2 (%p347_p12), %v8340_v34 }
 0x4f6   : >> { %9162 = vtanh.f32 %v5179_v60  ;;  %5207 = vst [vmem:[#allocation3 + $0x8] sm:$0xff] %v5179_v60 }
 0x4f8   : > { %5540 = vmatpush.bf16.msra.mxu1 (%p347_p12), %v8336_v2  ;;  %8996 = vmatpush.bf16.msra.mxu3 (%p347_p12), %v8336_v2 }
 0x4f9   : > { %5451 = vmatpush.bf16.msra.mxu0 (%p347_p12), %v8332_v18  ;;  %8988 = vmatpush.bf16.msra.mxu2 (%p347_p12), %v8332_v18 }
 0x4fc   : >> { %v9163_v16 = vpop.eup %9162 }
 0x4fd   : >> { %v5204_v57 = vmul.f32 %v9163_v16, %v5201_v27 }
 0x4ff   : >> { %v5205_v11 = vpack.c.bf16 %v5204_v57, %v5204_v57 }
 0x501   : >> { %5206 = vst [vmem:[#allocation2 + $0x8] sm:$0xf] %v5205_v11  ;;  %5280 = vmatmul.bf16.vlgmr.msrb.gmra.mxu1 %v5205_v11 }
 0x57e   : >> { %v5281_v23 = vpop.f32.mrf.mxu1 }
 0x57f   : >> { %v5285_v20 = vadd.f32 %v5281_v23, %v4383_v22 }
 0x581   : >> { %v5290_v35 = vadd.f32 %v9067_v29, %v5285_v20 }
 0x582   : > { %349 = sbr.rel (!%p347_p12) target bundleno = 40 (0x28), region = 117 }
 0x583   : >> { %8328 = vst [vmem:[%s11998_s17 + $0x8] sm:$0xff] %v5290_v35 }
 0x586   : >> { %v5283_v25 = vpop.f32.mrf.mxu1 }
 0x58a   : > { %v5294_v38 = vld [vmem:[#allocation4] sm:$0xff]  ;;  %v5295_v60 = vld [vmem:[#allocation4 + $0x8] sm:$0xff]  ;;  %v5296_v16 = vld [vmem:[#allocation4 + $0x10] sm:$0xff] }
 0x58b   : > { %v5310_v46 = vld [vmem:[#allocation4 + $0x80] sm:$0xff]  ;;  %v5311_v31 = vld [vmem:[#allocation4 + $0x88] sm:$0xff]  ;;  %v5326_v7 = vpack.c.bf16 %v5295_v60, %v5294_v38  ;;  %v5297_v27 = vld [vmem:[#allocation4 + $0x18] sm:$0xff] }
 0x58c   : > { %v5334_v24 = vpack.c.bf16 %v5311_v31, %v5310_v46  ;;  %v5312_v57 = vld [vmem:[#allocation4 + $0x90] sm:$0xff]  ;;  %v5313_v11 = vld [vmem:[#allocation4 + $0x98] sm:$0xff]  ;;  %v5327_v22 = vpack.c.bf16 %v5297_v27, %v5296_v16  ;;  %v5298_v23 = vld [vmem:[#allocation4 + $0x20] sm:$0xff] }
 0x58d   : > { %5452 = vmatmul.bf16.vlgmr.msra.gmra.mxu0 %v5326_v7  ;;  %5541 = vmatmul.bf16.vlgmr.msra.gmra.mxu1 %v5326_v7  ;;  %v5335_v29 = vpack.c.bf16 %v5313_v11, %v5312_v57  ;;  %v5299_v20 = vld [vmem:[#allocation4 + $0x28] sm:$0xff]  ;;  %v5314_v35 = vld [vmem:[#allocation4 + $0xa0] sm:$0xff]  ;;  %v5300_v36 = vld [vmem:[#allocation4 + $0x30] sm:$0xff] }
 0x58e   : > { %5492 = vmatmul.bf16.vlgmr.msra.gmra.mxu2 %v5334_v24  ;;  %5581 = vmatmul.bf16.vlgmr.msra.gmra.mxu3 %v5334_v24  ;;  %v5315_v25 = vld [vmem:[#allocation4 + $0xa8] sm:$0xff]  ;;  %v5328_v37 = vpack.c.bf16 %v5299_v20, %v5298_v23  ;;  %v5301_v33 = vld [vmem:[#allocation4 + $0x38] sm:$0xff]  ;;  %v5316_v15 = vld [vmem:[#allocation4 + $0xb0] sm:$0xff] }
 0x58f   : > { %v5336_v21 = vpack.c.bf16 %v5315_v25, %v5314_v35  ;;  %v5317_v39 = vld [vmem:[#allocation4 + $0xb8] sm:$0xff]  ;;  %v5329_v45 = vpack.c.bf16 %v5301_v33, %v5300_v36  ;;  %v5302_v49 = vld [vmem:[#allocation4 + $0x40] sm:$0xff]  ;;  %v5303_v56 = vld [vmem:[#allocation4 + $0x48] sm:$0xff] }
 0x590   : > { %v5337_v48 = vpack.c.bf16 %v5317_v39, %v5316_v15  ;;  %v5318_v10 = vld [vmem:[#allocation4 + $0xc0] sm:$0xff]  ;;  %v5319_v50 = vld [vmem:[#allocation4 + $0xc8] sm:$0xff]  ;;  %v5330_v51 = vpack.c.bf16 %v5303_v56, %v5302_v49  ;;  %v5304_v43 = vld [vmem:[#allocation4 + $0x50] sm:$0xff] }
 0x591   : > { %v5338_v14 = vpack.c.bf16 %v5319_v50, %v5318_v10  ;;  %v5305_v54 = vld [vmem:[#allocation4 + $0x58] sm:$0xff]  ;;  %v5320_v58 = vld [vmem:[#allocation4 + $0xd0] sm:$0xff]  ;;  %v5306_v19 = vld [vmem:[#allocation4 + $0x60] sm:$0xff] }
 0x592   : > { %v5321_v12 = vld [vmem:[#allocation4 + $0xd8] sm:$0xff]  ;;  %v5331_v52 = vpack.c.bf16 %v5305_v54, %v5304_v43  ;;  %v5307_v32 = vld [vmem:[#allocation4 + $0x68] sm:$0xff]  ;;  %v5322_v61 = vld [vmem:[#allocation4 + $0xe0] sm:$0xff] }
 0x593   : > { %v5339_v53 = vpack.c.bf16 %v5321_v12, %v5320_v58  ;;  %v5323_v40 = vld [vmem:[#allocation4 + $0xe8] sm:$0xff]  ;;  %v5332_v62 = vpack.c.bf16 %v5307_v32, %v5306_v19  ;;  %v5308_v4 = vld [vmem:[#allocation4 + $0x70] sm:$0xff]  ;;  %v5309_v42 = vld [vmem:[#allocation4 + $0x78] sm:$0xff] }
 0x594   : > { %v5340_v0 = vpack.c.bf16 %v5323_v40, %v5322_v61  ;;  %v5324_v41 = vld [vmem:[#allocation4 + $0xf0] sm:$0xff]  ;;  %v5325_v5 = vld [vmem:[#allocation4 + $0xf8] sm:$0xff]  ;;  %v5333_v6 = vpack.c.bf16 %v5309_v42, %v5308_v4 }
 0x595   : > { %v5341_v63 = vpack.c.bf16 %v5325_v5, %v5324_v41 }
 0x59d   : > { %5457 = vmatmul.bf16.gmra.mxu0 %v5327_v22  ;;  %5546 = vmatmul.bf16.gmra.mxu1 %v5327_v22 }
 0x59e   : > { %5497 = vmatmul.bf16.gmra.mxu2 %v5335_v29  ;;  %5586 = vmatmul.bf16.gmra.mxu3 %v5335_v29 }
 0x5ad   : > { %5462 = vmatmul.bf16.gmra.mxu0 %v5328_v37  ;;  %5551 = vmatmul.bf16.gmra.mxu1 %v5328_v37 }
 0x5ae   : > { %5502 = vmatmul.bf16.gmra.mxu2 %v5336_v21  ;;  %5591 = vmatmul.bf16.gmra.mxu3 %v5336_v21 }
 0x5bd   : > { %5467 = vmatmul.bf16.gmra.mxu0 %v5329_v45  ;;  %5556 = vmatmul.bf16.gmra.mxu1 %v5329_v45 }
 0x5be   : > { %5507 = vmatmul.bf16.gmra.mxu2 %v5337_v48  ;;  %5596 = vmatmul.bf16.gmra.mxu3 %v5337_v48 }
 0x5cd   : > { %5472 = vmatmul.bf16.gmra.mxu0 %v5330_v51  ;;  %5561 = vmatmul.bf16.gmra.mxu1 %v5330_v51 }
 0x5ce   : > { %5512 = vmatmul.bf16.gmra.mxu2 %v5338_v14  ;;  %5601 = vmatmul.bf16.gmra.mxu3 %v5338_v14 }
 0x5dd   : > { %5477 = vmatmul.bf16.gmra.mxu0 %v5331_v52  ;;  %5566 = vmatmul.bf16.gmra.mxu1 %v5331_v52 }
 0x5de   : > { %5517 = vmatmul.bf16.gmra.mxu2 %v5339_v53  ;;  %5606 = vmatmul.bf16.gmra.mxu3 %v5339_v53 }
 0x5ed   : > { %5482 = vmatmul.bf16.gmra.mxu0 %v5332_v62  ;;  %5571 = vmatmul.bf16.gmra.mxu1 %v5332_v62 }
 0x5ee   : > { %5522 = vmatmul.bf16.gmra.mxu2 %v5340_v0  ;;  %5611 = vmatmul.bf16.gmra.mxu3 %v5340_v0 }
 0x5fd   : > { %5487 = vmatmul.bf16.gmra.mxu0 %v5333_v6  ;;  %5576 = vmatmul.bf16.gmra.mxu1 %v5333_v6 }
 0x5fe   : > { %5527 = vmatmul.bf16.gmra.mxu2 %v5341_v63  ;;  %5616 = vmatmul.bf16.gmra.mxu3 %v5341_v63 }
 0x60a   : > { %v5453_v55 = vpop.f32.mrf.mxu0  ;;  %v5542_v9 = vpop.f32.mrf.mxu1 }
 0x60b   : > { %v5454_v30 = vadd.f32 %v5453_v55, %v13201_v28  ;;  %v5543_v13 = vadd.f32 %v5542_v9, %v13203_v8 }
 0x60d   : > { %5622 = vst [vmem:[%s9352_s28] sm:$0xff] %v5454_v30 }
 0x60e   : > { %5623 = vst [vmem:[%s9352_s28 + $0x8] sm:$0xff] %v5543_v13 }
 0x611   : > { %v5493_v1 = vpop.f32.mrf.mxu2  ;;  %v5582_v47 = vpop.f32.mrf.mxu3 }
 0x612   : > { %v5494_v34 = vadd.f32 %v5493_v1, %v13201_v28  ;;  %v5583_v44 = vadd.f32 %v5582_v47, %v13203_v8  ;;  %v5455_v3 = vpop.f32.mrf.mxu0  ;;  %v5544_v17 = vpop.f32.mrf.mxu1 }
 0x613   : > { %v5456_v59 = vadd.f32 %v5455_v3, %v13201_v28  ;;  %v5545_v38 = vadd.f32 %v5544_v17, %v13203_v8 }
 0x614   : > { %5654 = vst [vmem:[%s9352_s28 + $0x100] sm:$0xff] %v5494_v34 }
 0x615   : > { %5655 = vst [vmem:[%s9352_s28 + $0x108] sm:$0xff] %v5583_v44 }
 0x616   : > { %5624 = vst [vmem:[%s9352_s28 + $0x10] sm:$0xff] %v5456_v59 }
 0x617   : > { %5625 = vst [vmem:[%s9352_s28 + $0x18] sm:$0xff] %v5545_v38 }
 0x619   : > { %v5495_v18 = vpop.f32.mrf.mxu2  ;;  %v5584_v46 = vpop.f32.mrf.mxu3 }
 0x61a   : > { %v5496_v60 = vadd.f32 %v5495_v18, %v13201_v28  ;;  %v5585_v31 = vadd.f32 %v5584_v46, %v13203_v8  ;;  %v5458_v2 = vpop.f32.mrf.mxu0  ;;  %v5547_v24 = vpop.f32.mrf.mxu1 }
 0x61b   : > { %v5459_v7 = vadd.f32 %v5458_v2, %v13201_v28  ;;  %v5548_v16 = vadd.f32 %v5547_v24, %v13203_v8 }
 0x61c   : > { %5656 = vst [vmem:[%s9352_s28 + $0x110] sm:$0xff] %v5496_v60 }
 0x61d   : > { %5657 = vst [vmem:[%s9352_s28 + $0x118] sm:$0xff] %v5585_v31 }
 0x61e   : > { %5626 = vst [vmem:[%s9352_s28 + $0x20] sm:$0xff] %v5459_v7 }
 0x61f   : > { %5627 = vst [vmem:[%s9352_s28 + $0x28] sm:$0xff] %v5548_v16 }
 0x621   : > { %v5498_v27 = vpop.f32.mrf.mxu2  ;;  %v5587_v11 = vpop.f32.mrf.mxu3 }
 0x622   : > { %v5499_v57 = vadd.f32 %v5498_v27, %v13201_v28  ;;  %v5588_v22 = vadd.f32 %v5587_v11, %v13203_v8  ;;  %v5460_v29 = vpop.f32.mrf.mxu0  ;;  %v5549_v20 = vpop.f32.mrf.mxu1 }
 0x623   : > { %v5461_v23 = vadd.f32 %v5460_v29, %v13201_v28  ;;  %v5550_v35 = vadd.f32 %v5549_v20, %v13203_v8 }
 0x624   : > { %5658 = vst [vmem:[%s9352_s28 + $0x120] sm:$0xff] %v5499_v57 }
 0x625   : > { %5659 = vst [vmem:[%s9352_s28 + $0x128] sm:$0xff] %v5588_v22 }
 0x626   : > { %5628 = vst [vmem:[%s9352_s28 + $0x30] sm:$0xff] %v5461_v23 }
 0x627   : > { %5629 = vst [vmem:[%s9352_s28 + $0x38] sm:$0xff] %v5550_v35 }
 0x629   : > { %v5500_v25 = vpop.f32.mrf.mxu2  ;;  %v5589_v21 = vpop.f32.mrf.mxu3 }
 0x62a   : > { %v5501_v37 = vadd.f32 %v5500_v25, %v13201_v28  ;;  %v5590_v36 = vadd.f32 %v5589_v21, %v13203_v8  ;;  %v5463_v33 = vpop.f32.mrf.mxu0  ;;  %v5552_v39 = vpop.f32.mrf.mxu1 }
 0x62b   : > { %v5464_v15 = vadd.f32 %v5463_v33, %v13201_v28  ;;  %v5553_v45 = vadd.f32 %v5552_v39, %v13203_v8 }
 0x62c   : > { %5660 = vst [vmem:[%s9352_s28 + $0x130] sm:$0xff] %v5501_v37 }
 0x62d   : > { %5661 = vst [vmem:[%s9352_s28 + $0x138] sm:$0xff] %v5590_v36 }
 0x62e   : > { %5630 = vst [vmem:[%s9352_s28 + $0x40] sm:$0xff] %v5464_v15 }
 0x62f   : > { %5631 = vst [vmem:[%s9352_s28 + $0x48] sm:$0xff] %v5553_v45 }
 0x631   : > { %v5503_v48 = vpop.f32.mrf.mxu2  ;;  %v5592_v56 = vpop.f32.mrf.mxu3 }
 0x632   : > { %v5504_v49 = vadd.f32 %v5503_v48, %v13201_v28  ;;  %v5593_v10 = vadd.f32 %v5592_v56, %v13203_v8  ;;  %v5465_v50 = vpop.f32.mrf.mxu0  ;;  %v5554_v14 = vpop.f32.mrf.mxu1 }
 0x633   : > { %v5466_v51 = vadd.f32 %v5465_v50, %v13201_v28  ;;  %v5555_v43 = vadd.f32 %v5554_v14, %v13203_v8 }
 0x634   : > { %5662 = vst [vmem:[%s9352_s28 + $0x140] sm:$0xff] %v5504_v49 }
 0x635   : > { %5663 = vst [vmem:[%s9352_s28 + $0x148] sm:$0xff] %v5593_v10 }
 0x636   : > { %5632 = vst [vmem:[%s9352_s28 + $0x50] sm:$0xff] %v5466_v51 }
 0x637   : > { %5633 = vst [vmem:[%s9352_s28 + $0x58] sm:$0xff] %v5555_v43 }
 0x639   : > { %v5505_v54 = vpop.f32.mrf.mxu2  ;;  %v5594_v12 = vpop.f32.mrf.mxu3 }
 0x63a   : > { %v5506_v58 = vadd.f32 %v5505_v54, %v13201_v28  ;;  %v5595_v52 = vadd.f32 %v5594_v12, %v13203_v8  ;;  %v5468_v53 = vpop.f32.mrf.mxu0  ;;  %v5557_v32 = vpop.f32.mrf.mxu1 }
 0x63b   : > { %v5469_v19 = vadd.f32 %v5468_v53, %v13201_v28  ;;  %v5558_v61 = vadd.f32 %v5557_v32, %v13203_v8 }
 0x63c   : > { %5664 = vst [vmem:[%s9352_s28 + $0x150] sm:$0xff] %v5506_v58 }
 0x63d   : > { %5665 = vst [vmem:[%s9352_s28 + $0x158] sm:$0xff] %v5595_v52 }
 0x63e   : > { %5634 = vst [vmem:[%s9352_s28 + $0x60] sm:$0xff] %v5469_v19 }
 0x63f   : > { %5635 = vst [vmem:[%s9352_s28 + $0x68] sm:$0xff] %v5558_v61 }
 0x641   : > { %v5508_v40 = vpop.f32.mrf.mxu2  ;;  %v5597_v0 = vpop.f32.mrf.mxu3 }
 0x642   : > { %v5509_v62 = vadd.f32 %v5508_v40, %v13201_v28  ;;  %v5598_v4 = vadd.f32 %v5597_v0, %v13203_v8  ;;  %v5470_v42 = vpop.f32.mrf.mxu0  ;;  %v5559_v5 = vpop.f32.mrf.mxu1 }
 0x643   : > { %v5471_v41 = vadd.f32 %v5470_v42, %v13201_v28  ;;  %v5560_v6 = vadd.f32 %v5559_v5, %v13203_v8 }
 0x644   : > { %5666 = vst [vmem:[%s9352_s28 + $0x160] sm:$0xff] %v5509_v62 }
 0x645   : > { %5667 = vst [vmem:[%s9352_s28 + $0x168] sm:$0xff] %v5598_v4 }
 0x646   : > { %5636 = vst [vmem:[%s9352_s28 + $0x70] sm:$0xff] %v5471_v41 }
 0x647   : > { %5637 = vst [vmem:[%s9352_s28 + $0x78] sm:$0xff] %v5560_v6 }
 0x649   : > { %v5510_v63 = vpop.f32.mrf.mxu2  ;;  %v5599_v55 = vpop.f32.mrf.mxu3 }
 0x64a   : > { %v5511_v26 = vadd.f32 %v5510_v63, %v13201_v28  ;;  %v5600_v30 = vadd.f32 %v5599_v55, %v13203_v8  ;;  %v5473_v9 = vpop.f32.mrf.mxu0  ;;  %v5562_v1 = vpop.f32.mrf.mxu1 }
 0x64b   : > { %v5474_v13 = vadd.f32 %v5473_v9, %v13201_v28  ;;  %v5563_v34 = vadd.f32 %v5562_v1, %v13203_v8 }
 0x64c   : > { %5668 = vst [vmem:[%s9352_s28 + $0x170] sm:$0xff] %v5511_v26 }
 0x64d   : > { %5669 = vst [vmem:[%s9352_s28 + $0x178] sm:$0xff] %v5600_v30 }
 0x64e   : > { %5638 = vst [vmem:[%s9352_s28 + $0x80] sm:$0xff] %v5474_v13 }
 0x64f   : > { %5639 = vst [vmem:[%s9352_s28 + $0x88] sm:$0xff] %v5563_v34 }
 0x651   : > { %v5513_v47 = vpop.f32.mrf.mxu2  ;;  %v5602_v3 = vpop.f32.mrf.mxu3 }
 0x652   : > { %v5514_v44 = vadd.f32 %v5513_v47, %v13201_v28  ;;  %v5603_v59 = vadd.f32 %v5602_v3, %v13203_v8  ;;  %v5475_v17 = vpop.f32.mrf.mxu0  ;;  %v5564_v18 = vpop.f32.mrf.mxu1 }
 0x653   : > { %v5476_v38 = vadd.f32 %v5475_v17, %v13201_v28  ;;  %v5565_v60 = vadd.f32 %v5564_v18, %v13203_v8 }
 0x654   : > { %5670 = vst [vmem:[%s9352_s28 + $0x180] sm:$0xff] %v5514_v44 }
 0x655   : > { %5671 = vst [vmem:[%s9352_s28 + $0x188] sm:$0xff] %v5603_v59 }
 0x656   : > { %5640 = vst [vmem:[%s9352_s28 + $0x90] sm:$0xff] %v5476_v38 }
 0x657   : > { %5641 = vst [vmem:[%s9352_s28 + $0x98] sm:$0xff] %v5565_v60 }
 0x659   : > { %v5515_v46 = vpop.f32.mrf.mxu2  ;;  %v5604_v2 = vpop.f32.mrf.mxu3 }
 0x65a   : > { %v5516_v31 = vadd.f32 %v5515_v46, %v13201_v28  ;;  %v5605_v7 = vadd.f32 %v5604_v2, %v13203_v8  ;;  %v5478_v24 = vpop.f32.mrf.mxu0  ;;  %v5567_v27 = vpop.f32.mrf.mxu1 }
 0x65b   : > { %v5479_v16 = vadd.f32 %v5478_v24, %v13201_v28  ;;  %v5568_v57 = vadd.f32 %v5567_v27, %v13203_v8 }
 0x65c   : > { %5672 = vst [vmem:[%s9352_s28 + $0x190] sm:$0xff] %v5516_v31 }
 0x65d   : > { %5673 = vst [vmem:[%s9352_s28 + $0x198] sm:$0xff] %v5605_v7 }
 0x65e   : > { %5642 = vst [vmem:[%s9352_s28 + $0xa0] sm:$0xff] %v5479_v16 }
 0x65f   : > { %5643 = vst [vmem:[%s9352_s28 + $0xa8] sm:$0xff] %v5568_v57 }
 0x661   : > { %v5518_v11 = vpop.f32.mrf.mxu2  ;;  %v5607_v29 = vpop.f32.mrf.mxu3 }
 0x662   : > { %v5519_v22 = vadd.f32 %v5518_v11, %v13201_v28  ;;  %v5608_v23 = vadd.f32 %v5607_v29, %v13203_v8  ;;  %v5480_v20 = vpop.f32.mrf.mxu0  ;;  %v5569_v25 = vpop.f32.mrf.mxu1 }
 0x663   : > { %v5481_v35 = vadd.f32 %v5480_v20, %v13201_v28  ;;  %v5570_v37 = vadd.f32 %v5569_v25, %v13203_v8 }
 0x664   : > { %5674 = vst [vmem:[%s9352_s28 + $0x1a0] sm:$0xff] %v5519_v22 }
 0x665   : > { %5675 = vst [vmem:[%s9352_s28 + $0x1a8] sm:$0xff] %v5608_v23 }
 0x666   : > { %5644 = vst [vmem:[%s9352_s28 + $0xb0] sm:$0xff] %v5481_v35 }
 0x667   : > { %5645 = vst [vmem:[%s9352_s28 + $0xb8] sm:$0xff] %v5570_v37 }
 0x669   : > { %v5520_v21 = vpop.f32.mrf.mxu2  ;;  %v5609_v33 = vpop.f32.mrf.mxu3 }
 0x66a   : > { %v5521_v36 = vadd.f32 %v5520_v21, %v13201_v28  ;;  %v5610_v15 = vadd.f32 %v5609_v33, %v13203_v8  ;;  %v5483_v39 = vpop.f32.mrf.mxu0  ;;  %v5572_v48 = vpop.f32.mrf.mxu1 }
 0x66b   : > { %v5484_v45 = vadd.f32 %v5483_v39, %v13201_v28  ;;  %v5573_v49 = vadd.f32 %v5572_v48, %v13203_v8 }
 0x66c   : > { %5676 = vst [vmem:[%s9352_s28 + $0x1b0] sm:$0xff] %v5521_v36 }
 0x66d   : > { %5677 = vst [vmem:[%s9352_s28 + $0x1b8] sm:$0xff] %v5610_v15 }
 0x66e   : > { %5646 = vst [vmem:[%s9352_s28 + $0xc0] sm:$0xff] %v5484_v45 }
 0x66f   : > { %5647 = vst [vmem:[%s9352_s28 + $0xc8] sm:$0xff] %v5573_v49 }
 0x671   : > { %v5523_v56 = vpop.f32.mrf.mxu2  ;;  %v5612_v50 = vpop.f32.mrf.mxu3 }
 0x672   : > { %v5524_v10 = vadd.f32 %v5523_v56, %v13201_v28  ;;  %v5613_v51 = vadd.f32 %v5612_v50, %v13203_v8  ;;  %v5485_v14 = vpop.f32.mrf.mxu0  ;;  %v5574_v54 = vpop.f32.mrf.mxu1 }
 0x673   : > { %v5486_v43 = vadd.f32 %v5485_v14, %v13201_v28  ;;  %v5575_v58 = vadd.f32 %v5574_v54, %v13203_v8 }
 0x674   : > { %5678 = vst [vmem:[%s9352_s28 + $0x1c0] sm:$0xff] %v5524_v10 }
 0x675   : > { %5679 = vst [vmem:[%s9352_s28 + $0x1c8] sm:$0xff] %v5613_v51 }
 0x676   : > { %5648 = vst [vmem:[%s9352_s28 + $0xd0] sm:$0xff] %v5486_v43 }
 0x677   : > { %5649 = vst [vmem:[%s9352_s28 + $0xd8] sm:$0xff] %v5575_v58 }
 0x679   : > { %v5525_v12 = vpop.f32.mrf.mxu2  ;;  %v5614_v53 = vpop.f32.mrf.mxu3 }
 0x67a   : > { %v5526_v52 = vadd.f32 %v5525_v12, %v13201_v28  ;;  %v5615_v19 = vadd.f32 %v5614_v53, %v13203_v8  ;;  %v5488_v32 = vpop.f32.mrf.mxu0  ;;  %v5577_v40 = vpop.f32.mrf.mxu1 }
 0x67b   : > { %v5489_v61 = vadd.f32 %v5488_v32, %v13201_v28  ;;  %v5578_v62 = vadd.f32 %v5577_v40, %v13203_v8 }
 0x67c   : > { %5680 = vst [vmem:[%s9352_s28 + $0x1d0] sm:$0xff] %v5526_v52 }
 0x67d   : > { %5681 = vst [vmem:[%s9352_s28 + $0x1d8] sm:$0xff] %v5615_v19 }
 0x67e   : > { %5650 = vst [vmem:[%s9352_s28 + $0xe0] sm:$0xff] %v5489_v61 }
 0x67f   : > { %5651 = vst [vmem:[%s9352_s28 + $0xe8] sm:$0xff] %v5578_v62 }
 0x681   : > { %v5528_v0 = vpop.f32.mrf.mxu2  ;;  %v5617_v42 = vpop.f32.mrf.mxu3 }
 0x682   : > { %v5529_v4 = vadd.f32 %v5528_v0, %v13201_v28  ;;  %v5618_v41 = vadd.f32 %v5617_v42, %v13203_v8  ;;  %v5490_v5 = vpop.f32.mrf.mxu0  ;;  %v5579_v63 = vpop.f32.mrf.mxu1 }
 0x683   : > { %v5491_v6 = vadd.f32 %v5490_v5, %v13201_v28  ;;  %v5580_v26 = vadd.f32 %v5579_v63, %v13203_v8 }
 0x684   : > { %5682 = vst [vmem:[%s9352_s28 + $0x1e0] sm:$0xff] %v5529_v4 }
 0x685   : > { %5683 = vst [vmem:[%s9352_s28 + $0x1e8] sm:$0xff] %v5618_v41 }
 0x686   : > { %5652 = vst [vmem:[%s9352_s28 + $0xf0] sm:$0xff] %v5491_v6 }
 0x687   : > { %5653 = vst [vmem:[%s9352_s28 + $0xf8] sm:$0xff] %v5580_v26 }
 0x689   : > { %v5530_v55 = vpop.f32.mrf.mxu2  ;;  %v5619_v9 = vpop.f32.mrf.mxu3 }
 0x68a   : > { %v5531_v30 = vadd.f32 %v5530_v55, %v13201_v28  ;;  %v5620_v13 = vadd.f32 %v5619_v9, %v13203_v8 }
 0x68c   : > { %5684 = vst [vmem:[%s9352_s28 + $0x1f0] sm:$0xff] %v5531_v30 }
 0x68d   : > { %5685 = vst [vmem:[%s9352_s28 + $0x1f8] sm:$0xff] %v5620_v13 }
 0x68e   : > { %9196 = shalt.err (!%p9193_p7)
}
 0x68f   : > { %s9243_s28 = smov 256   ;;  %s9244_s11 = smov 16  }
 0x690   : > { %8997 = dma.vmem_to_hbm [thread:$0]  (%p9333_p5), %s5701_s13, 8192, %s5703_s14, %s5687_s25, %s9243_s28, %s9243_s28, %s9244_s11  }
 0x691 PF: > { %p9003_p8 = scmp.ge.s32.totalorder %s9235_s12, 2  ;;  %s5717_s22 = sand.u32 1, %s9223_s30  }
 0x692   : > { %s5718_s27 = scalar_lea.sflag [#allocation6], %s5717_s22 }
 0x693   : > { %p9000_p9 = pnand %p9003_p8, %p9337_p6 }
 0x695   : > { %p9001_p10 = pneg %p9000_p9 }
 0x697   : > { %9218 = dma.done.wait (%p9001_p10), %s5718_s27, 8192  }
 0x698   : > { %9220 = vsyncadd (%p9001_p10), %s5718_s27, 4294959104  ;;  %s13398_s23 = sld [smem:[#allocation8_spill]]  ;;  %p19_p11 = scmp.ge.s32.totalorder %s9320_s15, 4  }
 0x699   : > { %s13399_s11 = sld [smem:[#allocation9_spill]]  ;;  %s13400_s30 = smov %s9227_s10 }
 0x69a   : > { %s13402_s12 = smov %s9320_s15  ;;  %21 = sbr.rel (!%p19_p11) target bundleno = 5 (0x5), region = 128 }
 0x69e   : > { %s13401_s10 = smov %s13398_s23 }
 0x69f   :  { %5724 = vsyncpa [#allocation6], 1 }
 0x6a0   :  { %5726 = vsyncpa [#allocation6 + $0x1], 1 }

</bundles_post_ra>
